<compile_context>
chip_gen: v6e
topology: v6e:2x2x1
jax: 0.10.0
libtpu: 0.0.40
codegen_flags: <defaults>
</compile_context>

<pallas_src>
import math

import numpy as np
import jax
import jax.numpy as jnp
from jax.experimental import pallas as pl
from jax.experimental.pallas import tpu as pltpu

_BN_EPS = 1e-5
_LANE = 128
_VMEM_LIMIT = 32 * 1024 * 1024


def _round_up(x, m):
    return (x + m - 1) // m * m


# ---------------------------------------------------------------------------
# Fused conv3x3 + BN + ReLU + maxpool2x2 (+ optional global avg pool) kernel
# ---------------------------------------------------------------------------
def _make_conv_kernel(H, W, Cinp, Coutp, global_pool):
    """One image per grid step.

    The image arrives as zero-padded rows flattened to (>= Hp*Wp, Cinp) with
    Hp = H+2, Wp = W+2.  Conv output row r corresponds to (h, w) = (r // Wp,
    r % Wp); tap (dh, dw) of the 3x3 kernel reads input row r + dh*Wp + dw, so
    the conv is 9 shifted contiguous matmuls.  Columns w in [W, Wp) of each
    image row are junk and are never selected by the pooling gather matrix.
    """
    Wp = W + 2
    Mrows = H * Wp
    Lsel = Mrows - Wp - 1          # rows for which the 2x2 window max exists
    Hh, Wh = H // 2, W // 2
    n_pool = Hh * Wh

    def kernel(x_ref, w_ref, scale_ref, shift_ref, sel_ref, o_ref, acc_ref):
        # --- 3x3 conv: 9 shifted bf16 MXU matmuls, f32 accumulation ---------
        for k in range(9):
            dh, dw = divmod(k, 3)
            xs = x_ref[pl.ds(dh * Wp + dw, Mrows), :]          # (Mrows, Cinp)
            contrib = jnp.dot(xs, w_ref[k],
                              preferred_element_type=jnp.float32)
            if k == 0:
                acc_ref[...] = contrib
            else:
                acc_ref[...] += contrib

        # --- folded BatchNorm affine + ReLU epilogue (f32) ------------------
        acc_ref[...] = jnp.maximum(
            acc_ref[...] * scale_ref[...] + shift_ref[...], 0.0)

        # --- fused 2x2 max-pool ---------------------------------------------
        # elementwise max of the four window corners (row offsets 0,1,Wp,Wp+1)
        m = jnp.maximum(
            jnp.maximum(acc_ref[pl.ds(0, Lsel), :],
                        acc_ref[pl.ds(1, Lsel), :]),
            jnp.maximum(acc_ref[pl.ds(Wp, Lsel), :],
                        acc_ref[pl.ds(Wp + 1, Lsel), :]))
        # ... then gather the (even-h, even-w) rows with a constant one-hot
        # matrix (an MXU "gather" -- avoids sublane shuffles / reshapes).
        pooled = jnp.dot(sel_ref[...], m,
                         preferred_element_type=jnp.float32)   # (n_pool, Coutp)

        if global_pool:
            o_ref[...] = (jnp.sum(pooled, axis=0, keepdims=True)
                          * (1.0 / n_pool)).astype(o_ref.dtype)
        else:
            o_ref[...] = pooled.astype(o_ref.dtype)

    return kernel


def conv_bn_relu_pool(x_flat, w, scale, shift, sel, *, H, W, Cinp, Coutp,
                      global_pool=False):
    """x_flat: (B, Mpad, Cinp) bf16, flattened zero-padded NHWC rows."""
    assert H % 2 == 0 and W % 2 == 0
    B, Mpad, _ = x_flat.shape
    Wp = W + 2
    Mrows = H * Wp
    Hh, Wh = H // 2, W // 2
    n_pool = Hh * Wh
    Lsel = Mrows - Wp - 1

    if global_pool:
        out_shape = jax.ShapeDtypeStruct((B, 1, Coutp), jnp.float32)
        out_spec = pl.BlockSpec((None, 1, Coutp), lambda b: (b, 0, 0))
        out_bytes = B * Coutp * 4
    else:
        out_shape = jax.ShapeDtypeStruct((B, n_pool, Coutp), jnp.bfloat16)
        out_spec = pl.BlockSpec((None, n_pool, Coutp), lambda b: (b, 0, 0))
        out_bytes = B * n_pool * Coutp * 2

    flops = 2 * B * (9 * Mrows * Cinp * Coutp + n_pool * Lsel * Coutp)
    bytes_accessed = int(x_flat.size * 2 + w.size * 2 + sel.size * 4
                         + scale.size * 4 + shift.size * 4 + out_bytes)

    return pl.pallas_call(
        _make_conv_kernel(H, W, Cinp, Coutp, global_pool),
        out_shape=out_shape,
        grid=(B,),                      # one image / step; sharded on megacore
        in_specs=[
            pl.BlockSpec((None, Mpad, Cinp), lambda b: (b, 0, 0)),
            pl.BlockSpec((9, Cinp, Coutp), lambda b: (0, 0, 0)),   # resident
            pl.BlockSpec((1, Coutp), lambda b: (0, 0)),            # resident
            pl.BlockSpec((1, Coutp), lambda b: (0, 0)),            # resident
            pl.BlockSpec((n_pool, Lsel), lambda b: (0, 0)),        # resident
        ],
        out_specs=out_spec,
        scratch_shapes=[pltpu.VMEM((Mrows, Coutp), jnp.float32)],
        compiler_params=pltpu.CompilerParams(
            dimension_semantics=("parallel",),
            vmem_limit_bytes=_VMEM_LIMIT),
        cost_estimate=pl.CostEstimate(flops=flops, transcendentals=0,
                                      bytes_accessed=bytes_accessed),
    )(x_flat, w, scale, shift, sel)


# ---------------------------------------------------------------------------
# Fully fused MLP head: 256 -> 300 -> 100 -> 50 -> n_params*7 (+ sigmoid)
# ---------------------------------------------------------------------------
def _mlp_kernel(x_ref, w1_ref, s1_ref, t1_ref, w2_ref, s2_ref, t2_ref,
                w3_ref, s3_ref, t3_ref, w4_ref, b4_ref, o_ref):
    # Whole head in one kernel: weights stay VMEM-resident, activations never
    # leave VMEM.  Matmuls run in bf16 on the MXU, epilogues in f32.
    h = x_ref[...].astype(jnp.bfloat16)
    h = jnp.dot(h, w1_ref[...], preferred_element_type=jnp.float32)
    h = jnp.maximum(h * s1_ref[...] + t1_ref[...], 0.0)
    h = jnp.dot(h.astype(jnp.bfloat16), w2_ref[...],
                preferred_element_type=jnp.float32)
    h = jnp.maximum(h * s2_ref[...] + t2_ref[...], 0.0)
    h = jnp.dot(h.astype(jnp.bfloat16), w3_ref[...],
                preferred_element_type=jnp.float32)
    h = jnp.maximum(h * s3_ref[...] + t3_ref[...], 0.0)
    z = jnp.dot(h.astype(jnp.bfloat16), w4_ref[...],
                preferred_element_type=jnp.float32) + b4_ref[...]
    # split(4)/sigmoid/cat over the last axis == elementwise sigmoid.
    o_ref[...] = 1.0 / (1.0 + jnp.exp(-z))


def mlp_head(mlp_params, feat):
    layers, (w4, b4) = mlp_params
    (w1, s1, t1), (w2, s2, t2), (w3, s3, t3) = layers
    B, Fin = feat.shape
    Bp = _round_up(max(B, 8), 8)
    tb = Bp if Bp <= 256 else 256
    Bp = _round_up(Bp, tb)
    x = jnp.pad(feat, ((0, Bp - B), (0, 0)))
    Nout = w4.shape[1]

    def const(a):
        return pl.BlockSpec(a.shape, lambda i: (0, 0))

    flops = 2 * Bp * (w1.shape[0] * w1.shape[1] + w2.shape[0] * w2.shape[1]
                      + w3.shape[0] * w3.shape[1] + w4.shape[0] * w4.shape[1])
    bytes_accessed = int(x.size * 4 + Bp * Nout * 4
                         + sum(int(a.size) * a.dtype.itemsize
                               for a in (w1, s1, t1, w2, s2, t2,
                                         w3, s3, t3, w4, b4)))

    return pl.pallas_call(
        _mlp_kernel,
        out_shape=jax.ShapeDtypeStruct((Bp, Nout), jnp.float32),
        grid=(Bp // tb,),
        in_specs=[pl.BlockSpec((tb, Fin), lambda i: (i, 0)),
                  const(w1), const(s1), const(t1),
                  const(w2), const(s2), const(t2),
                  const(w3), const(s3), const(t3),
                  const(w4), const(b4)],
        out_specs=pl.BlockSpec((tb, Nout), lambda i: (i, 0)),
        compiler_params=pltpu.CompilerParams(
            dimension_semantics=("parallel",),
            vmem_limit_bytes=_VMEM_LIMIT),
        cost_estimate=pl.CostEstimate(flops=flops, transcendentals=Bp * Nout,
                                      bytes_accessed=bytes_accessed),
    )(x, w1, s1, t1, w2, s2, t2, w3, s3, t3, w4, b4)


# ---------------------------------------------------------------------------
# JAX-side glue (cheap layout prep; no data expansion)
# ---------------------------------------------------------------------------
def _prep_conv_input(x_nhwc, cinp):
    """Zero-pad H/W by 1, pad channels to `cinp`, flatten rows, pad tail."""
    B, H, W, C = x_nhwc.shape
    Hp, Wp = H + 2, W + 2
    x = jnp.pad(x_nhwc, ((0, 0), (1, 1), (1, 1), (0, cinp - C)))
    x = x.reshape(B, Hp * Wp, cinp)
    rows = _round_up(Hp * Wp + 2, 8)      # +2 so the (dh=2, dw=2) slice fits
    x = jnp.pad(x, ((0, 0), (0, rows - Hp * Wp), (0, 0)))
    return x.astype(jnp.bfloat16)


def _pool_select_matrix(H, W):
    """One-hot matrix gathering the (even-h, even-w) rows of the window max."""
    Wp = W + 2
    Lsel = H * Wp - Wp - 1
    Hh, Wh = H // 2, W // 2
    sel = np.zeros((Hh * Wh, Lsel), np.float32)
    for hp in range(Hh):
        for wp in range(Wh):
            sel[hp * Wh + wp, 2 * hp * Wp + 2 * wp] = 1.0
    return jnp.asarray(sel)


# ---------------------------------------------------------------------------
# Parameter initialization (PyTorch-style uniform init, eval-mode BN folding)
# ---------------------------------------------------------------------------
def _uniform(key, shape, bound):
    return jax.random.uniform(key, shape, jnp.float32, -bound, bound)


def _fold_bn(bias, gamma, beta, mean, var):
    # BN(z + bias) = gamma * (z + bias - mean) / sqrt(var+eps) + beta
    #              = scale * z + shift
    scale = gamma / jnp.sqrt(var + _BN_EPS)
    shift = (bias - mean) * scale + beta
    return scale, shift


def init_detection_network(key, input_channels, n_params):
    keys = jax.random.split(key, 14)
    params = {"convs": [], "mlp": None}
    ki = 0

    # Assumed backbone convs: Cin -> 64 -> 128 -> 256 (3x3, pad 1) + BN + ReLU.
    for cin, cout in [(input_channels, 64), (64, 128), (128, 256)]:
        cinp, coutp = _round_up(cin, _LANE), _round_up(cout, _LANE)
        bound = 1.0 / math.sqrt(9 * cin)
        w = _uniform(keys[ki], (3, 3, cin, cout), bound); ki += 1
        b = _uniform(keys[ki], (cout,), bound); ki += 1
        ones, zeros = jnp.ones((cout,), jnp.float32), jnp.zeros((cout,), jnp.float32)
        scale, shift = _fold_bn(b, ones, zeros, zeros, ones)
        w_p = jnp.zeros((3, 3, cinp, coutp), jnp.float32).at[:, :, :cin, :cout].set(w)
        params["convs"].append(dict(
            w=w_p.reshape(9, cinp, coutp).astype(jnp.bfloat16),
            scale=jnp.zeros((1, coutp), jnp.float32).at[0, :cout].set(scale),
            shift=jnp.zeros((1, coutp), jnp.float32).at[0, :cout].set(shift)))

    # outLayer MLP: 256 -> 300 -> 100 -> 50 (+BN+ReLU) -> n_params*7, padded to
    # lane-dense widths 384 / 128 / 128 / 128 with zero weights.
    dims = [256, 300, 100, 50, n_params * 7]
    pads = [256, 384, 128, 128, 128]
    layers = []
    for li in range(3):
        fin, fout = dims[li], dims[li + 1]
        finp, foutp = pads[li], pads[li + 1]
        bound = 1.0 / math.sqrt(fin)
        w = _uniform(keys[ki], (fin, fout), bound); ki += 1
        b = _uniform(keys[ki], (fout,), bound); ki += 1
        ones, zeros = jnp.ones((fout,), jnp.float32), jnp.zeros((fout,), jnp.float32)
        scale, shift = _fold_bn(b, ones, zeros, zeros, ones)
        layers.append((
            jnp.zeros((finp, foutp), jnp.float32).at[:fin, :fout].set(w).astype(jnp.bfloat16),
            jnp.zeros((1, foutp), jnp.float32).at[0, :fout].set(scale),
            jnp.zeros((1, foutp), jnp.float32).at[0, :fout].set(shift)))
    fin, fout = dims[3], dims[4]
    finp, foutp = pads[3], pads[4]
    bound = 1.0 / math.sqrt(fin)
    w = _uniform(keys[ki], (fin, fout), bound); ki += 1
    b = _uniform(keys[ki], (fout,), bound); ki += 1
    w4 = jnp.zeros((finp, foutp), jnp.float32).at[:fin, :fout].set(w).astype(jnp.bfloat16)
    b4 = jnp.zeros((1, foutp), jnp.float32).at[0, :fout].set(b)
    params["mlp"] = (layers, (w4, b4))
    return params


# ---------------------------------------------------------------------------
# Forward pass
# ---------------------------------------------------------------------------
def detection_network_forward(params, x_nchw, n_params):
    B = x_nchw.shape[0]
    x = jnp.transpose(x_nchw, (0, 2, 3, 1)).astype(jnp.float32)    # NCHW->NHWC

    n_conv = len(params["convs"])
    feat = None
    for li, layer in enumerate(params["convs"]):
        H, W = x.shape[1], x.shape[2]
        cinp, coutp = layer["w"].shape[1], layer["w"].shape[2]
        xf = _prep_conv_input(x, cinp)
        sel = _pool_select_matrix(H, W)
        last = li == n_conv - 1
        y = conv_bn_relu_pool(xf, layer["w"], layer["scale"], layer["shift"],
                              sel, H=H, W=W, Cinp=cinp, Coutp=coutp,
                              global_pool=last)
        if last:
            feat = y[:, 0, :]                                      # (B, 256) f32
        else:
            x = y.reshape(B, H // 2, W // 2, coutp)                # bf16 NHWC

    out = mlp_head(params["mlp"], feat)                            # (Bp, 128) f32
    logits = out[:B, :n_params * 7]
    # module hard-codes reshape to (B, 3, 7); split/sigmoid/cat already fused.
    return logits.reshape(B, 3, 7)


# ---------------------------------------------------------------------------
if __name__ == "__main__":
    input_channels = 4
    n_params = 3            # forward reshapes to (B, 3, 7) => n_params == 3
    batch, spatial = 2, 16

    key = jax.random.PRNGKey(0)
    k_param, k_x = jax.random.split(key)

    params = init_detection_network(k_param, input_channels, n_params)
    x = jax.random.normal(k_x, (batch, input_channels, spatial, spatial),
                          dtype=jnp.float32)

    fwd = jax.jit(lambda p, xx: detection_network_forward(p, xx, n_params))
    out = fwd(params, x)
    jax.block_until_ready(out)

    assert out.shape == (batch, 3, 7), out.shape
    assert bool(jnp.all((out >= 0.0) & (out <= 1.0)))   # sigmoid output range
    print("KERNEL_OK")
</pallas_src>

<mosaic_0001>
module attributes {stable_mosaic.version = 11 : i64} {
  func.func @kernel(%arg0: i32, %arg1: memref<1x328x128xbf16, #tpu.memory_space<vmem>>, %arg2: memref<9x128x128xbf16, #tpu.memory_space<vmem>>, %arg3: memref<1x128xf32, #tpu.memory_space<vmem>>, %arg4: memref<1x128xf32, #tpu.memory_space<vmem>>, %arg5: memref<64x269xf32, #tpu.memory_space<vmem>>, %arg6: memref<1x64x128xbf16, #tpu.memory_space<vmem>>, %arg7: memref<288x128xf32, #tpu.memory_space<vmem>>) attributes {dimension_semantics = [#tpu.dimension_semantics<parallel>], iteration_bounds = array<i64: 2>, scalar_prefetch = 0 : i64, scratch_operands = 1 : i64, tpu.core_type = #tpu.core_type<tc>, window_params = [{transform_indices = @transform_0, window_bounds = array<i64: 1, 328, 128>}, {pipeline_mode = #tpu.pipeline_mode<synchronous>, transform_indices = @transform_1, window_bounds = array<i64: 9, 128, 128>}, {pipeline_mode = #tpu.pipeline_mode<synchronous>, transform_indices = @transform_2, window_bounds = array<i64: 1, 128>}, {pipeline_mode = #tpu.pipeline_mode<synchronous>, transform_indices = @transform_3, window_bounds = array<i64: 1, 128>}, {pipeline_mode = #tpu.pipeline_mode<synchronous>, transform_indices = @transform_4, window_bounds = array<i64: 64, 269>}, {transform_indices = @transform_5, window_bounds = array<i64: 1, 64, 128>}]} {
    %c0 = arith.constant 0 : index
    %c0_0 = arith.constant 0 : index
    %c0_1 = arith.constant 0 : index
    %0 = vector.load %arg1[%c0, %c0_0, %c0_1] : memref<1x328x128xbf16, #tpu.memory_space<vmem>>, vector<1x288x128xbf16>
    %1 = vector.shape_cast %0 : vector<1x288x128xbf16> to vector<288x128xbf16>
    %c0_2 = arith.constant 0 : index
    %c0_3 = arith.constant 0 : index
    %c0_4 = arith.constant 0 : index
    %2 = vector.load %arg2[%c0_2, %c0_3, %c0_4] : memref<9x128x128xbf16, #tpu.memory_space<vmem>>, vector<1x128x128xbf16>
    %3 = vector.shape_cast %2 : vector<1x128x128xbf16> to vector<128x128xbf16>
    %cst = arith.constant dense<0.000000e+00> : vector<288x128xf32>
    %4 = tpu.matmul %1, %3, %cst {dimension_numbers = #tpu.dot_dimension_numbers<[1], [0], [0], [1], [0, 0, 1, 1], [], []>} : vector<288x128xbf16>, vector<128x128xbf16>, vector<288x128xf32> -> vector<288x128xf32>
    %c0_5 = arith.constant 0 : index
    %c0_6 = arith.constant 0 : index
    %5 = vector.load %arg7[%c0_5, %c0_6] : memref<288x128xf32, #tpu.memory_space<vmem>>, vector<288x128xf32>
    tpu.vector_store %arg7[%c0_5, %c0_6], %4 {strides = array<i32>} : memref<288x128xf32, #tpu.memory_space<vmem>>, vector<288x128xf32>,
    %c0_7 = arith.constant 0 : index
    %c1 = arith.constant 1 : index
    %c0_8 = arith.constant 0 : index
    %6 = vector.load %arg1[%c0_7, %c1, %c0_8] : memref<1x328x128xbf16, #tpu.memory_space<vmem>>, vector<1x288x128xbf16>
    %7 = vector.shape_cast %6 : vector<1x288x128xbf16> to vector<288x128xbf16>
    %c1_9 = arith.constant 1 : index
    %c0_10 = arith.constant 0 : index
    %c0_11 = arith.constant 0 : index
    %8 = vector.load %arg2[%c1_9, %c0_10, %c0_11] : memref<9x128x128xbf16, #tpu.memory_space<vmem>>, vector<1x128x128xbf16>
    %9 = vector.shape_cast %8 : vector<1x128x128xbf16> to vector<128x128xbf16>
    %cst_12 = arith.constant dense<0.000000e+00> : vector<288x128xf32>
    %10 = tpu.matmul %7, %9, %cst_12 {dimension_numbers = #tpu.dot_dimension_numbers<[1], [0], [0], [1], [0, 0, 1, 1], [], []>} : vector<288x128xbf16>, vector<128x128xbf16>, vector<288x128xf32> -> vector<288x128xf32>
    %c0_13 = arith.constant 0 : index
    %c0_14 = arith.constant 0 : index
    %11 = vector.load %arg7[%c0_13, %c0_14] : memref<288x128xf32, #tpu.memory_space<vmem>>, vector<288x128xf32>
    %12 = arith.addf %11, %10 : vector<288x128xf32>
    %c0_15 = arith.constant 0 : index
    %c0_16 = arith.constant 0 : index
    %13 = vector.load %arg7[%c0_15, %c0_16] : memref<288x128xf32, #tpu.memory_space<vmem>>, vector<288x128xf32>
    tpu.vector_store %arg7[%c0_15, %c0_16], %12 {strides = array<i32>} : memref<288x128xf32, #tpu.memory_space<vmem>>, vector<288x128xf32>,
    %c0_17 = arith.constant 0 : index
    %c2 = arith.constant 2 : index
    %c0_18 = arith.constant 0 : index
    %14 = vector.load %arg1[%c0_17, %c2, %c0_18] : memref<1x328x128xbf16, #tpu.memory_space<vmem>>, vector<1x288x128xbf16>
    %15 = vector.shape_cast %14 : vector<1x288x128xbf16> to vector<288x128xbf16>
    %c2_19 = arith.constant 2 : index
    %c0_20 = arith.constant 0 : index
    %c0_21 = arith.constant 0 : index
    %16 = vector.load %arg2[%c2_19, %c0_20, %c0_21] : memref<9x128x128xbf16, #tpu.memory_space<vmem>>, vector<1x128x128xbf16>
    %17 = vector.shape_cast %16 : vector<1x128x128xbf16> to vector<128x128xbf16>
    %cst_22 = arith.constant dense<0.000000e+00> : vector<288x128xf32>
    %18 = tpu.matmul %15, %17, %cst_22 {dimension_numbers = #tpu.dot_dimension_numbers<[1], [0], [0], [1], [0, 0, 1, 1], [], []>} : vector<288x128xbf16>, vector<128x128xbf16>, vector<288x128xf32> -> vector<288x128xf32>
    %c0_23 = arith.constant 0 : index
    %c0_24 = arith.constant 0 : index
    %19 = vector.load %arg7[%c0_23, %c0_24] : memref<288x128xf32, #tpu.memory_space<vmem>>, vector<288x128xf32>
    %20 = arith.addf %19, %18 : vector<288x128xf32>
    %c0_25 = arith.constant 0 : index
    %c0_26 = arith.constant 0 : index
    %21 = vector.load %arg7[%c0_25, %c0_26] : memref<288x128xf32, #tpu.memory_space<vmem>>, vector<288x128xf32>
    tpu.vector_store %arg7[%c0_25, %c0_26], %20 {strides = array<i32>} : memref<288x128xf32, #tpu.memory_space<vmem>>, vector<288x128xf32>,
    %c0_27 = arith.constant 0 : index
    %c18 = arith.constant 18 : index
    %c0_28 = arith.constant 0 : index
    %22 = vector.load %arg1[%c0_27, %c18, %c0_28] : memref<1x328x128xbf16, #tpu.memory_space<vmem>>, vector<1x288x128xbf16>
    %23 = vector.shape_cast %22 : vector<1x288x128xbf16> to vector<288x128xbf16>
    %c3 = arith.constant 3 : index
    %c0_29 = arith.constant 0 : index
    %c0_30 = arith.constant 0 : index
    %24 = vector.load %arg2[%c3, %c0_29, %c0_30] : memref<9x128x128xbf16, #tpu.memory_space<vmem>>, vector<1x128x128xbf16>
    %25 = vector.shape_cast %24 : vector<1x128x128xbf16> to vector<128x128xbf16>
    %cst_31 = arith.constant dense<0.000000e+00> : vector<288x128xf32>
    %26 = tpu.matmul %23, %25, %cst_31 {dimension_numbers = #tpu.dot_dimension_numbers<[1], [0], [0], [1], [0, 0, 1, 1], [], []>} : vector<288x128xbf16>, vector<128x128xbf16>, vector<288x128xf32> -> vector<288x128xf32>
    %c0_32 = arith.constant 0 : index
    %c0_33 = arith.constant 0 : index
    %27 = vector.load %arg7[%c0_32, %c0_33] : memref<288x128xf32, #tpu.memory_space<vmem>>, vector<288x128xf32>
    %28 = arith.addf %27, %26 : vector<288x128xf32>
    %c0_34 = arith.constant 0 : index
    %c0_35 = arith.constant 0 : index
    %29 = vector.load %arg7[%c0_34, %c0_35] : memref<288x128xf32, #tpu.memory_space<vmem>>, vector<288x128xf32>
    tpu.vector_store %arg7[%c0_34, %c0_35], %28 {strides = array<i32>} : memref<288x128xf32, #tpu.memory_space<vmem>>, vector<288x128xf32>,
    %c0_36 = arith.constant 0 : index
    %c19 = arith.constant 19 : index
    %c0_37 = arith.constant 0 : index
    %30 = vector.load %arg1[%c0_36, %c19, %c0_37] : memref<1x328x128xbf16, #tpu.memory_space<vmem>>, vector<1x288x128xbf16>
    %31 = vector.shape_cast %30 : vector<1x288x128xbf16> to vector<288x128xbf16>
    %c4 = arith.constant 4 : index
    %c0_38 = arith.constant 0 : index
    %c0_39 = arith.constant 0 : index
    %32 = vector.load %arg2[%c4, %c0_38, %c0_39] : memref<9x128x128xbf16, #tpu.memory_space<vmem>>, vector<1x128x128xbf16>
    %33 = vector.shape_cast %32 : vector<1x128x128xbf16> to vector<128x128xbf16>
    %cst_40 = arith.constant dense<0.000000e+00> : vector<288x128xf32>
    %34 = tpu.matmul %31, %33, %cst_40 {dimension_numbers = #tpu.dot_dimension_numbers<[1], [0], [0], [1], [0, 0, 1, 1], [], []>} : vector<288x128xbf16>, vector<128x128xbf16>, vector<288x128xf32> -> vector<288x128xf32>
    %c0_41 = arith.constant 0 : index
    %c0_42 = arith.constant 0 : index
    %35 = vector.load %arg7[%c0_41, %c0_42] : memref<288x128xf32, #tpu.memory_space<vmem>>, vector<288x128xf32>
    %36 = arith.addf %35, %34 : vector<288x128xf32>
    %c0_43 = arith.constant 0 : index
    %c0_44 = arith.constant 0 : index
    %37 = vector.load %arg7[%c0_43, %c0_44] : memref<288x128xf32, #tpu.memory_space<vmem>>, vector<288x128xf32>
    tpu.vector_store %arg7[%c0_43, %c0_44], %36 {strides = array<i32>} : memref<288x128xf32, #tpu.memory_space<vmem>>, vector<288x128xf32>,
    %c0_45 = arith.constant 0 : index
    %c20 = arith.constant 20 : index
    %c0_46 = arith.constant 0 : index
    %38 = vector.load %arg1[%c0_45, %c20, %c0_46] : memref<1x328x128xbf16, #tpu.memory_space<vmem>>, vector<1x288x128xbf16>
    %39 = vector.shape_cast %38 : vector<1x288x128xbf16> to vector<288x128xbf16>
    %c5 = arith.constant 5 : index
    %c0_47 = arith.constant 0 : index
    %c0_48 = arith.constant 0 : index
    %40 = vector.load %arg2[%c5, %c0_47, %c0_48] : memref<9x128x128xbf16, #tpu.memory_space<vmem>>, vector<1x128x128xbf16>
    %41 = vector.shape_cast %40 : vector<1x128x128xbf16> to vector<128x128xbf16>
    %cst_49 = arith.constant dense<0.000000e+00> : vector<288x128xf32>
    %42 = tpu.matmul %39, %41, %cst_49 {dimension_numbers = #tpu.dot_dimension_numbers<[1], [0], [0], [1], [0, 0, 1, 1], [], []>} : vector<288x128xbf16>, vector<128x128xbf16>, vector<288x128xf32> -> vector<288x128xf32>
    %c0_50 = arith.constant 0 : index
    %c0_51 = arith.constant 0 : index
    %43 = vector.load %arg7[%c0_50, %c0_51] : memref<288x128xf32, #tpu.memory_space<vmem>>, vector<288x128xf32>
    %44 = arith.addf %43, %42 : vector<288x128xf32>
    %c0_52 = arith.constant 0 : index
    %c0_53 = arith.constant 0 : index
    %45 = vector.load %arg7[%c0_52, %c0_53] : memref<288x128xf32, #tpu.memory_space<vmem>>, vector<288x128xf32>
    tpu.vector_store %arg7[%c0_52, %c0_53], %44 {strides = array<i32>} : memref<288x128xf32, #tpu.memory_space<vmem>>, vector<288x128xf32>,
    %c0_54 = arith.constant 0 : index
    %c36 = arith.constant 36 : index
    %c0_55 = arith.constant 0 : index
    %46 = vector.load %arg1[%c0_54, %c36, %c0_55] : memref<1x328x128xbf16, #tpu.memory_space<vmem>>, vector<1x288x128xbf16>
    %47 = vector.shape_cast %46 : vector<1x288x128xbf16> to vector<288x128xbf16>
    %c6 = arith.constant 6 : index
    %c0_56 = arith.constant 0 : index
    %c0_57 = arith.constant 0 : index
    %48 = vector.load %arg2[%c6, %c0_56, %c0_57] : memref<9x128x128xbf16, #tpu.memory_space<vmem>>, vector<1x128x128xbf16>
    %49 = vector.shape_cast %48 : vector<1x128x128xbf16> to vector<128x128xbf16>
    %cst_58 = arith.constant dense<0.000000e+00> : vector<288x128xf32>
    %50 = tpu.matmul %47, %49, %cst_58 {dimension_numbers = #tpu.dot_dimension_numbers<[1], [0], [0], [1], [0, 0, 1, 1], [], []>} : vector<288x128xbf16>, vector<128x128xbf16>, vector<288x128xf32> -> vector<288x128xf32>
    %c0_59 = arith.constant 0 : index
    %c0_60 = arith.constant 0 : index
    %51 = vector.load %arg7[%c0_59, %c0_60] : memref<288x128xf32, #tpu.memory_space<vmem>>, vector<288x128xf32>
    %52 = arith.addf %51, %50 : vector<288x128xf32>
    %c0_61 = arith.constant 0 : index
    %c0_62 = arith.constant 0 : index
    %53 = vector.load %arg7[%c0_61, %c0_62] : memref<288x128xf32, #tpu.memory_space<vmem>>, vector<288x128xf32>
    tpu.vector_store %arg7[%c0_61, %c0_62], %52 {strides = array<i32>} : memref<288x128xf32, #tpu.memory_space<vmem>>, vector<288x128xf32>,
    %c0_63 = arith.constant 0 : index
    %c37 = arith.constant 37 : index
    %c0_64 = arith.constant 0 : index
    %54 = vector.load %arg1[%c0_63, %c37, %c0_64] : memref<1x328x128xbf16, #tpu.memory_space<vmem>>, vector<1x288x128xbf16>
    %55 = vector.shape_cast %54 : vector<1x288x128xbf16> to vector<288x128xbf16>
    %c7 = arith.constant 7 : index
    %c0_65 = arith.constant 0 : index
    %c0_66 = arith.constant 0 : index
    %56 = vector.load %arg2[%c7, %c0_65, %c0_66] : memref<9x128x128xbf16, #tpu.memory_space<vmem>>, vector<1x128x128xbf16>
    %57 = vector.shape_cast %56 : vector<1x128x128xbf16> to vector<128x128xbf16>
    %cst_67 = arith.constant dense<0.000000e+00> : vector<288x128xf32>
    %58 = tpu.matmul %55, %57, %cst_67 {dimension_numbers = #tpu.dot_dimension_numbers<[1], [0], [0], [1], [0, 0, 1, 1], [], []>} : vector<288x128xbf16>, vector<128x128xbf16>, vector<288x128xf32> -> vector<288x128xf32>
    %c0_68 = arith.constant 0 : index
    %c0_69 = arith.constant 0 : index
    %59 = vector.load %arg7[%c0_68, %c0_69] : memref<288x128xf32, #tpu.memory_space<vmem>>, vector<288x128xf32>
    %60 = arith.addf %59, %58 : vector<288x128xf32>
    %c0_70 = arith.constant 0 : index
    %c0_71 = arith.constant 0 : index
    %61 = vector.load %arg7[%c0_70, %c0_71] : memref<288x128xf32, #tpu.memory_space<vmem>>, vector<288x128xf32>
    tpu.vector_store %arg7[%c0_70, %c0_71], %60 {strides = array<i32>} : memref<288x128xf32, #tpu.memory_space<vmem>>, vector<288x128xf32>,
    %c0_72 = arith.constant 0 : index
    %c38 = arith.constant 38 : index
    %c0_73 = arith.constant 0 : index
    %62 = vector.load %arg1[%c0_72, %c38, %c0_73] : memref<1x328x128xbf16, #tpu.memory_space<vmem>>, vector<1x288x128xbf16>
    %63 = vector.shape_cast %62 : vector<1x288x128xbf16> to vector<288x128xbf16>
    %c8 = arith.constant 8 : index
    %c0_74 = arith.constant 0 : index
    %c0_75 = arith.constant 0 : index
    %64 = vector.load %arg2[%c8, %c0_74, %c0_75] : memref<9x128x128xbf16, #tpu.memory_space<vmem>>, vector<1x128x128xbf16>
    %65 = vector.shape_cast %64 : vector<1x128x128xbf16> to vector<128x128xbf16>
    %cst_76 = arith.constant dense<0.000000e+00> : vector<288x128xf32>
    %66 = tpu.matmul %63, %65, %cst_76 {dimension_numbers = #tpu.dot_dimension_numbers<[1], [0], [0], [1], [0, 0, 1, 1], [], []>} : vector<288x128xbf16>, vector<128x128xbf16>, vector<288x128xf32> -> vector<288x128xf32>
    %c0_77 = arith.constant 0 : index
    %c0_78 = arith.constant 0 : index
    %67 = vector.load %arg7[%c0_77, %c0_78] : memref<288x128xf32, #tpu.memory_space<vmem>>, vector<288x128xf32>
    %68 = arith.addf %67, %66 : vector<288x128xf32>
    %c0_79 = arith.constant 0 : index
    %c0_80 = arith.constant 0 : index
    %69 = vector.load %arg7[%c0_79, %c0_80] : memref<288x128xf32, #tpu.memory_space<vmem>>, vector<288x128xf32>
    tpu.vector_store %arg7[%c0_79, %c0_80], %68 {strides = array<i32>} : memref<288x128xf32, #tpu.memory_space<vmem>>, vector<288x128xf32>,
    %c0_81 = arith.constant 0 : index
    %c0_82 = arith.constant 0 : index
    %70 = vector.load %arg7[%c0_81, %c0_82] : memref<288x128xf32, #tpu.memory_space<vmem>>, vector<288x128xf32>
    %c0_83 = arith.constant 0 : index
    %c0_84 = arith.constant 0 : index
    %71 = vector.load %arg3[%c0_83, %c0_84] : memref<1x128xf32, #tpu.memory_space<vmem>>, vector<1x128xf32>
    %72 = vector.broadcast %71 : vector<1x128xf32> to vector<288x128xf32>
    %73 = arith.mulf %70, %72 : vector<288x128xf32>
    %c0_85 = arith.constant 0 : index
    %c0_86 = arith.constant 0 : index
    %74 = vector.load %arg4[%c0_85, %c0_86] : memref<1x128xf32, #tpu.memory_space<vmem>>, vector<1x128xf32>
    %75 = vector.broadcast %74 : vector<1x128xf32> to vector<288x128xf32>
    %76 = arith.addf %73, %75 : vector<288x128xf32>
    %cst_87 = arith.constant 0.000000e+00 : f32
    %77 = vector.broadcast %cst_87 : f32 to vector<288x128xf32>
    %78 = arith.maximumf %76, %77 : vector<288x128xf32>
    %c0_88 = arith.constant 0 : index
    %c0_89 = arith.constant 0 : index
    %79 = vector.load %arg7[%c0_88, %c0_89] : memref<288x128xf32, #tpu.memory_space<vmem>>, vector<288x128xf32>
    tpu.vector_store %arg7[%c0_88, %c0_89], %78 {strides = array<i32>} : memref<288x128xf32, #tpu.memory_space<vmem>>, vector<288x128xf32>,
    %c0_90 = arith.constant 0 : index
    %c0_91 = arith.constant 0 : index
    %80 = vector.load %arg7[%c0_90, %c0_91] : memref<288x128xf32, #tpu.memory_space<vmem>>, vector<269x128xf32>
    %c1_92 = arith.constant 1 : index
    %c0_93 = arith.constant 0 : index
    %81 = vector.load %arg7[%c1_92, %c0_93] : memref<288x128xf32, #tpu.memory_space<vmem>>, vector<269x128xf32>
    %82 = arith.maximumf %80, %81 : vector<269x128xf32>
    %c18_94 = arith.constant 18 : index
    %c0_95 = arith.constant 0 : index
    %83 = vector.load %arg7[%c18_94, %c0_95] : memref<288x128xf32, #tpu.memory_space<vmem>>, vector<269x128xf32>
    %c19_96 = arith.constant 19 : index
    %c0_97 = arith.constant 0 : index
    %84 = vector.load %arg7[%c19_96, %c0_97] : memref<288x128xf32, #tpu.memory_space<vmem>>, vector<269x128xf32>
    %85 = arith.maximumf %83, %84 : vector<269x128xf32>
    %86 = arith.maximumf %82, %85 : vector<269x128xf32>
    %c0_98 = arith.constant 0 : index
    %c0_99 = arith.constant 0 : index
    %87 = vector.load %arg5[%c0_98, %c0_99] : memref<64x269xf32, #tpu.memory_space<vmem>>, vector<64x269xf32>
    %cst_100 = arith.constant dense<0.000000e+00> : vector<64x128xf32>
    %88 = tpu.matmul %87, %86, %cst_100 {dimension_numbers = #tpu.dot_dimension_numbers<[1], [0], [0], [1], [0, 0, 1, 1], [], []>} : vector<64x269xf32>, vector<269x128xf32>, vector<64x128xf32> -> vector<64x128xf32>
    %89 = arith.truncf %88 : vector<64x128xf32> to vector<64x128xbf16>
    %c0_101 = arith.constant 0 : index
    %c0_102 = arith.constant 0 : index
    %c0_103 = arith.constant 0 : index
    %90 = vector.load %arg6[%c0_101, %c0_102, %c0_103] : memref<1x64x128xbf16, #tpu.memory_space<vmem>>, vector<1x64x128xbf16>
    %91 = vector.shape_cast %90 : vector<1x64x128xbf16> to vector<64x128xbf16>
    %92 = vector.shape_cast %89 : vector<64x128xbf16> to vector<1x64x128xbf16>
    tpu.vector_store %arg6[%c0_101, %c0_102, %c0_103], %92 {strides = array<i32>} : memref<1x64x128xbf16, #tpu.memory_space<vmem>>, vector<1x64x128xbf16>,
    return
  }
  func.func @transform_0(%arg0: i32) -> (i32, i32, i32) {
    %c0_i32 = arith.constant 0 : i32
    %c0_i32_0 = arith.constant 0 : i32
    %c0_i32_1 = arith.constant 0 : i32
    return %arg0, %c0_i32, %c0_i32_0 : i32, i32, i32
  }
  func.func @transform_1(%arg0: i32) -> (i32, i32, i32) {
    %c0_i32 = arith.constant 0 : i32
    %c0_i32_0 = arith.constant 0 : i32
    %c0_i32_1 = arith.constant 0 : i32
    %c0_i32_2 = arith.constant 0 : i32
    return %c0_i32, %c0_i32_0, %c0_i32_1 : i32, i32, i32
  }
  func.func @transform_2(%arg0: i32) -> (i32, i32) {
    %c0_i32 = arith.constant 0 : i32
    %c0_i32_0 = arith.constant 0 : i32
    %c0_i32_1 = arith.constant 0 : i32
    return %c0_i32, %c0_i32_0 : i32, i32
  }
  func.func @transform_3(%arg0: i32) -> (i32, i32) {
    %c0_i32 = arith.constant 0 : i32
    %c0_i32_0 = arith.constant 0 : i32
    %c0_i32_1 = arith.constant 0 : i32
    return %c0_i32, %c0_i32_0 : i32, i32
  }
  func.func @transform_4(%arg0: i32) -> (i32, i32) {
    %c0_i32 = arith.constant 0 : i32
    %c0_i32_0 = arith.constant 0 : i32
    %c0_i32_1 = arith.constant 0 : i32
    return %c0_i32, %c0_i32_0 : i32, i32
  }
  func.func @transform_5(%arg0: i32) -> (i32, i32, i32) {
    %c0_i32 = arith.constant 0 : i32
    %c0_i32_0 = arith.constant 0 : i32
    %c0_i32_1 = arith.constant 0 : i32
    return %arg0, %c0_i32, %c0_i32_0 : i32, i32, i32
  }
}

module attributes {stable_mosaic.version = 11 : i64} {
  func.func @kernel(%arg0: i32, %arg1: memref<1x104x128xbf16, #tpu.memory_space<vmem>>, %arg2: memref<9x128x128xbf16, #tpu.memory_space<vmem>>, %arg3: memref<1x128xf32, #tpu.memory_space<vmem>>, %arg4: memref<1x128xf32, #tpu.memory_space<vmem>>, %arg5: memref<16x69xf32, #tpu.memory_space<vmem>>, %arg6: memref<1x16x128xbf16, #tpu.memory_space<vmem>>, %arg7: memref<80x128xf32, #tpu.memory_space<vmem>>) attributes {dimension_semantics = [#tpu.dimension_semantics<parallel>], iteration_bounds = array<i64: 2>, scalar_prefetch = 0 : i64, scratch_operands = 1 : i64, tpu.core_type = #tpu.core_type<tc>, window_params = [{transform_indices = @transform_0, window_bounds = array<i64: 1, 104, 128>}, {pipeline_mode = #tpu.pipeline_mode<synchronous>, transform_indices = @transform_1, window_bounds = array<i64: 9, 128, 128>}, {pipeline_mode = #tpu.pipeline_mode<synchronous>, transform_indices = @transform_2, window_bounds = array<i64: 1, 128>}, {pipeline_mode = #tpu.pipeline_mode<synchronous>, transform_indices = @transform_3, window_bounds = array<i64: 1, 128>}, {pipeline_mode = #tpu.pipeline_mode<synchronous>, transform_indices = @transform_4, window_bounds = array<i64: 16, 69>}, {transform_indices = @transform_5, window_bounds = array<i64: 1, 16, 128>}]} {
    %c0 = arith.constant 0 : index
    %c0_0 = arith.constant 0 : index
    %c0_1 = arith.constant 0 : index
    %0 = vector.load %arg1[%c0, %c0_0, %c0_1] : memref<1x104x128xbf16, #tpu.memory_space<vmem>>, vector<1x80x128xbf16>
    %1 = vector.shape_cast %0 : vector<1x80x128xbf16> to vector<80x128xbf16>
    %c0_2 = arith.constant 0 : index
    %c0_3 = arith.constant 0 : index
    %c0_4 = arith.constant 0 : index
    %2 = vector.load %arg2[%c0_2, %c0_3, %c0_4] : memref<9x128x128xbf16, #tpu.memory_space<vmem>>, vector<1x128x128xbf16>
    %3 = vector.shape_cast %2 : vector<1x128x128xbf16> to vector<128x128xbf16>
    %cst = arith.constant dense<0.000000e+00> : vector<80x128xf32>
    %4 = tpu.matmul %1, %3, %cst {dimension_numbers = #tpu.dot_dimension_numbers<[1], [0], [0], [1], [0, 0, 1, 1], [], []>} : vector<80x128xbf16>, vector<128x128xbf16>, vector<80x128xf32> -> vector<80x128xf32>
    %c0_5 = arith.constant 0 : index
    %c0_6 = arith.constant 0 : index
    %5 = vector.load %arg7[%c0_5, %c0_6] : memref<80x128xf32, #tpu.memory_space<vmem>>, vector<80x128xf32>
    tpu.vector_store %arg7[%c0_5, %c0_6], %4 {strides = array<i32>} : memref<80x128xf32, #tpu.memory_space<vmem>>, vector<80x128xf32>,
    %c0_7 = arith.constant 0 : index
    %c1 = arith.constant 1 : index
    %c0_8 = arith.constant 0 : index
    %6 = vector.load %arg1[%c0_7, %c1, %c0_8] : memref<1x104x128xbf16, #tpu.memory_space<vmem>>, vector<1x80x128xbf16>
    %7 = vector.shape_cast %6 : vector<1x80x128xbf16> to vector<80x128xbf16>
    %c1_9 = arith.constant 1 : index
    %c0_10 = arith.constant 0 : index
    %c0_11 = arith.constant 0 : index
    %8 = vector.load %arg2[%c1_9, %c0_10, %c0_11] : memref<9x128x128xbf16, #tpu.memory_space<vmem>>, vector<1x128x128xbf16>
    %9 = vector.shape_cast %8 : vector<1x128x128xbf16> to vector<128x128xbf16>
    %cst_12 = arith.constant dense<0.000000e+00> : vector<80x128xf32>
    %10 = tpu.matmul %7, %9, %cst_12 {dimension_numbers = #tpu.dot_dimension_numbers<[1], [0], [0], [1], [0, 0, 1, 1], [], []>} : vector<80x128xbf16>, vector<128x128xbf16>, vector<80x128xf32> -> vector<80x128xf32>
    %c0_13 = arith.constant 0 : index
    %c0_14 = arith.constant 0 : index
    %11 = vector.load %arg7[%c0_13, %c0_14] : memref<80x128xf32, #tpu.memory_space<vmem>>, vector<80x128xf32>
    %12 = arith.addf %11, %10 : vector<80x128xf32>
    %c0_15 = arith.constant 0 : index
    %c0_16 = arith.constant 0 : index
    %13 = vector.load %arg7[%c0_15, %c0_16] : memref<80x128xf32, #tpu.memory_space<vmem>>, vector<80x128xf32>
    tpu.vector_store %arg7[%c0_15, %c0_16], %12 {strides = array<i32>} : memref<80x128xf32, #tpu.memory_space<vmem>>, vector<80x128xf32>,
    %c0_17 = arith.constant 0 : index
    %c2 = arith.constant 2 : index
    %c0_18 = arith.constant 0 : index
    %14 = vector.load %arg1[%c0_17, %c2, %c0_18] : memref<1x104x128xbf16, #tpu.memory_space<vmem>>, vector<1x80x128xbf16>
    %15 = vector.shape_cast %14 : vector<1x80x128xbf16> to vector<80x128xbf16>
    %c2_19 = arith.constant 2 : index
    %c0_20 = arith.constant 0 : index
    %c0_21 = arith.constant 0 : index
    %16 = vector.load %arg2[%c2_19, %c0_20, %c0_21] : memref<9x128x128xbf16, #tpu.memory_space<vmem>>, vector<1x128x128xbf16>
    %17 = vector.shape_cast %16 : vector<1x128x128xbf16> to vector<128x128xbf16>
    %cst_22 = arith.constant dense<0.000000e+00> : vector<80x128xf32>
    %18 = tpu.matmul %15, %17, %cst_22 {dimension_numbers = #tpu.dot_dimension_numbers<[1], [0], [0], [1], [0, 0, 1, 1], [], []>} : vector<80x128xbf16>, vector<128x128xbf16>, vector<80x128xf32> -> vector<80x128xf32>
    %c0_23 = arith.constant 0 : index
    %c0_24 = arith.constant 0 : index
    %19 = vector.load %arg7[%c0_23, %c0_24] : memref<80x128xf32, #tpu.memory_space<vmem>>, vector<80x128xf32>
    %20 = arith.addf %19, %18 : vector<80x128xf32>
    %c0_25 = arith.constant 0 : index
    %c0_26 = arith.constant 0 : index
    %21 = vector.load %arg7[%c0_25, %c0_26] : memref<80x128xf32, #tpu.memory_space<vmem>>, vector<80x128xf32>
    tpu.vector_store %arg7[%c0_25, %c0_26], %20 {strides = array<i32>} : memref<80x128xf32, #tpu.memory_space<vmem>>, vector<80x128xf32>,
    %c0_27 = arith.constant 0 : index
    %c10 = arith.constant 10 : index
    %c0_28 = arith.constant 0 : index
    %22 = vector.load %arg1[%c0_27, %c10, %c0_28] : memref<1x104x128xbf16, #tpu.memory_space<vmem>>, vector<1x80x128xbf16>
    %23 = vector.shape_cast %22 : vector<1x80x128xbf16> to vector<80x128xbf16>
    %c3 = arith.constant 3 : index
    %c0_29 = arith.constant 0 : index
    %c0_30 = arith.constant 0 : index
    %24 = vector.load %arg2[%c3, %c0_29, %c0_30] : memref<9x128x128xbf16, #tpu.memory_space<vmem>>, vector<1x128x128xbf16>
    %25 = vector.shape_cast %24 : vector<1x128x128xbf16> to vector<128x128xbf16>
    %cst_31 = arith.constant dense<0.000000e+00> : vector<80x128xf32>
    %26 = tpu.matmul %23, %25, %cst_31 {dimension_numbers = #tpu.dot_dimension_numbers<[1], [0], [0], [1], [0, 0, 1, 1], [], []>} : vector<80x128xbf16>, vector<128x128xbf16>, vector<80x128xf32> -> vector<80x128xf32>
    %c0_32 = arith.constant 0 : index
    %c0_33 = arith.constant 0 : index
    %27 = vector.load %arg7[%c0_32, %c0_33] : memref<80x128xf32, #tpu.memory_space<vmem>>, vector<80x128xf32>
    %28 = arith.addf %27, %26 : vector<80x128xf32>
    %c0_34 = arith.constant 0 : index
    %c0_35 = arith.constant 0 : index
    %29 = vector.load %arg7[%c0_34, %c0_35] : memref<80x128xf32, #tpu.memory_space<vmem>>, vector<80x128xf32>
    tpu.vector_store %arg7[%c0_34, %c0_35], %28 {strides = array<i32>} : memref<80x128xf32, #tpu.memory_space<vmem>>, vector<80x128xf32>,
    %c0_36 = arith.constant 0 : index
    %c11 = arith.constant 11 : index
    %c0_37 = arith.constant 0 : index
    %30 = vector.load %arg1[%c0_36, %c11, %c0_37] : memref<1x104x128xbf16, #tpu.memory_space<vmem>>, vector<1x80x128xbf16>
    %31 = vector.shape_cast %30 : vector<1x80x128xbf16> to vector<80x128xbf16>
    %c4 = arith.constant 4 : index
    %c0_38 = arith.constant 0 : index
    %c0_39 = arith.constant 0 : index
    %32 = vector.load %arg2[%c4, %c0_38, %c0_39] : memref<9x128x128xbf16, #tpu.memory_space<vmem>>, vector<1x128x128xbf16>
    %33 = vector.shape_cast %32 : vector<1x128x128xbf16> to vector<128x128xbf16>
    %cst_40 = arith.constant dense<0.000000e+00> : vector<80x128xf32>
    %34 = tpu.matmul %31, %33, %cst_40 {dimension_numbers = #tpu.dot_dimension_numbers<[1], [0], [0], [1], [0, 0, 1, 1], [], []>} : vector<80x128xbf16>, vector<128x128xbf16>, vector<80x128xf32> -> vector<80x128xf32>
    %c0_41 = arith.constant 0 : index
    %c0_42 = arith.constant 0 : index
    %35 = vector.load %arg7[%c0_41, %c0_42] : memref<80x128xf32, #tpu.memory_space<vmem>>, vector<80x128xf32>
    %36 = arith.addf %35, %34 : vector<80x128xf32>
    %c0_43 = arith.constant 0 : index
    %c0_44 = arith.constant 0 : index
    %37 = vector.load %arg7[%c0_43, %c0_44] : memref<80x128xf32, #tpu.memory_space<vmem>>, vector<80x128xf32>
    tpu.vector_store %arg7[%c0_43, %c0_44], %36 {strides = array<i32>} : memref<80x128xf32, #tpu.memory_space<vmem>>, vector<80x128xf32>,
    %c0_45 = arith.constant 0 : index
    %c12 = arith.constant 12 : index
    %c0_46 = arith.constant 0 : index
    %38 = vector.load %arg1[%c0_45, %c12, %c0_46] : memref<1x104x128xbf16, #tpu.memory_space<vmem>>, vector<1x80x128xbf16>
    %39 = vector.shape_cast %38 : vector<1x80x128xbf16> to vector<80x128xbf16>
    %c5 = arith.constant 5 : index
    %c0_47 = arith.constant 0 : index
    %c0_48 = arith.constant 0 : index
    %40 = vector.load %arg2[%c5, %c0_47, %c0_48] : memref<9x128x128xbf16, #tpu.memory_space<vmem>>, vector<1x128x128xbf16>
    %41 = vector.shape_cast %40 : vector<1x128x128xbf16> to vector<128x128xbf16>
    %cst_49 = arith.constant dense<0.000000e+00> : vector<80x128xf32>
    %42 = tpu.matmul %39, %41, %cst_49 {dimension_numbers = #tpu.dot_dimension_numbers<[1], [0], [0], [1], [0, 0, 1, 1], [], []>} : vector<80x128xbf16>, vector<128x128xbf16>, vector<80x128xf32> -> vector<80x128xf32>
    %c0_50 = arith.constant 0 : index
    %c0_51 = arith.constant 0 : index
    %43 = vector.load %arg7[%c0_50, %c0_51] : memref<80x128xf32, #tpu.memory_space<vmem>>, vector<80x128xf32>
    %44 = arith.addf %43, %42 : vector<80x128xf32>
    %c0_52 = arith.constant 0 : index
    %c0_53 = arith.constant 0 : index
    %45 = vector.load %arg7[%c0_52, %c0_53] : memref<80x128xf32, #tpu.memory_space<vmem>>, vector<80x128xf32>
    tpu.vector_store %arg7[%c0_52, %c0_53], %44 {strides = array<i32>} : memref<80x128xf32, #tpu.memory_space<vmem>>, vector<80x128xf32>,
    %c0_54 = arith.constant 0 : index
    %c20 = arith.constant 20 : index
    %c0_55 = arith.constant 0 : index
    %46 = vector.load %arg1[%c0_54, %c20, %c0_55] : memref<1x104x128xbf16, #tpu.memory_space<vmem>>, vector<1x80x128xbf16>
    %47 = vector.shape_cast %46 : vector<1x80x128xbf16> to vector<80x128xbf16>
    %c6 = arith.constant 6 : index
    %c0_56 = arith.constant 0 : index
    %c0_57 = arith.constant 0 : index
    %48 = vector.load %arg2[%c6, %c0_56, %c0_57] : memref<9x128x128xbf16, #tpu.memory_space<vmem>>, vector<1x128x128xbf16>
    %49 = vector.shape_cast %48 : vector<1x128x128xbf16> to vector<128x128xbf16>
    %cst_58 = arith.constant dense<0.000000e+00> : vector<80x128xf32>
    %50 = tpu.matmul %47, %49, %cst_58 {dimension_numbers = #tpu.dot_dimension_numbers<[1], [0], [0], [1], [0, 0, 1, 1], [], []>} : vector<80x128xbf16>, vector<128x128xbf16>, vector<80x128xf32> -> vector<80x128xf32>
    %c0_59 = arith.constant 0 : index
    %c0_60 = arith.constant 0 : index
    %51 = vector.load %arg7[%c0_59, %c0_60] : memref<80x128xf32, #tpu.memory_space<vmem>>, vector<80x128xf32>
    %52 = arith.addf %51, %50 : vector<80x128xf32>
    %c0_61 = arith.constant 0 : index
    %c0_62 = arith.constant 0 : index
    %53 = vector.load %arg7[%c0_61, %c0_62] : memref<80x128xf32, #tpu.memory_space<vmem>>, vector<80x128xf32>
    tpu.vector_store %arg7[%c0_61, %c0_62], %52 {strides = array<i32>} : memref<80x128xf32, #tpu.memory_space<vmem>>, vector<80x128xf32>,
    %c0_63 = arith.constant 0 : index
    %c21 = arith.constant 21 : index
    %c0_64 = arith.constant 0 : index
    %54 = vector.load %arg1[%c0_63, %c21, %c0_64] : memref<1x104x128xbf16, #tpu.memory_space<vmem>>, vector<1x80x128xbf16>
    %55 = vector.shape_cast %54 : vector<1x80x128xbf16> to vector<80x128xbf16>
    %c7 = arith.constant 7 : index
    %c0_65 = arith.constant 0 : index
    %c0_66 = arith.constant 0 : index
    %56 = vector.load %arg2[%c7, %c0_65, %c0_66] : memref<9x128x128xbf16, #tpu.memory_space<vmem>>, vector<1x128x128xbf16>
    %57 = vector.shape_cast %56 : vector<1x128x128xbf16> to vector<128x128xbf16>
    %cst_67 = arith.constant dense<0.000000e+00> : vector<80x128xf32>
    %58 = tpu.matmul %55, %57, %cst_67 {dimension_numbers = #tpu.dot_dimension_numbers<[1], [0], [0], [1], [0, 0, 1, 1], [], []>} : vector<80x128xbf16>, vector<128x128xbf16>, vector<80x128xf32> -> vector<80x128xf32>
    %c0_68 = arith.constant 0 : index
    %c0_69 = arith.constant 0 : index
    %59 = vector.load %arg7[%c0_68, %c0_69] : memref<80x128xf32, #tpu.memory_space<vmem>>, vector<80x128xf32>
    %60 = arith.addf %59, %58 : vector<80x128xf32>
    %c0_70 = arith.constant 0 : index
    %c0_71 = arith.constant 0 : index
    %61 = vector.load %arg7[%c0_70, %c0_71] : memref<80x128xf32, #tpu.memory_space<vmem>>, vector<80x128xf32>
    tpu.vector_store %arg7[%c0_70, %c0_71], %60 {strides = array<i32>} : memref<80x128xf32, #tpu.memory_space<vmem>>, vector<80x128xf32>,
    %c0_72 = arith.constant 0 : index
    %c22 = arith.constant 22 : index
    %c0_73 = arith.constant 0 : index
    %62 = vector.load %arg1[%c0_72, %c22, %c0_73] : memref<1x104x128xbf16, #tpu.memory_space<vmem>>, vector<1x80x128xbf16>
    %63 = vector.shape_cast %62 : vector<1x80x128xbf16> to vector<80x128xbf16>
    %c8 = arith.constant 8 : index
    %c0_74 = arith.constant 0 : index
    %c0_75 = arith.constant 0 : index
    %64 = vector.load %arg2[%c8, %c0_74, %c0_75] : memref<9x128x128xbf16, #tpu.memory_space<vmem>>, vector<1x128x128xbf16>
    %65 = vector.shape_cast %64 : vector<1x128x128xbf16> to vector<128x128xbf16>
    %cst_76 = arith.constant dense<0.000000e+00> : vector<80x128xf32>
    %66 = tpu.matmul %63, %65, %cst_76 {dimension_numbers = #tpu.dot_dimension_numbers<[1], [0], [0], [1], [0, 0, 1, 1], [], []>} : vector<80x128xbf16>, vector<128x128xbf16>, vector<80x128xf32> -> vector<80x128xf32>
    %c0_77 = arith.constant 0 : index
    %c0_78 = arith.constant 0 : index
    %67 = vector.load %arg7[%c0_77, %c0_78] : memref<80x128xf32, #tpu.memory_space<vmem>>, vector<80x128xf32>
    %68 = arith.addf %67, %66 : vector<80x128xf32>
    %c0_79 = arith.constant 0 : index
    %c0_80 = arith.constant 0 : index
    %69 = vector.load %arg7[%c0_79, %c0_80] : memref<80x128xf32, #tpu.memory_space<vmem>>, vector<80x128xf32>
    tpu.vector_store %arg7[%c0_79, %c0_80], %68 {strides = array<i32>} : memref<80x128xf32, #tpu.memory_space<vmem>>, vector<80x128xf32>,
    %c0_81 = arith.constant 0 : index
    %c0_82 = arith.constant 0 : index
    %70 = vector.load %arg7[%c0_81, %c0_82] : memref<80x128xf32, #tpu.memory_space<vmem>>, vector<80x128xf32>
    %c0_83 = arith.constant 0 : index
    %c0_84 = arith.constant 0 : index
    %71 = vector.load %arg3[%c0_83, %c0_84] : memref<1x128xf32, #tpu.memory_space<vmem>>, vector<1x128xf32>
    %72 = vector.broadcast %71 : vector<1x128xf32> to vector<80x128xf32>
    %73 = arith.mulf %70, %72 : vector<80x128xf32>
    %c0_85 = arith.constant 0 : index
    %c0_86 = arith.constant 0 : index
    %74 = vector.load %arg4[%c0_85, %c0_86] : memref<1x128xf32, #tpu.memory_space<vmem>>, vector<1x128xf32>
    %75 = vector.broadcast %74 : vector<1x128xf32> to vector<80x128xf32>
    %76 = arith.addf %73, %75 : vector<80x128xf32>
    %cst_87 = arith.constant 0.000000e+00 : f32
    %77 = vector.broadcast %cst_87 : f32 to vector<80x128xf32>
    %78 = arith.maximumf %76, %77 : vector<80x128xf32>
    %c0_88 = arith.constant 0 : index
    %c0_89 = arith.constant 0 : index
    %79 = vector.load %arg7[%c0_88, %c0_89] : memref<80x128xf32, #tpu.memory_space<vmem>>, vector<80x128xf32>
    tpu.vector_store %arg7[%c0_88, %c0_89], %78 {strides = array<i32>} : memref<80x128xf32, #tpu.memory_space<vmem>>, vector<80x128xf32>,
    %c0_90 = arith.constant 0 : index
    %c0_91 = arith.constant 0 : index
    %80 = vector.load %arg7[%c0_90, %c0_91] : memref<80x128xf32, #tpu.memory_space<vmem>>, vector<69x128xf32>
    %c1_92 = arith.constant 1 : index
    %c0_93 = arith.constant 0 : index
    %81 = vector.load %arg7[%c1_92, %c0_93] : memref<80x128xf32, #tpu.memory_space<vmem>>, vector<69x128xf32>
    %82 = arith.maximumf %80, %81 : vector<69x128xf32>
    %c10_94 = arith.constant 10 : index
    %c0_95 = arith.constant 0 : index
    %83 = vector.load %arg7[%c10_94, %c0_95] : memref<80x128xf32, #tpu.memory_space<vmem>>, vector<69x128xf32>
    %c11_96 = arith.constant 11 : index
    %c0_97 = arith.constant 0 : index
    %84 = vector.load %arg7[%c11_96, %c0_97] : memref<80x128xf32, #tpu.memory_space<vmem>>, vector<69x128xf32>
    %85 = arith.maximumf %83, %84 : vector<69x128xf32>
    %86 = arith.maximumf %82, %85 : vector<69x128xf32>
    %c0_98 = arith.constant 0 : index
    %c0_99 = arith.constant 0 : index
    %87 = vector.load %arg5[%c0_98, %c0_99] : memref<16x69xf32, #tpu.memory_space<vmem>>, vector<16x69xf32>
    %cst_100 = arith.constant dense<0.000000e+00> : vector<16x128xf32>
    %88 = tpu.matmul %87, %86, %cst_100 {dimension_numbers = #tpu.dot_dimension_numbers<[1], [0], [0], [1], [0, 0, 1, 1], [], []>} : vector<16x69xf32>, vector<69x128xf32>, vector<16x128xf32> -> vector<16x128xf32>
    %89 = arith.truncf %88 : vector<16x128xf32> to vector<16x128xbf16>
    %c0_101 = arith.constant 0 : index
    %c0_102 = arith.constant 0 : index
    %c0_103 = arith.constant 0 : index
    %90 = vector.load %arg6[%c0_101, %c0_102, %c0_103] : memref<1x16x128xbf16, #tpu.memory_space<vmem>>, vector<1x16x128xbf16>
    %91 = vector.shape_cast %90 : vector<1x16x128xbf16> to vector<16x128xbf16>
    %92 = vector.shape_cast %89 : vector<16x128xbf16> to vector<1x16x128xbf16>
    tpu.vector_store %arg6[%c0_101, %c0_102, %c0_103], %92 {strides = array<i32>} : memref<1x16x128xbf16, #tpu.memory_space<vmem>>, vector<1x16x128xbf16>,
    return
  }
  func.func @transform_0(%arg0: i32) -> (i32, i32, i32) {
    %c0_i32 = arith.constant 0 : i32
    %c0_i32_0 = arith.constant 0 : i32
    %c0_i32_1 = arith.constant 0 : i32
    return %arg0, %c0_i32, %c0_i32_0 : i32, i32, i32
  }
  func.func @transform_1(%arg0: i32) -> (i32, i32, i32) {
    %c0_i32 = arith.constant 0 : i32
    %c0_i32_0 = arith.constant 0 : i32
    %c0_i32_1 = arith.constant 0 : i32
    %c0_i32_2 = arith.constant 0 : i32
    return %c0_i32, %c0_i32_0, %c0_i32_1 : i32, i32, i32
  }
  func.func @transform_2(%arg0: i32) -> (i32, i32) {
    %c0_i32 = arith.constant 0 : i32
    %c0_i32_0 = arith.constant 0 : i32
    %c0_i32_1 = arith.constant 0 : i32
    return %c0_i32, %c0_i32_0 : i32, i32
  }
  func.func @transform_3(%arg0: i32) -> (i32, i32) {
    %c0_i32 = arith.constant 0 : i32
    %c0_i32_0 = arith.constant 0 : i32
    %c0_i32_1 = arith.constant 0 : i32
    return %c0_i32, %c0_i32_0 : i32, i32
  }
  func.func @transform_4(%arg0: i32) -> (i32, i32) {
    %c0_i32 = arith.constant 0 : i32
    %c0_i32_0 = arith.constant 0 : i32
    %c0_i32_1 = arith.constant 0 : i32
    return %c0_i32, %c0_i32_0 : i32, i32
  }
  func.func @transform_5(%arg0: i32) -> (i32, i32, i32) {
    %c0_i32 = arith.constant 0 : i32
    %c0_i32_0 = arith.constant 0 : i32
    %c0_i32_1 = arith.constant 0 : i32
    return %arg0, %c0_i32, %c0_i32_0 : i32, i32, i32
  }
}

module attributes {stable_mosaic.version = 11 : i64} {
  func.func @_mlp_kernel(%arg0: i32, %arg1: memref<8x256xf32, #tpu.memory_space<vmem>>, %arg2: memref<256x384xbf16, #tpu.memory_space<vmem>>, %arg3: memref<1x384xf32, #tpu.memory_space<vmem>>, %arg4: memref<1x384xf32, #tpu.memory_space<vmem>>, %arg5: memref<384x128xbf16, #tpu.memory_space<vmem>>, %arg6: memref<1x128xf32, #tpu.memory_space<vmem>>, %arg7: memref<1x128xf32, #tpu.memory_space<vmem>>, %arg8: memref<128x128xbf16, #tpu.memory_space<vmem>>, %arg9: memref<1x128xf32, #tpu.memory_space<vmem>>, %arg10: memref<1x128xf32, #tpu.memory_space<vmem>>, %arg11: memref<128x128xbf16, #tpu.memory_space<vmem>>, %arg12: memref<1x128xf32, #tpu.memory_space<vmem>>, %arg13: memref<8x128xf32, #tpu.memory_space<vmem>>) attributes {dimension_semantics = [#tpu.dimension_semantics<parallel>], iteration_bounds = array<i64: 1>, scalar_prefetch = 0 : i64, scratch_operands = 0 : i64, tpu.core_type = #tpu.core_type<tc>, window_params = [{transform_indices = @transform_0, window_bounds = array<i64: 8, 256>}, {pipeline_mode = #tpu.pipeline_mode<synchronous>, transform_indices = @transform_1, window_bounds = array<i64: 256, 384>}, {pipeline_mode = #tpu.pipeline_mode<synchronous>, transform_indices = @transform_2, window_bounds = array<i64: 1, 384>}, {pipeline_mode = #tpu.pipeline_mode<synchronous>, transform_indices = @transform_3, window_bounds = array<i64: 1, 384>}, {pipeline_mode = #tpu.pipeline_mode<synchronous>, transform_indices = @transform_4, window_bounds = array<i64: 384, 128>}, {pipeline_mode = #tpu.pipeline_mode<synchronous>, transform_indices = @transform_5, window_bounds = array<i64: 1, 128>}, {pipeline_mode = #tpu.pipeline_mode<synchronous>, transform_indices = @transform_6, window_bounds = array<i64: 1, 128>}, {pipeline_mode = #tpu.pipeline_mode<synchronous>, transform_indices = @transform_7, window_bounds = array<i64: 128, 128>}, {pipeline_mode = #tpu.pipeline_mode<synchronous>, transform_indices = @transform_8, window_bounds = array<i64: 1, 128>}, {pipeline_mode = #tpu.pipeline_mode<synchronous>, transform_indices = @transform_9, window_bounds = array<i64: 1, 128>}, {pipeline_mode = #tpu.pipeline_mode<synchronous>, transform_indices = @transform_10, window_bounds = array<i64: 128, 128>}, {pipeline_mode = #tpu.pipeline_mode<synchronous>, transform_indices = @transform_11, window_bounds = array<i64: 1, 128>}, {transform_indices = @transform_12, window_bounds = array<i64: 8, 128>}]} {
    %c0 = arith.constant 0 : index
    %c0_0 = arith.constant 0 : index
    %0 = vector.load %arg1[%c0, %c0_0] : memref<8x256xf32, #tpu.memory_space<vmem>>, vector<8x256xf32>
    %1 = arith.truncf %0 : vector<8x256xf32> to vector<8x256xbf16>
    %c0_1 = arith.constant 0 : index
    %c0_2 = arith.constant 0 : index
    %2 = vector.load %arg2[%c0_1, %c0_2] : memref<256x384xbf16, #tpu.memory_space<vmem>>, vector<256x384xbf16>
    %cst = arith.constant dense<0.000000e+00> : vector<8x384xf32>
    %3 = tpu.matmul %1, %2, %cst {dimension_numbers = #tpu.dot_dimension_numbers<[1], [0], [0], [1], [0, 0, 1, 1], [], []>} : vector<8x256xbf16>, vector<256x384xbf16>, vector<8x384xf32> -> vector<8x384xf32>
    %c0_3 = arith.constant 0 : index
    %c0_4 = arith.constant 0 : index
    %4 = vector.load %arg3[%c0_3, %c0_4] : memref<1x384xf32, #tpu.memory_space<vmem>>, vector<1x384xf32>
    %5 = vector.broadcast %4 : vector<1x384xf32> to vector<8x384xf32>
    %6 = arith.mulf %3, %5 : vector<8x384xf32>
    %c0_5 = arith.constant 0 : index
    %c0_6 = arith.constant 0 : index
    %7 = vector.load %arg4[%c0_5, %c0_6] : memref<1x384xf32, #tpu.memory_space<vmem>>, vector<1x384xf32>
    %8 = vector.broadcast %7 : vector<1x384xf32> to vector<8x384xf32>
    %9 = arith.addf %6, %8 : vector<8x384xf32>
    %cst_7 = arith.constant 0.000000e+00 : f32
    %10 = vector.broadcast %cst_7 : f32 to vector<8x384xf32>
    %11 = arith.maximumf %9, %10 : vector<8x384xf32>
    %12 = arith.truncf %11 : vector<8x384xf32> to vector<8x384xbf16>
    %c0_8 = arith.constant 0 : index
    %c0_9 = arith.constant 0 : index
    %13 = vector.load %arg5[%c0_8, %c0_9] : memref<384x128xbf16, #tpu.memory_space<vmem>>, vector<384x128xbf16>
    %cst_10 = arith.constant dense<0.000000e+00> : vector<8x128xf32>
    %14 = tpu.matmul %12, %13, %cst_10 {dimension_numbers = #tpu.dot_dimension_numbers<[1], [0], [0], [1], [0, 0, 1, 1], [], []>} : vector<8x384xbf16>, vector<384x128xbf16>, vector<8x128xf32> -> vector<8x128xf32>
    %c0_11 = arith.constant 0 : index
    %c0_12 = arith.constant 0 : index
    %15 = vector.load %arg6[%c0_11, %c0_12] : memref<1x128xf32, #tpu.memory_space<vmem>>, vector<1x128xf32>
    %16 = vector.broadcast %15 : vector<1x128xf32> to vector<8x128xf32>
    %17 = arith.mulf %14, %16 : vector<8x128xf32>
    %c0_13 = arith.constant 0 : index
    %c0_14 = arith.constant 0 : index
    %18 = vector.load %arg7[%c0_13, %c0_14] : memref<1x128xf32, #tpu.memory_space<vmem>>, vector<1x128xf32>
    %19 = vector.broadcast %18 : vector<1x128xf32> to vector<8x128xf32>
    %20 = arith.addf %17, %19 : vector<8x128xf32>
    %cst_15 = arith.constant 0.000000e+00 : f32
    %21 = vector.broadcast %cst_15 : f32 to vector<8x128xf32>
    %22 = arith.maximumf %20, %21 : vector<8x128xf32>
    %23 = arith.truncf %22 : vector<8x128xf32> to vector<8x128xbf16>
    %c0_16 = arith.constant 0 : index
    %c0_17 = arith.constant 0 : index
    %24 = vector.load %arg8[%c0_16, %c0_17] : memref<128x128xbf16, #tpu.memory_space<vmem>>, vector<128x128xbf16>
    %cst_18 = arith.constant dense<0.000000e+00> : vector<8x128xf32>
    %25 = tpu.matmul %23, %24, %cst_18 {dimension_numbers = #tpu.dot_dimension_numbers<[1], [0], [0], [1], [0, 0, 1, 1], [], []>} : vector<8x128xbf16>, vector<128x128xbf16>, vector<8x128xf32> -> vector<8x128xf32>
    %c0_19 = arith.constant 0 : index
    %c0_20 = arith.constant 0 : index
    %26 = vector.load %arg9[%c0_19, %c0_20] : memref<1x128xf32, #tpu.memory_space<vmem>>, vector<1x128xf32>
    %27 = vector.broadcast %26 : vector<1x128xf32> to vector<8x128xf32>
    %28 = arith.mulf %25, %27 : vector<8x128xf32>
    %c0_21 = arith.constant 0 : index
    %c0_22 = arith.constant 0 : index
    %29 = vector.load %arg10[%c0_21, %c0_22] : memref<1x128xf32, #tpu.memory_space<vmem>>, vector<1x128xf32>
    %30 = vector.broadcast %29 : vector<1x128xf32> to vector<8x128xf32>
    %31 = arith.addf %28, %30 : vector<8x128xf32>
    %cst_23 = arith.constant 0.000000e+00 : f32
    %32 = vector.broadcast %cst_23 : f32 to vector<8x128xf32>
    %33 = arith.maximumf %31, %32 : vector<8x128xf32>
    %34 = arith.truncf %33 : vector<8x128xf32> to vector<8x128xbf16>
    %c0_24 = arith.constant 0 : index
    %c0_25 = arith.constant 0 : index
    %35 = vector.load %arg11[%c0_24, %c0_25] : memref<128x128xbf16, #tpu.memory_space<vmem>>, vector<128x128xbf16>
    %cst_26 = arith.constant dense<0.000000e+00> : vector<8x128xf32>
    %36 = tpu.matmul %34, %35, %cst_26 {dimension_numbers = #tpu.dot_dimension_numbers<[1], [0], [0], [1], [0, 0, 1, 1], [], []>} : vector<8x128xbf16>, vector<128x128xbf16>, vector<8x128xf32> -> vector<8x128xf32>
    %c0_27 = arith.constant 0 : index
    %c0_28 = arith.constant 0 : index
    %37 = vector.load %arg12[%c0_27, %c0_28] : memref<1x128xf32, #tpu.memory_space<vmem>>, vector<1x128xf32>
    %38 = vector.broadcast %37 : vector<1x128xf32> to vector<8x128xf32>
    %39 = arith.addf %36, %38 : vector<8x128xf32>
    %cst_29 = arith.constant 0.000000e+00 : f32
    %40 = vector.broadcast %cst_29 : f32 to vector<8x128xf32>
    %41 = arith.subf %40, %39 : vector<8x128xf32>
    %42 = math.exp %41 : vector<8x128xf32>
    %cst_30 = arith.constant 1.000000e+00 : f32
    %43 = vector.broadcast %cst_30 : f32 to vector<8x128xf32>
    %44 = arith.addf %43, %42 : vector<8x128xf32>
    %cst_31 = arith.constant 1.000000e+00 : f32
    %45 = vector.broadcast %cst_31 : f32 to vector<8x128xf32>
    %46 = arith.divf %45, %44 : vector<8x128xf32>
    %c0_32 = arith.constant 0 : index
    %c0_33 = arith.constant 0 : index
    %47 = vector.load %arg13[%c0_32, %c0_33] : memref<8x128xf32, #tpu.memory_space<vmem>>, vector<8x128xf32>
    tpu.vector_store %arg13[%c0_32, %c0_33], %46 {strides = array<i32>} : memref<8x128xf32, #tpu.memory_space<vmem>>, vector<8x128xf32>,
    return
  }
  func.func @transform_0(%arg0: i32) -> (i32, i32) {
    %c0_i32 = arith.constant 0 : i32
    %c0_i32_0 = arith.constant 0 : i32
    return %arg0, %c0_i32 : i32, i32
  }
  func.func @transform_1(%arg0: i32) -> (i32, i32) {
    %c0_i32 = arith.constant 0 : i32
    %c0_i32_0 = arith.constant 0 : i32
    %c0_i32_1 = arith.constant 0 : i32
    return %c0_i32, %c0_i32_0 : i32, i32
  }
  func.func @transform_2(%arg0: i32) -> (i32, i32) {
    %c0_i32 = arith.constant 0 : i32
    %c0_i32_0 = arith.constant 0 : i32
    %c0_i32_1 = arith.constant 0 : i32
    return %c0_i32, %c0_i32_0 : i32, i32
  }
  func.func @transform_3(%arg0: i32) -> (i32, i32) {
    %c0_i32 = arith.constant 0 : i32
    %c0_i32_0 = arith.constant 0 : i32
    %c0_i32_1 = arith.constant 0 : i32
    return %c0_i32, %c0_i32_0 : i32, i32
  }
  func.func @transform_4(%arg0: i32) -> (i32, i32) {
    %c0_i32 = arith.constant 0 : i32
    %c0_i32_0 = arith.constant 0 : i32
    %c0_i32_1 = arith.constant 0 : i32
    return %c0_i32, %c0_i32_0 : i32, i32
  }
  func.func @transform_5(%arg0: i32) -> (i32, i32) {
    %c0_i32 = arith.constant 0 : i32
    %c0_i32_0 = arith.constant 0 : i32
    %c0_i32_1 = arith.constant 0 : i32
    return %c0_i32, %c0_i32_0 : i32, i32
  }
  func.func @transform_6(%arg0: i32) -> (i32, i32) {
    %c0_i32 = arith.constant 0 : i32
    %c0_i32_0 = arith.constant 0 : i32
    %c0_i32_1 = arith.constant 0 : i32
    return %c0_i32, %c0_i32_0 : i32, i32
  }
  func.func @transform_7(%arg0: i32) -> (i32, i32) {
    %c0_i32 = arith.constant 0 : i32
    %c0_i32_0 = arith.constant 0 : i32
    %c0_i32_1 = arith.constant 0 : i32
    return %c0_i32, %c0_i32_0 : i32, i32
  }
  func.func @transform_8(%arg0: i32) -> (i32, i32) {
    %c0_i32 = arith.constant 0 : i32
    %c0_i32_0 = arith.constant 0 : i32
    %c0_i32_1 = arith.constant 0 : i32
    return %c0_i32, %c0_i32_0 : i32, i32
  }
  func.func @transform_9(%arg0: i32) -> (i32, i32) {
    %c0_i32 = arith.constant 0 : i32
    %c0_i32_0 = arith.constant 0 : i32
    %c0_i32_1 = arith.constant 0 : i32
    return %c0_i32, %c0_i32_0 : i32, i32
  }
  func.func @transform_10(%arg0: i32) -> (i32, i32) {
    %c0_i32 = arith.constant 0 : i32
    %c0_i32_0 = arith.constant 0 : i32
    %c0_i32_1 = arith.constant 0 : i32
    return %c0_i32, %c0_i32_0 : i32, i32
  }
  func.func @transform_11(%arg0: i32) -> (i32, i32) {
    %c0_i32 = arith.constant 0 : i32
    %c0_i32_0 = arith.constant 0 : i32
    %c0_i32_1 = arith.constant 0 : i32
    return %c0_i32, %c0_i32_0 : i32, i32
  }
  func.func @transform_12(%arg0: i32) -> (i32, i32) {
    %c0_i32 = arith.constant 0 : i32
    %c0_i32_0 = arith.constant 0 : i32
    return %arg0, %c0_i32 : i32, i32
  }
}

module attributes {stable_mosaic.version = 11 : i64} {
  func.func @kernel(%arg0: i32, %arg1: memref<1x40x128xbf16, #tpu.memory_space<vmem>>, %arg2: memref<9x128x256xbf16, #tpu.memory_space<vmem>>, %arg3: memref<1x256xf32, #tpu.memory_space<vmem>>, %arg4: memref<1x256xf32, #tpu.memory_space<vmem>>, %arg5: memref<4x17xf32, #tpu.memory_space<vmem>>, %arg6: memref<1x1x256xf32, #tpu.memory_space<vmem>>, %arg7: memref<24x256xf32, #tpu.memory_space<vmem>>) attributes {dimension_semantics = [#tpu.dimension_semantics<parallel>], iteration_bounds = array<i64: 2>, scalar_prefetch = 0 : i64, scratch_operands = 1 : i64, tpu.core_type = #tpu.core_type<tc>, window_params = [{transform_indices = @transform_0, window_bounds = array<i64: 1, 40, 128>}, {pipeline_mode = #tpu.pipeline_mode<synchronous>, transform_indices = @transform_1, window_bounds = array<i64: 9, 128, 256>}, {pipeline_mode = #tpu.pipeline_mode<synchronous>, transform_indices = @transform_2, window_bounds = array<i64: 1, 256>}, {pipeline_mode = #tpu.pipeline_mode<synchronous>, transform_indices = @transform_3, window_bounds = array<i64: 1, 256>}, {pipeline_mode = #tpu.pipeline_mode<synchronous>, transform_indices = @transform_4, window_bounds = array<i64: 4, 17>}, {transform_indices = @transform_5, window_bounds = array<i64: 1, 1, 256>}]} {
    %c0 = arith.constant 0 : index
    %c0_0 = arith.constant 0 : index
    %c0_1 = arith.constant 0 : index
    %0 = vector.load %arg1[%c0, %c0_0, %c0_1] : memref<1x40x128xbf16, #tpu.memory_space<vmem>>, vector<1x24x128xbf16>
    %1 = vector.shape_cast %0 : vector<1x24x128xbf16> to vector<24x128xbf16>
    %c0_2 = arith.constant 0 : index
    %c0_3 = arith.constant 0 : index
    %c0_4 = arith.constant 0 : index
    %2 = vector.load %arg2[%c0_2, %c0_3, %c0_4] : memref<9x128x256xbf16, #tpu.memory_space<vmem>>, vector<1x128x256xbf16>
    %3 = vector.shape_cast %2 : vector<1x128x256xbf16> to vector<128x256xbf16>
    %cst = arith.constant dense<0.000000e+00> : vector<24x256xf32>
    %4 = tpu.matmul %1, %3, %cst {dimension_numbers = #tpu.dot_dimension_numbers<[1], [0], [0], [1], [0, 0, 1, 1], [], []>} : vector<24x128xbf16>, vector<128x256xbf16>, vector<24x256xf32> -> vector<24x256xf32>
    %c0_5 = arith.constant 0 : index
    %c0_6 = arith.constant 0 : index
    %5 = vector.load %arg7[%c0_5, %c0_6] : memref<24x256xf32, #tpu.memory_space<vmem>>, vector<24x256xf32>
    tpu.vector_store %arg7[%c0_5, %c0_6], %4 {strides = array<i32>} : memref<24x256xf32, #tpu.memory_space<vmem>>, vector<24x256xf32>,
    %c0_7 = arith.constant 0 : index
    %c1 = arith.constant 1 : index
    %c0_8 = arith.constant 0 : index
    %6 = vector.load %arg1[%c0_7, %c1, %c0_8] : memref<1x40x128xbf16, #tpu.memory_space<vmem>>, vector<1x24x128xbf16>
    %7 = vector.shape_cast %6 : vector<1x24x128xbf16> to vector<24x128xbf16>
    %c1_9 = arith.constant 1 : index
    %c0_10 = arith.constant 0 : index
    %c0_11 = arith.constant 0 : index
    %8 = vector.load %arg2[%c1_9, %c0_10, %c0_11] : memref<9x128x256xbf16, #tpu.memory_space<vmem>>, vector<1x128x256xbf16>
    %9 = vector.shape_cast %8 : vector<1x128x256xbf16> to vector<128x256xbf16>
    %cst_12 = arith.constant dense<0.000000e+00> : vector<24x256xf32>
    %10 = tpu.matmul %7, %9, %cst_12 {dimension_numbers = #tpu.dot_dimension_numbers<[1], [0], [0], [1], [0, 0, 1, 1], [], []>} : vector<24x128xbf16>, vector<128x256xbf16>, vector<24x256xf32> -> vector<24x256xf32>
    %c0_13 = arith.constant 0 : index
    %c0_14 = arith.constant 0 : index
    %11 = vector.load %arg7[%c0_13, %c0_14] : memref<24x256xf32, #tpu.memory_space<vmem>>, vector<24x256xf32>
    %12 = arith.addf %11, %10 : vector<24x256xf32>
    %c0_15 = arith.constant 0 : index
    %c0_16 = arith.constant 0 : index
    %13 = vector.load %arg7[%c0_15, %c0_16] : memref<24x256xf32, #tpu.memory_space<vmem>>, vector<24x256xf32>
    tpu.vector_store %arg7[%c0_15, %c0_16], %12 {strides = array<i32>} : memref<24x256xf32, #tpu.memory_space<vmem>>, vector<24x256xf32>,
    %c0_17 = arith.constant 0 : index
    %c2 = arith.constant 2 : index
    %c0_18 = arith.constant 0 : index
    %14 = vector.load %arg1[%c0_17, %c2, %c0_18] : memref<1x40x128xbf16, #tpu.memory_space<vmem>>, vector<1x24x128xbf16>
    %15 = vector.shape_cast %14 : vector<1x24x128xbf16> to vector<24x128xbf16>
    %c2_19 = arith.constant 2 : index
    %c0_20 = arith.constant 0 : index
    %c0_21 = arith.constant 0 : index
    %16 = vector.load %arg2[%c2_19, %c0_20, %c0_21] : memref<9x128x256xbf16, #tpu.memory_space<vmem>>, vector<1x128x256xbf16>
    %17 = vector.shape_cast %16 : vector<1x128x256xbf16> to vector<128x256xbf16>
    %cst_22 = arith.constant dense<0.000000e+00> : vector<24x256xf32>
    %18 = tpu.matmul %15, %17, %cst_22 {dimension_numbers = #tpu.dot_dimension_numbers<[1], [0], [0], [1], [0, 0, 1, 1], [], []>} : vector<24x128xbf16>, vector<128x256xbf16>, vector<24x256xf32> -> vector<24x256xf32>
    %c0_23 = arith.constant 0 : index
    %c0_24 = arith.constant 0 : index
    %19 = vector.load %arg7[%c0_23, %c0_24] : memref<24x256xf32, #tpu.memory_space<vmem>>, vector<24x256xf32>
    %20 = arith.addf %19, %18 : vector<24x256xf32>
    %c0_25 = arith.constant 0 : index
    %c0_26 = arith.constant 0 : index
    %21 = vector.load %arg7[%c0_25, %c0_26] : memref<24x256xf32, #tpu.memory_space<vmem>>, vector<24x256xf32>
    tpu.vector_store %arg7[%c0_25, %c0_26], %20 {strides = array<i32>} : memref<24x256xf32, #tpu.memory_space<vmem>>, vector<24x256xf32>,
    %c0_27 = arith.constant 0 : index
    %c6 = arith.constant 6 : index
    %c0_28 = arith.constant 0 : index
    %22 = vector.load %arg1[%c0_27, %c6, %c0_28] : memref<1x40x128xbf16, #tpu.memory_space<vmem>>, vector<1x24x128xbf16>
    %23 = vector.shape_cast %22 : vector<1x24x128xbf16> to vector<24x128xbf16>
    %c3 = arith.constant 3 : index
    %c0_29 = arith.constant 0 : index
    %c0_30 = arith.constant 0 : index
    %24 = vector.load %arg2[%c3, %c0_29, %c0_30] : memref<9x128x256xbf16, #tpu.memory_space<vmem>>, vector<1x128x256xbf16>
    %25 = vector.shape_cast %24 : vector<1x128x256xbf16> to vector<128x256xbf16>
    %cst_31 = arith.constant dense<0.000000e+00> : vector<24x256xf32>
    %26 = tpu.matmul %23, %25, %cst_31 {dimension_numbers = #tpu.dot_dimension_numbers<[1], [0], [0], [1], [0, 0, 1, 1], [], []>} : vector<24x128xbf16>, vector<128x256xbf16>, vector<24x256xf32> -> vector<24x256xf32>
    %c0_32 = arith.constant 0 : index
    %c0_33 = arith.constant 0 : index
    %27 = vector.load %arg7[%c0_32, %c0_33] : memref<24x256xf32, #tpu.memory_space<vmem>>, vector<24x256xf32>
    %28 = arith.addf %27, %26 : vector<24x256xf32>
    %c0_34 = arith.constant 0 : index
    %c0_35 = arith.constant 0 : index
    %29 = vector.load %arg7[%c0_34, %c0_35] : memref<24x256xf32, #tpu.memory_space<vmem>>, vector<24x256xf32>
    tpu.vector_store %arg7[%c0_34, %c0_35], %28 {strides = array<i32>} : memref<24x256xf32, #tpu.memory_space<vmem>>, vector<24x256xf32>,
    %c0_36 = arith.constant 0 : index
    %c7 = arith.constant 7 : index
    %c0_37 = arith.constant 0 : index
    %30 = vector.load %arg1[%c0_36, %c7, %c0_37] : memref<1x40x128xbf16, #tpu.memory_space<vmem>>, vector<1x24x128xbf16>
    %31 = vector.shape_cast %30 : vector<1x24x128xbf16> to vector<24x128xbf16>
    %c4 = arith.constant 4 : index
    %c0_38 = arith.constant 0 : index
    %c0_39 = arith.constant 0 : index
    %32 = vector.load %arg2[%c4, %c0_38, %c0_39] : memref<9x128x256xbf16, #tpu.memory_space<vmem>>, vector<1x128x256xbf16>
    %33 = vector.shape_cast %32 : vector<1x128x256xbf16> to vector<128x256xbf16>
    %cst_40 = arith.constant dense<0.000000e+00> : vector<24x256xf32>
    %34 = tpu.matmul %31, %33, %cst_40 {dimension_numbers = #tpu.dot_dimension_numbers<[1], [0], [0], [1], [0, 0, 1, 1], [], []>} : vector<24x128xbf16>, vector<128x256xbf16>, vector<24x256xf32> -> vector<24x256xf32>
    %c0_41 = arith.constant 0 : index
    %c0_42 = arith.constant 0 : index
    %35 = vector.load %arg7[%c0_41, %c0_42] : memref<24x256xf32, #tpu.memory_space<vmem>>, vector<24x256xf32>
    %36 = arith.addf %35, %34 : vector<24x256xf32>
    %c0_43 = arith.constant 0 : index
    %c0_44 = arith.constant 0 : index
    %37 = vector.load %arg7[%c0_43, %c0_44] : memref<24x256xf32, #tpu.memory_space<vmem>>, vector<24x256xf32>
    tpu.vector_store %arg7[%c0_43, %c0_44], %36 {strides = array<i32>} : memref<24x256xf32, #tpu.memory_space<vmem>>, vector<24x256xf32>,
    %c0_45 = arith.constant 0 : index
    %c8 = arith.constant 8 : index
    %c0_46 = arith.constant 0 : index
    %38 = vector.load %arg1[%c0_45, %c8, %c0_46] : memref<1x40x128xbf16, #tpu.memory_space<vmem>>, vector<1x24x128xbf16>
    %39 = vector.shape_cast %38 : vector<1x24x128xbf16> to vector<24x128xbf16>
    %c5 = arith.constant 5 : index
    %c0_47 = arith.constant 0 : index
    %c0_48 = arith.constant 0 : index
    %40 = vector.load %arg2[%c5, %c0_47, %c0_48] : memref<9x128x256xbf16, #tpu.memory_space<vmem>>, vector<1x128x256xbf16>
    %41 = vector.shape_cast %40 : vector<1x128x256xbf16> to vector<128x256xbf16>
    %cst_49 = arith.constant dense<0.000000e+00> : vector<24x256xf32>
    %42 = tpu.matmul %39, %41, %cst_49 {dimension_numbers = #tpu.dot_dimension_numbers<[1], [0], [0], [1], [0, 0, 1, 1], [], []>} : vector<24x128xbf16>, vector<128x256xbf16>, vector<24x256xf32> -> vector<24x256xf32>
    %c0_50 = arith.constant 0 : index
    %c0_51 = arith.constant 0 : index
    %43 = vector.load %arg7[%c0_50, %c0_51] : memref<24x256xf32, #tpu.memory_space<vmem>>, vector<24x256xf32>
    %44 = arith.addf %43, %42 : vector<24x256xf32>
    %c0_52 = arith.constant 0 : index
    %c0_53 = arith.constant 0 : index
    %45 = vector.load %arg7[%c0_52, %c0_53] : memref<24x256xf32, #tpu.memory_space<vmem>>, vector<24x256xf32>
    tpu.vector_store %arg7[%c0_52, %c0_53], %44 {strides = array<i32>} : memref<24x256xf32, #tpu.memory_space<vmem>>, vector<24x256xf32>,
    %c0_54 = arith.constant 0 : index
    %c12 = arith.constant 12 : index
    %c0_55 = arith.constant 0 : index
    %46 = vector.load %arg1[%c0_54, %c12, %c0_55] : memref<1x40x128xbf16, #tpu.memory_space<vmem>>, vector<1x24x128xbf16>
    %47 = vector.shape_cast %46 : vector<1x24x128xbf16> to vector<24x128xbf16>
    %c6_56 = arith.constant 6 : index
    %c0_57 = arith.constant 0 : index
    %c0_58 = arith.constant 0 : index
    %48 = vector.load %arg2[%c6_56, %c0_57, %c0_58] : memref<9x128x256xbf16, #tpu.memory_space<vmem>>, vector<1x128x256xbf16>
    %49 = vector.shape_cast %48 : vector<1x128x256xbf16> to vector<128x256xbf16>
    %cst_59 = arith.constant dense<0.000000e+00> : vector<24x256xf32>
    %50 = tpu.matmul %47, %49, %cst_59 {dimension_numbers = #tpu.dot_dimension_numbers<[1], [0], [0], [1], [0, 0, 1, 1], [], []>} : vector<24x128xbf16>, vector<128x256xbf16>, vector<24x256xf32> -> vector<24x256xf32>
    %c0_60 = arith.constant 0 : index
    %c0_61 = arith.constant 0 : index
    %51 = vector.load %arg7[%c0_60, %c0_61] : memref<24x256xf32, #tpu.memory_space<vmem>>, vector<24x256xf32>
    %52 = arith.addf %51, %50 : vector<24x256xf32>
    %c0_62 = arith.constant 0 : index
    %c0_63 = arith.constant 0 : index
    %53 = vector.load %arg7[%c0_62, %c0_63] : memref<24x256xf32, #tpu.memory_space<vmem>>, vector<24x256xf32>
    tpu.vector_store %arg7[%c0_62, %c0_63], %52 {strides = array<i32>} : memref<24x256xf32, #tpu.memory_space<vmem>>, vector<24x256xf32>,
    %c0_64 = arith.constant 0 : index
    %c13 = arith.constant 13 : index
    %c0_65 = arith.constant 0 : index
    %54 = vector.load %arg1[%c0_64, %c13, %c0_65] : memref<1x40x128xbf16, #tpu.memory_space<vmem>>, vector<1x24x128xbf16>
    %55 = vector.shape_cast %54 : vector<1x24x128xbf16> to vector<24x128xbf16>
    %c7_66 = arith.constant 7 : index
    %c0_67 = arith.constant 0 : index
    %c0_68 = arith.constant 0 : index
    %56 = vector.load %arg2[%c7_66, %c0_67, %c0_68] : memref<9x128x256xbf16, #tpu.memory_space<vmem>>, vector<1x128x256xbf16>
    %57 = vector.shape_cast %56 : vector<1x128x256xbf16> to vector<128x256xbf16>
    %cst_69 = arith.constant dense<0.000000e+00> : vector<24x256xf32>
    %58 = tpu.matmul %55, %57, %cst_69 {dimension_numbers = #tpu.dot_dimension_numbers<[1], [0], [0], [1], [0, 0, 1, 1], [], []>} : vector<24x128xbf16>, vector<128x256xbf16>, vector<24x256xf32> -> vector<24x256xf32>
    %c0_70 = arith.constant 0 : index
    %c0_71 = arith.constant 0 : index
    %59 = vector.load %arg7[%c0_70, %c0_71] : memref<24x256xf32, #tpu.memory_space<vmem>>, vector<24x256xf32>
    %60 = arith.addf %59, %58 : vector<24x256xf32>
    %c0_72 = arith.constant 0 : index
    %c0_73 = arith.constant 0 : index
    %61 = vector.load %arg7[%c0_72, %c0_73] : memref<24x256xf32, #tpu.memory_space<vmem>>, vector<24x256xf32>
    tpu.vector_store %arg7[%c0_72, %c0_73], %60 {strides = array<i32>} : memref<24x256xf32, #tpu.memory_space<vmem>>, vector<24x256xf32>,
    %c0_74 = arith.constant 0 : index
    %c14 = arith.constant 14 : index
    %c0_75 = arith.constant 0 : index
    %62 = vector.load %arg1[%c0_74, %c14, %c0_75] : memref<1x40x128xbf16, #tpu.memory_space<vmem>>, vector<1x24x128xbf16>
    %63 = vector.shape_cast %62 : vector<1x24x128xbf16> to vector<24x128xbf16>
    %c8_76 = arith.constant 8 : index
    %c0_77 = arith.constant 0 : index
    %c0_78 = arith.constant 0 : index
    %64 = vector.load %arg2[%c8_76, %c0_77, %c0_78] : memref<9x128x256xbf16, #tpu.memory_space<vmem>>, vector<1x128x256xbf16>
    %65 = vector.shape_cast %64 : vector<1x128x256xbf16> to vector<128x256xbf16>
    %cst_79 = arith.constant dense<0.000000e+00> : vector<24x256xf32>
    %66 = tpu.matmul %63, %65, %cst_79 {dimension_numbers = #tpu.dot_dimension_numbers<[1], [0], [0], [1], [0, 0, 1, 1], [], []>} : vector<24x128xbf16>, vector<128x256xbf16>, vector<24x256xf32> -> vector<24x256xf32>
    %c0_80 = arith.constant 0 : index
    %c0_81 = arith.constant 0 : index
    %67 = vector.load %arg7[%c0_80, %c0_81] : memref<24x256xf32, #tpu.memory_space<vmem>>, vector<24x256xf32>
    %68 = arith.addf %67, %66 : vector<24x256xf32>
    %c0_82 = arith.constant 0 : index
    %c0_83 = arith.constant 0 : index
    %69 = vector.load %arg7[%c0_82, %c0_83] : memref<24x256xf32, #tpu.memory_space<vmem>>, vector<24x256xf32>
    tpu.vector_store %arg7[%c0_82, %c0_83], %68 {strides = array<i32>} : memref<24x256xf32, #tpu.memory_space<vmem>>, vector<24x256xf32>,
    %c0_84 = arith.constant 0 : index
    %c0_85 = arith.constant 0 : index
    %70 = vector.load %arg7[%c0_84, %c0_85] : memref<24x256xf32, #tpu.memory_space<vmem>>, vector<24x256xf32>
    %c0_86 = arith.constant 0 : index
    %c0_87 = arith.constant 0 : index
    %71 = vector.load %arg3[%c0_86, %c0_87] : memref<1x256xf32, #tpu.memory_space<vmem>>, vector<1x256xf32>
    %72 = vector.broadcast %71 : vector<1x256xf32> to vector<24x256xf32>
    %73 = arith.mulf %70, %72 : vector<24x256xf32>
    %c0_88 = arith.constant 0 : index
    %c0_89 = arith.constant 0 : index
    %74 = vector.load %arg4[%c0_88, %c0_89] : memref<1x256xf32, #tpu.memory_space<vmem>>, vector<1x256xf32>
    %75 = vector.broadcast %74 : vector<1x256xf32> to vector<24x256xf32>
    %76 = arith.addf %73, %75 : vector<24x256xf32>
    %cst_90 = arith.constant 0.000000e+00 : f32
    %77 = vector.broadcast %cst_90 : f32 to vector<24x256xf32>
    %78 = arith.maximumf %76, %77 : vector<24x256xf32>
    %c0_91 = arith.constant 0 : index
    %c0_92 = arith.constant 0 : index
    %79 = vector.load %arg7[%c0_91, %c0_92] : memref<24x256xf32, #tpu.memory_space<vmem>>, vector<24x256xf32>
    tpu.vector_store %arg7[%c0_91, %c0_92], %78 {strides = array<i32>} : memref<24x256xf32, #tpu.memory_space<vmem>>, vector<24x256xf32>,
    %c0_93 = arith.constant 0 : index
    %c0_94 = arith.constant 0 : index
    %80 = vector.load %arg7[%c0_93, %c0_94] : memref<24x256xf32, #tpu.memory_space<vmem>>, vector<17x256xf32>
    %c1_95 = arith.constant 1 : index
    %c0_96 = arith.constant 0 : index
    %81 = vector.load %arg7[%c1_95, %c0_96] : memref<24x256xf32, #tpu.memory_space<vmem>>, vector<17x256xf32>
    %82 = arith.maximumf %80, %81 : vector<17x256xf32>
    %c6_97 = arith.constant 6 : index
    %c0_98 = arith.constant 0 : index
    %83 = vector.load %arg7[%c6_97, %c0_98] : memref<24x256xf32, #tpu.memory_space<vmem>>, vector<17x256xf32>
    %c7_99 = arith.constant 7 : index
    %c0_100 = arith.constant 0 : index
    %84 = vector.load %arg7[%c7_99, %c0_100] : memref<24x256xf32, #tpu.memory_space<vmem>>, vector<17x256xf32>
    %85 = arith.maximumf %83, %84 : vector<17x256xf32>
    %86 = arith.maximumf %82, %85 : vector<17x256xf32>
    %c0_101 = arith.constant 0 : index
    %c0_102 = arith.constant 0 : index
    %87 = vector.load %arg5[%c0_101, %c0_102] : memref<4x17xf32, #tpu.memory_space<vmem>>, vector<4x17xf32>
    %cst_103 = arith.constant dense<0.000000e+00> : vector<4x256xf32>
    %88 = tpu.matmul %87, %86, %cst_103 {dimension_numbers = #tpu.dot_dimension_numbers<[1], [0], [0], [1], [0, 0, 1, 1], [], []>} : vector<4x17xf32>, vector<17x256xf32>, vector<4x256xf32> -> vector<4x256xf32>
    %cst_104 = arith.constant dense<0.000000e+00> : vector<256xf32>
    %89 = vector.multi_reduction <add>, %88, %cst_104 [0] : vector<4x256xf32> to vector<256xf32>
    %90 = vector.shape_cast %89 : vector<256xf32> to vector<1x256xf32>
    %cst_105 = arith.constant 2.500000e-01 : f32
    %91 = vector.broadcast %cst_105 : f32 to vector<1x256xf32>
    %92 = arith.mulf %90, %91 : vector<1x256xf32>
    %c0_106 = arith.constant 0 : index
    %c0_107 = arith.constant 0 : index
    %c0_108 = arith.constant 0 : index
    %93 = vector.load %arg6[%c0_106, %c0_107, %c0_108] : memref<1x1x256xf32, #tpu.memory_space<vmem>>, vector<1x1x256xf32>
    %94 = vector.shape_cast %93 : vector<1x1x256xf32> to vector<1x256xf32>
    %95 = vector.shape_cast %92 : vector<1x256xf32> to vector<1x1x256xf32>
    tpu.vector_store %arg6[%c0_106, %c0_107, %c0_108], %95 {strides = array<i32>} : memref<1x1x256xf32, #tpu.memory_space<vmem>>, vector<1x1x256xf32>,
    return
  }
  func.func @transform_0(%arg0: i32) -> (i32, i32, i32) {
    %c0_i32 = arith.constant 0 : i32
    %c0_i32_0 = arith.constant 0 : i32
    %c0_i32_1 = arith.constant 0 : i32
    return %arg0, %c0_i32, %c0_i32_0 : i32, i32, i32
  }
  func.func @transform_1(%arg0: i32) -> (i32, i32, i32) {
    %c0_i32 = arith.constant 0 : i32
    %c0_i32_0 = arith.constant 0 : i32
    %c0_i32_1 = arith.constant 0 : i32
    %c0_i32_2 = arith.constant 0 : i32
    return %c0_i32, %c0_i32_0, %c0_i32_1 : i32, i32, i32
  }
  func.func @transform_2(%arg0: i32) -> (i32, i32) {
    %c0_i32 = arith.constant 0 : i32
    %c0_i32_0 = arith.constant 0 : i32
    %c0_i32_1 = arith.constant 0 : i32
    return %c0_i32, %c0_i32_0 : i32, i32
  }
  func.func @transform_3(%arg0: i32) -> (i32, i32) {
    %c0_i32 = arith.constant 0 : i32
    %c0_i32_0 = arith.constant 0 : i32
    %c0_i32_1 = arith.constant 0 : i32
    return %c0_i32, %c0_i32_0 : i32, i32
  }
  func.func @transform_4(%arg0: i32) -> (i32, i32) {
    %c0_i32 = arith.constant 0 : i32
    %c0_i32_0 = arith.constant 0 : i32
    %c0_i32_1 = arith.constant 0 : i32
    return %c0_i32, %c0_i32_0 : i32, i32
  }
  func.func @transform_5(%arg0: i32) -> (i32, i32, i32) {
    %c0_i32 = arith.constant 0 : i32
    %c0_i32_0 = arith.constant 0 : i32
    %c0_i32_1 = arith.constant 0 : i32
    return %arg0, %c0_i32, %c0_i32_0 : i32, i32, i32
  }
}

</mosaic_0001>

<bundles_post_ra>
// kernel: _lambda_.7
= control target key start
LH: loop header
LB: loop body
LE: loop exit
PB: predicated region body
PF: predicated region fallthrough
CT: control target
= control target key end

     0   :  { %v1361_v61 = vmov 0.0   ;;  %vm1362_vm0 = vmmov 0   ;;  %s1752_s1 = inlined_call_operand.vmem [shape: bf16[256,384], index: 1, kind: input, shape index: {}]   ;;  %s1753_s0 = inlined_call_operand.vmem [shape: f32[8,256], index: 0, kind: input, shape index: {}]   ;;  %s1754_s4 = inlined_call_operand.vmem [shape: bf16[384,128], index: 4, kind: input, shape index: {}]   ;;  %s1755_s7 = inlined_call_operand.vmem [shape: bf16[128,128], index: 7, kind: input, shape index: {}]   ;;  %s1756_s2 = inlined_call_operand.vmem [shape: f32[1,384], index: 2, kind: input, shape index: {}]   ;;  %s1757_s3 = inlined_call_operand.vmem [shape: f32[1,384], index: 3, kind: input, shape index: {}]   ;;  %s1758_s10 = inlined_call_operand.vmem [shape: bf16[128,128], index: 10, kind: input, shape index: {}]   ;;  %s1759_s5 = inlined_call_operand.vmem [shape: f32[1,128], index: 5, kind: input, shape index: {}]   ;;  %s1760_s6 = inlined_call_operand.vmem [shape: f32[1,128], index: 6, kind: input, shape index: {}]   ;;  %s1761_s8 = inlined_call_operand.vmem [shape: f32[1,128], index: 8, kind: input, shape index: {}]   ;;  %s1762_s9 = inlined_call_operand.vmem [shape: f32[1,128], index: 9, kind: input, shape index: {}]   ;;  %s1763_s11 = inlined_call_operand.vmem [shape: f32[1,128], index: 11, kind: input, shape index: {}]   ;;  %s1764_s12 = inlined_call_operand.vmem [shape: f32[8,128], index: 12, kind: output, shape index: {}]  }
   0x1   :  { %v1253_v0 = vld [vmem:[%s1752_s1 + $0xac] ss:$12 sps:$4 sm:$0xff]   ;;  %v1255_v1 = vld [vmem:[%s1752_s1 + $0xa8] ss:$12 sps:$4 sm:$0xff]   ;;  %v1258_v3 = vld [vmem:[%s1752_s1 + $0x90] ss:$12 sps:$4 sm:$0xff]  }
   0x2   :  { %366 = vmatprep.subr.bf16.mxu0 %v1253_v0  ;;  %v1256_v2 = vld [vmem:[%s1752_s1 + $0x94] ss:$12 sps:$4 sm:$0xff]   ;;  %v1259_v4 = vld [vmem:[%s1752_s1 + $0x7c] ss:$12 sps:$4 sm:$0xff]   ;;  %v1261_v5 = vld [vmem:[%s1752_s1 + $0x78] ss:$12 sps:$4 sm:$0xff]  }
   0x3   :  { %367 = vmatpush1.bf16.msra.mxu0 %v1255_v1  ;;  %v1262_v6 = vld [vmem:[%s1752_s1 + $0x64] ss:$12 sps:$4 sm:$0xff]   ;;  %v1264_v8 = vld [vmem:[%s1752_s1 + $0x60] ss:$12 sps:$4 sm:$0xff]   ;;  %v1267_v12 = vld [vmem:[%s1752_s1 + $0x48] ss:$12 sps:$4 sm:$0xff]  }
   0x4   :  { %368 = vmatprep.subr.bf16.mxu0 %v1256_v2  ;;  %v1274_v7 = vld [vmem:[%s1752_s1 + $0x170] ss:$12 sps:$4 sm:$0xff]   ;;  %v1265_v9 = vld [vmem:[%s1752_s1 + $0x4c] ss:$12 sps:$4 sm:$0xff]   ;;  %v1268_v13 = vld [vmem:[%s1752_s1 + $0x34] ss:$12 sps:$4 sm:$0xff]  }
   0x5   :  { %1120 = vmatprep.subr.bf16.mxu1 %v1274_v7  ;;  %v1277_v10 = vld [vmem:[%s1752_s1 + $0xb0] ss:$12 sps:$4 sm:$0xff]   ;;  %v1279_v11 = vld [vmem:[%s1752_s1 + $0x158] ss:$12 sps:$4 sm:$0xff]   ;;  %v1284_v15 = vld [vmem:[%s1752_s1 + $0x140] ss:$12 sps:$4 sm:$0xff]  }
   0x6   :  { %1121 = vmatpush3.bf16.msra.mxu1 %v1277_v10  ;;  %v1282_v14 = vld [vmem:[%s1752_s1 + $0x98] ss:$12 sps:$4 sm:$0xff]   ;;  %v1270_v16 = vld [vmem:[%s1752_s1 + $0x30] ss:$12 sps:$4 sm:$0xff]   ;;  %v1287_v17 = vld [vmem:[%s1752_s1 + $0x80] ss:$12 sps:$4 sm:$0xff]  }
   0x7   :  { %369 = vmatpush1.bf16.msra.mxu0 %v1258_v3  ;;  %1122 = vmatprep.subr.bf16.mxu1 %v1279_v11  ;;  %v1271_v18 = vld [vmem:[%s1752_s1 + $0x1c] ss:$12 sps:$4 sm:$0xff]   ;;  %v1273_v20 = vld [vmem:[%s1752_s1 + $0x18] ss:$12 sps:$4 sm:$0xff]   ;;  %v1278_v24 = vld [vmem:[%s1752_s1] ss:$12 sps:$4 sm:$0xff]  }
   0x8   :  { %370 = vmatprep.subr.bf16.mxu0 %v1259_v4  ;;  %v1289_v19 = vld [vmem:[%s1752_s1 + $0x128] ss:$12 sps:$4 sm:$0xff]   ;;  %v1294_v22 = vld [vmem:[%s1752_s1 + $0x110] ss:$12 sps:$4 sm:$0xff]   ;;  %v1299_v26 = vld [vmem:[%s1752_s1 + $0xf8] ss:$12 sps:$4 sm:$0xff]  }
   0x9   :  { %v1292_v21 = vld [vmem:[%s1752_s1 + $0x68] ss:$12 sps:$4 sm:$0xff]   ;;  %v1275_v23 = vld [vmem:[%s1752_s1 + $0x4] ss:$12 sps:$4 sm:$0xff]   ;;  %v1280_v27 = vld [vmem:[%s1752_s1 + $0x16c] ss:$12 sps:$4 sm:$0xff]  }
   0xa   :  { %1123 = vmatpush3.bf16.msra.mxu1 %v1282_v14  ;;  %v1297_v25 = vld [vmem:[%s1752_s1 + $0x50] ss:$12 sps:$4 sm:$0xff]   ;;  %v1283_v28 = vld [vmem:[%s1752_s1 + $0x168] ss:$12 sps:$4 sm:$0xff]   ;;  %v1302_v29 = vld [vmem:[%s1752_s1 + $0x38] ss:$12 sps:$4 sm:$0xff]  }
   0xb   :  { %371 = vmatpush1.bf16.msra.mxu0 %v1261_v5  ;;  %1124 = vmatprep.subr.bf16.mxu1 %v1284_v15  ;;  %v1304_v30 = vld [vmem:[%s1752_s1 + $0xe0] ss:$12 sps:$4 sm:$0xff]   ;;  %v1288_v33 = vld [vmem:[%s1752_s1 + $0x150] ss:$12 sps:$4 sm:$0xff]   ;;  %v1309_v34 = vld [vmem:[%s1752_s1 + $0xc8] ss:$12 sps:$4 sm:$0xff]  }
   0xc   :  { %372 = vmatprep.subr.bf16.mxu0 %v1262_v6  ;;  %v1285_v31 = vld [vmem:[%s1752_s1 + $0x154] ss:$12 sps:$4 sm:$0xff]   ;;  %v1290_v35 = vld [vmem:[%s1752_s1 + $0x13c] ss:$12 sps:$4 sm:$0xff]   ;;  %v1293_v37 = vld [vmem:[%s1752_s1 + $0x138] ss:$12 sps:$4 sm:$0xff]  }
   0xd   :  { %v1307_v32 = vld [vmem:[%s1752_s1 + $0x20] ss:$12 sps:$4 sm:$0xff]   ;;  %v1312_v38 = vld [vmem:[%s1752_s1 + $0x8] ss:$12 sps:$4 sm:$0xff]   ;;  %v1318_v41 = vld [vmem:[%s1754_s4 + $0x78] sm:$0xff]  }
   0xe   :  { %1125 = vmatpush3.bf16.msra.mxu1 %v1287_v17  ;;  %v43_v36 = vld [vmem:[%s1753_s0 + $0x8] sm:$0xff]  ;;  %v42_v40 = vld [vmem:[%s1753_s0] sm:$0xff]  ;;  %v1319_v45 = vld [vmem:[%s1754_s4 + $0x38] sm:$0xff]  }
   0xf   :  { %373 = vmatpush1.bf16.msra.mxu0 %v1264_v8  ;;  %1126 = vmatprep.subr.bf16.mxu1 %v1289_v19  ;;  %v45_v39 = vpack.c.bf16 %v43_v36, %v43_v36  ;;  %v1295_v42 = vld [vmem:[%s1752_s1 + $0x124] ss:$12 sps:$4 sm:$0xff]   ;;  %v1298_v43 = vld [vmem:[%s1752_s1 + $0x120] ss:$12 sps:$4 sm:$0xff]   ;;  %v44_v44 = vpack.c.bf16 %v42_v40, %v42_v40  ;;  %v1303_v48 = vld [vmem:[%s1752_s1 + $0x108] ss:$12 sps:$4 sm:$0xff]  }
  0x10   :  { %374 = vmatprep.subr.bf16.mxu0 %v1265_v9  ;;  %v1321_v46 = vld [vmem:[%s1754_s4 + $0x70] sm:$0xff]   ;;  %v1300_v47 = vld [vmem:[%s1752_s1 + $0x10c] ss:$12 sps:$4 sm:$0xff]   ;;  %v1310_v54 = vld [vmem:[%s1752_s1 + $0xdc] ss:$12 sps:$4 sm:$0xff]  }
  0x11   :  { %439 = vmatprep.mubr.bf16.mxu1 %v45_v39  ;;  %398 = vmatprep.mubr.bf16.mxu0 %v45_v39  ;;  %v1322_v49 = vld [vmem:[%s1754_s4 + $0x30] sm:$0xff]   ;;  %v1324_v50 = vld [vmem:[%s1754_s4 + $0x68] sm:$0xff]   ;;  %v1327_v55 = vld [vmem:[%s1754_s4 + $0x60] sm:$0xff]  }
  0x12   :  { %1127 = vmatpush3.bf16.msra.mxu1 %v1292_v21  ;;  %v1305_v51 = vld [vmem:[%s1752_s1 + $0xf4] ss:$12 sps:$4 sm:$0xff]   ;;  %v1308_v52 = vld [vmem:[%s1752_s1 + $0xf0] ss:$12 sps:$4 sm:$0xff]   ;;  %v1325_v53 = vld [vmem:[%s1754_s4 + $0x28] sm:$0xff]  }
  0x13   :  { %375 = vmatpush1.bf16.msra.mxu0 %v1267_v12  ;;  %1128 = vmatprep.subr.bf16.mxu1 %v1294_v22  ;;  %v1328_v56 = vld [vmem:[%s1754_s4 + $0x20] sm:$0xff]   ;;  %v1317_v60 = vld [vmem:[%s1754_s4 + $0xb8] sm:$0xff]   ;;  %v1320_v62 = vld [vmem:[%s1754_s4 + $0xb0] sm:$0xff]  }
  0x14   :  { %376 = vmatprep.subr.bf16.mxu0 %v1268_v13  ;;  %v1313_v57 = vld [vmem:[%s1752_s1 + $0xd8] ss:$12 sps:$4 sm:$0xff]   ;;  %v1316_v59 = vld [vmem:[%s1752_s1 + $0xc0] ss:$12 sps:$4 sm:$0xff]   ;;  %v1332_v4 = vld [vmem:[%s1754_s4 + $0x90] sm:$0xff]   ;;  %v449_v13 = vlaneseq }
  0x15   :  { %v1314_v58 = vld [vmem:[%s1752_s1 + $0xc4] ss:$12 sps:$4 sm:$0xff]   ;;  %v1323_v63 = vld [vmem:[%s1754_s4 + $0xa8] sm:$0xff]   ;;  %v1329_v1 = vld [vmem:[%s1754_s4 + $0x98] sm:$0xff]  }
  0x16   :  { %1129 = vmatpush3.bf16.msra.mxu1 %v1297_v25  ;;  %v1326_v0 = vld [vmem:[%s1754_s4 + $0xa0] sm:$0xff]   ;;  %v1330_v2 = vld [vmem:[%s1754_s4 + $0x58] sm:$0xff]   ;;  %v1333_v5 = vld [vmem:[%s1754_s4 + $0x50] sm:$0xff]   ;;  %v450_v14 = vshrl.u32 %v449_v13, 7 }
  0x17   :  { %377 = vmatpush1.bf16.msra.mxu0 %v1270_v16  ;;  %1130 = vmatprep.subr.bf16.mxu1 %v1299_v26  ;;  %v1331_v3 = vld [vmem:[%s1754_s4 + $0x18] sm:$0xff]   ;;  %v1334_v6 = vld [vmem:[%s1754_s4 + $0x10] sm:$0xff]   ;;  %v1335_v7 = vld [vmem:[%s1754_s4 + $0x88] sm:$0xff]  }
  0x18   :  { %378 = vmatprep.subr.bf16.mxu0 %v1271_v18  ;;  %v1336_v8 = vld [vmem:[%s1754_s4 + $0x48] sm:$0xff]   ;;  %v1338_v10 = vld [vmem:[%s1754_s4 + $0x80] sm:$0xff]   ;;  %v459_v15 = vsub.s32 2, %v450_v14 }
  0x19   :  { %v1337_v9 = vld [vmem:[%s1754_s4 + $0x8] sm:$0xff]   ;;  %v1339_v11 = vld [vmem:[%s1754_s4 + $0x40] sm:$0xff]  }
  0x1a   :  { %1131 = vmatpush3.bf16.msra.mxu1 %v1302_v29  ;;  %v1340_v12 = vld [vmem:[%s1754_s4] sm:$0xff]   ;;  %v451_v29 = vsub.s32 0, %v450_v14 }
  0x1b   :  { %379 = vmatpush1.bf16.msra.mxu0 %v1273_v20  ;;  %1132 = vmatprep.subr.bf16.mxu1 %v1304_v30  ;;  %v447_v16 = vld [vmem:[%s1756_s2] sm:$0x7]  ;;  %v455_v30 = vsub.s32 1, %v450_v14  ;;  %v1355_v14 = vld [vmem:[%s1758_s10 + $0x8] sm:$0xff]  }
  0x1c   :  { %380 = vmatprep.subr.bf16.mxu0 %v1275_v23  ;;  %v467_v18 = vld [vmem:[%s1757_s3] sm:$0x7]  ;;  %v460_v19 = vrot.slane %v447_v16, %v459_v15 }
  0x1d   :  { %v480_v22 = vrot.slane %v467_v18, %v459_v15  ;;  %v476_v36 = vrot.slane %v467_v18, %v455_v30  ;;  %v1356_v15 = vld [vmem:[%s1758_s10] sm:$0xff]  }
  0x1e   :  { %1133 = vmatpush3.bf16.msra.mxu1 %v1307_v32  ;;  %v472_v32 = vrot.slane %v467_v18, %v451_v29  ;;  %v1110_v18 = vld [vmem:[%s1762_s9] ss:$0 sm:$0xff] }
  0x1f   :  { %381 = vmatpush1.bf16.msra.mxu0 %v1278_v24  ;;  %1134 = vmatprep.subr.bf16.mxu1 %v1309_v34 }
  0x20   :  { %382 = vmatprep.subr.bf16.mxu0 %v1280_v27 }
  0x22   :  { %1135 = vmatpush3.bf16.msra.mxu1 %v1312_v38 }
  0x23   :  { %383 = vmatpush2.bf16.msra.mxu0 %v1283_v28  ;;  %1142 = vmatprep.subr.bf16.mxu1 %v1318_v41 }
  0x24   :  { %384 = vmatprep.subr.bf16.mxu0 %v1285_v31  ;;  %v452_v31 = vrot.slane %v447_v16, %v451_v29 }
  0x25   :  { %440 = vmatmul.mubr.bf16.vlgmr.msra.gmra.mxu1 %v44_v44 }
  0x26   :  { %1143 = vmatpush3.bf16.msra.mxu1 %v1319_v45 }
  0x27   :  { %385 = vmatpush2.bf16.msra.mxu0 %v1288_v33  ;;  %1144 = vmatprep.subr.bf16.mxu1 %v1321_v46  ;;  %v456_v33 = vrot.slane %v447_v16, %v455_v30  ;;  %v1341_v46 = vld [vmem:[%s1755_s7 + $0x38] sm:$0xff]   ;;  %v1109_v16 = vld [vmem:[%s1761_s8] ss:$0 sm:$0xff] }
  0x28   :  { %386 = vmatprep.subr.bf16.mxu0 %v1290_v35 }
  0x2a   :  { %1145 = vmatpush3.bf16.msra.mxu1 %v1322_v49  ;;  %v1343_v49 = vld [vmem:[%s1755_s7 + $0x28] sm:$0xff]  }
  0x2b   :  { %387 = vmatpush2.bf16.msra.mxu0 %v1293_v37  ;;  %1146 = vmatprep.subr.bf16.mxu1 %v1324_v50  ;;  %v1344_v50 = vld [vmem:[%s1755_s7 + $0x20] sm:$0xff]  }
  0x2c   :  { %388 = vmatprep.subr.bf16.mxu0 %v1295_v42 }
  0x2e   :  { %1147 = vmatpush3.bf16.msra.mxu1 %v1325_v53  ;;  %v1347_v53 = vld [vmem:[%s1755_s7 + $0x8] sm:$0xff]  }
  0x2f   :  { %389 = vmatpush2.bf16.msra.mxu0 %v1298_v43  ;;  %1148 = vmatprep.subr.bf16.mxu1 %v1327_v55  ;;  %v1349_v55 = vld [vmem:[%s1758_s10 + $0x38] sm:$0xff]  }
  0x30   :  { %390 = vmatprep.subr.bf16.mxu0 %v1300_v47 }
  0x32   :  { %1149 = vmatpush3.bf16.msra.mxu1 %v1328_v56  ;;  %v1350_v56 = vld [vmem:[%s1758_s10 + $0x30] sm:$0xff]  }
  0x33   :  { %391 = vmatpush2.bf16.msra.mxu0 %v1303_v48  ;;  %1150 = vmatprep.subr.bf16.mxu1 %v1330_v2  ;;  %v1342_v48 = vld [vmem:[%s1755_s7 + $0x30] sm:$0xff]  }
  0x34   :  { %392 = vmatprep.subr.bf16.mxu0 %v1305_v51  ;;  %v1345_v51 = vld [vmem:[%s1755_s7 + $0x18] sm:$0xff]  }
  0x36   :  { %1151 = vmatpush3.bf16.msra.mxu1 %v1331_v3 }
  0x37   :  { %393 = vmatpush2.bf16.msra.mxu0 %v1308_v52  ;;  %1152 = vmatprep.subr.bf16.mxu1 %v1333_v5  ;;  %v1346_v52 = vld [vmem:[%s1755_s7 + $0x10] sm:$0xff]   ;;  %v1099_v5 = vld [vmem:[%s1759_s5] ss:$0 sm:$0xff] }
  0x38   :  { %394 = vmatprep.subr.bf16.mxu0 %v1310_v54  ;;  %v1348_v54 = vld [vmem:[%s1755_s7] sm:$0xff]  }
  0x3a   :  { %1153 = vmatpush3.bf16.msra.mxu1 %v1334_v6 }
  0x3b   :  { %395 = vmatpush2.bf16.msra.mxu0 %v1313_v57  ;;  %1154 = vmatprep.subr.bf16.mxu1 %v1336_v8  ;;  %v1351_v57 = vld [vmem:[%s1758_s10 + $0x28] sm:$0xff]   ;;  %v1100_v8 = vld [vmem:[%s1760_s6] ss:$0 sm:$0xff] }
  0x3c   :  { %396 = vmatprep.subr.bf16.mxu0 %v1314_v58  ;;  %v1352_v58 = vld [vmem:[%s1758_s10 + $0x20] sm:$0xff]  }
  0x3e   :  { %1155 = vmatpush3.bf16.msra.mxu1 %v1337_v9 }
  0x3f   :  { %397 = vmatpush2.bf16.msra.mxu0 %v1316_v59  ;;  %1156 = vmatprep.subr.bf16.mxu1 %v1339_v11  ;;  %v1353_v59 = vld [vmem:[%s1758_s10 + $0x18] sm:$0xff]  }
  0x40   :  { %1191 = vmatprep.subr.bf16.mxu0 %v1361_v61 }
  0x42   :  { %399 = vmatmul.mubr.bf16.vlgmr.msra.gmra.mxu0 %v44_v44  ;;  %1157 = vmatpush3.bf16.msra.mxu1 %v1340_v12 }
  0x43   :  { %1192 = vmatpush3.bf16.msra.mxu0 %v1317_v60  ;;  %1207 = vmatprep.mubr.msk.bf16.mxu0 %vm1362_vm0, %v1361_v61  ;;  %v1354_v60 = vld [vmem:[%s1758_s10 + $0x10] sm:$0xff]  }
  0x44   :  { %1193 = vmatprep.subr.bf16.mxu0 %v1361_v61  ;;  %1211 = vmatprep.subr.bf16.mxu1 %v1361_v61 }
  0x47   :  { %1194 = vmatpush3.bf16.msra.mxu0 %v1320_v62 }
  0x48   :  { %1195 = vmatprep.subr.bf16.mxu0 %v1361_v61 }
  0x4b   :  { %1196 = vmatpush3.bf16.msra.mxu0 %v1323_v63 }
  0x4c   :  { %1197 = vmatprep.subr.bf16.mxu0 %v1361_v61 }
  0x4f   :  { %1198 = vmatpush3.bf16.msra.mxu0 %v1326_v0 }
  0x50   :  { %1199 = vmatprep.subr.bf16.mxu0 %v1361_v61 }
  0x53   :  { %1200 = vmatpush3.bf16.msra.mxu0 %v1329_v1 }
  0x54   :  { %1201 = vmatprep.subr.bf16.mxu0 %v1361_v61 }
  0x57   :  { %1202 = vmatpush3.bf16.msra.mxu0 %v1332_v4 }
  0x58   :  { %1203 = vmatprep.subr.bf16.mxu0 %v1361_v61 }
  0x5b   :  { %1204 = vmatpush3.bf16.msra.mxu0 %v1335_v7 }
  0x5c   :  { %1205 = vmatprep.subr.bf16.mxu0 %v1361_v61 }
  0x5f   :  { %1206 = vmatpush3.bf16.msra.mxu0 %v1338_v10 }
  0x60   :  { %1231 = vmatprep.subr.bf16.mxu0 %v1361_v61 }
  0xe5   :  { %v1136_v17 = vpop.f32.mrf.mxu1 }
  0xe7   :  { %v1137_v20 = vpop.f32.mrf.mxu1 }
  0xe8   :  { %v1138_v21 = vadd.f32 %v1137_v20, %v1136_v17 }
  0xe9   :  { %v1139_v23 = vpop.f32.mrf.mxu1 }
  0xea   :  { %v466_v24 = vmul.f32 %v1138_v21, %v460_v19 }
  0xeb   :  { %v1140_v25 = vpop.f32.mrf.mxu1 }
  0xec   :  { %v486_v26 = vadd.f32 %v480_v22, %v466_v24  ;;  %v1111_v25 = vld [vmem:[%s1763_s11] ss:$0 sm:$0xff] }
  0xee   :  { %v489_v27 = vmax.f32 %v486_v26, 0.0 }
  0xf0   :  { %v492_v28 = vpack.c.bf16 %v489_v27, %v489_v27 }
  0xf2   :  { %1208 = vmatmul.mubr.bf16.vlgmr.msra.gmra.mxu0 %v492_v28 }
  0xf3   :  { %1247 = vmatprep.mubr.msk.bf16.mxu0 %vm1362_vm0, %v1361_v61  ;;  %1232 = vmatpush3.bf16.msra.mxu0 %v1349_v55 }
  0xf4   :  { %1233 = vmatprep.subr.bf16.mxu0 %v1361_v61 }
  0xf7   :  { %1234 = vmatpush3.bf16.msra.mxu0 %v1350_v56 }
  0xf8   :  { %1235 = vmatprep.subr.bf16.mxu0 %v1361_v61 }
  0xfb   :  { %1236 = vmatpush3.bf16.msra.mxu0 %v1351_v57 }
  0xfc   :  { %1237 = vmatprep.subr.bf16.mxu0 %v1361_v61 }
  0xff   :  { %1238 = vmatpush3.bf16.msra.mxu0 %v1352_v58 }
 0x100   :  { %1239 = vmatprep.subr.bf16.mxu0 %v1361_v61 }
 0x102   :  { %v400_v34 = vpop.f32.mrf.mxu0 }
 0x103   :  { %v464_v35 = vmul.f32 %v452_v31, %v400_v34  ;;  %1240 = vmatpush3.bf16.msra.mxu0 %v1353_v59 }
 0x104   :  { %v402_v37 = vpop.f32.mrf.mxu0  ;;  %1241 = vmatprep.subr.bf16.mxu0 %v1361_v61 }
 0x105   :  { %v484_v38 = vadd.f32 %v472_v32, %v464_v35  ;;  %v465_v39 = vmul.f32 %v456_v33, %v402_v37 }
 0x106   :  { %v404_v40 = vpop.f32.mrf.mxu0 }
 0x107   :  { %v485_v41 = vadd.f32 %v476_v36, %v465_v39  ;;  %v487_v42 = vmax.f32 %v484_v38, 0.0  ;;  %1242 = vmatpush3.bf16.msra.mxu0 %v1354_v60 }
 0x108   :  { %v405_v43 = vpop.f32.mrf.mxu0  ;;  %1243 = vmatprep.subr.bf16.mxu0 %v1361_v61 }
 0x109   :  { %v488_v44 = vmax.f32 %v485_v41, 0.0  ;;  %v490_v47 = vpack.c.bf16 %v487_v42, %v487_v42 }
 0x10b   :  { %v491_v45 = vpack.c.bf16 %v488_v44, %v488_v44  ;;  %1244 = vmatpush3.bf16.msra.mxu0 %v1355_v14 }
 0x10c   :  { %1245 = vmatprep.subr.bf16.mxu0 %v1361_v61 }
 0x10d   :  { %717 = vmatprep.mubr.bf16.mxu1 %v491_v45 }
 0x10e   :  { %718 = vmatmul.mubr.bf16.vlgmr.msra.gmra.mxu1 %v490_v47 }
 0x10f   :  { %1212 = vmatpush3.bf16.msra.mxu1 %v1341_v46  ;;  %1227 = vmatprep.mubr.msk.bf16.mxu1 %vm1362_vm0, %v1361_v61 }
 0x110   :  { %1213 = vmatprep.subr.bf16.mxu1 %v1361_v61  ;;  %1246 = vmatpush3.bf16.msra.mxu0 %v1356_v15 }
 0x113   :  { %1214 = vmatpush3.bf16.msra.mxu1 %v1342_v48 }
 0x114   :  { %1215 = vmatprep.subr.bf16.mxu1 %v1361_v61 }
 0x117   :  { %1216 = vmatpush3.bf16.msra.mxu1 %v1343_v49 }
 0x118   :  { %1217 = vmatprep.subr.bf16.mxu1 %v1361_v61 }
 0x11b   :  { %1218 = vmatpush3.bf16.msra.mxu1 %v1344_v50 }
 0x11c   :  { %1219 = vmatprep.subr.bf16.mxu1 %v1361_v61 }
 0x11f   :  { %1220 = vmatpush3.bf16.msra.mxu1 %v1345_v51 }
 0x120   :  { %1221 = vmatprep.subr.bf16.mxu1 %v1361_v61 }
 0x123   :  { %1222 = vmatpush3.bf16.msra.mxu1 %v1346_v52 }
 0x124   :  { %1223 = vmatprep.subr.bf16.mxu1 %v1361_v61 }
 0x127   :  { %1224 = vmatpush3.bf16.msra.mxu1 %v1347_v53 }
 0x128   :  { %1225 = vmatprep.subr.bf16.mxu1 %v1361_v61 }
 0x12b   :  { %1226 = vmatpush3.bf16.msra.mxu1 %v1348_v54 }
 0x1b2   :  { %v759_v62 = vpop.f32.mrf.mxu0 }
 0x1b4   :  { %v1209_v63 = vpop.f32.mrf.mxu0 }
 0x1b6   :  { %v762_v0 = vpop.f32.mrf.mxu0 }
 0x1b8   :  { %v1210_v1 = vpop.f32.mrf.mxu0 }
 0x1ce   :  { %v1158_v2 = vpop.f32.mrf.mxu1 }
 0x1d0   :  { %v1159_v3 = vpop.f32.mrf.mxu1 }
 0x1d1   :  { %v1160_v4 = vadd.f32 %v1159_v3, %v1158_v2 }
 0x1d2   :  { %v1161_v6 = vpop.f32.mrf.mxu1 }
 0x1d3   :  { %v760_v7 = vadd.f32 %v1160_v4, %v759_v62 }
 0x1d4   :  { %v1162_v9 = vpop.f32.mrf.mxu1 }
 0x1d5   :  { %v772_v10 = vmul.f32 %v1099_v5, %v760_v7 }
 0x1d7   :  { %v780_v11 = vadd.f32 %v1100_v8, %v772_v10 }
 0x1d9   :  { %v781_v12 = vmax.f32 %v780_v11, 0.0 }
 0x1db   :  { %v782_v13 = vpack.c.bf16 %v781_v12, %v781_v12 }
 0x1dd   :  { %1228 = vmatmul.mubr.bf16.vlgmr.msra.gmra.mxu1 %v782_v13 }
 0x29d   :  { %v881_v17 = vpop.f32.mrf.mxu1 }
 0x29e   :  { %v894_v19 = vmul.f32 %v1109_v16, %v881_v17 }
 0x29f   :  { %v1229_v20 = vpop.f32.mrf.mxu1 }
 0x2a0   :  { %v902_v21 = vadd.f32 %v1110_v18, %v894_v19 }
 0x2a1   :  { %v884_v22 = vpop.f32.mrf.mxu1 }
 0x2a2   :  { %v903_v23 = vmax.f32 %v902_v21, 0.0 }
 0x2a3   :  { %v1230_v61 = vpop.f32.mrf.mxu1 }
 0x2a4   :  { %v904_v24 = vpack.c.bf16 %v903_v23, %v903_v23 }
 0x2a6   :  { %1248 = vmatmul.mubr.bf16.vlgmr.msra.gmra.mxu0 %v904_v24 }
 0x366   :  { %v1010_v26 = vpop.f32.mrf.mxu0 }
 0x367   :  { %v1011_v27 = vadd.f32 %v1111_v25, %v1010_v26 }
 0x368   :  { %v1249_v28 = vpop.f32.mrf.mxu0 }
 0x369   :  { %v1016_v29 = vsub.f32 0.0, %v1011_v27 }
 0x36a   :  { %v1013_v30 = vpop.f32.mrf.mxu0 }
 0x36b   :  { %v1017_v31 = vmul.f32 1.442695, %v1016_v29 }
 0x36c   :  { %v1250_v32 = vpop.f32.mrf.mxu0 }
 0x36d   :  { %1357 = vpow2.f32 %v1017_v31 }
 0x37a   :  { %v1358_v33 = vpop.eup %1357 }
 0x37b   :  { %v1019_v34 = vadd.f32 1.0, %v1358_v33 }
 0x37d   :  { %1359 = vrcp.f32 %v1019_v34 }
 0x38a   :  { %v1360_v35 = vpop.eup %1359 }
 0x38b   :  { %1022 = vst [vmem:[%s1764_s12] sm:$0xff] %v1360_v35 }

// kernel: _lambda_.6
= control target key start
LH: loop header
LB: loop body
LE: loop exit
PB: predicated region body
PF: predicated region fallthrough
CT: control target
= control target key end

     0   :  { %s2845_s18 = smov 0   ;;  %s3380_s0 = inlined_call_operand.vmem [shape: bf16[2,40,128], index: 0, kind: input, shape index: {}]   ;;  %s3381_s1 = inlined_call_operand.vmem [shape: bf16[9,128,256], index: 1, kind: input, shape index: {}]   ;;  %s3382_s2 = inlined_call_operand.vmem [shape: f32[1,256], index: 2, kind: input, shape index: {}]   ;;  %s3383_s3 = inlined_call_operand.vmem [shape: f32[1,256], index: 3, kind: input, shape index: {}]   ;;  %s3384_s4 = inlined_call_operand.vmem [shape: f32[4,17], index: 4, kind: input, shape index: {}]   ;;  %s3385_s5 = inlined_call_operand.vmem [shape: f32[2,1,256], index: 5, kind: output, shape index: {}]  }
   0x1 LB: > { %s2240_s19 = sadd.s32 4294967295, %s2810_s18   ;;  %p2244_p0 = scmp.ge.s32.totalorder %s2810_s18, 1  ;;  %s2810_s18 = sphi %s2845_s18, %s15_s18  }
   0x2   : > { %p187_p1 = scmp.lt.s32.totalorder %s2810_s18, 3 }
   0x4   : > { %p188_p2 = pnand %p2244_p0, %p187_p1 }
   0x5   : > { %p214_p3 = scmp.lt.s32.totalorder (!%p188_p2), %s2240_s19, 1 }
   0x6   : > { %191 = sbr.rel (%p188_p2) target bundleno = 616 (0x268), region = 40 }
   0xb   : > { %v2570_v0 = vld [vmem:[%s3381_s1 + $0x74] ss:$8 sps:$4 sm:$0xff]   ;;  %v2812_v2 = vmov 0   ;;  %v2574_v3 = vld [vmem:[%s3381_s1 + $0x70] ss:$8 sps:$4 sm:$0xff]   ;;  %s3387_s19 = smov (!%p214_p3, %s2240_s19), 1 }
   0xc   : > { %v2572_v1 = vld [vmem:[%s3381_s1 + $0xf4] ss:$8 sps:$4 sm:$0xff]   ;;  %365 = vmatprep.mubr.bf16.mxu0 %v2812_v2  ;;  %551 = vmatprep.mubr.bf16.mxu1 %v2812_v2  ;;  %v2575_v4 = vld [vmem:[%s3381_s1 + $0xf0] ss:$8 sps:$4 sm:$0xff]   ;;  %v2576_v5 = vld [vmem:[%s3381_s1 + $0x64] ss:$8 sps:$4 sm:$0xff]  }
   0xd   : > { %333 = vmatprep.subr.bf16.mxu0 %v2570_v0  ;;  %519 = vmatprep.subr.bf16.mxu1 %v2572_v1  ;;  %v2578_v6 = vld [vmem:[%s3381_s1 + $0xe4] ss:$8 sps:$4 sm:$0xff]   ;;  %v2580_v7 = vld [vmem:[%s3381_s1 + $0x60] ss:$8 sps:$4 sm:$0xff]   ;;  %v2582_v9 = vld [vmem:[%s3381_s1 + $0x54] ss:$8 sps:$4 sm:$0xff]  }
   0xe   : > { %334 = vmatpush1.bf16.msra.mxu0 %v2574_v3  ;;  %520 = vmatpush1.bf16.msra.mxu1 %v2575_v4  ;;  %v2581_v8 = vld [vmem:[%s3381_s1 + $0xe0] ss:$8 sps:$4 sm:$0xff]   ;;  %v2584_v10 = vld [vmem:[%s3381_s1 + $0xd4] ss:$8 sps:$4 sm:$0xff]   ;;  %v2586_v11 = vld [vmem:[%s3381_s1 + $0x50] ss:$8 sps:$4 sm:$0xff]  }
   0xf   : > { %335 = vmatprep.subr.bf16.mxu0 %v2576_v5  ;;  %521 = vmatprep.subr.bf16.mxu1 %v2578_v6  ;;  %v2587_v12 = vld [vmem:[%s3381_s1 + $0xd0] ss:$8 sps:$4 sm:$0xff]   ;;  %v2588_v13 = vld [vmem:[%s3381_s1 + $0x44] ss:$8 sps:$4 sm:$0xff]   ;;  %v2592_v15 = vld [vmem:[%s3381_s1 + $0x40] ss:$8 sps:$4 sm:$0xff]  }
  0x10   : > { %v2590_v14 = vld [vmem:[%s3381_s1 + $0xc4] ss:$8 sps:$4 sm:$0xff]   ;;  %v2593_v16 = vld [vmem:[%s3381_s1 + $0xc0] ss:$8 sps:$4 sm:$0xff]   ;;  %v2594_v17 = vld [vmem:[%s3381_s1 + $0x34] ss:$8 sps:$4 sm:$0xff]  }
  0x11   : > { %v2596_v18 = vld [vmem:[%s3381_s1 + $0xb4] ss:$8 sps:$4 sm:$0xff]   ;;  %v2598_v19 = vld [vmem:[%s3381_s1 + $0x30] ss:$8 sps:$4 sm:$0xff]   ;;  %v2600_v21 = vld [vmem:[%s3381_s1 + $0x24] ss:$8 sps:$4 sm:$0xff]  }
  0x12   : > { %336 = vmatpush1.bf16.msra.mxu0 %v2580_v7  ;;  %522 = vmatpush1.bf16.msra.mxu1 %v2581_v8  ;;  %v2599_v20 = vld [vmem:[%s3381_s1 + $0xb0] ss:$8 sps:$4 sm:$0xff]   ;;  %s2558_s14 = smul.u32 20, %s3387_s19  ;;  %v2602_v22 = vld [vmem:[%s3381_s1 + $0xa4] ss:$8 sps:$4 sm:$0xff]   ;;  %vm619_vm1 = vcmask 1046528  }
  0x13   : > { %337 = vmatprep.subr.bf16.mxu0 %v2582_v9  ;;  %523 = vmatprep.subr.bf16.mxu1 %v2584_v10  ;;  %v2604_v23 = vld [vmem:[%s3381_s1 + $0x20] ss:$8 sps:$4 sm:$0xff]   ;;  %v2606_v25 = vld [vmem:[%s3381_s1 + $0x14] ss:$8 sps:$4 sm:$0xff]   ;;  %v2610_v27 = vld [vmem:[%s3381_s1 + $0x10] ss:$8 sps:$4 sm:$0xff]  }
  0x14   : > { %v2605_v24 = vld [vmem:[%s3381_s1 + $0xa0] ss:$8 sps:$4 sm:$0xff]   ;;  %s2940_s27 = scalar_lea.vmem %s3380_s0, %s2558_s14  ;;  %v2608_v26 = vld [vmem:[%s3381_s1 + $0x94] ss:$8 sps:$4 sm:$0xff]   ;;  %v2611_v28 = vld [vmem:[%s3381_s1 + $0x90] ss:$8 sps:$4 sm:$0xff]  }
  0x15   : > { %v2619_v29 = vld [vmem:[%s2940_s27] sm:$0xff]   ;;  %v2620_v30 = vld [vmem:[%s2940_s27 + $0x8] sm:$0x1f]   ;;  %vm421_vm0 = vsmask.f32 7424  ;;  %vm805_vm2 = vcmask 1044480  }
  0x16   : > { %338 = vmatpush1.bf16.msra.mxu0 %v2586_v11  ;;  %524 = vmatpush1.bf16.msra.mxu1 %v2587_v12  ;;  %v2612_v31 = vld [vmem:[%s3381_s1 + $0x4] ss:$8 sps:$4 sm:$0xff]   ;;  %v423_v33 = vshrl.u32 %v2619_v29, 16  ;;  %v425_v34 = vshll.u32 %v2619_v29, 16  ;;  %v430_v35 = vshll.u32 %v2620_v30, 16  ;;  %v434_v49 = vshrl.u32 %v2620_v30, 16 }
  0x17   : > { %339 = vmatprep.subr.bf16.mxu0 %v2588_v13  ;;  %525 = vmatprep.subr.bf16.mxu1 %v2590_v14  ;;  %v2614_v32 = vld [vmem:[%s3381_s1 + $0x84] ss:$8 sps:$4 sm:$0xff]   ;;  %v2616_v37 = vld [vmem:[%s3381_s1] ss:$8 sps:$4 sm:$0xff]   ;;  %v2623_v41 = vld [vmem:[%s3381_s1 + $0x174] ss:$8 sps:$4 sm:$0xff]  }
  0x18   : > { %v427_v36 = vrot.slane %v425_v34, 1  ;;  %v2617_v38 = vld [vmem:[%s3381_s1 + $0x80] ss:$8 sps:$4 sm:$0xff]   ;;  %v432_v39 = vrot.slane %v430_v35, 1  ;;  %v2626_v42 = vld [vmem:[%s3381_s1 + $0x1f4] ss:$8 sps:$4 sm:$0xff]  }
  0x19   : > { %v2618_v43 = vld [vmem:[%s2940_s27] sm:$0xff]   ;;  %v2621_v45 = vld [vmem:[%s3381_s1 + $0x170] ss:$8 sps:$4 sm:$0xff]   ;;  %v2635_v52 = vld [vmem:[%s3381_s1 + $0x154] ss:$8 sps:$4 sm:$0xff]   ;;  %vm1370_vm4 = vcmask 1045504  }
  0x1a   : > { %340 = vmatpush1.bf16.msra.mxu0 %v2592_v15  ;;  %526 = vmatpush1.bf16.msra.mxu1 %v2593_v16  ;;  %v428_v40 = vor.u32 %v427_v36, %v423_v33  ;;  %v2624_v46 = vld [vmem:[%s3381_s1 + $0x1f0] ss:$8 sps:$4 sm:$0xff]   ;;  %v2629_v47 = vld [vmem:[%s3381_s1 + $0x164] ss:$8 sps:$4 sm:$0xff]   ;;  %v2627_v50 = vld [vmem:[%s3381_s1 + $0x160] ss:$8 sps:$4 sm:$0xff]   ;;  %v436_v57 = vor.u32 %v434_v49, %v432_v39 }
  0x1b   : > { %341 = vmatprep.subr.bf16.mxu0 %v2594_v17  ;;  %527 = vmatprep.subr.bf16.mxu1 %v2596_v18  ;;  %v2632_v48 = vld [vmem:[%s3381_s1 + $0x1e4] ss:$8 sps:$4 sm:$0xff]   ;;  %v2630_v51 = vld [vmem:[%s3381_s1 + $0x1e0] ss:$8 sps:$4 sm:$0xff]   ;;  %v2638_v53 = vld [vmem:[%s3381_s1 + $0x1d4] ss:$8 sps:$4 sm:$0xff]  }
  0x1c   : > { %v433_v44 = vsel %vm421_vm0, %v428_v40, %v432_v39  ;;  %v2633_v54 = vld [vmem:[%s3381_s1 + $0x150] ss:$8 sps:$4 sm:$0xff]   ;;  %v2651_v56 = vld [vmem:[%s2940_s27 + $0x8] ss:$0 sps:$4 sm:$0xff]   ;;  %v2641_v58 = vld [vmem:[%s3381_s1 + $0x144] ss:$8 sps:$4 sm:$0xff]  }
  0x1d   : > { %v2636_v55 = vld [vmem:[%s3381_s1 + $0x1d0] ss:$8 sps:$4 sm:$0xff]   ;;  %v2644_v59 = vld [vmem:[%s3381_s1 + $0x1c4] ss:$8 sps:$4 sm:$0xff]   ;;  %v2639_v60 = vld [vmem:[%s3381_s1 + $0x140] ss:$8 sps:$4 sm:$0xff]  }
  0x1e   : > { %342 = vmatpush1.bf16.msra.mxu0 %v2598_v19  ;;  %528 = vmatpush1.bf16.msra.mxu1 %v2599_v20  ;;  %v2642_v61 = vld [vmem:[%s3381_s1 + $0x1c0] ss:$8 sps:$4 sm:$0xff]   ;;  %v2647_v62 = vld [vmem:[%s3381_s1 + $0x134] ss:$8 sps:$4 sm:$0xff]   ;;  %v2645_v0 = vld [vmem:[%s3381_s1 + $0x130] ss:$8 sps:$4 sm:$0xff]  }
  0x1f   : > { %343 = vmatprep.subr.bf16.mxu0 %v2600_v21  ;;  %529 = vmatprep.subr.bf16.mxu1 %v2602_v22  ;;  %v2650_v63 = vld [vmem:[%s3381_s1 + $0x1b4] ss:$8 sps:$4 sm:$0xff]   ;;  %v2648_v1 = vld [vmem:[%s3381_s1 + $0x1b0] ss:$8 sps:$4 sm:$0xff]   ;;  %v2654_v3 = vld [vmem:[%s3381_s1 + $0x124] ss:$8 sps:$4 sm:$0xff]  }
  0x20   : > { %v2657_v4 = vld [vmem:[%s3381_s1 + $0x1a4] ss:$8 sps:$4 sm:$0xff]   ;;  %v2652_v5 = vld [vmem:[%s3381_s1 + $0x120] ss:$8 sps:$4 sm:$0xff]   ;;  %v2660_v7 = vld [vmem:[%s3381_s1 + $0x114] ss:$8 sps:$4 sm:$0xff]  }
  0x21   : > { %v2655_v6 = vld [vmem:[%s3381_s1 + $0x1a0] ss:$8 sps:$4 sm:$0xff]   ;;  %v2663_v8 = vld [vmem:[%s3381_s1 + $0x194] ss:$8 sps:$4 sm:$0xff]   ;;  %v2658_v9 = vld [vmem:[%s3381_s1 + $0x110] ss:$8 sps:$4 sm:$0xff]  }
  0x22   : > { %344 = vmatpush1.bf16.msra.mxu0 %v2604_v23  ;;  %530 = vmatpush1.bf16.msra.mxu1 %v2605_v24  ;;  %v2661_v10 = vld [vmem:[%s3381_s1 + $0x190] ss:$8 sps:$4 sm:$0xff]   ;;  %v2670_v11 = vld [vmem:[%s2940_s27] sm:$0xfe]   ;;  %v2671_v12 = vld [vmem:[%s2940_s27 + $0x8] sm:$0x1f]  }
  0x23   : > { %345 = vmatprep.subr.bf16.mxu0 %v2606_v25  ;;  %531 = vmatprep.subr.bf16.mxu1 %v2608_v26  ;;  %v2672_v13 = vld [vmem:[%s2940_s27] sm:$0xf8]   ;;  %v2673_v14 = vld [vmem:[%s2940_s27 + $0x8] sm:$0x7f]   ;;  %v620_v19 = vrot.slane %v2670_v11, 1  ;;  %v621_v20 = vrot.slane %v2671_v12, 1 }
  0x24   : > { %v2666_v15 = vld [vmem:[%s3381_s1 + $0x104] ss:$8 sps:$4 sm:$0xff]   ;;  %v2664_v17 = vld [vmem:[%s3381_s1 + $0x100] ss:$8 sps:$4 sm:$0xff]   ;;  %v806_v21 = vrot.slane %v2672_v13, 3  ;;  %v807_v22 = vrot.slane %v2673_v14, 3 }
  0x25   : > { %v2669_v16 = vld [vmem:[%s3381_s1 + $0x184] ss:$8 sps:$4 sm:$0xff]   ;;  %v2667_v18 = vld [vmem:[%s3381_s1 + $0x180] ss:$8 sps:$4 sm:$0xff]   ;;  %v2676_v23 = vld [vmem:[%s3381_s1 + $0x274] ss:$8 sps:$4 sm:$0xff]   ;;  %v622_v26 = vsel %vm619_vm1, %v620_v19, %v621_v20 }
  0x26   : > { %346 = vmatpush1.bf16.msra.mxu0 %v2610_v27  ;;  %532 = vmatpush1.bf16.msra.mxu1 %v2611_v28  ;;  %v2679_v24 = vld [vmem:[%s3381_s1 + $0x2f4] ss:$8 sps:$4 sm:$0xff]   ;;  %v2674_v25 = vld [vmem:[%s3381_s1 + $0x270] ss:$8 sps:$4 sm:$0xff]   ;;  %v808_v27 = vsel %vm805_vm2, %v806_v21, %v807_v22  ;;  %v2682_v29 = vld [vmem:[%s3381_s1 + $0x264] ss:$8 sps:$4 sm:$0xff]  }
  0x27   : > { %347 = vmatprep.subr.bf16.mxu0 %v2612_v31  ;;  %533 = vmatprep.subr.bf16.mxu1 %v2614_v32  ;;  %v2677_v28 = vld [vmem:[%s3381_s1 + $0x2f0] ss:$8 sps:$4 sm:$0xff]   ;;  %v2685_v30 = vld [vmem:[%s3381_s1 + $0x2e4] ss:$8 sps:$4 sm:$0xff]   ;;  %v2680_v31 = vld [vmem:[%s3381_s1 + $0x260] ss:$8 sps:$4 sm:$0xff]  }
  0x28   : > { %v2683_v32 = vld [vmem:[%s3381_s1 + $0x2e0] ss:$8 sps:$4 sm:$0xff]   ;;  %v2688_v33 = vld [vmem:[%s3381_s1 + $0x254] ss:$8 sps:$4 sm:$0xff]   ;;  %v2686_v35 = vld [vmem:[%s3381_s1 + $0x250] ss:$8 sps:$4 sm:$0xff]  }
  0x29   : > { %v2691_v34 = vld [vmem:[%s3381_s1 + $0x2d4] ss:$8 sps:$4 sm:$0xff]   ;;  %v2689_v36 = vld [vmem:[%s3381_s1 + $0x2d0] ss:$8 sps:$4 sm:$0xff]   ;;  %v2692_v39 = vld [vmem:[%s3381_s1 + $0x240] ss:$8 sps:$4 sm:$0xff]  }
  0x2a   : > { %348 = vmatpush1.bf16.msra.mxu0 %v2616_v37  ;;  %534 = vmatpush1.bf16.msra.mxu1 %v2617_v38  ;;  %v2694_v37 = vld [vmem:[%s3381_s1 + $0x244] ss:$8 sps:$4 sm:$0xff]   ;;  %v2695_v40 = vld [vmem:[%s3381_s1 + $0x2c0] ss:$8 sps:$4 sm:$0xff]   ;;  %vm991_vm3 = vsmask.f32 4352 }
  0x2b   : > { %705 = vmatprep.subr.bf16.mxu0 %v2623_v41  ;;  %891 = vmatprep.subr.bf16.mxu1 %v2626_v42  ;;  %v2697_v38 = vld [vmem:[%s3381_s1 + $0x2c4] ss:$8 sps:$4 sm:$0xff]   ;;  %v2700_v41 = vld [vmem:[%s3381_s1 + $0x234] ss:$8 sps:$4 sm:$0xff]   ;;  %v2704_v49 = vld [vmem:[%s3381_s1 + $0x220] ss:$8 sps:$4 sm:$0xff]  }
  0x2c   : > { %v2703_v42 = vld [vmem:[%s3381_s1 + $0x2b4] ss:$8 sps:$4 sm:$0xff]   ;;  %v2728_v11 = vld [vmem:[%s3381_s1 + $0x3f0] ss:$8 sps:$4 sm:$0xff]   ;;  %v2733_v12 = vld [vmem:[%s3381_s1 + $0x364] ss:$8 sps:$4 sm:$0xff]  }
  0x2d   : > { %366 = vmatmul.mubr.bf16.vlgmr.msra.gmra.mxu0 %v2618_v43  ;;  %552 = vmatmul.mubr.bf16.vlgmr.msra.gmra.mxu1 %v433_v44  ;;  %v2698_v43 = vld [vmem:[%s3381_s1 + $0x230] ss:$8 sps:$4 sm:$0xff]   ;;  %v2736_v13 = vld [vmem:[%s3381_s1 + $0x3e4] ss:$8 sps:$4 sm:$0xff]   ;;  %v2731_v14 = vld [vmem:[%s3381_s1 + $0x360] ss:$8 sps:$4 sm:$0xff]  }
  0x2e   : > { %706 = vmatpush1.bf16.msra.mxu0 %v2621_v45  ;;  %892 = vmatpush1.bf16.msra.mxu1 %v2624_v46  ;;  %v2701_v44 = vld [vmem:[%s3381_s1 + $0x2b0] ss:$8 sps:$4 sm:$0xff]   ;;  %v2706_v45 = vld [vmem:[%s3381_s1 + $0x224] ss:$8 sps:$4 sm:$0xff]   ;;  %vm1556_vm5 = vsmask.f32 5376 }
  0x2f   : > { %707 = vmatprep.subr.bf16.mxu0 %v2629_v47  ;;  %893 = vmatprep.subr.bf16.mxu1 %v2632_v48  ;;  %v2722_v46 = vld [vmem:[%s2940_s27] sm:$0xf8]   ;;  %v2723_v47 = vld [vmem:[%s2940_s27 + $0x8] sm:$0xff]   ;;  %v2740_v19 = vld [vmem:[%s3381_s1 + $0x3d0] ss:$8 sps:$4 sm:$0xff]   ;;  %vm2069_vm6 = vcmask 1040384  }
  0x30   : > { %375 = vmatprep.mubr.bf16.mxu0 %v2812_v2  ;;  %561 = vmatprep.mubr.bf16.mxu1 %v2812_v2  ;;  %v2709_v48 = vld [vmem:[%s3381_s1 + $0x2a4] ss:$8 sps:$4 sm:$0xff]   ;;  %vm2041_vm7 = vcmask 1041408   ;;  %vm2065_vm8 = vcmask 138240   ;;  %vm2147_vm9 = vcmask 1043456   ;;  %s2246_s29 = sshll.u32 %s3387_s19, 1 }
  0x31   : > { %v2745_v21 = vld [vmem:[%s3381_s1 + $0x344] ss:$8 sps:$4 sm:$0xff]   ;;  %s222_s7 = scalar_lea.vmem %s3385_s5, %s2246_s29 }
  0x32   : > { %708 = vmatpush1.bf16.msra.mxu0 %v2627_v50  ;;  %894 = vmatpush1.bf16.msra.mxu1 %v2630_v51  ;;  %v2707_v50 = vld [vmem:[%s3381_s1 + $0x2a0] ss:$8 sps:$4 sm:$0xff]   ;;  %v2712_v51 = vld [vmem:[%s3381_s1 + $0x214] ss:$8 sps:$4 sm:$0xff]  }
  0x33   : > { %709 = vmatprep.subr.bf16.mxu0 %v2635_v52  ;;  %895 = vmatprep.subr.bf16.mxu1 %v2638_v53  ;;  %v993_v52 = vshrl.u32 %v2722_v46, 16  ;;  %v996_v53 = vshll.u32 %v2722_v46, 16 }
  0x35   : > { %376 = vmatmul.mubr.bf16.gmra.mxu0 %v2651_v56  ;;  %562 = vmatmul.mubr.bf16.gmra.mxu1 %v436_v57  ;;  %v2715_v56 = vld [vmem:[%s3381_s1 + $0x294] ss:$8 sps:$4 sm:$0xff]   ;;  %v2710_v57 = vld [vmem:[%s3381_s1 + $0x210] ss:$8 sps:$4 sm:$0xff]  }
  0x36   : > { %710 = vmatpush1.bf16.msra.mxu0 %v2633_v54  ;;  %896 = vmatpush1.bf16.msra.mxu1 %v2636_v55  ;;  %v1001_v54 = vshrl.u32 %v2723_v47, 16  ;;  %v1004_v55 = vshll.u32 %v2723_v47, 16 }
  0x37   : > { %711 = vmatprep.subr.bf16.mxu0 %v2641_v58  ;;  %897 = vmatprep.subr.bf16.mxu1 %v2644_v59  ;;  %v2713_v58 = vld [vmem:[%s3381_s1 + $0x290] ss:$8 sps:$4 sm:$0xff]   ;;  %v2718_v59 = vld [vmem:[%s3381_s1 + $0x204] ss:$8 sps:$4 sm:$0xff]  }
  0x38   : > { %737 = vmatprep.mubr.bf16.mxu0 %v2812_v2  ;;  %923 = vmatprep.mubr.bf16.mxu1 %v2812_v2 }
  0x3a   : > { %712 = vmatpush1.bf16.msra.mxu0 %v2639_v60  ;;  %898 = vmatpush1.bf16.msra.mxu1 %v2642_v61  ;;  %v995_v60 = vrot.slane %v993_v52, 3  ;;  %v998_v61 = vrot.slane %v996_v53, 4  ;;  %v2771_v52 = vld [vmem:[%s3381_s1 + $0x380] ss:$8 sps:$4 sm:$0xff]  }
  0x3b   : > { %713 = vmatprep.subr.bf16.mxu0 %v2647_v62  ;;  %899 = vmatprep.subr.bf16.mxu1 %v2650_v63  ;;  %v1003_v62 = vrot.slane %v1001_v54, 3  ;;  %v1006_v63 = vrot.slane %v1004_v55, 4 }
  0x3e   : > { %714 = vmatpush1.bf16.msra.mxu0 %v2645_v0  ;;  %900 = vmatpush1.bf16.msra.mxu1 %v2648_v1  ;;  %v2721_v0 = vld [vmem:[%s3381_s1 + $0x284] ss:$8 sps:$4 sm:$0xff]   ;;  %v2716_v1 = vld [vmem:[%s3381_s1 + $0x200] ss:$8 sps:$4 sm:$0xff]  }
  0x3f   : > { %715 = vmatprep.subr.bf16.mxu0 %v2654_v3  ;;  %901 = vmatprep.subr.bf16.mxu1 %v2657_v4  ;;  %v2719_v3 = vld [vmem:[%s3381_s1 + $0x280] ss:$8 sps:$4 sm:$0xff]   ;;  %v999_v4 = vor.u32 %v998_v61, %v995_v60  ;;  %v2778_v60 = vld [vmem:[%s3381_s1 + $0x470] ss:$8 sps:$4 sm:$0xff]   ;;  %v2783_v61 = vld [vmem:[%s3381_s1 + $0x464] ss:$8 sps:$4 sm:$0xff]  }
  0x42   : > { %716 = vmatpush1.bf16.msra.mxu0 %v2652_v5  ;;  %902 = vmatpush1.bf16.msra.mxu1 %v2655_v6  ;;  %v1007_v5 = vor.u32 %v1006_v63, %v1003_v62  ;;  %v2727_v6 = vld [vmem:[%s3381_s1 + $0x374] ss:$8 sps:$4 sm:$0xff]   ;;  %v2781_v62 = vld [vmem:[%s3381_s1 + $0x460] ss:$8 sps:$4 sm:$0xff]  }
  0x43   : > { %717 = vmatprep.subr.bf16.mxu0 %v2660_v7  ;;  %903 = vmatprep.subr.bf16.mxu1 %v2663_v8  ;;  %v2730_v7 = vld [vmem:[%s3381_s1 + $0x3f4] ss:$8 sps:$4 sm:$0xff]   ;;  %v2724_v8 = vld [vmem:[%s2940_s27 + $0x4] sm:$0xff]  }
  0x44   : > { %v2786_v63 = vld [vmem:[%s3381_s1 + $0x454] ss:$8 sps:$4 sm:$0xff]  }
  0x46   : > { %718 = vmatpush1.bf16.msra.mxu0 %v2658_v9  ;;  %904 = vmatpush1.bf16.msra.mxu1 %v2661_v10  ;;  %v2725_v9 = vld [vmem:[%s3381_s1 + $0x370] ss:$8 sps:$4 sm:$0xff]   ;;  %v1008_v10 = vsel %vm991_vm3, %v999_v4, %v1007_v5  ;;  %v2792_v4 = vld [vmem:[%s3381_s1 + $0x434] ss:$8 sps:$4 sm:$0xff]  }
  0x47   : > { %719 = vmatprep.subr.bf16.mxu0 %v2666_v15  ;;  %905 = vmatprep.subr.bf16.mxu1 %v2669_v16  ;;  %v2734_v15 = vld [vmem:[%s3381_s1 + $0x3e0] ss:$8 sps:$4 sm:$0xff]   ;;  %v2739_v16 = vld [vmem:[%s3381_s1 + $0x354] ss:$8 sps:$4 sm:$0xff]  }
  0x4a   : > { %720 = vmatpush1.bf16.msra.mxu0 %v2664_v17  ;;  %906 = vmatpush1.bf16.msra.mxu1 %v2667_v18  ;;  %v2742_v17 = vld [vmem:[%s3381_s1 + $0x3d4] ss:$8 sps:$4 sm:$0xff]   ;;  %v2737_v18 = vld [vmem:[%s3381_s1 + $0x350] ss:$8 sps:$4 sm:$0xff]  }
  0x4b   : > { %1091 = vmatprep.subr.bf16.mxu0 %v2676_v23  ;;  %1270 = vmatprep.subr.bf16.mxu1 %v2679_v24  ;;  %v2743_v23 = vld [vmem:[%s3381_s1 + $0x340] ss:$8 sps:$4 sm:$0xff]  }
  0x4c   : > { %v2746_v24 = vld [vmem:[%s3381_s1 + $0x3c0] ss:$8 sps:$4 sm:$0xff]  }
  0x4d   : > { %738 = vmatmul.mubr.bf16.vlgmr.msra.gmra.mxu0 %v622_v26  ;;  %924 = vmatmul.mubr.bf16.vlgmr.msra.gmra.mxu1 %v808_v27  ;;  %v2754_v26 = vld [vmem:[%s3381_s1 + $0x3b4] ss:$8 sps:$4 sm:$0xff]   ;;  %v2749_v27 = vld [vmem:[%s3381_s1 + $0x330] ss:$8 sps:$4 sm:$0xff]  }
  0x4e   : > { %1092 = vmatpush1.bf16.msra.mxu0 %v2674_v25  ;;  %1271 = vmatpush1.bf16.msra.mxu1 %v2677_v28  ;;  %v2751_v25 = vld [vmem:[%s3381_s1 + $0x334] ss:$8 sps:$4 sm:$0xff]   ;;  %v2752_v28 = vld [vmem:[%s3381_s1 + $0x3b0] ss:$8 sps:$4 sm:$0xff]  }
  0x4f   : > { %1093 = vmatprep.subr.bf16.mxu0 %v2682_v29  ;;  %1272 = vmatprep.subr.bf16.mxu1 %v2685_v30  ;;  %v2758_v29 = vld [vmem:[%s3381_s1 + $0x324] ss:$8 sps:$4 sm:$0xff]  }
  0x50   : > { %747 = vmatprep.mubr.bf16.mxu0 %v2812_v2  ;;  %933 = vmatprep.mubr.bf16.mxu1 %v2812_v2  ;;  %v2761_v30 = vld [vmem:[%s3381_s1 + $0x3a4] ss:$8 sps:$4 sm:$0xff]  }
  0x52   : > { %1094 = vmatpush1.bf16.msra.mxu0 %v2680_v31  ;;  %1273 = vmatpush1.bf16.msra.mxu1 %v2683_v32  ;;  %v2776_v31 = vld [vmem:[%s2940_s27 + $0x4] sm:$0xfc]   ;;  %v2777_v32 = vld [vmem:[%s2940_s27 + $0xc] sm:$0x7f]  }
  0x53   : > { %1095 = vmatprep.subr.bf16.mxu0 %v2688_v33  ;;  %1274 = vmatprep.subr.bf16.mxu1 %v2691_v34  ;;  %v2756_v33 = vld [vmem:[%s3381_s1 + $0x320] ss:$8 sps:$4 sm:$0xff]  }
  0x54   : > { %v2759_v34 = vld [vmem:[%s3381_s1 + $0x3a0] ss:$8 sps:$4 sm:$0xff]  }
  0x55   : > { %748 = vmatmul.mubr.bf16.gmra.mxu0 %v621_v20  ;;  %934 = vmatmul.mubr.bf16.gmra.mxu1 %v807_v22  ;;  %v2755_v20 = vld [vmem:[%s2940_s27 + $0xc] ss:$0 sps:$4 sm:$0xff]  }
  0x56   : > { %1096 = vmatpush1.bf16.msra.mxu0 %v2686_v35  ;;  %1275 = vmatpush1.bf16.msra.mxu1 %v2689_v36  ;;  %v2748_v22 = vld [vmem:[%s3381_s1 + $0x3c4] ss:$8 sps:$4 sm:$0xff]   ;;  %v1558_v35 = vshrl.u32 %v2776_v31, 16  ;;  %v1561_v36 = vshll.u32 %v2776_v31, 16 }
  0x57   : > { %1097 = vmatprep.subr.bf16.mxu0 %v2694_v37  ;;  %1276 = vmatprep.subr.bf16.mxu1 %v2697_v38  ;;  %v1566_v37 = vshrl.u32 %v2777_v32, 16  ;;  %v1569_v38 = vshll.u32 %v2777_v32, 16 }
  0x58   : > { %1123 = vmatprep.mubr.bf16.mxu0 %v2812_v2  ;;  %1302 = vmatprep.mubr.bf16.mxu1 %v2812_v2  ;;  %v1563_v46 = vrot.slane %v1561_v36, 3 }
  0x59   : > { %v1568_v47 = vrot.slane %v1566_v37, 2 }
  0x5a   : > { %1098 = vmatpush1.bf16.msra.mxu0 %v2692_v39  ;;  %1277 = vmatpush1.bf16.msra.mxu1 %v2695_v40  ;;  %v2764_v39 = vld [vmem:[%s3381_s1 + $0x314] ss:$8 sps:$4 sm:$0xff]  }
  0x5b   : > { %1099 = vmatprep.subr.bf16.mxu0 %v2700_v41  ;;  %1278 = vmatprep.subr.bf16.mxu1 %v2703_v42  ;;  %v2767_v40 = vld [vmem:[%s3381_s1 + $0x394] ss:$8 sps:$4 sm:$0xff]   ;;  %v2762_v41 = vld [vmem:[%s3381_s1 + $0x310] ss:$8 sps:$4 sm:$0xff]  }
  0x5c   : > { %v2765_v42 = vld [vmem:[%s3381_s1 + $0x390] ss:$8 sps:$4 sm:$0xff]  }
  0x5e   : > { %1100 = vmatpush1.bf16.msra.mxu0 %v2698_v43  ;;  %1279 = vmatpush1.bf16.msra.mxu1 %v2701_v44  ;;  %v2774_v43 = vld [vmem:[%s2940_s27 + $0x4] sm:$0xfc]   ;;  %v2775_v44 = vld [vmem:[%s2940_s27 + $0xc] sm:$0x3f]  }
  0x5f   : > { %1101 = vmatprep.subr.bf16.mxu0 %v2706_v45  ;;  %1280 = vmatprep.subr.bf16.mxu1 %v2709_v48  ;;  %v1560_v45 = vrot.slane %v1558_v35, 2  ;;  %v1571_v48 = vrot.slane %v1569_v38, 3  ;;  %v1371_v53 = vrot.slane %v2774_v43, 2  ;;  %v1372_v54 = vrot.slane %v2775_v44, 2 }
  0x61   : > { %v1564_v55 = vor.u32 %v1563_v46, %v1560_v45  ;;  %v2813_v45 = vmov 0.0  }
  0x62   : > { %1102 = vmatpush1.bf16.msra.mxu0 %v2704_v49  ;;  %1281 = vmatpush1.bf16.msra.mxu1 %v2707_v50  ;;  %v2770_v49 = vld [vmem:[%s3381_s1 + $0x304] ss:$8 sps:$4 sm:$0xff]  }
  0x63   : > { %1103 = vmatprep.subr.bf16.mxu0 %v2712_v51  ;;  %1282 = vmatprep.subr.bf16.mxu1 %v2715_v56  ;;  %v2773_v50 = vld [vmem:[%s3381_s1 + $0x384] ss:$8 sps:$4 sm:$0xff]   ;;  %v2768_v51 = vld [vmem:[%s3381_s1 + $0x300] ss:$8 sps:$4 sm:$0xff]   ;;  %v1572_v56 = vor.u32 %v1571_v48, %v1568_v47 }
  0x66   : > { %1104 = vmatpush1.bf16.msra.mxu0 %v2710_v57  ;;  %1283 = vmatpush1.bf16.msra.mxu1 %v2713_v58  ;;  %v2780_v57 = vld [vmem:[%s3381_s1 + $0x474] ss:$8 sps:$4 sm:$0xff]   ;;  %v1373_v58 = vsel %vm1370_vm4, %v1371_v53, %v1372_v54 }
  0x67   : > { %1105 = vmatprep.subr.bf16.mxu0 %v2718_v59  ;;  %1284 = vmatprep.subr.bf16.mxu1 %v2721_v0  ;;  %v1573_v59 = vsel %vm1556_vm5, %v1564_v55, %v1572_v56  ;;  %v2784_v0 = vld [vmem:[%s3381_s1 + $0x450] ss:$8 sps:$4 sm:$0xff]  }
  0x6a   : > { %1106 = vmatpush1.bf16.msra.mxu0 %v2716_v1  ;;  %1285 = vmatpush1.bf16.msra.mxu1 %v2719_v3  ;;  %v2789_v1 = vld [vmem:[%s3381_s1 + $0x444] ss:$8 sps:$4 sm:$0xff]   ;;  %v2787_v3 = vld [vmem:[%s3381_s1 + $0x440] ss:$8 sps:$4 sm:$0xff]  }
  0x6b   : > { %1456 = vmatprep.subr.bf16.mxu0 %v2727_v6  ;;  %1656 = vmatprep.subr.bf16.mxu1 %v2730_v7  ;;  %v2795_v6 = vld [vmem:[%s3381_s1 + $0x424] ss:$8 sps:$4 sm:$0xff]   ;;  %v2798_v7 = vld [vmem:[%s3381_s1 + $0x414] ss:$8 sps:$4 sm:$0xff]  }
  0x6d   : > { %1124 = vmatmul.mubr.bf16.vlgmr.msra.gmra.mxu0 %v1008_v10  ;;  %1303 = vmatmul.mubr.bf16.vlgmr.msra.gmra.mxu1 %v2724_v8  ;;  %v2796_v8 = vld [vmem:[%s3381_s1 + $0x410] ss:$8 sps:$4 sm:$0xff]  }
  0x6e   : > { %1457 = vmatpush1.bf16.msra.mxu0 %v2725_v9  ;;  %1657 = vmatpush1.bf16.msra.mxu1 %v2728_v11  ;;  %v2802_v9 = vld [vmem:[%s2940_s27 + $0x4] sm:$0xf8]   ;;  %v2803_v10 = vld [vmem:[%s2940_s27 + $0xc] sm:$0x7f]  }
  0x6f   : > { %1458 = vmatprep.subr.bf16.mxu0 %v2733_v12  ;;  %1658 = vmatprep.subr.bf16.mxu1 %v2736_v13  ;;  %v2801_v11 = vld [vmem:[%s3381_s1 + $0x404] ss:$8 sps:$4 sm:$0xff]   ;;  %v2799_v12 = vld [vmem:[%s3381_s1 + $0x400] ss:$8 sps:$4 sm:$0xff]   ;;  %v1756_v13 = vrot.slane %v2802_v9, 3 }
  0x70   : > { %1133 = vmatprep.mubr.bf16.mxu0 %v2812_v2  ;;  %1312 = vmatprep.mubr.bf16.mxu1 %v2812_v2 }
  0x72   : > { %1459 = vmatpush1.bf16.msra.mxu0 %v2731_v14  ;;  %1659 = vmatpush1.bf16.msra.mxu1 %v2734_v15  ;;  %v1757_v14 = vrot.slane %v2803_v10, 3 }
  0x73   : > { %1460 = vmatprep.subr.bf16.mxu0 %v2739_v16  ;;  %1660 = vmatprep.subr.bf16.mxu1 %v2742_v17 }
  0x74   : > { %v1758_v15 = vsel %vm805_vm2, %v1756_v13, %v1757_v14 }
  0x75   : > { %1134 = vmatmul.mubr.bf16.gmra.mxu0 %v1007_v5  ;;  %1313 = vmatmul.mubr.bf16.gmra.mxu1 %v2755_v20  ;;  %v2790_v5 = vld [vmem:[%s3381_s1 + $0x430] ss:$8 sps:$4 sm:$0xff]  }
  0x76   : > { %1461 = vmatpush1.bf16.msra.mxu0 %v2737_v18  ;;  %1661 = vmatpush1.bf16.msra.mxu1 %v2740_v19 }
  0x77   : > { %1462 = vmatprep.subr.bf16.mxu0 %v2745_v21  ;;  %1662 = vmatprep.subr.bf16.mxu1 %v2748_v22 }
  0x78   : > { %1488 = vmatprep.mubr.bf16.mxu0 %v2812_v2  ;;  %1688 = vmatprep.mubr.bf16.mxu1 %v2812_v2 }
  0x7a   : > { %1463 = vmatpush1.bf16.msra.mxu0 %v2743_v23  ;;  %1663 = vmatpush1.bf16.msra.mxu1 %v2746_v24 }
  0x7b   : > { %1464 = vmatprep.subr.bf16.mxu0 %v2751_v25  ;;  %1664 = vmatprep.subr.bf16.mxu1 %v2754_v26 }
  0x7e   : > { %1465 = vmatpush1.bf16.msra.mxu0 %v2749_v27  ;;  %1665 = vmatpush1.bf16.msra.mxu1 %v2752_v28 }
  0x7f   : > { %1466 = vmatprep.subr.bf16.mxu0 %v2758_v29  ;;  %1666 = vmatprep.subr.bf16.mxu1 %v2761_v30 }
  0x82   : > { %1467 = vmatpush1.bf16.msra.mxu0 %v2756_v33  ;;  %1667 = vmatpush1.bf16.msra.mxu1 %v2759_v34 }
  0x83   : > { %1468 = vmatprep.subr.bf16.mxu0 %v2764_v39  ;;  %1668 = vmatprep.subr.bf16.mxu1 %v2767_v40 }
  0x86   : > { %1469 = vmatpush1.bf16.msra.mxu0 %v2762_v41  ;;  %1669 = vmatpush1.bf16.msra.mxu1 %v2765_v42 }
  0x87   : > { %1470 = vmatprep.subr.bf16.mxu0 %v2770_v49  ;;  %1670 = vmatprep.subr.bf16.mxu1 %v2773_v50 }
  0x8a   : > { %1471 = vmatpush1.bf16.msra.mxu0 %v2768_v51  ;;  %1671 = vmatpush1.bf16.msra.mxu1 %v2771_v52 }
  0x8b   : > { %1841 = vmatprep.subr.bf16.mxu0 %v2780_v57  ;;  %2542 = vmatprep.subr.bf16.mxu1 %v2780_v57 }
  0x8d   : > { %1489 = vmatmul.mubr.bf16.vlgmr.msra.gmra.mxu0 %v1373_v58  ;;  %1689 = vmatmul.mubr.bf16.vlgmr.msra.gmra.mxu1 %v1573_v59 }
  0x8e   : > { %1842 = vmatpush1.bf16.msra.mxu0 %v2778_v60  ;;  %2550 = vmatpush1.bf16.msra.mxu1 %v2778_v60 }
  0x8f   : > { %1843 = vmatprep.subr.bf16.mxu0 %v2783_v61  ;;  %2543 = vmatprep.subr.bf16.mxu1 %v2783_v61 }
  0x90   : > { %1498 = vmatprep.mubr.bf16.mxu0 %v2812_v2  ;;  %1698 = vmatprep.mubr.bf16.mxu1 %v2812_v2 }
  0x92   : > { %1844 = vmatpush1.bf16.msra.mxu0 %v2781_v62  ;;  %2551 = vmatpush1.bf16.msra.mxu1 %v2781_v62 }
  0x93   : > { %1845 = vmatprep.subr.bf16.mxu0 %v2786_v63  ;;  %2544 = vmatprep.subr.bf16.mxu1 %v2786_v63 }
  0x95   : > { %1499 = vmatmul.mubr.bf16.gmra.mxu0 %v1372_v54  ;;  %1699 = vmatmul.mubr.bf16.gmra.mxu1 %v1572_v56 }
  0x96   : > { %1846 = vmatpush1.bf16.msra.mxu0 %v2784_v0  ;;  %2552 = vmatpush1.bf16.msra.mxu1 %v2784_v0 }
  0x97   : > { %1847 = vmatprep.subr.bf16.mxu0 %v2789_v1  ;;  %2545 = vmatprep.subr.bf16.mxu1 %v2789_v1 }
  0x98   : > { %1873 = vmatprep.mubr.bf16.mxu0 %v2812_v2  ;;  %1883 = vmatprep.mubr.bf16.mxu1 %v2812_v2  ;;  %v2793_v2 = vld [vmem:[%s3381_s1 + $0x420] ss:$8 sps:$4 sm:$0xff]  }
  0x9a   : > { %1848 = vmatpush1.bf16.msra.mxu0 %v2787_v3  ;;  %2553 = vmatpush1.bf16.msra.mxu1 %v2787_v3 }
  0x9b   : > { %1849 = vmatprep.subr.bf16.mxu0 %v2792_v4  ;;  %2546 = vmatprep.subr.bf16.mxu1 %v2792_v4 }
  0x9e   : > { %1850 = vmatpush1.bf16.msra.mxu0 %v2790_v5  ;;  %2554 = vmatpush1.bf16.msra.mxu1 %v2790_v5 }
  0x9f   : > { %1851 = vmatprep.subr.bf16.mxu0 %v2795_v6  ;;  %2547 = vmatprep.subr.bf16.mxu1 %v2795_v6 }
  0xa2   : > { %1852 = vmatpush1.bf16.msra.mxu0 %v2793_v2  ;;  %2555 = vmatpush1.bf16.msra.mxu1 %v2793_v2 }
  0xa3   : > { %1853 = vmatprep.subr.bf16.mxu0 %v2798_v7  ;;  %2548 = vmatprep.subr.bf16.mxu1 %v2798_v7 }
  0xa6   : > { %1854 = vmatpush1.bf16.msra.mxu0 %v2796_v8  ;;  %2556 = vmatpush1.bf16.msra.mxu1 %v2796_v8 }
  0xa7   : > { %1855 = vmatprep.subr.bf16.mxu0 %v2801_v11  ;;  %2549 = vmatprep.subr.bf16.mxu1 %v2801_v11 }
  0xaa   : > { %1856 = vmatpush1.bf16.msra.mxu0 %v2799_v12  ;;  %2557 = vmatpush1.bf16.msra.mxu1 %v2799_v12 }
  0xad   : > { %1874 = vmatmul.mubr.bf16.vlgmr.msra.gmra.mxu0 %v1758_v15  ;;  %1884 = vmatmul.mubr.bf16.vlgmr.msra.gmra.mxu1 %v1757_v14 }
  0xae   : > { %2140 = vmatprep.mubr.f32.mxu1 %v2813_v45 }
  0xed   : > { %v367_v16 = vpop.f32.mrf.mxu0  ;;  %v553_v17 = vpop.f32.mrf.mxu1 }
  0xee   : > { %v576_v18 = vadd.f32 %v553_v17, %v367_v16 }
  0xef   : > { %v369_v19 = vpop.f32.mrf.mxu0  ;;  %v555_v20 = vpop.f32.mrf.mxu1 }
  0xf0   : > { %v577_v21 = vadd.f32 %v555_v20, %v369_v19 }
  0xf1   : > { %v371_v22 = vpop.f32.mrf.mxu0  ;;  %v557_v23 = vpop.f32.mrf.mxu1 }
  0xf2   : > { %v578_v24 = vadd.f32 %v557_v23, %v371_v22 }
  0xf3   : > { %v373_v25 = vpop.f32.mrf.mxu0  ;;  %v559_v26 = vpop.f32.mrf.mxu1 }
  0xf4   : > { %v579_v27 = vadd.f32 %v559_v26, %v373_v25 }
  0xf5   : > { %v377_v28 = vpop.f32.mrf.mxu0  ;;  %v563_v29 = vpop.f32.mrf.mxu1 }
  0xf6   : > { %v580_v30 = vadd.f32 %v563_v29, %v377_v28 }
  0xf7   : > { %v379_v31 = vpop.f32.mrf.mxu0  ;;  %v565_v32 = vpop.f32.mrf.mxu1 }
  0xf8   : > { %v581_v33 = vadd.f32 %v565_v32, %v379_v31 }
  0xf9   : > { %v381_v34 = vpop.f32.mrf.mxu0  ;;  %v567_v35 = vpop.f32.mrf.mxu1 }
  0xfa   : > { %v1918_v35 = vlaneseq }
  0xfb   : > { %v382_v36 = vpop.f32.mrf.mxu0  ;;  %v568_v37 = vpop.f32.mrf.mxu1 }
  0xfc   : > { %vm2184_vm10 = vcmp.lt.s32.totalorder %v1918_v35, 256 }
 0x10d   : > { %v739_v38 = vpop.f32.mrf.mxu0  ;;  %v925_v39 = vpop.f32.mrf.mxu1 }
 0x10e   : > { %v762_v40 = vadd.f32 %v739_v38, %v576_v18  ;;  %v3337_v38 = vshrl.u32 %v1918_v35, 7 }
 0x10f   : > { %v741_v41 = vpop.f32.mrf.mxu0  ;;  %v927_v42 = vpop.f32.mrf.mxu1 }
 0x110   : > { %v948_v43 = vadd.f32 %v925_v39, %v762_v40  ;;  %v763_v44 = vadd.f32 %v741_v41, %v577_v21  ;;  %v1920_v45 = vsub.s32 0, %v3337_v38 }
 0x111   : > { %v743_v46 = vpop.f32.mrf.mxu0  ;;  %v929_v47 = vpop.f32.mrf.mxu1 }
 0x112   : > { %v949_v48 = vadd.f32 %v927_v42, %v763_v44  ;;  %v764_v49 = vadd.f32 %v743_v46, %v578_v24 }
 0x113   : > { %v745_v50 = vpop.f32.mrf.mxu0  ;;  %v931_v51 = vpop.f32.mrf.mxu1 }
 0x114   : > { %v950_v52 = vadd.f32 %v929_v47, %v764_v49  ;;  %v765_v53 = vadd.f32 %v745_v50, %v579_v27 }
 0x115   : > { %v749_v54 = vpop.f32.mrf.mxu0  ;;  %v935_v55 = vpop.f32.mrf.mxu1 }
 0x116   : > { %v951_v56 = vadd.f32 %v931_v51, %v765_v53  ;;  %v766_v57 = vadd.f32 %v749_v54, %v580_v30  ;;  %v1924_v53 = vsub.s32 1, %v3337_v38 }
 0x117   : > { %v751_v58 = vpop.f32.mrf.mxu0  ;;  %v937_v59 = vpop.f32.mrf.mxu1 }
 0x118   : > { %v767_v60 = vadd.f32 %v751_v58, %v581_v33  ;;  %v952_v61 = vadd.f32 %v935_v55, %v766_v57 }
 0x119   : > { %v753_v62 = vpop.f32.mrf.mxu0  ;;  %v939_v63 = vpop.f32.mrf.mxu1 }
 0x11a   : > { %v953_v0 = vadd.f32 %v937_v59, %v767_v60 }
 0x11b   : > { %v754_v1 = vpop.f32.mrf.mxu0  ;;  %v940_v3 = vpop.f32.mrf.mxu1 }
 0x12d   : > { %v1125_v4 = vpop.f32.mrf.mxu0  ;;  %v1304_v5 = vpop.f32.mrf.mxu1 }
 0x12e   : > { %v1148_v36 = vadd.f32 %v1125_v4, %v948_v43  ;;  %v1916_v43 = vld [vmem:[%s3382_s2] sm:$0x3] }
 0x12f   : > { %v1127_v6 = vpop.f32.mrf.mxu0  ;;  %v1306_v2 = vpop.f32.mrf.mxu1  ;;  %v1921_v59 = vrot.slane %v1916_v43, %v1920_v45 }
 0x130   : > { %v1149_v39 = vadd.f32 %v1127_v6, %v949_v48  ;;  %v1327_v41 = vadd.f32 %v1304_v5, %v1148_v36  ;;  %v1934_v48 = vld [vmem:[%s3383_s3] sm:$0x3] }
 0x131   : > { %v1129_v7 = vpop.f32.mrf.mxu0  ;;  %v1308_v8 = vpop.f32.mrf.mxu1 }
 0x132   : > { %v1150_v44 = vadd.f32 %v1129_v7, %v950_v52  ;;  %v1328_v46 = vadd.f32 %v1306_v2, %v1149_v39  ;;  %v1943_v7 = vrot.slane %v1934_v48, %v1924_v53 }
 0x133   : > { %v1131_v9 = vpop.f32.mrf.mxu0  ;;  %v1310_v10 = vpop.f32.mrf.mxu1 }
 0x134   : > { %v1151_v51 = vadd.f32 %v1131_v9, %v951_v56  ;;  %v1329_v52 = vadd.f32 %v1308_v8, %v1150_v44  ;;  %v1939_v56 = vrot.slane %v1934_v48, %v1920_v45 }
 0x135   : > { %v1135_v11 = vpop.f32.mrf.mxu0  ;;  %v1314_v12 = vpop.f32.mrf.mxu1 }
 0x136   : > { %v1152_v37 = vadd.f32 %v1135_v11, %v952_v61  ;;  %v1330_v60 = vadd.f32 %v1310_v10, %v1151_v51 }
 0x137   : > { %v1137_v13 = vpop.f32.mrf.mxu0  ;;  %v1316_v14 = vpop.f32.mrf.mxu1 }
 0x138   : > { %v1153_v40 = vadd.f32 %v1137_v13, %v953_v0  ;;  %v1331_v42 = vadd.f32 %v1314_v12, %v1152_v37  ;;  %v1925_v0 = vrot.slane %v1916_v43, %v1924_v53 }
 0x139   : > { %v1139_v15 = vpop.f32.mrf.mxu0  ;;  %v1318_v16 = vpop.f32.mrf.mxu1 }
 0x13a   : > { %v1332_v47 = vadd.f32 %v1316_v14, %v1153_v40 }
 0x13b   : > { %v1140_v17 = vpop.f32.mrf.mxu0  ;;  %v1319_v18 = vpop.f32.mrf.mxu1 }
 0x14d   : > { %v1490_v19 = vpop.f32.mrf.mxu0  ;;  %v1690_v20 = vpop.f32.mrf.mxu1 }
 0x14e   : > { %v1513_v49 = vadd.f32 %v1490_v19, %v1327_v41 }
 0x14f   : > { %v1492_v21 = vpop.f32.mrf.mxu0  ;;  %v1692_v22 = vpop.f32.mrf.mxu1 }
 0x150   : > { %v1514_v54 = vadd.f32 %v1492_v21, %v1328_v46  ;;  %v1713_v57 = vadd.f32 %v1690_v20, %v1513_v49 }
 0x151   : > { %v1494_v23 = vpop.f32.mrf.mxu0  ;;  %v1694_v24 = vpop.f32.mrf.mxu1 }
 0x152   : > { %v1515_v61 = vadd.f32 %v1494_v23, %v1329_v52  ;;  %v1714_v1 = vadd.f32 %v1692_v22, %v1514_v54 }
 0x153   : > { %v1496_v25 = vpop.f32.mrf.mxu0  ;;  %v1696_v26 = vpop.f32.mrf.mxu1 }
 0x154   : > { %v1516_v6 = vadd.f32 %v1496_v25, %v1330_v60  ;;  %v1715_v14 = vadd.f32 %v1694_v24, %v1515_v61 }
 0x155   : > { %v1500_v27 = vpop.f32.mrf.mxu0  ;;  %v1700_v28 = vpop.f32.mrf.mxu1 }
 0x156   : > { %v1517_v50 = vadd.f32 %v1500_v27, %v1331_v42  ;;  %v1716_v20 = vadd.f32 %v1696_v26, %v1516_v6 }
 0x157   : > { %v1502_v29 = vpop.f32.mrf.mxu0  ;;  %v1702_v30 = vpop.f32.mrf.mxu1 }
 0x158   : > { %v1518_v55 = vadd.f32 %v1502_v29, %v1332_v47  ;;  %v1717_v58 = vadd.f32 %v1700_v28, %v1517_v50 }
 0x159   : > { %v1504_v31 = vpop.f32.mrf.mxu0  ;;  %v1704_v32 = vpop.f32.mrf.mxu1 }
 0x15a   : > { %v1718_v3 = vadd.f32 %v1702_v30, %v1518_v55 }
 0x15b   : > { %v1505_v33 = vpop.f32.mrf.mxu0  ;;  %v1705_v34 = vpop.f32.mrf.mxu1 }
 0x16d   : > { %v1875_v62 = vpop.f32.mrf.mxu0  ;;  %v1885_v63 = vpop.f32.mrf.mxu1 }
 0x16e   : > { %v1898_v4 = vadd.f32 %v1875_v62, %v1713_v57  ;;  %v1902_v5 = vadd.f32 %v1885_v63, %v1717_v58 }
 0x16f   : > { %v1877_v2 = vpop.f32.mrf.mxu0  ;;  %v1887_v9 = vpop.f32.mrf.mxu1 }
 0x170   : > { %v1928_v11 = vmul.f32 %v1921_v59, %v1898_v4  ;;  %v1932_v12 = vmul.f32 %v1921_v59, %v1902_v5  ;;  %v1899_v8 = vadd.f32 %v1877_v2, %v1714_v1  ;;  %v1903_v13 = vadd.f32 %v1887_v9, %v1718_v3 }
 0x171   : > { %v1879_v15 = vpop.f32.mrf.mxu0  ;;  %v1889_v10 = vpop.f32.mrf.mxu1 }
 0x172   : > { %v3347_v16 = vadd.f32 %v1939_v56, %v1928_v11  ;;  %v1950_v17 = vadd.f32 %v1939_v56, %v1932_v12  ;;  %v1929_v18 = vmul.f32 %v1925_v0, %v1899_v8  ;;  %v1933_v19 = vmul.f32 %v1925_v0, %v1903_v13 }
 0x173   : > { %v1900_v21 = vadd.f32 %v1879_v15, %v1715_v14  ;;  %v1881_v22 = vpop.f32.mrf.mxu0  ;;  %v1890_v23 = vpop.f32.mrf.mxu1 }
 0x174   : > { %v1952_v25 = vmax.f32 %v3347_v16, 0.0  ;;  %v1956_v27 = vmax.f32 %v1950_v17, 0.0  ;;  %v1947_v28 = vadd.f32 %v1943_v7, %v1929_v18  ;;  %v1951_v29 = vadd.f32 %v1943_v7, %v1933_v19  ;;  %v2064_v16 = vld [vmem:[%s3384_s4] sm:$0xf] }
 0x175   : > { %v1930_v30 = vmul.f32 %v1921_v59, %v1900_v21  ;;  %v1901_v31 = vadd.f32 %v1881_v22, %v1716_v20 }
 0x176   : > { %1958 = vst [vmem:[#allocation2 + $0x28] sm:$0xff] %v1952_v25  ;;  %1962 = vst [vmem:[#allocation2 + $0x18] sm:$0xff] %v1956_v27  ;;  %v1953_v24 = vmax.f32 %v1947_v28, 0.0  ;;  %v1957_v32 = vmax.f32 %v1951_v29, 0.0  ;;  %v2019_v39 = vrot.slane %v1956_v27, 1 }
 0x177   : > { %v1948_v33 = vadd.f32 %v1939_v56, %v1930_v30  ;;  %v1931_v34 = vmul.f32 %v1925_v0, %v1901_v31 }
 0x178   : > { %1959 = vst [vmem:[#allocation2 + $0x10] sm:$0xff] %v1953_v24  ;;  %1963 = vst [vmem:[#allocation2 + $0x20] sm:$0xff] %v1957_v32  ;;  %v2021_v41 = vrot.slane %v1957_v32, 1 }
 0x179   : > { %v1954_v26 = vmax.f32 %v1948_v33, 0.0  ;;  %v1949_v36 = vadd.f32 %v1943_v7, %v1931_v34 }
 0x17b   : > { %v1955_v37 = vmax.f32 %v1949_v36, 0.0  ;;  %v1982_v40 = vrot.slane %v1954_v26, 1 }
 0x17d   : > { %v1972_v42 = vld [vmem:[#allocation2 + $0x18] sm:$0x3]  ;;  %v2020_v45 = vsel %vm619_vm1, %v1982_v40, %v2019_v39  ;;  %v1985_v49 = vrot.slane %v1955_v37, 1  ;;  %v1970_v58 = vld [vmem:[#allocation2 + $0x28] sm:$0xfe] }
 0x17e   : > { %v2005_v44 = vld [vmem:[#allocation2 + $0x18] sm:$0x7f]  ;;  %v1987_v46 = vrot.slane %v1972_v42, 1  ;;  %v2031_v50 = vmax.f32 %v1954_v26, %v2020_v45  ;;  %v2007_v5 = vld [vmem:[#allocation2 + $0x28] sm:$0x80]  ;;  %v1981_v13 = vrot.slane %v1970_v58, 1 }
 0x17f   : > { %v2033_v47 = vmax.f32 %v2005_v44, %v2019_v39  ;;  %v1973_v51 = vld [vmem:[#allocation2 + $0x20] sm:$0x3]  ;;  %v1968_v53 = vld [vmem:[#allocation2 + $0x18] sm:$0x1]  ;;  %v1971_v57 = vld [vmem:[#allocation2 + $0x10] sm:$0xfe]  ;;  %v2022_v60 = vsel %vm619_vm1, %v1985_v49, %v2021_v41 }
 0x180   : > { %v2006_v43 = vld [vmem:[#allocation2 + $0x20] sm:$0x7f]  ;;  %v1989_v54 = vrot.slane %v1973_v51, 1  ;;  %v2001_v48 = vmax.f32 %v1968_v53, %v1987_v46  ;;  %v1988_v61 = vsel %vm619_vm1, %v1982_v40, %v1987_v46  ;;  %v2043_v62 = vrot.slane %v2031_v50, 6  ;;  %v2008_v63 = vld [vmem:[#allocation2 + $0x10] sm:$0x80] }
 0x181   : > { %v2034_v55 = vmax.f32 %v2006_v43, %v2021_v41  ;;  %v2048_v52 = vrot.slane %v2033_v47, 6  ;;  %v1969_v59 = vld [vmem:[#allocation2 + $0x20] sm:$0x1]  ;;  %v1984_v56 = vrot.slane %v1971_v57, 1  ;;  %v2032_v2 = vmax.f32 %v1955_v37, %v2022_v60  ;;  %v2004_v18 = vld [vmem:[#allocation2 + $0x10] sm:$0xc0] }
 0x182   : > { %v2002_v0 = vmax.f32 %v1969_v59, %v1989_v54  ;;  %v1990_v4 = vsel %vm619_vm1, %v1985_v49, %v1989_v54  ;;  %v1999_v7 = vmax.f32 %v1954_v26, %v1988_v61  ;;  %v2017_v8 = vrot.slane %v2008_v63, 1  ;;  %v2003_v27 = vld [vmem:[#allocation2 + $0x28] sm:$0xc0] }
 0x183   : > { %v2050_v1 = vrot.slane %v2034_v55, 6  ;;  %v2062_v3 = vmax.f32 %v2001_v48, %v2048_v52  ;;  %v2000_v6 = vmax.f32 %v1955_v37, %v1990_v4  ;;  %v2049_v9 = vsel %vm2041_vm7, %v2043_v62, %v2048_v52 }
 0x184   : > { %v1986_v12 = vsel %vm619_vm1, %v1984_v56, %v1985_v49  ;;  %v2046_v14 = vrot.slane %v2032_v2, 6  ;;  %v2060_v15 = vmax.f32 %v1999_v7, %v2049_v9  ;;  %v2015_v17 = vrot.slane %v2007_v5, 1 }
 0x185   : > { %v2063_v11 = vmax.f32 %v2002_v0, %v2050_v1  ;;  %v1998_v10 = vmax.f32 %v1953_v24, %v1986_v12  ;;  %v2018_v19 = vsel %vm619_vm1, %v2017_v8, %v1985_v49  ;;  %v1983_v20 = vsel %vm619_vm1, %v1981_v13, %v1982_v40 }
 0x186   : > { %v2051_v21 = vsel %vm2041_vm7, %v2046_v14, %v2050_v1  ;;  %v2030_v22 = vmax.f32 %v2004_v18, %v2018_v19  ;;  %v1997_v23 = vmax.f32 %v1952_v25, %v1983_v20  ;;  %v2016_v28 = vsel %vm619_vm1, %v2015_v17, %v1982_v40 }
 0x187   : > { %2537 = vmatprep.subr.msk.mxu1 %vm2069_vm6, %v2063_v11  ;;  %v2061_v29 = vmax.f32 %v2000_v6, %v2051_v21  ;;  %v2029_v30 = vmax.f32 %v2003_v27, %v2016_v28  ;;  %v2814_v49 = vmov 1966171168  }
 0x188   : > { %2538 = vmatpush1.msk.msra.mxu1 %vm2069_vm6, %v2062_v3  ;;  %v2045_v31 = vrot.slane %v2030_v22, 6  ;;  %v2168_v50 = vunpack.c.l.s4 %v2814_v49 }
 0x189   : > { %2104 = vmatprep.subr.mxu1 %v2061_v29  ;;  %v2042_v24 = vrot.slane %v2029_v30, 6 }
 0x18a   : > { %2105 = vmatpush1.msra.mxu1 %v2060_v15  ;;  %v2047_v32 = vsel %vm2041_vm7, %v2045_v31, %v2046_v14  ;;  %v2169_v55 = vunpack.c.0.s8 %v2168_v50 }
 0x18b   : > { %v2059_v33 = vmax.f32 %v1998_v10, %v2047_v32  ;;  %v2044_v34 = vsel %vm2041_vm7, %v2042_v24, %v2043_v62 }
 0x18c   : > { %v2058_v26 = vmax.f32 %v1997_v23, %v2044_v34  ;;  %v2172_v58 = vsub.s32 %v2169_v55, %v3337_v38 }
 0x18d   : > { %2106 = vmatprep.subr.mxu1 %v2059_v33 }
 0x18e   : > { %2107 = vmatpush1.msra.mxu1 %v2058_v26 }
 0x18f   : > { %2539 = vmatmul.mubr.msk.f32.vlgmr.msra.gmra.mxu1 %vm2065_vm8, %v2064_v16 }
 0x24f   : > { %v2142_v25 = vpop.f32.mrf.mxu1 }
 0x250   : > { %v2148_v36 = vsel %vm2147_vm9, %v2142_v25, 0.0 }
 0x251   : > { %v2149_v37 = vrot.slane %v2148_v36, 4  ;;  %v2144_v39 = vpop.f32.mrf.mxu1 }
 0x252   : > { %v2155_v40 = vsel %vm2147_vm9, %v2144_v39, 0.0 }
 0x253   : > { %v2150_v41 = vadd.f32 %v2149_v37, %v2148_v36  ;;  %v2156_v42 = vrot.slane %v2155_v40, 4 }
 0x255   : > { %v2151_v44 = vrot.slane %v2150_v41, 2  ;;  %v2157_v45 = vadd.f32 %v2156_v42, %v2155_v40 }
 0x257   : > { %v2152_v46 = vadd.f32 %v2151_v44, %v2150_v41  ;;  %v2158_v47 = vrot.slane %v2157_v45, 2 }
 0x259   : > { %v2153_v51 = vrot.slane %v2152_v46, 1  ;;  %v2159_v43 = vadd.f32 %v2158_v47, %v2157_v45 }
 0x25b   : > { %v2154_v53 = vadd.f32 %v2153_v51, %v2152_v46  ;;  %v2160_v54 = vrot.slane %v2159_v43, 1 }
 0x25d   : > { %v2161_v48 = vadd.f32 %v2160_v54, %v2159_v43  ;;  %v2162_v52 = vmul.f32 0.25, %v2154_v53 }
 0x25f   : > { %v2163_v57 = vmul.f32 0.25, %v2161_v48 }
 0x261   : > { %v2166_v59 = vcombine.low %v2162_v52, %v2163_v57 }
 0x263   : > { %v2173_v60 = vrot.slane %v2166_v59, %v2172_v58 }
 0x265   : > { %v2180_v61 = vrot.slane %v2173_v60, %v2172_v58 }
 0x267   : > { %2186 = vst.msk [vmem:[%s222_s7] sm:$0x3] %vm2184_vm10, %v2180_v61 }
 0x268 PF: > { %s15_s18 = sadd.s32 1, %s2810_s18  }
 0x269   : > { %p12_p4 = scmp.ge.s32.totalorder %s15_s18, 4  }
 0x26b   :  { %14 = sbr.rel (!%p12_p4) target bundleno = 1 (0x1), region = 78 }

// kernel: _lambda_.5
= control target key start
LH: loop header
LB: loop body
LE: loop exit
PB: predicated region body
PF: predicated region fallthrough
CT: control target
= control target key end

     0   :  { %s3543_s18 = smov 0   ;;  %s4173_s0 = inlined_call_operand.vmem [shape: bf16[2,104,128], index: 0, kind: input, shape index: {}]   ;;  %s4174_s1 = inlined_call_operand.vmem [shape: bf16[9,128,128], index: 1, kind: input, shape index: {}]   ;;  %s4175_s2 = inlined_call_operand.vmem [shape: f32[1,128], index: 2, kind: input, shape index: {}]   ;;  %s4176_s3 = inlined_call_operand.vmem [shape: f32[1,128], index: 3, kind: input, shape index: {}]   ;;  %s4177_s4 = inlined_call_operand.vmem [shape: f32[16,69], index: 4, kind: input, shape index: {}]   ;;  %s4178_s5 = inlined_call_operand.vmem [shape: bf16[2,16,128], index: 5, kind: output, shape index: {}]  }
   0x1 LB: > { %s2600_s19 = sadd.s32 4294967295, %s3509_s18   ;;  %p2604_p0 = scmp.ge.s32.totalorder %s3509_s18, 1  ;;  %s3509_s18 = sphi %s3543_s18, %s15_s18  }
   0x2   : > { %p187_p1 = scmp.lt.s32.totalorder %s3509_s18, 3 }
   0x4   : > { %p188_p2 = pnand %p2604_p0, %p187_p1 }
   0x5   : > { %p215_p3 = scmp.lt.s32.totalorder (!%p188_p2), %s2600_s19, 1 }
   0x6   : > { %191 = sbr.rel (%p188_p2) target bundleno = 647 (0x287), region = 40 }
   0xb   : > { %v3378_v0 = vld [vmem:[%s4174_s1 + $0x38] sm:$0xff]   ;;  %v3511_v1 = vmov 0.0   ;;  %v3380_v3 = vld [vmem:[%s4174_s1 + $0x30] sm:$0xff]   ;;  %vm3512_vm0 = vmmov 0   ;;  %v3382_v5 = vld [vmem:[%s4174_s1 + $0x28] sm:$0xff]   ;;  %s4180_s19 = smov (!%p215_p3, %s2600_s19), 1 }
   0xc   : > { %3006 = vmatprep.subr.bf16.mxu0 %v3511_v1  ;;  %3042 = vmatprep.subr.bf16.mxu1 %v3511_v1  ;;  %v3379_v2 = vld [vmem:[%s4174_s1 + $0x78] sm:$0xff]   ;;  %v3381_v4 = vld [vmem:[%s4174_s1 + $0x70] sm:$0xff]   ;;  %v3383_v6 = vld [vmem:[%s4174_s1 + $0x68] sm:$0xff]   ;;  %s3367_s11 = smul.u32 52, %s4180_s19  ;;  %vm469_vm1 = vsmask.f32 7424 }
   0xd   : > { %3007 = vmatpush3.bf16.msra.mxu0 %v3378_v0  ;;  %3022 = vmatprep.mubr.msk.bf16.mxu0 %vm3512_vm0, %v3511_v1  ;;  %v3384_v7 = vld [vmem:[%s4174_s1 + $0x20] sm:$0xff]   ;;  %v3386_v9 = vld [vmem:[%s4174_s1 + $0x18] sm:$0xff]   ;;  %v3388_v11 = vld [vmem:[%s4174_s1 + $0x10] sm:$0xff]   ;;  %vm726_vm2 = vcmask 1046528   ;;  %vm1173_vm3 = vsmask.f32 6400 }
   0xe   : > { %3043 = vmatpush3.bf16.msra.mxu1 %v3379_v2  ;;  %3008 = vmatprep.subr.bf16.mxu0 %v3511_v1  ;;  %v3385_v8 = vld [vmem:[%s4174_s1 + $0x60] sm:$0xff]   ;;  %v3387_v10 = vld [vmem:[%s4174_s1 + $0x58] sm:$0xff]   ;;  %s3600_s20 = scalar_lea.vmem %s4173_s0, %s3367_s11  ;;  %v3389_v14 = vld [vmem:[%s4174_s1 + $0x50] sm:$0xff]   ;;  %vm1439_vm4 = vcmask 1045504   ;;  %vm1886_vm5 = vsmask.f32 5376 }
   0xf   : > { %3044 = vmatprep.subr.bf16.mxu1 %v3511_v1  ;;  %3058 = vmatprep.mubr.msk.bf16.mxu1 %vm3512_vm0, %v3511_v1  ;;  %v3395_v12 = vld [vmem:[%s3600_s20] sm:$0xff]   ;;  %v3396_v13 = vld [vmem:[%s3600_s20 + $0x8] sm:$0xff]   ;;  %v3401_v26 = vld [vmem:[%s3600_s20 + $0x10] sm:$0xff]   ;;  %vm2152_vm6 = vcmask 1044480   ;;  %vm2449_vm7 = vcmask 564224   ;;  %s2870_s17 = sshll.u32 %s4180_s19, 3 }
  0x10   : > { %v3390_v15 = vld [vmem:[%s4174_s1 + $0x8] sm:$0xff]   ;;  %v473_v16 = vshll.u32 %v3395_v12, 16  ;;  %v471_v18 = vshrl.u32 %v3395_v12, 16  ;;  %v478_v20 = vshll.u32 %v3396_v13, 16  ;;  %v3392_v21 = vld [vmem:[%s4174_s1] sm:$0xff]   ;;  %v3397_v27 = vld [vmem:[%s4174_s1 + $0xb8] sm:$0xff]   ;;  %s224_s23 = scalar_lea.vmem %s4178_s5, %s2870_s17 }
  0x11   : > { %3009 = vmatpush3.bf16.msra.mxu0 %v3380_v3  ;;  %v3391_v17 = vld [vmem:[%s4174_s1 + $0x48] sm:$0xff]   ;;  %v3393_v22 = vld [vmem:[%s4174_s1 + $0x40] sm:$0xff]   ;;  %v3398_v28 = vld [vmem:[%s4174_s1 + $0xf8] sm:$0xff]   ;;  %v482_v30 = vshrl.u32 %v3396_v13, 16  ;;  %v486_v31 = vshll.u32 %v3401_v26, 16  ;;  %v490_v40 = vshrl.u32 %v3401_v26, 16 }
  0x12   : > { %3045 = vmatpush3.bf16.msra.mxu1 %v3381_v4  ;;  %3010 = vmatprep.subr.bf16.mxu0 %v3511_v1  ;;  %v475_v19 = vrot.slane %v473_v16, 1  ;;  %v3394_v23 = vld [vmem:[%s3600_s20] sm:$0xff]   ;;  %v480_v25 = vrot.slane %v478_v20, 1  ;;  %v3399_v32 = vld [vmem:[%s4174_s1 + $0xb0] sm:$0xff]   ;;  %v3406_v36 = vld [vmem:[%s3600_s20 + $0x18] sm:$0xff]  }
  0x13   : > { %3046 = vmatprep.subr.bf16.mxu1 %v3511_v1  ;;  %v3402_v33 = vld [vmem:[%s4174_s1 + $0xf0] sm:$0xff]   ;;  %v488_v35 = vrot.slane %v486_v31, 1  ;;  %v3400_v37 = vld [vmem:[%s3600_s20 + $0x8] sm:$0xff]   ;;  %v494_v41 = vshll.u32 %v3406_v36, 16  ;;  %v3407_v43 = vld [vmem:[%s4174_s1 + $0xa0] sm:$0xff]   ;;  %v498_v51 = vshrl.u32 %v3406_v36, 16 }
  0x14   : > { %v476_v24 = vor.u32 %v475_v19, %v471_v18  ;;  %v484_v34 = vor.u32 %v482_v30, %v480_v25  ;;  %v3403_v38 = vld [vmem:[%s4174_s1 + $0xa8] sm:$0xff]   ;;  %v3411_v46 = vld [vmem:[%s3600_s20 + $0x20] sm:$0xff]   ;;  %v3405_v48 = vld [vmem:[%s3600_s20 + $0x10] sm:$0xff]  }
  0x15   : > { %3011 = vmatpush3.bf16.msra.mxu0 %v3382_v5  ;;  %v3404_v42 = vld [vmem:[%s4174_s1 + $0xe8] sm:$0xff]   ;;  %v492_v44 = vor.u32 %v490_v40, %v488_v35  ;;  %v496_v45 = vrot.slane %v494_v41, 1  ;;  %v3408_v47 = vld [vmem:[%s4174_s1 + $0xe0] sm:$0xff]   ;;  %v3409_v49 = vld [vmem:[%s4174_s1 + $0x98] sm:$0xff]   ;;  %v502_v52 = vshll.u32 %v3411_v46, 16  ;;  %v506_v60 = vshrl.u32 %v3411_v46, 16 }
  0x16   : > { %3047 = vmatpush3.bf16.msra.mxu1 %v3383_v6  ;;  %3012 = vmatprep.subr.bf16.mxu0 %v3511_v1  ;;  %v481_v29 = vsel %vm469_vm1, %v476_v24, %v480_v25  ;;  %v489_v39 = vsel %vm469_vm1, %v484_v34, %v488_v35  ;;  %v3412_v53 = vld [vmem:[%s4174_s1 + $0xd8] sm:$0xff]   ;;  %v3417_v54 = vld [vmem:[%s3600_s20 + $0x28] ss:$0 sps:$4 sm:$0x11]   ;;  %v3413_v55 = vld [vmem:[%s4174_s1 + $0x90] sm:$0xff]  }
  0x17   : > { %3048 = vmatprep.subr.bf16.mxu1 %v3511_v1  ;;  %v497_v50 = vsel %vm469_vm1, %v492_v44, %v496_v45  ;;  %v500_v56 = vor.u32 %v498_v51, %v496_v45  ;;  %v504_v57 = vrot.slane %v502_v52, 1  ;;  %v3414_v58 = vld [vmem:[%s4174_s1 + $0xd0] sm:$0xff]   ;;  %v3410_v59 = vld [vmem:[%s3600_s20 + $0x18] sm:$0xff]   ;;  %v3415_v62 = vld [vmem:[%s4174_s1 + $0x88] sm:$0xff]   ;;  %v510_v63 = vshll.u32 %v3417_v54, 16 }
  0x18   : > { %v3418_v0 = vld [vmem:[%s4174_s1 + $0xc8] sm:$0xff]   ;;  %v3419_v2 = vld [vmem:[%s4174_s1 + $0x80] sm:$0xff]   ;;  %v3425_v16 = vld [vmem:[%s4174_s1 + $0x138] sm:$0xff]  }
  0x19   : > { %3013 = vmatpush3.bf16.msra.mxu0 %v3384_v7  ;;  %v505_v61 = vsel %vm469_vm1, %v500_v56, %v504_v57  ;;  %v3416_v3 = vld [vmem:[%s3600_s20 + $0x20] sm:$0xff]   ;;  %v508_v4 = vor.u32 %v506_v60, %v504_v57  ;;  %v512_v5 = vrot.slane %v510_v63, 1  ;;  %v3422_v7 = vld [vmem:[%s3600_s20 + $0x8] sm:$0xff]   ;;  %v3426_v18 = vld [vmem:[%s4174_s1 + $0x178] sm:$0xff]  }
  0x1a   : > { %3049 = vmatpush3.bf16.msra.mxu1 %v3385_v8  ;;  %3014 = vmatprep.subr.bf16.mxu0 %v3511_v1  ;;  %v3420_v6 = vld [vmem:[%s4174_s1 + $0xc0] sm:$0xff]   ;;  %v728_v13 = vrot.slane %v3422_v7, 1  ;;  %v3429_v19 = vld [vmem:[%s3600_s20 + $0x14] sm:$0xff]   ;;  %v3431_v26 = vld [vmem:[%s4174_s1 + $0x128] sm:$0xff]  }
  0x1b   : > { %3050 = vmatprep.subr.bf16.mxu1 %v3511_v1  ;;  %v3421_v8 = vld [vmem:[%s3600_s20] sm:$0xfe]   ;;  %v953_v24 = vrot.slane %v3429_v19, 1  ;;  %v3430_v25 = vld [vmem:[%s4174_s1 + $0x170] sm:$0xff]   ;;  %v3432_v31 = vld [vmem:[%s4174_s1 + $0x168] sm:$0xff]  }
  0x1c   : > { %v727_v12 = vrot.slane %v3421_v8, 1  ;;  %v3434_v30 = vld [vmem:[%s3600_s20 + $0x1c] sm:$0xff]   ;;  %v3439_v40 = vld [vmem:[%s3600_s20 + $0x24] sm:$0xff]   ;;  %v3442_v45 = vld [vmem:[%s4174_s1 + $0x150] sm:$0xff]  }
  0x1d   : > { %3015 = vmatpush3.bf16.msra.mxu0 %v3386_v9  ;;  %v3424_v9 = vld [vmem:[%s3600_s20 + $0xc] sm:$0xff]   ;;  %v955_v34 = vrot.slane %v3434_v30, 1  ;;  %v3436_v35 = vld [vmem:[%s4174_s1 + $0x160] sm:$0xff]   ;;  %v3437_v36 = vld [vmem:[%s4174_s1 + $0x118] sm:$0xff]   ;;  %v957_v44 = vrot.slane %v3439_v40, 1 }
  0x1e   : > { %3051 = vmatpush3.bf16.msra.mxu1 %v3387_v10  ;;  %3016 = vmatprep.subr.bf16.mxu0 %v3511_v1  ;;  %v513_v10 = vsel %vm469_vm1, %v508_v4, %v512_v5  ;;  %v729_v20 = vsel %vm726_vm2, %v727_v12, %v728_v13  ;;  %v3440_v41 = vld [vmem:[%s4174_s1 + $0x158] sm:$0xff]   ;;  %v3444_v46 = vld [vmem:[%s3600_s20 + $0x28] ss:$0 sps:$4 sm:$0x11]   ;;  %v3447_v56 = vld [vmem:[%s4174_s1 + $0x100] sm:$0xff]  }
  0x1f   : > { %3052 = vmatprep.subr.bf16.mxu1 %v3511_v1  ;;  %v958_v51 = vsel %vm726_vm2, %v955_v34, %v957_v44  ;;  %v3443_v52 = vld [vmem:[%s4174_s1 + $0x108] sm:$0xff]   ;;  %v3456_v63 = vld [vmem:[%s3600_s20 + $0x14] sm:$0xff]   ;;  %v3461_v19 = vld [vmem:[%s3600_s20 + $0x1c] sm:$0xff]  }
  0x20   : > { %v1192_v8 = vshrl.u32 %v3456_v63, 16 }
  0x21   : > { %3017 = vmatpush3.bf16.msra.mxu0 %v3388_v11  ;;  %v3423_v11 = vld [vmem:[%s3600_s20 + $0x4] sm:$0xfe]  }
  0x22   : > { %3053 = vmatpush3.bf16.msra.mxu1 %v3389_v14  ;;  %3018 = vmatprep.subr.bf16.mxu0 %v3511_v1  ;;  %v950_v14 = vrot.slane %v3423_v11, 1  ;;  %v1195_v11 = vshll.u32 %v3456_v63, 16  ;;  %v3480_v63 = vld [vmem:[%s3600_s20 + $0x10] sm:$0xff]  }
  0x23   : > { %3054 = vmatprep.subr.bf16.mxu1 %v3511_v1 }
  0x25   : > { %3019 = vmatpush3.bf16.msra.mxu0 %v3390_v15  ;;  %v951_v15 = vrot.slane %v3424_v9, 1 }
  0x26   : > { %3055 = vmatpush3.bf16.msra.mxu1 %v3391_v17  ;;  %3020 = vmatprep.subr.bf16.mxu0 %v3511_v1  ;;  %v3428_v17 = vld [vmem:[%s3600_s20 + $0x10] sm:$0xff]  }
  0x27   : > { %3056 = vmatprep.subr.bf16.mxu1 %v3511_v1 }
  0x29   : > { %3021 = vmatpush3.bf16.msra.mxu0 %v3392_v21  ;;  %v952_v21 = vsel %vm726_vm2, %v950_v14, %v951_v15  ;;  %v3453_v14 = vld [vmem:[%s4174_s1 + $0x1b8] sm:$0xff]  }
  0x2a   : > { %3057 = vmatpush3.bf16.msra.mxu1 %v3393_v22  ;;  %3078 = vmatprep.subr.bf16.mxu0 %v3511_v1  ;;  %v3427_v22 = vld [vmem:[%s4174_s1 + $0x130] sm:$0xff]  }
  0x2b   : > { %3114 = vmatprep.subr.bf16.mxu1 %v3511_v1 }
  0x2c   : > { %3023 = vmatmul.mubr.bf16.vlgmr.msra.gmra.mxu0 %v3394_v23  ;;  %v730_v23 = vrot.slane %v3428_v17, 1 }
  0x2d   : > { %3059 = vmatmul.mubr.bf16.vlgmr.msra.gmra.mxu1 %v481_v29  ;;  %3079 = vmatpush3.bf16.msra.mxu0 %v3397_v27  ;;  %v954_v29 = vsel %vm726_vm2, %v951_v15, %v953_v24  ;;  %v3454_v15 = vld [vmem:[%s4174_s1 + $0x1f8] sm:$0xff]  }
  0x2e   : > { %3080 = vmatprep.subr.bf16.mxu0 %v3511_v1  ;;  %3115 = vmatpush3.bf16.msra.mxu1 %v3398_v28  ;;  %v731_v27 = vsel %vm726_vm2, %v728_v13, %v730_v23  ;;  %v3433_v28 = vld [vmem:[%s3600_s20 + $0x18] sm:$0xff]  }
  0x2f   : > { %3026 = vmatprep.mubr.msk.bf16.mxu0 %vm3512_vm0, %v3511_v1  ;;  %3062 = vmatprep.mubr.msk.bf16.mxu1 %vm3512_vm0, %v3511_v1 }
  0x30   : > { %3116 = vmatprep.subr.bf16.mxu1 %v3511_v1 }
  0x31   : > { %3081 = vmatpush3.bf16.msra.mxu0 %v3399_v32  ;;  %v732_v32 = vrot.slane %v3433_v28, 1  ;;  %v3466_v28 = vld [vmem:[%s3600_s20 + $0x24] sm:$0xff]  }
  0x32   : > { %3082 = vmatprep.subr.bf16.mxu0 %v3511_v1  ;;  %3117 = vmatpush3.bf16.msra.mxu1 %v3402_v33  ;;  %v3435_v33 = vld [vmem:[%s4174_s1 + $0x120] sm:$0xff]  }
  0x33   : > { %3118 = vmatprep.subr.bf16.mxu1 %v3511_v1 }
  0x34   : > { %3027 = vmatmul.mubr.bf16.gmra.mxu0 %v3400_v37  ;;  %v733_v37 = vsel %vm726_vm2, %v730_v23, %v732_v32 }
  0x35   : > { %3063 = vmatmul.mubr.bf16.gmra.mxu1 %v489_v39  ;;  %3083 = vmatpush3.bf16.msra.mxu0 %v3403_v38  ;;  %v3438_v38 = vld [vmem:[%s3600_s20 + $0x20] sm:$0xff]   ;;  %v956_v39 = vsel %vm726_vm2, %v953_v24, %v955_v34  ;;  %v1201_v24 = vshrl.u32 %v3461_v19, 16 }
  0x36   : > { %3030 = vmatprep.mubr.msk.bf16.mxu0 %vm3512_vm0, %v3511_v1  ;;  %3066 = vmatprep.mubr.msk.bf16.mxu1 %vm3512_vm0, %v3511_v1  ;;  %v3462_v34 = vld [vmem:[%s3600_s20 + $0x1c] sm:$0xff]  }
  0x37   : > { %3084 = vmatprep.subr.bf16.mxu0 %v3511_v1  ;;  %3119 = vmatpush3.bf16.msra.mxu1 %v3404_v42  ;;  %v734_v42 = vrot.slane %v3438_v38, 1  ;;  %v1445_v40 = vrot.slane %v3462_v34, 2 }
  0x38   : > { %3120 = vmatprep.subr.bf16.mxu1 %v3511_v1 }
  0x39   : > { %3085 = vmatpush3.bf16.msra.mxu0 %v3407_v43  ;;  %v3441_v43 = vld [vmem:[%s4174_s1 + $0x110] sm:$0xff]  }
  0x3a   : > { %3086 = vmatprep.subr.bf16.mxu0 %v3511_v1 }
  0x3b   : > { %3121 = vmatpush3.bf16.msra.mxu1 %v3408_v47  ;;  %v3450_v47 = vld [vmem:[%s3600_s20 + $0xc] sm:$0xff]  }
  0x3c   : > { %3031 = vmatmul.mubr.bf16.gmra.mxu0 %v3405_v48  ;;  %3122 = vmatprep.subr.bf16.mxu1 %v3511_v1  ;;  %v3445_v48 = vld [vmem:[%s3600_s20 + $0x2c] ss:$0 sps:$4 sm:$0x11]   ;;  %v1183_v54 = vshrl.u32 %v3450_v47, 16  ;;  %v1186_v57 = vshll.u32 %v3450_v47, 16 }
  0x3d   : > { %3067 = vmatmul.mubr.bf16.gmra.mxu1 %v497_v50  ;;  %3087 = vmatpush3.bf16.msra.mxu0 %v3409_v49  ;;  %v735_v49 = vsel %vm726_vm2, %v732_v32, %v734_v42  ;;  %v3449_v50 = vld [vmem:[%s3600_s20 + $0x4] sm:$0xfe]   ;;  %v959_v60 = vrot.slane %v3445_v48, 1 }
  0x3e   : > { %3034 = vmatprep.mubr.msk.bf16.mxu0 %vm3512_vm0, %v3511_v1  ;;  %3070 = vmatprep.mubr.msk.bf16.mxu1 %vm3512_vm0, %v3511_v1  ;;  %v1188_v5 = vrot.slane %v1186_v57, 2  ;;  %v3467_v48 = vld [vmem:[%s3600_s20 + $0x24] sm:$0xff]  }
  0x3f   : > { %3088 = vmatprep.subr.bf16.mxu0 %v3511_v1  ;;  %3123 = vmatpush3.bf16.msra.mxu1 %v3412_v53  ;;  %v3446_v53 = vld [vmem:[%s4174_s1 + $0x148] sm:$0xff]   ;;  %v960_v7 = vsel %vm726_vm2, %v957_v44, %v959_v60 }
  0x40   : > { %3124 = vmatprep.subr.bf16.mxu1 %v3511_v1 }
  0x41   : > { %3089 = vmatpush3.bf16.msra.mxu0 %v3413_v55  ;;  %v736_v55 = vrot.slane %v3444_v46, 1 }
  0x42   : > { %3090 = vmatprep.subr.bf16.mxu0 %v3511_v1 }
  0x43   : > { %3125 = vmatpush3.bf16.msra.mxu1 %v3414_v58  ;;  %v1175_v58 = vshrl.u32 %v3449_v50, 16 }
  0x44   : > { %3035 = vmatmul.mubr.bf16.gmra.mxu0 %v3410_v59  ;;  %3126 = vmatprep.subr.bf16.mxu1 %v3511_v1  ;;  %v1178_v59 = vshll.u32 %v3449_v50, 16 }
  0x45   : > { %3071 = vmatmul.mubr.bf16.gmra.mxu1 %v505_v61  ;;  %3038 = vmatprep.mubr.msk.bf16.mxu0 %vm3512_vm0, %v3511_v1  ;;  %v3448_v61 = vld [vmem:[%s4174_s1 + $0x140] sm:$0xff]  }
  0x46   : > { %3074 = vmatprep.mubr.msk.bf16.mxu1 %vm3512_vm0, %v3511_v1  ;;  %3091 = vmatpush3.bf16.msra.mxu0 %v3415_v62  ;;  %v1185_v62 = vrot.slane %v1183_v54, 1  ;;  %v1180_v4 = vrot.slane %v1178_v59, 2  ;;  %v1447_v54 = vrot.slane %v3467_v48, 2  ;;  %v3473_v59 = vld [vmem:[%s3600_s20 + $0x2c] ss:$0 sps:$4 sm:$0x33]  }
  0x47   : > { %3127 = vmatpush3.bf16.msra.mxu1 %v3418_v0  ;;  %3092 = vmatprep.subr.bf16.mxu0 %v3511_v1  ;;  %v3451_v0 = vld [vmem:[%s3600_s20 + $0x4] sm:$0xfc]  }
  0x48   : > { %3128 = vmatprep.subr.bf16.mxu1 %v3511_v1  ;;  %v1440_v12 = vrot.slane %v3451_v0, 2  ;;  %v1448_v60 = vsel %vm1439_vm4, %v1445_v40, %v1447_v54  ;;  %v3474_v0 = vld [vmem:[%s4174_s1 + $0x1c8] sm:$0xff]  }
  0x4a   : > { %3093 = vmatpush3.bf16.msra.mxu0 %v3419_v2  ;;  %v737_v2 = vsel %vm726_vm2, %v734_v42, %v736_v55  ;;  %v3465_v42 = vld [vmem:[%s4174_s1 + $0x198] sm:$0xff]   ;;  %v3470_v55 = vld [vmem:[%s4174_s1 + $0x1d0] sm:$0xff]  }
  0x4b   : > { %3129 = vmatpush3.bf16.msra.mxu1 %v3420_v6  ;;  %3150 = vmatprep.subr.bf16.mxu0 %v3511_v1  ;;  %v3452_v6 = vld [vmem:[%s3600_s20 + $0xc] sm:$0xff]  }
  0x4c   : > { %3039 = vmatmul.mubr.bf16.gmra.mxu0 %v3416_v3  ;;  %3186 = vmatprep.subr.bf16.mxu1 %v3511_v1  ;;  %v1177_v3 = vrot.slane %v1175_v58, 1  ;;  %v1441_v13 = vrot.slane %v3452_v6, 2 }
  0x4d   : > { %3075 = vmatmul.mubr.bf16.gmra.mxu1 %v513_v10  ;;  %3094 = vmatprep.mubr.msk.bf16.mxu0 %vm3512_vm0, %v3511_v1  ;;  %v1189_v10 = vor.u32 %v1188_v5, %v1185_v62  ;;  %v3479_v62 = vld [vmem:[%s3600_s20 + $0x8] sm:$0xfc]  }
  0x4e   : > { %3130 = vmatprep.mubr.msk.bf16.mxu1 %vm3512_vm0, %v3511_v1  ;;  %v1181_v9 = vor.u32 %v1180_v4, %v1177_v3  ;;  %v1449_v3 = vrot.slane %v3473_v59, 2  ;;  %v3475_v4 = vld [vmem:[%s4174_s1 + $0x180] sm:$0xff]   ;;  %v1888_v5 = vshrl.u32 %v3479_v62, 16  ;;  %v1891_v6 = vshll.u32 %v3479_v62, 16 }
  0x4f   : > { %v3493_v62 = vld [vmem:[%s3600_s20 + $0x30] ss:$0 sps:$4 sm:$0x33]  }
  0x50   : > { %v1190_v17 = vsel %vm1173_vm3, %v1181_v9, %v1189_v10  ;;  %v3476_v9 = vld [vmem:[%s4174_s1 + $0x1c0] sm:$0xff]  }
  0x54   : > { %3095 = vmatmul.mubr.bf16.vlgmr.msra.gmra.mxu0 %v729_v20  ;;  %v1442_v20 = vsel %vm1439_vm4, %v1440_v12, %v1441_v13  ;;  %v3477_v12 = vld [vmem:[%s3600_s20 + $0x8] sm:$0xfc]  }
  0x55   : > { %3131 = vmatmul.mubr.bf16.vlgmr.msra.gmra.mxu1 %v952_v21  ;;  %3151 = vmatpush3.bf16.msra.mxu0 %v3425_v16  ;;  %v1194_v16 = vrot.slane %v1192_v8, 1  ;;  %v3457_v21 = vld [vmem:[%s3600_s20 + $0x14] sm:$0xff]   ;;  %v1899_v8 = vshll.u32 %v3480_v63, 16 }
  0x56   : > { %3152 = vmatprep.subr.bf16.mxu0 %v3511_v1  ;;  %3187 = vmatpush3.bf16.msra.mxu1 %v3426_v18  ;;  %v1197_v18 = vrot.slane %v1195_v11, 2  ;;  %v1450_v11 = vsel %vm1439_vm4, %v1447_v54, %v1449_v3  ;;  %v3495_v3 = vld [vmem:[%s4174_s1 + $0x208] sm:$0xff]  }
  0x57   : > { %3098 = vmatprep.mubr.msk.bf16.mxu0 %vm3512_vm0, %v3511_v1  ;;  %3134 = vmatprep.mubr.msk.bf16.mxu1 %vm3512_vm0, %v3511_v1 }
  0x58   : > { %3188 = vmatprep.subr.bf16.mxu1 %v3511_v1  ;;  %v1198_v23 = vor.u32 %v1197_v18, %v1194_v16  ;;  %v3483_v18 = vld [vmem:[%s3600_s20 + $0x18] sm:$0xff]  }
  0x59   : > { %3153 = vmatpush3.bf16.msra.mxu0 %v3427_v22  ;;  %v3455_v22 = vld [vmem:[%s4174_s1 + $0x1b0] sm:$0xff]  }
  0x5a   : > { %3154 = vmatprep.subr.bf16.mxu0 %v3511_v1  ;;  %3189 = vmatpush3.bf16.msra.mxu1 %v3430_v25  ;;  %v1204_v25 = vshll.u32 %v3461_v19, 16  ;;  %v1199_v30 = vsel %vm1173_vm3, %v1189_v10, %v1198_v23  ;;  %v1663_v19 = vrot.slane %v3477_v12, 2  ;;  %v3500_v12 = vld [vmem:[%s3600_s20 + $0x28] sm:$0xff]  }
  0x5b   : > { %3190 = vmatprep.subr.bf16.mxu1 %v3511_v1 }
  0x5c   : > { %3099 = vmatmul.mubr.bf16.gmra.mxu0 %v731_v27  ;;  %v3458_v27 = vld [vmem:[%s4174_s1 + $0x1f0] sm:$0xff]   ;;  %v1206_v32 = vrot.slane %v1204_v25, 2 }
  0x5d   : > { %3135 = vmatmul.mubr.bf16.gmra.mxu1 %v954_v29  ;;  %3155 = vmatpush3.bf16.msra.mxu0 %v3431_v26  ;;  %v1443_v26 = vrot.slane %v3457_v21, 2  ;;  %v3459_v29 = vld [vmem:[%s4174_s1 + $0x1a8] sm:$0xff]  }
  0x5e   : > { %3102 = vmatprep.mubr.msk.bf16.mxu0 %vm3512_vm0, %v3511_v1  ;;  %3138 = vmatprep.mubr.msk.bf16.mxu1 %vm3512_vm0, %v3511_v1 }
  0x5f   : > { %3156 = vmatprep.subr.bf16.mxu0 %v3511_v1  ;;  %3191 = vmatpush3.bf16.msra.mxu1 %v3432_v31  ;;  %v1203_v31 = vrot.slane %v1201_v24, 1  ;;  %v1446_v47 = vsel %vm1439_vm4, %v1443_v26, %v1445_v40  ;;  %v1908_v24 = vshll.u32 %v3483_v18, 16 }
  0x60   : > { %3192 = vmatprep.subr.bf16.mxu1 %v3511_v1 }
  0x61   : > { %3157 = vmatpush3.bf16.msra.mxu0 %v3435_v33  ;;  %v1444_v33 = vsel %vm1439_vm4, %v1441_v13, %v1443_v26  ;;  %v1207_v38 = vor.u32 %v1206_v32, %v1203_v31  ;;  %v3478_v13 = vld [vmem:[%s3600_s20 + $0x10] sm:$0xff]   ;;  %v3481_v26 = vld [vmem:[%s4174_s1 + $0x238] sm:$0xff]   ;;  %v3487_v31 = vld [vmem:[%s3600_s20 + $0x20] sm:$0xff]  }
  0x62   : > { %3158 = vmatprep.subr.bf16.mxu0 %v3511_v1 }
  0x63   : > { %3193 = vmatpush3.bf16.msra.mxu1 %v3436_v35  ;;  %v3460_v35 = vld [vmem:[%s4174_s1 + $0x1e8] sm:$0xff]   ;;  %v1208_v46 = vsel %vm1173_vm3, %v1198_v23, %v1207_v38  ;;  %v1905_v23 = vshrl.u32 %v3483_v18, 16  ;;  %v3501_v18 = vld [vmem:[%s3600_s20 + $0x18] sm:$0xff]  }
  0x64   : > { %3103 = vmatmul.mubr.bf16.gmra.mxu0 %v733_v37  ;;  %3194 = vmatprep.subr.bf16.mxu1 %v3511_v1  ;;  %v1213_v37 = vshll.u32 %v3466_v28, 16 }
  0x65   : > { %3139 = vmatmul.mubr.bf16.gmra.mxu1 %v956_v39  ;;  %3159 = vmatpush3.bf16.msra.mxu0 %v3437_v36  ;;  %v1210_v36 = vshrl.u32 %v3466_v28, 16  ;;  %v3463_v39 = vld [vmem:[%s4174_s1 + $0x1a0] sm:$0xff]  }
  0x66   : > { %3106 = vmatprep.mubr.msk.bf16.mxu0 %vm3512_vm0, %v3511_v1  ;;  %3142 = vmatprep.mubr.msk.bf16.mxu1 %vm3512_vm0, %v3511_v1  ;;  %v1215_v44 = vrot.slane %v1213_v37, 2 }
  0x67   : > { %3160 = vmatprep.subr.bf16.mxu0 %v3511_v1  ;;  %3195 = vmatpush3.bf16.msra.mxu1 %v3440_v41  ;;  %v3464_v41 = vld [vmem:[%s4174_s1 + $0x1e0] sm:$0xff]  }
  0x68   : > { %3196 = vmatprep.subr.bf16.mxu1 %v3511_v1 }
  0x69   : > { %3161 = vmatpush3.bf16.msra.mxu0 %v3441_v43  ;;  %v1212_v43 = vrot.slane %v1210_v36, 1  ;;  %v1917_v36 = vshll.u32 %v3487_v31, 16 }
  0x6a   : > { %3162 = vmatprep.subr.bf16.mxu0 %v3511_v1 }
  0x6b   : > { %3197 = vmatpush3.bf16.msra.mxu1 %v3442_v45  ;;  %v3472_v45 = vld [vmem:[%s3600_s20 + $0x2c] ss:$0 sps:$4 sm:$0x33]   ;;  %v1216_v50 = vor.u32 %v1215_v44, %v1212_v43 }
  0x6c   : > { %3107 = vmatmul.mubr.bf16.gmra.mxu0 %v735_v49  ;;  %3198 = vmatprep.subr.bf16.mxu1 %v3511_v1  ;;  %v3468_v49 = vld [vmem:[%s4174_s1 + $0x1d8] sm:$0xff]   ;;  %v3491_v43 = vld [vmem:[%s3600_s20 + $0x28] sm:$0xff]  }
  0x6d   : > { %3143 = vmatmul.mubr.bf16.gmra.mxu1 %v958_v51  ;;  %3110 = vmatprep.mubr.msk.bf16.mxu0 %vm3512_vm0, %v3511_v1  ;;  %v3469_v51 = vld [vmem:[%s4174_s1 + $0x190] sm:$0xff]   ;;  %v1926_v48 = vshll.u32 %v3491_v43, 16 }
  0x6e   : > { %3146 = vmatprep.mubr.msk.bf16.mxu1 %vm3512_vm0, %v3511_v1  ;;  %3163 = vmatpush3.bf16.msra.mxu0 %v3443_v52  ;;  %v1219_v52 = vshrl.u32 %v3472_v45, 16 }
  0x6f   : > { %3199 = vmatpush3.bf16.msra.mxu1 %v3446_v53  ;;  %3164 = vmatprep.subr.bf16.mxu0 %v3511_v1  ;;  %v1222_v53 = vshll.u32 %v3472_v45, 16  ;;  %v3488_v45 = vld [vmem:[%s4174_s1 + $0x220] sm:$0xff]   ;;  %v1928_v54 = vrot.slane %v1926_v48, 3 }
  0x70   : > { %3200 = vmatprep.subr.bf16.mxu1 %v3511_v1  ;;  %v1221_v57 = vrot.slane %v1219_v52, 1  ;;  %v3489_v52 = vld [vmem:[%s4174_s1 + $0x218] sm:$0xff]  }
  0x71   : > { %v1224_v58 = vrot.slane %v1222_v53, 2 }
  0x72   : > { %3165 = vmatpush3.bf16.msra.mxu0 %v3447_v56  ;;  %v1217_v56 = vsel %vm1173_vm3, %v1207_v38, %v1216_v50  ;;  %v3485_v38 = vld [vmem:[%s4174_s1 + $0x228] sm:$0xff]  }
  0x73   : > { %3201 = vmatpush3.bf16.msra.mxu1 %v3448_v61  ;;  %3222 = vmatprep.subr.bf16.mxu0 %v3511_v1  ;;  %v3471_v61 = vld [vmem:[%s4174_s1 + $0x188] sm:$0xff]  }
  0x74   : > { %3111 = vmatmul.mubr.bf16.gmra.mxu0 %v737_v2  ;;  %3258 = vmatprep.subr.bf16.mxu1 %v3511_v1  ;;  %v1225_v2 = vor.u32 %v1224_v58, %v1221_v57  ;;  %v3492_v58 = vld [vmem:[%s4174_s1 + $0x210] sm:$0xff]  }
  0x75   : > { %3147 = vmatmul.mubr.bf16.gmra.mxu1 %v960_v7  ;;  %3166 = vmatprep.mubr.msk.bf16.mxu0 %vm3512_vm0, %v3511_v1  ;;  %v1896_v7 = vshrl.u32 %v3480_v63, 16 }
  0x76   : > { %3202 = vmatprep.mubr.msk.bf16.mxu1 %vm3512_vm0, %v3511_v1  ;;  %v1226_v10 = vsel %vm1173_vm3, %v1216_v50, %v1225_v2  ;;  %v3490_v50 = vld [vmem:[%s3600_s20 + $0x28] sm:$0xff]  }
  0x77   : > { %v1898_v16 = vrot.slane %v1896_v7, 2 }
  0x7c   : > { %3167 = vmatmul.mubr.bf16.vlgmr.msra.gmra.mxu0 %v1190_v17  ;;  %v1901_v17 = vrot.slane %v1899_v8, 3  ;;  %v3497_v8 = vld [vmem:[%s3600_s20 + $0x8] sm:$0xf8]  }
  0x7d   : > { %3203 = vmatmul.mubr.bf16.vlgmr.msra.gmra.mxu1 %v1442_v20  ;;  %3223 = vmatpush3.bf16.msra.mxu0 %v3453_v14  ;;  %v1890_v14 = vrot.slane %v1888_v5, 2  ;;  %v1664_v20 = vrot.slane %v3478_v13, 2  ;;  %v2153_v13 = vrot.slane %v3497_v8, 3 }
  0x7e   : > { %3224 = vmatprep.subr.bf16.mxu0 %v3511_v1  ;;  %3259 = vmatpush3.bf16.msra.mxu1 %v3454_v15  ;;  %v1893_v15 = vrot.slane %v1891_v6, 3  ;;  %v3496_v6 = vld [vmem:[%s4174_s1 + $0x200] sm:$0xff]  }
  0x7f   : > { %3170 = vmatprep.mubr.msk.bf16.mxu0 %vm3512_vm0, %v3511_v1  ;;  %3206 = vmatprep.mubr.msk.bf16.mxu1 %vm3512_vm0, %v3511_v1  ;;  %v1665_v25 = vsel %vm1439_vm4, %v1663_v19, %v1664_v20 }
  0x80   : > { %3260 = vmatprep.subr.bf16.mxu1 %v3511_v1  ;;  %v1894_v21 = vor.u32 %v1893_v15, %v1890_v14 }
  0x81   : > { %3225 = vmatpush3.bf16.msra.mxu0 %v3455_v22  ;;  %v1902_v22 = vor.u32 %v1901_v17, %v1898_v16  ;;  %v2160_v16 = vrot.slane %v3500_v12, 3 }
  0x82   : > { %3226 = vmatprep.subr.bf16.mxu0 %v3511_v1  ;;  %3261 = vmatpush3.bf16.msra.mxu1 %v3458_v27  ;;  %v3482_v27 = vld [vmem:[%s3600_s20 + $0x18] sm:$0xff]  }
  0x83   : > { %3262 = vmatprep.subr.bf16.mxu1 %v3511_v1  ;;  %v1903_v28 = vsel %vm1886_vm5, %v1894_v21, %v1902_v22  ;;  %v1666_v32 = vrot.slane %v3482_v27, 2  ;;  %v2156_v21 = vrot.slane %v3501_v18, 3 }
  0x84   : > { %3171 = vmatmul.mubr.bf16.gmra.mxu0 %v1199_v30  ;;  %v1910_v30 = vrot.slane %v1908_v24, 3 }
  0x85   : > { %3207 = vmatmul.mubr.bf16.gmra.mxu1 %v1444_v33  ;;  %3227 = vmatpush3.bf16.msra.mxu0 %v3459_v29  ;;  %v1907_v29 = vrot.slane %v1905_v23, 2  ;;  %v3484_v33 = vld [vmem:[%s4174_s1 + $0x230] sm:$0xff]   ;;  %v1667_v37 = vsel %vm1439_vm4, %v1664_v20, %v1666_v32 }
  0x86   : > { %3174 = vmatprep.mubr.msk.bf16.mxu0 %vm3512_vm0, %v3511_v1  ;;  %3210 = vmatprep.mubr.msk.bf16.mxu1 %vm3512_vm0, %v3511_v1  ;;  %v3502_v20 = vld [vmem:[%s3600_s20 + $0x30] ss:$0 sps:$4 sm:$0x77]  }
  0x87   : > { %3228 = vmatprep.subr.bf16.mxu0 %v3511_v1  ;;  %3263 = vmatpush3.bf16.msra.mxu1 %v3460_v35  ;;  %v1911_v34 = vor.u32 %v1910_v30, %v1907_v29  ;;  %v1914_v35 = vshrl.u32 %v3487_v31, 16 }
  0x88   : > { %3264 = vmatprep.subr.bf16.mxu1 %v3511_v1 }
  0x89   : > { %3229 = vmatpush3.bf16.msra.mxu0 %v3463_v39  ;;  %v3486_v39 = vld [vmem:[%s3600_s20 + $0x20] sm:$0xff]   ;;  %v1912_v40 = vsel %vm1886_vm5, %v1902_v22, %v1911_v34  ;;  %v2162_v22 = vrot.slane %v3502_v20, 3 }
  0x8a   : > { %3230 = vmatprep.subr.bf16.mxu0 %v3511_v1  ;;  %v1668_v44 = vrot.slane %v3486_v39, 2 }
  0x8b   : > { %3265 = vmatpush3.bf16.msra.mxu1 %v3464_v41  ;;  %v1916_v41 = vrot.slane %v1914_v35, 2  ;;  %v2163_v24 = vsel %vm2152_vm6, %v2160_v16, %v2162_v22 }
  0x8c   : > { %3175 = vmatmul.mubr.bf16.gmra.mxu0 %v1208_v46  ;;  %3266 = vmatprep.subr.bf16.mxu1 %v3511_v1 }
  0x8d   : > { %3211 = vmatmul.mubr.bf16.gmra.mxu1 %v1446_v47  ;;  %3231 = vmatpush3.bf16.msra.mxu0 %v3465_v42  ;;  %v1919_v42 = vrot.slane %v1917_v36, 3  ;;  %v1923_v47 = vshrl.u32 %v3491_v43, 16 }
  0x8e   : > { %3178 = vmatprep.mubr.msk.bf16.mxu0 %vm3512_vm0, %v3511_v1  ;;  %3214 = vmatprep.mubr.msk.bf16.mxu1 %vm3512_vm0, %v3511_v1 }
  0x8f   : > { %3232 = vmatprep.subr.bf16.mxu0 %v3511_v1  ;;  %3267 = vmatpush3.bf16.msra.mxu1 %v3468_v49  ;;  %v1920_v46 = vor.u32 %v1919_v42, %v1916_v41  ;;  %v1669_v49 = vsel %vm1439_vm4, %v1666_v32, %v1668_v44  ;;  %v1925_v53 = vrot.slane %v1923_v47, 2 }
  0x90   : > { %3268 = vmatprep.subr.bf16.mxu1 %v3511_v1 }
  0x91   : > { %3233 = vmatpush3.bf16.msra.mxu0 %v3469_v51  ;;  %v1921_v51 = vsel %vm1886_vm5, %v1911_v34, %v1920_v46  ;;  %v1929_v57 = vor.u32 %v1928_v54, %v1925_v53 }
  0x92   : > { %3234 = vmatprep.subr.bf16.mxu0 %v3511_v1 }
  0x93   : > { %3269 = vmatpush3.bf16.msra.mxu1 %v3470_v55  ;;  %v3494_v55 = vld [vmem:[%s3600_s20 + $0x30] ss:$0 sps:$4 sm:$0x77]   ;;  %v1930_v63 = vsel %vm1886_vm5, %v1920_v46, %v1929_v57 }
  0x94   : > { %3179 = vmatmul.mubr.bf16.gmra.mxu0 %v1217_v56  ;;  %3270 = vmatprep.subr.bf16.mxu1 %v3511_v1  ;;  %v1670_v56 = vrot.slane %v3490_v50, 2  ;;  %v1932_v59 = vshrl.u32 %v3494_v55, 16 }
  0x95   : > { %3215 = vmatmul.mubr.bf16.gmra.mxu1 %v1448_v60  ;;  %3182 = vmatprep.mubr.msk.bf16.mxu0 %vm3512_vm0, %v3511_v1  ;;  %v1935_v60 = vshll.u32 %v3494_v55, 16 }
  0x96   : > { %3218 = vmatprep.mubr.msk.bf16.mxu1 %vm3512_vm0, %v3511_v1  ;;  %3235 = vmatpush3.bf16.msra.mxu0 %v3471_v61  ;;  %v1671_v61 = vsel %vm1439_vm4, %v1668_v44, %v1670_v56 }
  0x97   : > { %3271 = vmatpush3.bf16.msra.mxu1 %v3474_v0  ;;  %3236 = vmatprep.subr.bf16.mxu0 %v3511_v1  ;;  %v1934_v0 = vrot.slane %v1932_v59, 2  ;;  %v1937_v2 = vrot.slane %v1935_v60, 3 }
  0x98   : > { %3272 = vmatprep.subr.bf16.mxu1 %v3511_v1 }
  0x99   : > { %v1938_v5 = vor.u32 %v1937_v2, %v1934_v0 }
  0x9a   : > { %3237 = vmatpush3.bf16.msra.mxu0 %v3475_v4  ;;  %v1672_v4 = vrot.slane %v3493_v62, 2 }
  0x9b   : > { %3273 = vmatpush3.bf16.msra.mxu1 %v3476_v9  ;;  %3294 = vmatprep.subr.bf16.mxu0 %v3511_v1  ;;  %v3498_v9 = vld [vmem:[%s3600_s20 + $0x10] sm:$0xff]  }
  0x9c   : > { %3183 = vmatmul.mubr.bf16.gmra.mxu0 %v1226_v10  ;;  %3351 = vmatprep.subr.bf16.mxu1 %v3511_v1  ;;  %v1673_v7 = vsel %vm1439_vm4, %v1670_v56, %v1672_v4  ;;  %v1939_v10 = vsel %vm1886_vm5, %v1929_v57, %v1938_v5  ;;  %v2154_v14 = vrot.slane %v3498_v9, 3 }
  0x9d   : > { %3219 = vmatmul.mubr.bf16.gmra.mxu1 %v1450_v11  ;;  %3238 = vmatprep.mubr.msk.bf16.mxu0 %vm3512_vm0, %v3511_v1  ;;  %v3499_v11 = vld [vmem:[%s3600_s20 + $0x20] sm:$0xff]  }
  0x9e   : > { %3274 = vmatprep.mubr.msk.bf16.mxu1 %vm3512_vm0, %v3511_v1  ;;  %v2158_v15 = vrot.slane %v3499_v11, 3  ;;  %v2155_v17 = vsel %vm2152_vm6, %v2153_v13, %v2154_v14  ;;  %v2157_v23 = vsel %vm2152_vm6, %v2154_v14, %v2156_v21 }
  0xa0   : > { %v2161_v19 = vsel %vm2152_vm6, %v2158_v15, %v2160_v16 }
  0xa4   : > { %3239 = vmatmul.mubr.bf16.vlgmr.msra.gmra.mxu0 %v1665_v25  ;;  %v2159_v25 = vsel %vm2152_vm6, %v2156_v21, %v2158_v15 }
  0xa5   : > { %3275 = vmatmul.mubr.bf16.vlgmr.msra.gmra.mxu1 %v1903_v28  ;;  %3295 = vmatpush3.bf16.msra.mxu0 %v3481_v26 }
  0xa6   : > { %3359 = vmatpush3.bf16.msra.mxu1 %v3481_v26  ;;  %3242 = vmatprep.mubr.msk.bf16.mxu0 %vm3512_vm0, %v3511_v1 }
  0xa7   : > { %3278 = vmatprep.mubr.msk.bf16.mxu1 %vm3512_vm0, %v3511_v1  ;;  %3296 = vmatprep.subr.bf16.mxu0 %v3511_v1 }
  0xa8   : > { %3352 = vmatprep.subr.bf16.mxu1 %v3511_v1 }
  0xa9   : > { %3297 = vmatpush3.bf16.msra.mxu0 %v3484_v33 }
  0xaa   : > { %3360 = vmatpush3.bf16.msra.mxu1 %v3484_v33  ;;  %3298 = vmatprep.subr.bf16.mxu0 %v3511_v1 }
  0xab   : > { %3353 = vmatprep.subr.bf16.mxu1 %v3511_v1 }
  0xac   : > { %3243 = vmatmul.mubr.bf16.gmra.mxu0 %v1667_v37 }
  0xad   : > { %3279 = vmatmul.mubr.bf16.gmra.mxu1 %v1912_v40  ;;  %3299 = vmatpush3.bf16.msra.mxu0 %v3485_v38 }
  0xae   : > { %3246 = vmatprep.mubr.msk.bf16.mxu0 %vm3512_vm0, %v3511_v1  ;;  %3282 = vmatprep.mubr.msk.bf16.mxu1 %vm3512_vm0, %v3511_v1 }
  0xaf   : > { %3361 = vmatpush3.bf16.msra.mxu1 %v3485_v38  ;;  %3300 = vmatprep.subr.bf16.mxu0 %v3511_v1 }
  0xb0   : > { %3354 = vmatprep.subr.bf16.mxu1 %v3511_v1 }
  0xb1   : > { %3301 = vmatpush3.bf16.msra.mxu0 %v3488_v45 }
  0xb2   : > { %3302 = vmatprep.subr.bf16.mxu0 %v3511_v1 }
  0xb3   : > { %3362 = vmatpush3.bf16.msra.mxu1 %v3488_v45 }
  0xb4   : > { %3247 = vmatmul.mubr.bf16.gmra.mxu0 %v1669_v49  ;;  %3355 = vmatprep.subr.bf16.mxu1 %v3511_v1 }
  0xb5   : > { %3283 = vmatmul.mubr.bf16.gmra.mxu1 %v1921_v51  ;;  %3250 = vmatprep.mubr.msk.bf16.mxu0 %vm3512_vm0, %v3511_v1 }
  0xb6   : > { %3286 = vmatprep.mubr.msk.bf16.mxu1 %vm3512_vm0, %v3511_v1  ;;  %3303 = vmatpush3.bf16.msra.mxu0 %v3489_v52 }
  0xb7   : > { %3363 = vmatpush3.bf16.msra.mxu1 %v3489_v52  ;;  %3304 = vmatprep.subr.bf16.mxu0 %v3511_v1 }
  0xb8   : > { %3356 = vmatprep.subr.bf16.mxu1 %v3511_v1 }
  0xba   : > { %3305 = vmatpush3.bf16.msra.mxu0 %v3492_v58 }
  0xbb   : > { %3364 = vmatpush3.bf16.msra.mxu1 %v3492_v58  ;;  %3306 = vmatprep.subr.bf16.mxu0 %v3511_v1 }
  0xbc   : > { %3251 = vmatmul.mubr.bf16.gmra.mxu0 %v1671_v61  ;;  %3357 = vmatprep.subr.bf16.mxu1 %v3511_v1 }
  0xbd   : > { %3287 = vmatmul.mubr.bf16.gmra.mxu1 %v1930_v63  ;;  %3254 = vmatprep.mubr.msk.bf16.mxu0 %vm3512_vm0, %v3511_v1 }
  0xbe   : > { %3290 = vmatprep.mubr.msk.bf16.mxu1 %vm3512_vm0, %v3511_v1  ;;  %3307 = vmatpush3.bf16.msra.mxu0 %v3495_v3 }
  0xbf   : > { %3365 = vmatpush3.bf16.msra.mxu1 %v3495_v3  ;;  %3308 = vmatprep.subr.bf16.mxu0 %v3511_v1 }
  0xc0   : > { %3358 = vmatprep.subr.bf16.mxu1 %v3511_v1 }
  0xc2   : > { %3309 = vmatpush3.bf16.msra.mxu0 %v3496_v6 }
  0xc3   : > { %3366 = vmatpush3.bf16.msra.mxu1 %v3496_v6 }
  0xc4   : > { %3255 = vmatmul.mubr.bf16.gmra.mxu0 %v1673_v7 }
  0xc5   : > { %3291 = vmatmul.mubr.bf16.gmra.mxu1 %v1939_v10  ;;  %3310 = vmatprep.mubr.msk.bf16.mxu0 %vm3512_vm0, %v3511_v1 }
  0xc6   : > { %3322 = vmatprep.mubr.msk.bf16.mxu1 %vm3512_vm0, %v3511_v1 }
  0xcc   : > { %3311 = vmatmul.mubr.bf16.vlgmr.msra.gmra.mxu0 %v2155_v17 }
  0xcd   : > { %3323 = vmatmul.mubr.bf16.vlgmr.msra.gmra.mxu1 %v2161_v19  ;;  %3314 = vmatprep.mubr.msk.bf16.mxu0 %vm3512_vm0, %v3511_v1 }
  0xce   : > { %3326 = vmatprep.mubr.msk.bf16.mxu1 %vm3512_vm0, %v3511_v1 }
  0xd4   : > { %3315 = vmatmul.mubr.bf16.gmra.mxu0 %v2157_v23 }
  0xd5   : > { %3327 = vmatmul.mubr.bf16.gmra.mxu1 %v2163_v24  ;;  %3318 = vmatprep.mubr.msk.bf16.mxu0 %vm3512_vm0, %v3511_v1 }
  0xdc   : > { %3319 = vmatmul.mubr.bf16.gmra.mxu0 %v2159_v25 }
  0xec   : > { %v364_v26 = vpop.f32.mrf.mxu0 }
  0xed   : > { %v601_v27 = vpop.f32.mrf.mxu1 }
  0xee   : > { %v650_v28 = vadd.f32 %v601_v27, %v364_v26  ;;  %v3024_v29 = vpop.f32.mrf.mxu0 }
  0xef   : > { %v3060_v30 = vpop.f32.mrf.mxu1 }
  0xf0   : > { %v367_v31 = vpop.f32.mrf.mxu0 }
  0xf1   : > { %v604_v32 = vpop.f32.mrf.mxu1 }
  0xf2   : > { %v651_v33 = vadd.f32 %v604_v32, %v367_v31  ;;  %v3025_v34 = vpop.f32.mrf.mxu0 }
  0xf3   : > { %v3061_v35 = vpop.f32.mrf.mxu1 }
  0xf4   : > { %v372_v36 = vpop.f32.mrf.mxu0 }
  0xf5   : > { %v609_v37 = vpop.f32.mrf.mxu1 }
  0xf6   : > { %v652_v38 = vadd.f32 %v609_v37, %v372_v36  ;;  %v3028_v39 = vpop.f32.mrf.mxu0 }
  0xf7   : > { %v3064_v40 = vpop.f32.mrf.mxu1 }
  0xf8   : > { %v375_v41 = vpop.f32.mrf.mxu0 }
  0xf9   : > { %v612_v1 = vpop.f32.mrf.mxu1 }
  0xfa   : > { %v653_v42 = vadd.f32 %v612_v1, %v375_v41  ;;  %v3029_v43 = vpop.f32.mrf.mxu0 }
  0xfb   : > { %v3065_v44 = vpop.f32.mrf.mxu1 }
  0xfc   : > { %v380_v45 = vpop.f32.mrf.mxu0 }
  0xfd   : > { %v617_v46 = vpop.f32.mrf.mxu1 }
  0xfe   : > { %v654_v47 = vadd.f32 %v617_v46, %v380_v45  ;;  %v3032_v48 = vpop.f32.mrf.mxu0 }
  0xff   : > { %v3068_v49 = vpop.f32.mrf.mxu1 }
 0x100   : > { %v383_v50 = vpop.f32.mrf.mxu0 }
 0x101   : > { %v620_v51 = vpop.f32.mrf.mxu1 }
 0x102   : > { %v655_v52 = vadd.f32 %v620_v51, %v383_v50  ;;  %v3033_v53 = vpop.f32.mrf.mxu0 }
 0x103   : > { %v3069_v54 = vpop.f32.mrf.mxu1 }
 0x104   : > { %v388_v55 = vpop.f32.mrf.mxu0 }
 0x105   : > { %v625_v56 = vpop.f32.mrf.mxu1 }
 0x106   : > { %v656_v57 = vadd.f32 %v625_v56, %v388_v55  ;;  %v3036_v58 = vpop.f32.mrf.mxu0 }
 0x107   : > { %v3072_v59 = vpop.f32.mrf.mxu1 }
 0x108   : > { %v391_v60 = vpop.f32.mrf.mxu0 }
 0x109   : > { %v628_v61 = vpop.f32.mrf.mxu1 }
 0x10a   : > { %v657_v62 = vadd.f32 %v628_v61, %v391_v60  ;;  %v3037_v63 = vpop.f32.mrf.mxu0 }
 0x10b   : > { %v3073_v0 = vpop.f32.mrf.mxu1 }
 0x10c   : > { %v396_v2 = vpop.f32.mrf.mxu0 }
 0x10d   : > { %v633_v3 = vpop.f32.mrf.mxu1 }
 0x10e   : > { %v658_v4 = vadd.f32 %v633_v3, %v396_v2  ;;  %v3040_v5 = vpop.f32.mrf.mxu0 }
 0x10f   : > { %v3076_v6 = vpop.f32.mrf.mxu1 }
 0x110   : > { %v399_v7 = vpop.f32.mrf.mxu0 }
 0x111   : > { %v636_v8 = vpop.f32.mrf.mxu1 }
 0x112   : > { %v659_v9 = vadd.f32 %v636_v8, %v399_v7  ;;  %v3041_v10 = vpop.f32.mrf.mxu0 }
 0x113   : > { %v3077_v11 = vpop.f32.mrf.mxu1 }
 0x114   : > { %v825_v12 = vpop.f32.mrf.mxu0 }
 0x115   : > { %v874_v13 = vadd.f32 %v825_v12, %v650_v28  ;;  %v1048_v14 = vpop.f32.mrf.mxu1 }
 0x116   : > { %v3096_v15 = vpop.f32.mrf.mxu0 }
 0x117   : > { %v1097_v16 = vadd.f32 %v1048_v14, %v874_v13  ;;  %v3132_v17 = vpop.f32.mrf.mxu1 }
 0x118   : > { %v828_v18 = vpop.f32.mrf.mxu0  ;;  %v2447_v17 = vld [vmem:[%s4177_s4] sm:$0xff] }
 0x119   : > { %v875_v19 = vadd.f32 %v828_v18, %v651_v33  ;;  %v1051_v20 = vpop.f32.mrf.mxu1  ;;  %3348 = vmatprep.mubr.msk.f32.mxu1 %vm2449_vm7, %v2447_v17 }
 0x11a   : > { %v3097_v21 = vpop.f32.mrf.mxu0 }
 0x11b   : > { %v1098_v22 = vadd.f32 %v1051_v20, %v875_v19  ;;  %v3133_v23 = vpop.f32.mrf.mxu1 }
 0x11c   : > { %v833_v24 = vpop.f32.mrf.mxu0 }
 0x11d   : > { %v876_v25 = vadd.f32 %v833_v24, %v652_v38  ;;  %v1056_v26 = vpop.f32.mrf.mxu1 }
 0x11e   : > { %v3100_v27 = vpop.f32.mrf.mxu0 }
 0x11f   : > { %v1099_v29 = vadd.f32 %v1056_v26, %v876_v25  ;;  %v3136_v30 = vpop.f32.mrf.mxu1 }
 0x120   : > { %v836_v31 = vpop.f32.mrf.mxu0 }
 0x121   : > { %v877_v32 = vadd.f32 %v836_v31, %v653_v42  ;;  %v1059_v34 = vpop.f32.mrf.mxu1 }
 0x122   : > { %v3101_v28 = vpop.f32.mrf.mxu0 }
 0x123   : > { %v1100_v35 = vadd.f32 %v1059_v34, %v877_v32  ;;  %v3137_v36 = vpop.f32.mrf.mxu1 }
 0x124   : > { %v841_v37 = vpop.f32.mrf.mxu0 }
 0x125   : > { %v878_v39 = vadd.f32 %v841_v37, %v654_v47  ;;  %v1064_v40 = vpop.f32.mrf.mxu1 }
 0x126   : > { %v3104_v33 = vpop.f32.mrf.mxu0 }
 0x127   : > { %v1101_v41 = vadd.f32 %v1064_v40, %v878_v39  ;;  %v3140_v1 = vpop.f32.mrf.mxu1 }
 0x128   : > { %v844_v43 = vpop.f32.mrf.mxu0 }
 0x129   : > { %v879_v44 = vadd.f32 %v844_v43, %v655_v52  ;;  %v1067_v45 = vpop.f32.mrf.mxu1 }
 0x12a   : > { %v3105_v38 = vpop.f32.mrf.mxu0 }
 0x12b   : > { %v1102_v46 = vadd.f32 %v1067_v45, %v879_v44  ;;  %v3141_v48 = vpop.f32.mrf.mxu1 }
 0x12c   : > { %v849_v49 = vpop.f32.mrf.mxu0 }
 0x12d   : > { %v880_v50 = vadd.f32 %v849_v49, %v656_v57  ;;  %v1072_v51 = vpop.f32.mrf.mxu1 }
 0x12e   : > { %v3108_v42 = vpop.f32.mrf.mxu0 }
 0x12f   : > { %v4038_v53 = vadd.f32 %v1072_v51, %v880_v50  ;;  %v3144_v54 = vpop.f32.mrf.mxu1 }
 0x130   : > { %v852_v55 = vpop.f32.mrf.mxu0 }
 0x131   : > { %v881_v56 = vadd.f32 %v852_v55, %v657_v62  ;;  %v1075_v47 = vpop.f32.mrf.mxu1 }
 0x132   : > { %v3109_v58 = vpop.f32.mrf.mxu0 }
 0x133   : > { %v4040_v59 = vadd.f32 %v1075_v47, %v881_v56  ;;  %v3145_v60 = vpop.f32.mrf.mxu1 }
 0x134   : > { %v857_v61 = vpop.f32.mrf.mxu0 }
 0x135   : > { %v882_v52 = vadd.f32 %v857_v61, %v658_v4  ;;  %v1080_v63 = vpop.f32.mrf.mxu1 }
 0x136   : > { %v3112_v0 = vpop.f32.mrf.mxu0 }
 0x137   : > { %v4042_v2 = vadd.f32 %v1080_v63, %v882_v52  ;;  %v3148_v3 = vpop.f32.mrf.mxu1 }
 0x138   : > { %v860_v57 = vpop.f32.mrf.mxu0 }
 0x139   : > { %v883_v5 = vadd.f32 %v860_v57, %v659_v9  ;;  %v1083_v6 = vpop.f32.mrf.mxu1 }
 0x13a   : > { %v3113_v7 = vpop.f32.mrf.mxu0 }
 0x13b   : > { %v4044_v8 = vadd.f32 %v1083_v6, %v883_v5  ;;  %v3149_v10 = vpop.f32.mrf.mxu1 }
 0x13c   : > { %v1314_v62 = vpop.f32.mrf.mxu0 }
 0x13d   : > { %v1363_v11 = vadd.f32 %v1314_v62, %v1097_v16  ;;  %v1538_v12 = vpop.f32.mrf.mxu1 }
 0x13e   : > { %v3168_v13 = vpop.f32.mrf.mxu0 }
 0x13f   : > { %v4046_v14 = vadd.f32 %v1538_v12, %v1363_v11  ;;  %v3204_v15 = vpop.f32.mrf.mxu1 }
 0x140   : > { %v1317_v4 = vpop.f32.mrf.mxu0 }
 0x141   : > { %v1364_v18 = vadd.f32 %v1317_v4, %v1098_v22  ;;  %v1541_v9 = vpop.f32.mrf.mxu1 }
 0x142   : > { %v3169_v19 = vpop.f32.mrf.mxu0 }
 0x143   : > { %v4052_v20 = vadd.f32 %v1541_v9, %v1364_v18  ;;  %v3205_v21 = vpop.f32.mrf.mxu1 }
 0x144   : > { %v1322_v16 = vpop.f32.mrf.mxu0 }
 0x145   : > { %v1365_v23 = vadd.f32 %v1322_v16, %v1099_v29  ;;  %v1546_v24 = vpop.f32.mrf.mxu1 }
 0x146   : > { %v3172_v25 = vpop.f32.mrf.mxu0 }
 0x147   : > { %v4054_v26 = vadd.f32 %v1546_v24, %v1365_v23  ;;  %v3208_v27 = vpop.f32.mrf.mxu1 }
 0x148   : > { %v1325_v30 = vpop.f32.mrf.mxu0 }
 0x149   : > { %v1366_v31 = vadd.f32 %v1325_v30, %v1100_v35  ;;  %v1549_v32 = vpop.f32.mrf.mxu1 }
 0x14a   : > { %v3173_v34 = vpop.f32.mrf.mxu0 }
 0x14b   : > { %v4056_v28 = vadd.f32 %v1549_v32, %v1366_v31  ;;  %v3209_v22 = vpop.f32.mrf.mxu1 }
 0x14c   : > { %v1330_v36 = vpop.f32.mrf.mxu0 }
 0x14d   : > { %v1367_v37 = vadd.f32 %v1330_v36, %v1101_v41  ;;  %v1554_v39 = vpop.f32.mrf.mxu1 }
 0x14e   : > { %v3176_v40 = vpop.f32.mrf.mxu0 }
 0x14f   : > { %v4058_v33 = vadd.f32 %v1554_v39, %v1367_v37  ;;  %v3212_v1 = vpop.f32.mrf.mxu1 }
 0x150   : > { %v1333_v29 = vpop.f32.mrf.mxu0 }
 0x151   : > { %v1368_v43 = vadd.f32 %v1333_v29, %v1102_v46  ;;  %v1557_v44 = vpop.f32.mrf.mxu1 }
 0x152   : > { %v3177_v45 = vpop.f32.mrf.mxu0 }
 0x153   : > { %v4060_v38 = vadd.f32 %v1557_v44, %v1368_v43  ;;  %v3213_v48 = vpop.f32.mrf.mxu1 }
 0x154   : > { %v1338_v35 = vpop.f32.mrf.mxu0 }
 0x155   : > { %v1562_v49 = vpop.f32.mrf.mxu1  ;;  %v1369_v39 = vadd.f32 %v1338_v35, %v4038_v53 }
 0x156   : > { %v3180_v50 = vpop.f32.mrf.mxu0 }
 0x157   : > { %v3216_v51 = vpop.f32.mrf.mxu1  ;;  %v1593_v44 = vadd.f32 %v1562_v49, %v1369_v39 }
 0x158   : > { %v1341_v42 = vpop.f32.mrf.mxu0 }
 0x159   : > { %v1565_v54 = vpop.f32.mrf.mxu1  ;;  %v1370_v45 = vadd.f32 %v1341_v42, %v4040_v59  ;;  %v4086_v59 = vld [vmem:[%s4175_s2] ss:$0 sm:$0xff] }
 0x15a   : > { %v3181_v55 = vpop.f32.mrf.mxu0 }
 0x15b   : > { %v3217_v41 = vpop.f32.mrf.mxu1 }
 0x15c   : > { %v1346_v56 = vpop.f32.mrf.mxu0 }
 0x15d   : > { %v1570_v47 = vpop.f32.mrf.mxu1 }
 0x15e   : > { %v3184_v58 = vpop.f32.mrf.mxu0 }
 0x15f   : > { %v3220_v60 = vpop.f32.mrf.mxu1 }
 0x160   : > { %v1349_v61 = vpop.f32.mrf.mxu0  ;;  %v1594_v60 = vadd.f32 %v1565_v54, %v1370_v45 }
 0x161   : > { %v4062_v52 = vpop.f32.mrf.mxu1  ;;  %v1372_v54 = vadd.f32 %v1349_v61, %v4044_v8 }
 0x162   : > { %v3185_v46 = vpop.f32.mrf.mxu0 }
 0x163   : > { %v3221_v63 = vpop.f32.mrf.mxu1  ;;  %v1371_v46 = vadd.f32 %v1346_v56, %v4042_v2  ;;  %v4092_v2 = vld [vmem:[%s4176_s3] ss:$0 sm:$0xff] }
 0x164   : > { %v1761_v0 = vpop.f32.mrf.mxu0 }
 0x165   : > { %v2027_v3 = vpop.f32.mrf.mxu1  ;;  %v1810_v50 = vadd.f32 %v1761_v0, %v4046_v14  ;;  %v1595_v0 = vadd.f32 %v1570_v47, %v1371_v46 }
 0x166   : > { %v3240_v57 = vpop.f32.mrf.mxu0 }
 0x167   : > { %v3276_v5 = vpop.f32.mrf.mxu1  ;;  %v2076_v57 = vadd.f32 %v2027_v3, %v1810_v50 }
 0x168   : > { %v1764_v6 = vpop.f32.mrf.mxu0 }
 0x169   : > { %v2030_v7 = vpop.f32.mrf.mxu1  ;;  %v1811_v53 = vadd.f32 %v1764_v6, %v4052_v20 }
 0x16a   : > { %v3241_v10 = vpop.f32.mrf.mxu0 }
 0x16b   : > { %v3277_v62 = vpop.f32.mrf.mxu1  ;;  %v2077_v3 = vadd.f32 %v2030_v7, %v1811_v53 }
 0x16c   : > { %v1769_v11 = vpop.f32.mrf.mxu0 }
 0x16d   : > { %v4064_v12 = vpop.f32.mrf.mxu1  ;;  %v1812_v6 = vadd.f32 %v1769_v11, %v4054_v26 }
 0x16e   : > { %v3244_v13 = vpop.f32.mrf.mxu0 }
 0x16f   : > { %v3280_v15 = vpop.f32.mrf.mxu1  ;;  %v2078_v11 = vadd.f32 %v4064_v12, %v1812_v6 }
 0x170   : > { %v4066_v4 = vpop.f32.mrf.mxu0 }
 0x171   : > { %v4068_v17 = vpop.f32.mrf.mxu1 }
 0x172   : > { %v3245_v18 = vpop.f32.mrf.mxu0 }
 0x173   : > { %v3281_v9 = vpop.f32.mrf.mxu1 }
 0x174   : > { %v4070_v19 = vpop.f32.mrf.mxu0 }
 0x175   : > { %v4072_v21 = vpop.f32.mrf.mxu1 }
 0x176   : > { %v3248_v16 = vpop.f32.mrf.mxu0 }
 0x177   : > { %v3284_v23 = vpop.f32.mrf.mxu1 }
 0x178   : > { %v4074_v24 = vpop.f32.mrf.mxu0  ;;  %v1596_v23 = vadd.f32 %v4062_v52, %v1372_v54 }
 0x179   : > { %v4076_v25 = vpop.f32.mrf.mxu1  ;;  %v1815_v53 = vadd.f32 %v4074_v24, %v4060_v38 }
 0x17a   : > { %v3249_v27 = vpop.f32.mrf.mxu0 }
 0x17b   : > { %v3285_v30 = vpop.f32.mrf.mxu1  ;;  %v2081_v24 = vadd.f32 %v4076_v25, %v1815_v53 }
 0x17c   : > { %v1785_v31 = vpop.f32.mrf.mxu0  ;;  %v1813_v30 = vadd.f32 %v4066_v4, %v4056_v28 }
 0x17d   : > { %v2051_v32 = vpop.f32.mrf.mxu1  ;;  %v1816_v55 = vadd.f32 %v1785_v31, %v1593_v44  ;;  %v1814_v44 = vadd.f32 %v4070_v19, %v4058_v33 }
 0x17e   : > { %v3252_v34 = vpop.f32.mrf.mxu0 }
 0x17f   : > { %v3288_v22 = vpop.f32.mrf.mxu1  ;;  %v2082_v5 = vadd.f32 %v2051_v32, %v1816_v55 }
 0x180   : > { %v1788_v36 = vpop.f32.mrf.mxu0 }
 0x181   : > { %v2054_v37 = vpop.f32.mrf.mxu1  ;;  %v1817_v10 = vadd.f32 %v1788_v36, %v1594_v60 }
 0x182   : > { %v3253_v40 = vpop.f32.mrf.mxu0 }
 0x183   : > { %v3289_v1 = vpop.f32.mrf.mxu1  ;;  %v2083_v15 = vadd.f32 %v2054_v37, %v1817_v10 }
 0x184   : > { %v1793_v29 = vpop.f32.mrf.mxu0 }
 0x185   : > { %v2059_v43 = vpop.f32.mrf.mxu1  ;;  %v1818_v18 = vadd.f32 %v1793_v29, %v1595_v0 }
 0x186   : > { %v3256_v48 = vpop.f32.mrf.mxu0 }
 0x187   : > { %v3292_v51 = vpop.f32.mrf.mxu1  ;;  %v2084_v22 = vadd.f32 %v2059_v43, %v1818_v18  ;;  %v2079_v43 = vadd.f32 %v4068_v17, %v1813_v30 }
 0x188   : > { %v1796_v41 = vpop.f32.mrf.mxu0 }
 0x189   : > { %v2062_v58 = vpop.f32.mrf.mxu1  ;;  %v1819_v36 = vadd.f32 %v1796_v41, %v1596_v23 }
 0x18a   : > { %v3257_v63 = vpop.f32.mrf.mxu0 }
 0x18b   : > { %v3293_v35 = vpop.f32.mrf.mxu1  ;;  %v2085_v51 = vadd.f32 %v2062_v58, %v1819_v36  ;;  %v2080_v58 = vadd.f32 %v4072_v21, %v1814_v44 }
 0x18c   : > { %v2251_v49 = vpop.f32.mrf.mxu0 }
 0x18d   : > { %v2300_v14 = vadd.f32 %v2251_v49, %v2076_v57  ;;  %v2275_v42 = vpop.f32.mrf.mxu1 }
 0x18e   : > { %v2306_v20 = vadd.f32 %v2275_v42, %v2082_v5  ;;  %v3312_v56 = vpop.f32.mrf.mxu0 }
 0x18f   : > { %v2337_v62 = vmul.f32 %v4086_v59, %v2300_v14  ;;  %v3324_v13 = vpop.f32.mrf.mxu1 }
 0x190   : > { %v2343_v9 = vmul.f32 %v4086_v59, %v2306_v20  ;;  %v2254_v47 = vpop.f32.mrf.mxu0 }
 0x191   : > { %v4098_v8 = vadd.f32 %v4092_v2, %v2337_v62  ;;  %v2301_v61 = vadd.f32 %v2254_v47, %v2077_v3  ;;  %v2278_v16 = vpop.f32.mrf.mxu1 }
 0x192   : > { %v4102_v27 = vadd.f32 %v4092_v2, %v2343_v9  ;;  %v2307_v7 = vadd.f32 %v2278_v16, %v2083_v15  ;;  %v3313_v26 = vpop.f32.mrf.mxu0 }
 0x193   : > { %v2364_v31 = vmax.f32 %v4098_v8, 0.0  ;;  %v2338_v32 = vmul.f32 %v4086_v59, %v2301_v61  ;;  %v3325_v34 = vpop.f32.mrf.mxu1 }
 0x194   : > { %v2370_v37 = vmax.f32 %v4102_v27, 0.0  ;;  %v2344_v52 = vmul.f32 %v4086_v59, %v2307_v7  ;;  %v2259_v39 = vpop.f32.mrf.mxu0 }
 0x195   : > { %2374 = vst [vmem:[#allocation2] sm:$0xff] %v2364_v31  ;;  %v4114_v12 = vadd.f32 %v4092_v2, %v2338_v32  ;;  %v2302_v40 = vadd.f32 %v2259_v39, %v2078_v11  ;;  %v2283_v28 = vpop.f32.mrf.mxu1 }
 0x196   : > { %2380 = vst [vmem:[#allocation2 + $0x30] sm:$0xff] %v2370_v37  ;;  %v4119_v4 = vadd.f32 %v4092_v2, %v2344_v52  ;;  %v2308_v1 = vadd.f32 %v2283_v28, %v2084_v22  ;;  %v3316_v29 = vpop.f32.mrf.mxu0 }
 0x197   : > { %v2365_v45 = vmax.f32 %v4114_v12, 0.0  ;;  %v2339_v48 = vmul.f32 %v4086_v59, %v2302_v40  ;;  %v3328_v50 = vpop.f32.mrf.mxu1 }
 0x198   : > { %v2371_v55 = vmax.f32 %v4119_v4, 0.0  ;;  %v2345_v41 = vmul.f32 %v4086_v59, %v2308_v1  ;;  %v2262_v60 = vpop.f32.mrf.mxu0 }
 0x199   : > { %2375 = vst [vmem:[#allocation2 + $0x8] sm:$0xff] %v2365_v45  ;;  %v4131_v46 = vadd.f32 %v4092_v2, %v2339_v48  ;;  %v2303_v17 = vadd.f32 %v2262_v60, %v2079_v43  ;;  %v2286_v63 = vpop.f32.mrf.mxu1 }
 0x19a   : > { %2381 = vst [vmem:[#allocation2 + $0x38] sm:$0xff] %v2371_v55  ;;  %v2362_v33 = vadd.f32 %v4092_v2, %v2345_v41  ;;  %v2309_v19 = vadd.f32 %v2286_v63, %v2085_v51  ;;  %v3317_v57 = vpop.f32.mrf.mxu0 }
 0x19b   : > { %v2366_v35 = vmax.f32 %v4131_v46, 0.0  ;;  %v2340_v5 = vmul.f32 %v4086_v59, %v2303_v17  ;;  %v3329_v10 = vpop.f32.mrf.mxu1 }
 0x19c   : > { %v2372_v49 = vmax.f32 %v2362_v33, 0.0  ;;  %v2346_v14 = vmul.f32 %v4086_v59, %v2309_v19  ;;  %v2267_v42 = vpop.f32.mrf.mxu0 }
 0x19d   : > { %2376 = vst [vmem:[#allocation2 + $0x10] sm:$0xff] %v2366_v35  ;;  %v4143_v0 = vadd.f32 %v4092_v2, %v2340_v5  ;;  %v2304_v54 = vadd.f32 %v2267_v42, %v2080_v58 }
 0x19e   : > { %2382 = vst [vmem:[#allocation2 + $0x40] sm:$0xff] %v2372_v49  ;;  %v2363_v21 = vadd.f32 %v4092_v2, %v2346_v14  ;;  %v3320_v38 = vpop.f32.mrf.mxu0 }
 0x19f   : > { %v2367_v20 = vmax.f32 %v4143_v0, 0.0  ;;  %v2341_v56 = vmul.f32 %v4086_v59, %v2304_v54 }
 0x1a0   : > { %v2373_v3 = vmax.f32 %v2363_v21, 0.0  ;;  %v2270_v6 = vpop.f32.mrf.mxu0 }
 0x1a1   : > { %2377 = vst [vmem:[#allocation2 + $0x18] sm:$0xff] %v2367_v20  ;;  %v2358_v62 = vadd.f32 %v4092_v2, %v2341_v56  ;;  %v2305_v13 = vadd.f32 %v2270_v6, %v2081_v24  ;;  %v2399_v39 = vld [vmem:[#allocation2 + $0x31] sm:$0xff] }
 0x1a2   : > { %2383 = vst [vmem:[#allocation2 + $0x48] sm:$0xff] %v2373_v3  ;;  %v3321_v15 = vpop.f32.mrf.mxu0  ;;  %v2408_v4 = vmax.f32 %v2370_v37, %v2399_v39  ;;  %v2416_v1 = vld [vmem:[#allocation2 + $0x32] sm:$0xff]  ;;  %v2393_v3 = vld [vmem:[#allocation2 + $0x1] sm:$0xff] }
 0x1a3   : > { %v2368_v18 = vmax.f32 %v2358_v62, 0.0  ;;  %v2342_v9 = vmul.f32 %v4086_v59, %v2305_v13  ;;  %v2425_v29 = vld [vmem:[#allocation2 + $0x33] sm:$0xff]  ;;  %v2402_v15 = vmax.f32 %v2364_v31, %v2393_v3 }
 0x1a4   : > { %v2434_v41 = vmax.f32 %v2416_v1, %v2425_v29  ;;  %v2394_v0 = vld [vmem:[#allocation2 + $0x9] sm:$0xff] }
 0x1a5   : > { %2378 = vst [vmem:[#allocation2 + $0x20] sm:$0xff] %v2368_v18  ;;  %v2359_v47 = vadd.f32 %v4092_v2, %v2342_v9  ;;  %v2392_v25 = vld [vmem:[#allocation2 + $0x40] sm:$0x1f]  ;;  %v2411_v54 = vld [vmem:[#allocation2 + $0xa] sm:$0xff]  ;;  %v2403_v62 = vmax.f32 %v2365_v45, %v2394_v0 }
 0x1a6   : > { %v2401_v16 = vld [vmem:[#allocation2 + $0x41] sm:$0x1f]  ;;  %v2400_v23 = vld [vmem:[#allocation2 + $0x39] sm:$0xff]  ;;  %v2420_v21 = vld [vmem:[#allocation2 + $0xb] sm:$0xff] }
 0x1a7   : > { %v2369_v61 = vmax.f32 %v2359_v47, 0.0  ;;  %v2417_v7 = vld [vmem:[#allocation2 + $0x3a] sm:$0xff]  ;;  %v2410_v34 = vmax.f32 %v2392_v25, %v2401_v16  ;;  %v2409_v59 = vmax.f32 %v2371_v55, %v2400_v23 }
 0x1a8   : > { %v2426_v26 = vld [vmem:[#allocation2 + $0x3b] sm:$0xff]  ;;  %v2395_v53 = vld [vmem:[#allocation2 + $0x11] sm:$0xff] }
 0x1a9   : > { %2379 = vst [vmem:[#allocation2 + $0x28] sm:$0xff] %v2369_v61  ;;  %v2419_v11 = vld [vmem:[#allocation2 + $0x4a] sm:$0x1f]  ;;  %v2418_v32 = vld [vmem:[#allocation2 + $0x42] sm:$0xff]  ;;  %v2435_v28 = vmax.f32 %v2417_v7, %v2426_v26  ;;  %v2412_v5 = vld [vmem:[#allocation2 + $0x12] sm:$0xff]  ;;  %v2404_v24 = vmax.f32 %v2366_v35, %v2395_v53 }
 0x1aa   : > { %v2428_v30 = vld [vmem:[#allocation2 + $0x4b] sm:$0x1f]  ;;  %v2427_v36 = vld [vmem:[#allocation2 + $0x43] sm:$0xff]  ;;  %v2421_v10 = vld [vmem:[#allocation2 + $0x13] sm:$0xff] }
 0x1ab   : > { %v2437_v22 = vmax.f32 %v2419_v11, %v2428_v30  ;;  %v2436_v52 = vmax.f32 %v2418_v32, %v2427_v36  ;;  %v2444_v43 = vmax.f32 %v2408_v4, %v2435_v28  ;;  %v2430_v56 = vmax.f32 %v2412_v5, %v2421_v10  ;;  %v2448_v35 = vld [vmem:[%s4177_s4 + $0x8] sm:$0xff] }
 0x1ac   : > { %v2396_v27 = vld [vmem:[#allocation2 + $0x19] sm:$0xff] }
 0x1ad   : > { %v2446_v40 = vmax.f32 %v2410_v34, %v2437_v22  ;;  %v2445_v2 = vmax.f32 %v2409_v59, %v2436_v52  ;;  %v2413_v37 = vld [vmem:[#allocation2 + $0x1a] sm:$0xff]  ;;  %v2405_v14 = vmax.f32 %v2367_v20, %v2396_v27  ;;  %v2429_v20 = vmax.f32 %v2411_v54, %v2420_v21 }
 0x1ae   : > { %v2422_v19 = vld [vmem:[#allocation2 + $0x1b] sm:$0xff]  ;;  %v2439_v13 = vmax.f32 %v2403_v62, %v2430_v56 }
 0x1af   : > { %3330 = vmatprep.subr.msk.mxu1 %vm2152_vm6, %v2446_v40  ;;  %v2431_v42 = vmax.f32 %v2413_v37, %v2422_v19  ;;  %v2438_v46 = vmax.f32 %v2402_v15, %v2429_v20 }
 0x1b0   : > { %3331 = vmatpush3.msk.msra.mxu1 %vm2152_vm6, %v2446_v40  ;;  %v2398_v44 = vld [vmem:[#allocation2 + $0x29] sm:$0xff]  ;;  %v2397_v48 = vld [vmem:[#allocation2 + $0x21] sm:$0xff] }
 0x1b1   : > { %3332 = vmatprep.subr.mxu1 %v2445_v2  ;;  %v2415_v50 = vld [vmem:[#allocation2 + $0x2a] sm:$0xff]  ;;  %v2407_v51 = vmax.f32 %v2369_v61, %v2398_v44  ;;  %v2406_v55 = vmax.f32 %v2368_v18, %v2397_v48  ;;  %v2414_v17 = vld [vmem:[#allocation2 + $0x22] sm:$0xff]  ;;  %v2440_v6 = vmax.f32 %v2404_v24, %v2431_v42 }
 0x1b2   : > { %3333 = vmatpush3.msra.mxu1 %v2445_v2  ;;  %v2424_v60 = vld [vmem:[#allocation2 + $0x2b] sm:$0xff]  ;;  %v2423_v63 = vld [vmem:[#allocation2 + $0x23] sm:$0xff] }
 0x1b3   : > { %3334 = vmatprep.subr.mxu1 %v2444_v43  ;;  %v2433_v33 = vmax.f32 %v2415_v50, %v2424_v60  ;;  %v2443_v57 = vmax.f32 %v2407_v51, %v2434_v41  ;;  %v2432_v58 = vmax.f32 %v2414_v17, %v2423_v63 }
 0x1b4   : > { %3335 = vmatpush3.msra.mxu1 %v2444_v43 }
 0x1b5   : > { %3336 = vmatprep.subr.mxu1 %v2443_v57  ;;  %v2442_v49 = vmax.f32 %v2406_v55, %v2433_v33  ;;  %v2441_v38 = vmax.f32 %v2405_v14, %v2432_v58 }
 0x1b6   : > { %3337 = vmatpush3.msra.mxu1 %v2443_v57 }
 0x1b7   : > { %3338 = vmatprep.subr.mxu1 %v2442_v49 }
 0x1b8   : > { %3339 = vmatpush3.msra.mxu1 %v2442_v49 }
 0x1b9   : > { %3340 = vmatprep.subr.mxu1 %v2441_v38 }
 0x1ba   : > { %3341 = vmatpush3.msra.mxu1 %v2441_v38 }
 0x1bb   : > { %3342 = vmatprep.subr.mxu1 %v2440_v6 }
 0x1bc   : > { %3343 = vmatpush3.msra.mxu1 %v2440_v6 }
 0x1bd   : > { %3344 = vmatprep.subr.mxu1 %v2439_v13 }
 0x1be   : > { %3345 = vmatpush3.msra.mxu1 %v2439_v13 }
 0x1bf   : > { %3346 = vmatprep.subr.mxu1 %v2438_v46 }
 0x1c0   : > { %3347 = vmatpush3.msra.mxu1 %v2438_v46 }
 0x1c1   : > { %3349 = vmatmul.mubr.msk.f32.vlgmr.msra.gmra.mxu1 %vm2449_vm7, %v2448_v35 }
 0x281   : > { %v3350_v12 = vpop.f32.mrf.mxu1 }
 0x283   : > { %v2526_v8 = vpop.f32.mrf.mxu1 }
 0x284   : > { %v2876_v31 = vpack.c.bf16 %v3350_v12, %v2526_v8 }
 0x286   : > { %2877 = vst [vmem:[%s224_s23] sm:$0xff] %v2876_v31  }
 0x287 PF: > { %s15_s18 = sadd.s32 1, %s3509_s18  }
 0x288   : > { %p12_p4 = scmp.ge.s32.totalorder %s15_s18, 4  }
 0x28a   :  { %14 = sbr.rel (!%p12_p4) target bundleno = 1 (0x1), region = 78 }

// kernel: _lambda_.4
= control target key start
LH: loop header
LB: loop body
LE: loop exit
PB: predicated region body
PF: predicated region fallthrough
CT: control target
= control target key end

     0   :  { %s7604_s18 = smov 0   ;;  %s9116_s0 = inlined_call_operand.vmem [shape: bf16[2,328,128], index: 0, kind: input, shape index: {}]   ;;  %s9117_s1 = inlined_call_operand.vmem [shape: bf16[9,128,128], index: 1, kind: input, shape index: {}]   ;;  %s9118_s2 = inlined_call_operand.vmem [shape: f32[1,128], index: 2, kind: input, shape index: {}]   ;;  %s9119_s3 = inlined_call_operand.vmem [shape: f32[1,128], index: 3, kind: input, shape index: {}]   ;;  %s9120_s4 = inlined_call_operand.vmem [shape: f32[64,269], index: 4, kind: input, shape index: {}]   ;;  %s9121_s5 = inlined_call_operand.vmem [shape: bf16[2,64,128], index: 5, kind: output, shape index: {}]  }
   0x1 LB: > { %s6100_s19 = sadd.s32 4294967295, %s7572_s18   ;;  %p6104_p0 = scmp.ge.s32.totalorder %s7572_s18, 1  ;;  %s7572_s18 = sphi %s7604_s18, %s15_s18  }
   0x2   : > { %p187_p1 = scmp.lt.s32.totalorder %s7572_s18, 3 }
   0x4   : > { %p188_p2 = pnand %p6104_p0, %p187_p1 }
   0x6   : > { %191 = sbr.rel (%p188_p2) target bundleno = 892 (0x37c), region = 40 }
   0xb   : > { %v7324_v0 = vld [vmem:[%s9117_s1 + $0x38] sm:$0xff]   ;;  %v7325_v1 = vld [vmem:[%s9117_s1 + $0x30] sm:$0xff]   ;;  %p215_p3 = scmp.lt.s32.totalorder %s6100_s19, 1  ;;  %v7326_v3 = vld [vmem:[%s9117_s1 + $0x28] sm:$0xff]   ;;  %vm794_vm0 = vsmask.f32 7424 }
   0xc   : > { %6831 = vmatprep.subr.bf16.mxu0 %v7324_v0  ;;  %v7327_v2 = vld [vmem:[%s9117_s1 + $0x78] sm:$0xff]   ;;  %v7329_v4 = vld [vmem:[%s9117_s1 + $0x70] sm:$0xff]   ;;  %v7331_v5 = vld [vmem:[%s9117_s1 + $0x68] sm:$0xff]   ;;  %vm1441_vm1 = vcmask 1046528   ;;  %vm2512_vm2 = vsmask.f32 6400 }
   0xd   : > { %6832 = vmatpush3.bf16.msra.mxu0 %v7324_v0  ;;  %6883 = vmatprep.subr.bf16.mxu1 %v7327_v2  ;;  %s9181_s19 = smov (!%p215_p3, %s6100_s19), 1  ;;  %v7328_v6 = vld [vmem:[%s9117_s1 + $0x20] sm:$0xff]   ;;  %v7330_v8 = vld [vmem:[%s9117_s1 + $0x18] sm:$0xff]   ;;  %v7332_v11 = vld [vmem:[%s9117_s1 + $0x10] sm:$0xff]   ;;  %vm3181_vm3 = vcmask 1045504   ;;  %vm4921_vm5 = vcmask 1044480  }
   0xe   : > { %6833 = vmatprep.subr.bf16.mxu0 %v7325_v1  ;;  %6884 = vmatpush3.bf16.msra.mxu1 %v7327_v2  ;;  %s7315_s9 = smul.u32 164, %s9181_s19  ;;  %v7333_v7 = vld [vmem:[%s9117_s1 + $0x60] sm:$0xff]   ;;  %v7335_v10 = vld [vmem:[%s9117_s1 + $0x58] sm:$0xff]   ;;  %v7334_v12 = vld [vmem:[%s9117_s1 + $0x8] sm:$0xff]   ;;  %vm4252_vm4 = vsmask.f32 5376 }
   0xf   : > { %6885 = vmatprep.subr.bf16.mxu1 %v7329_v4  ;;  %v7337_v13 = vld [vmem:[%s9117_s1 + $0x50] sm:$0xff]   ;;  %v7340_v16 = vld [vmem:[%s9117_s1 + $0x48] sm:$0xff]   ;;  %v7336_v21 = vld [vmem:[%s9117_s1] sm:$0xff]   ;;  %vm5766_vm6 = vcmask 105472   ;;  %s6499_s15 = sshll.u32 %s9181_s19, 5 }
  0x10   : > { %s7645_s16 = scalar_lea.vmem %s9116_s0, %s7315_s9  ;;  %v7341_v26 = vld [vmem:[%s9117_s1 + $0x40] sm:$0xff]   ;;  %v7363_v58 = vld [vmem:[%s9117_s1 + $0xb8] sm:$0xff]   ;;  %v7364_v61 = vld [vmem:[%s9117_s1 + $0xb0] sm:$0xff]   ;;  %s224_s21 = scalar_lea.vmem %s9121_s5, %s6499_s15 }
  0x11   : > { %6834 = vmatpush3.bf16.msra.mxu0 %v7325_v1  ;;  %v7338_v9 = vld [vmem:[%s7645_s16] sm:$0xff]   ;;  %v7344_v15 = vld [vmem:[%s7645_s16 + $0x8] sm:$0xff]   ;;  %v7346_v20 = vld [vmem:[%s7645_s16 + $0x10] sm:$0xff]  }
  0x12   : > { %6835 = vmatprep.subr.bf16.mxu0 %v7326_v3  ;;  %6886 = vmatpush3.bf16.msra.mxu1 %v7329_v4  ;;  %v7343_v14 = vld [vmem:[%s7645_s16] sm:$0xff]   ;;  %v803_v19 = vshll.u32 %v7344_v15, 16  ;;  %v7348_v24 = vld [vmem:[%s7645_s16 + $0x18] sm:$0xff]   ;;  %v811_v25 = vshll.u32 %v7346_v20, 16  ;;  %v807_v28 = vshrl.u32 %v7344_v15, 16  ;;  %v815_v29 = vshrl.u32 %v7346_v20, 16 }
  0x13   : > { %6887 = vmatprep.subr.bf16.mxu1 %v7331_v5  ;;  %6847 = vmatprep.mubr.bf16.mxu0 %v7338_v9  ;;  %v796_v17 = vshrl.u32 %v7343_v14, 16  ;;  %v798_v18 = vshll.u32 %v7343_v14, 16  ;;  %v819_v30 = vshll.u32 %v7348_v24, 16  ;;  %v7339_v31 = vld [vmem:[%s7645_s16 + $0x8] sm:$0xff]   ;;  %v7350_v34 = vld [vmem:[%s7645_s16 + $0x20] sm:$0xff]   ;;  %v7342_v37 = vld [vmem:[%s7645_s16 + $0x10] sm:$0xff]  }
  0x14   : > { %v805_v23 = vrot.slane %v803_v19, 1  ;;  %v813_v33 = vrot.slane %v811_v25, 1  ;;  %v7352_v36 = vld [vmem:[%s7645_s16 + $0x28] sm:$0xff]   ;;  %v827_v40 = vshll.u32 %v7350_v34, 16  ;;  %v823_v42 = vshrl.u32 %v7348_v24, 16  ;;  %v7354_v47 = vld [vmem:[%s7645_s16 + $0x30] sm:$0xff]  }
  0x15   : > { %6836 = vmatpush3.bf16.msra.mxu0 %v7326_v3  ;;  %v800_v22 = vrot.slane %v798_v18, 1  ;;  %v821_v39 = vrot.slane %v819_v30, 1  ;;  %v831_v43 = vshrl.u32 %v7350_v34, 16  ;;  %v835_v44 = vshll.u32 %v7352_v36, 16  ;;  %v7345_v48 = vld [vmem:[%s7645_s16 + $0x18] sm:$0xff]   ;;  %v7347_v49 = vld [vmem:[%s7645_s16 + $0x20] sm:$0xff]  }
  0x16   : > { %6837 = vmatprep.subr.bf16.mxu0 %v7328_v6  ;;  %6888 = vmatpush3.bf16.msra.mxu1 %v7331_v5  ;;  %v809_v35 = vor.u32 %v807_v28, %v805_v23  ;;  %v817_v38 = vor.u32 %v815_v29, %v813_v33  ;;  %v829_v46 = vrot.slane %v827_v40, 1  ;;  %v7356_v53 = vld [vmem:[%s7645_s16 + $0x38] sm:$0xff]   ;;  %v839_v54 = vshrl.u32 %v7352_v36, 16  ;;  %v7349_v62 = vld [vmem:[%s7645_s16 + $0x28] sm:$0xff]   ;;  %v7358_v0 = vld [vmem:[%s7645_s16 + $0x40] sm:$0xff]  }
  0x17   : > { %6889 = vmatprep.subr.bf16.mxu1 %v7333_v7  ;;  %v801_v27 = vor.u32 %v800_v22, %v796_v17  ;;  %v825_v50 = vor.u32 %v823_v42, %v821_v39  ;;  %v837_v52 = vrot.slane %v835_v44, 1  ;;  %v843_v55 = vshll.u32 %v7354_v47, 16  ;;  %v7351_v1 = vld [vmem:[%s7645_s16 + $0x30] sm:$0xff]   ;;  %v7355_v19 = vld [vmem:[%s7645_s16 + $0x40] sm:$0xff]   ;;  %v7366_v24 = vld [vmem:[%s7645_s16 + $0x58] sm:$0xff]  }
  0x18   : > { %v814_v41 = vsel %vm794_vm0, %v809_v35, %v813_v33  ;;  %v822_v45 = vsel %vm794_vm0, %v817_v38, %v821_v39  ;;  %v833_v51 = vor.u32 %v831_v43, %v829_v46  ;;  %v847_v57 = vshrl.u32 %v7354_v47, 16  ;;  %v7372_v15 = vld [vmem:[%s9117_s1 + $0xf0] sm:$0xff]   ;;  %v7377_v25 = vld [vmem:[%s9117_s1 + $0x98] sm:$0xff]   ;;  %v7378_v28 = vld [vmem:[%s9117_s1 + $0xe8] sm:$0xff]  }
  0x19   : > { %6838 = vmatpush3.bf16.msra.mxu0 %v7328_v6  ;;  %v806_v32 = vsel %vm794_vm0, %v801_v27, %v805_v23  ;;  %v830_v56 = vsel %vm794_vm0, %v825_v50, %v829_v46  ;;  %v851_v60 = vshll.u32 %v7356_v53, 16  ;;  %v845_v63 = vrot.slane %v843_v55, 1  ;;  %v7360_v6 = vld [vmem:[%s7645_s16 + $0x48] sm:$0xff]   ;;  %v7362_v18 = vld [vmem:[%s7645_s16 + $0x50] sm:$0xff]   ;;  %v7380_v33 = vld [vmem:[%s9117_s1 + $0xe0] sm:$0xff]  }
  0x1a   : > { %6839 = vmatprep.subr.bf16.mxu0 %v7330_v8  ;;  %6890 = vmatpush3.bf16.msra.mxu1 %v7333_v7  ;;  %v838_v59 = vsel %vm794_vm0, %v833_v51, %v837_v52  ;;  %v841_v2 = vor.u32 %v839_v54, %v837_v52  ;;  %v855_v5 = vshrl.u32 %v7356_v53, 16  ;;  %v7369_v7 = vld [vmem:[%s9117_s1 + $0xa8] sm:$0xff]   ;;  %v863_v9 = vshrl.u32 %v7358_v0, 16  ;;  %v7379_v29 = vld [vmem:[%s9117_s1 + $0x90] sm:$0xff]   ;;  %v7368_v36 = vld [vmem:[%s7645_s16 + $0x60] sm:$0xff]  }
  0x1b   : > { %6891 = vmatprep.subr.bf16.mxu1 %v7335_v10  ;;  %6899 = vmatprep.mubr.bf16.mxu1 %v806_v32  ;;  %v849_v3 = vor.u32 %v847_v57, %v845_v63  ;;  %v853_v4 = vrot.slane %v851_v60, 1  ;;  %v867_v14 = vshll.u32 %v7360_v6, 16  ;;  %v871_v23 = vshrl.u32 %v7360_v6, 16  ;;  %v7357_v34 = vld [vmem:[%s7645_s16 + $0x48] sm:$0xff]   ;;  %v7386_v46 = vld [vmem:[%s9117_s1 + $0xd8] sm:$0xff]   ;;  %v7387_v47 = vld [vmem:[%s9117_s1 + $0x80] sm:$0xff]  }
  0x1c   : > { %v879_v27 = vshrl.u32 %v7362_v18, 16  ;;  %v883_v32 = vshll.u32 %v7366_v24, 16  ;;  %v7374_v42 = vld [vmem:[%s7645_s16 + $0x68] sm:$0xff]   ;;  %v891_v44 = vshll.u32 %v7368_v36, 16  ;;  %v7388_v51 = vld [vmem:[%s9117_s1 + $0xd0] sm:$0xff]   ;;  %v7361_v54 = vld [vmem:[%s7645_s16 + $0x58] sm:$0xff]  }
  0x1d   : > { %6840 = vmatpush3.bf16.msra.mxu0 %v7330_v8  ;;  %v859_v8 = vshll.u32 %v7358_v0, 16  ;;  %v857_v20 = vor.u32 %v855_v5, %v853_v4  ;;  %v869_v22 = vrot.slane %v867_v14, 1  ;;  %v7385_v43 = vld [vmem:[%s9117_s1 + $0x88] sm:$0xff]   ;;  %v899_v50 = vshll.u32 %v7374_v42, 16  ;;  %v7376_v53 = vld [vmem:[%s7645_s16 + $0x70] sm:$0xff]   ;;  %v7384_v5 = vld [vmem:[%s7645_s16 + $0x80] sm:$0xff]  }
  0x1e   : > { %6841 = vmatprep.subr.bf16.mxu0 %v7332_v11  ;;  %6892 = vmatpush3.bf16.msra.mxu1 %v7335_v10  ;;  %v7370_v10 = vld [vmem:[%s9117_s1 + $0xf8] sm:$0xff]   ;;  %v885_v40 = vrot.slane %v883_v32, 1  ;;  %v893_v52 = vrot.slane %v891_v44, 1  ;;  %v903_v60 = vshrl.u32 %v7374_v42, 16  ;;  %v7367_v6 = vld [vmem:[%s7645_s16 + $0x68] sm:$0xff]  }
  0x1f   : > { %6893 = vmatprep.subr.bf16.mxu1 %v7337_v13  ;;  %v861_v17 = vrot.slane %v859_v8, 1  ;;  %v873_v38 = vor.u32 %v871_v23, %v869_v22  ;;  %v7381_v23 = vld [vmem:[%s7645_s16 + $0x80] sm:$0xff]   ;;  %v7398_v32 = vld [vmem:[%s7645_s16 + $0x8] sm:$0xfe]  }
  0x21   : > { %6842 = vmatpush3.bf16.msra.mxu0 %v7332_v11  ;;  %v7371_v11 = vld [vmem:[%s9117_s1 + $0xa0] sm:$0xff]   ;;  %v862_v30 = vsel %vm794_vm0, %v857_v20, %v861_v17 }
  0x22   : > { %6843 = vmatprep.subr.bf16.mxu0 %v7334_v12  ;;  %6894 = vmatpush3.bf16.msra.mxu1 %v7337_v13  ;;  %v854_v13 = vsel %vm794_vm0, %v849_v3, %v853_v4 }
  0x23   : > { %6895 = vmatprep.subr.bf16.mxu1 %v7340_v16 }
  0x25   : > { %6844 = vmatpush3.bf16.msra.mxu0 %v7334_v12  ;;  %v846_v12 = vsel %vm794_vm0, %v841_v2, %v845_v63  ;;  %v7395_v63 = vld [vmem:[%s9117_s1 + $0xc0] sm:$0xff]   ;;  %v911_v2 = vshrl.u32 %v7376_v53, 16 }
  0x26   : > { %6845 = vmatprep.subr.bf16.mxu0 %v7336_v21  ;;  %6896 = vmatpush3.bf16.msra.mxu1 %v7340_v16  ;;  %v7353_v16 = vld [vmem:[%s7645_s16 + $0x38] sm:$0xff]  }
  0x27   : > { %6897 = vmatprep.subr.bf16.mxu1 %v7341_v26 }
  0x29   : > { %6846 = vmatpush3.bf16.msra.mxu0 %v7336_v21  ;;  %v865_v21 = vor.u32 %v863_v9, %v861_v17 }
  0x2a   : > { %6898 = vmatpush3.bf16.msra.mxu1 %v7341_v26  ;;  %6935 = vmatprep.subr.bf16.mxu0 %v7363_v58  ;;  %v875_v26 = vshll.u32 %v7362_v18, 16  ;;  %v7392_v18 = vld [vmem:[%s7645_s16 + $0x90] ss:$0 sps:$4 sm:$0x11]  }
  0x2b   : > { %6987 = vmatprep.subr.bf16.mxu1 %v7370_v10 }
  0x2c   : > { %6848 = vmatmul.mubr.bf16.vlgmr.msra.gmra.mxu0 %v7339_v31  ;;  %v870_v31 = vsel %vm794_vm0, %v865_v21, %v869_v22  ;;  %v877_v35 = vrot.slane %v875_v26, 1  ;;  %v7390_v22 = vld [vmem:[%s7645_s16] sm:$0xfe]   ;;  %v7391_v26 = vld [vmem:[%s7645_s16 + $0x8] sm:$0xff]  }
  0x2d   : > { %6851 = vmatprep.mubr.bf16.mxu0 %v7342_v37  ;;  %6900 = vmatmul.mubr.bf16.vlgmr.msra.gmra.mxu1 %v814_v41  ;;  %v7359_v37 = vld [vmem:[%s7645_s16 + $0x50] sm:$0xff]   ;;  %v887_v41 = vshrl.u32 %v7366_v24, 16 }
  0x2e   : > { %6903 = vmatprep.mubr.bf16.mxu1 %v822_v45  ;;  %6936 = vmatpush3.bf16.msra.mxu0 %v7363_v58  ;;  %v881_v39 = vor.u32 %v879_v27, %v877_v35  ;;  %v895_v45 = vshrl.u32 %v7368_v36, 16  ;;  %v901_v58 = vrot.slane %v899_v50, 1  ;;  %v7393_v36 = vld [vmem:[%s7645_s16 + $0x10] sm:$0xff]   ;;  %v7397_v50 = vld [vmem:[%s7645_s16 + $0x20] sm:$0xff]  }
  0x2f   : > { %6937 = vmatprep.subr.bf16.mxu0 %v7364_v61  ;;  %6988 = vmatpush3.bf16.msra.mxu1 %v7370_v10  ;;  %v889_v55 = vor.u32 %v887_v41, %v885_v40 }
  0x30   : > { %6989 = vmatprep.subr.bf16.mxu1 %v7372_v15  ;;  %v897_v57 = vor.u32 %v895_v45, %v893_v52  ;;  %v905_v8 = vor.u32 %v903_v60, %v901_v58  ;;  %v7400_v45 = vld [vmem:[%s7645_s16 + $0x18] sm:$0xff]   ;;  %v7407_v60 = vld [vmem:[%s7645_s16 + $0x30] sm:$0xff]  }
  0x31   : > { %v894_v0 = vsel %vm794_vm0, %v889_v55, %v893_v52  ;;  %v7401_v52 = vld [vmem:[%s7645_s16 + $0x28] sm:$0xff]   ;;  %v7424_v55 = vld [vmem:[%s9117_s1 + $0x178] sm:$0xff]  }
  0x32   : > { %6938 = vmatpush3.bf16.msra.mxu0 %v7364_v61  ;;  %v7394_v61 = vld [vmem:[%s9117_s1 + $0xc8] sm:$0xff]  }
  0x33   : > { %6939 = vmatprep.subr.bf16.mxu0 %v7369_v7  ;;  %6990 = vmatpush3.bf16.msra.mxu1 %v7372_v15 }
  0x34   : > { %6852 = vmatmul.mubr.bf16.gmra.mxu0 %v7345_v48  ;;  %6991 = vmatprep.subr.bf16.mxu1 %v7378_v28  ;;  %v878_v48 = vsel %vm794_vm0, %v873_v38, %v877_v35  ;;  %v1443_v35 = vrot.slane %v7391_v26, 1  ;;  %v7412_v26 = vld [vmem:[%s7645_s16 + $0x48] sm:$0xff]  }
  0x35   : > { %6855 = vmatprep.mubr.bf16.mxu0 %v7347_v49  ;;  %6904 = vmatmul.mubr.bf16.gmra.mxu1 %v830_v56  ;;  %v886_v49 = vsel %vm794_vm0, %v881_v39, %v885_v40  ;;  %v7365_v56 = vld [vmem:[%s7645_s16 + $0x60] sm:$0xff]   ;;  %v7415_v39 = vld [vmem:[%s9117_s1 + $0x138] sm:$0xff]   ;;  %v1977_v40 = vrot.slane %v7398_v32, 1  ;;  %v7437_v32 = vld [vmem:[%s9117_s1 + $0x108] sm:$0xff]  }
  0x36   : > { %6907 = vmatprep.mubr.bf16.mxu1 %v838_v59  ;;  %6940 = vmatpush3.bf16.msra.mxu0 %v7369_v7  ;;  %v7382_v59 = vld [vmem:[%s7645_s16 + $0x78] sm:$0xff]   ;;  %v7373_v7 = vld [vmem:[%s7645_s16 + $0x70] sm:$0xff]  }
  0x37   : > { %6941 = vmatprep.subr.bf16.mxu0 %v7371_v11  ;;  %6992 = vmatpush3.bf16.msra.mxu1 %v7378_v28  ;;  %v915_v3 = vshll.u32 %v7382_v59, 16  ;;  %v919_v14 = vshrl.u32 %v7382_v59, 16 }
  0x38   : > { %6993 = vmatprep.subr.bf16.mxu1 %v7380_v33 }
  0x39   : > { %v917_v10 = vrot.slane %v915_v3, 1 }
  0x3a   : > { %6942 = vmatpush3.bf16.msra.mxu0 %v7371_v11  ;;  %v7389_v11 = vld [vmem:[%s7645_s16 + $0x88] sm:$0xff]  }
  0x3b   : > { %6943 = vmatprep.subr.bf16.mxu0 %v7377_v25  ;;  %6994 = vmatpush3.bf16.msra.mxu1 %v7380_v33  ;;  %v931_v17 = vshll.u32 %v7389_v11, 16  ;;  %v921_v21 = vor.u32 %v919_v14, %v917_v10  ;;  %v935_v27 = vshrl.u32 %v7389_v11, 16  ;;  %v7383_v33 = vld [vmem:[%s7645_s16 + $0x88] sm:$0xff]   ;;  %v7408_v11 = vld [vmem:[%s7645_s16 + $0x38] sm:$0xff]   ;;  %v7411_v14 = vld [vmem:[%s7645_s16 + $0x40] sm:$0xff]  }
  0x3c   : > { %6856 = vmatmul.mubr.bf16.gmra.mxu0 %v7349_v62  ;;  %6995 = vmatprep.subr.bf16.mxu1 %v7386_v46  ;;  %v907_v62 = vshll.u32 %v7376_v53, 16 }
  0x3d   : > { %6859 = vmatprep.mubr.bf16.mxu0 %v7351_v1  ;;  %6908 = vmatmul.mubr.bf16.gmra.mxu1 %v846_v12  ;;  %v902_v1 = vsel %vm794_vm0, %v897_v57, %v901_v58  ;;  %v923_v12 = vshll.u32 %v7384_v5, 16  ;;  %v7418_v57 = vld [vmem:[%s9117_s1 + $0x130] sm:$0xff]   ;;  %v7404_v58 = vld [vmem:[%s7645_s16 + $0x28] sm:$0xff]  }
  0x3e   : > { %6911 = vmatprep.mubr.bf16.mxu1 %v854_v13  ;;  %6944 = vmatpush3.bf16.msra.mxu0 %v7377_v25  ;;  %v909_v4 = vrot.slane %v907_v62, 1  ;;  %v933_v25 = vrot.slane %v931_v17, 1  ;;  %v1984_v3 = vrot.slane %v7404_v58, 1  ;;  %v7429_v17 = vld [vmem:[%s9117_s1 + $0x118] sm:$0xff]  }
  0x3f   : > { %6945 = vmatprep.subr.bf16.mxu0 %v7379_v29  ;;  %6996 = vmatpush3.bf16.msra.mxu1 %v7386_v46  ;;  %v925_v20 = vrot.slane %v923_v12, 1  ;;  %v1445_v46 = vrot.slane %v7393_v36, 1  ;;  %v7410_v36 = vld [vmem:[%s7645_s16 + $0x50] sm:$0xff]  }
  0x40   : > { %6997 = vmatprep.subr.bf16.mxu1 %v7388_v51  ;;  %v913_v9 = vor.u32 %v911_v2, %v909_v4  ;;  %v910_v13 = vsel %vm794_vm0, %v905_v8, %v909_v4  ;;  %v7402_v2 = vld [vmem:[%s7645_s16 + $0x30] sm:$0xff]   ;;  %v7405_v4 = vld [vmem:[%s7645_s16 + $0x38] sm:$0xff]  }
  0x41   : > { %v926_v28 = vsel %vm794_vm0, %v921_v21, %v925_v20  ;;  %v1446_v53 = vsel %vm1441_vm1, %v1443_v35, %v1445_v46  ;;  %v1453_v12 = vrot.slane %v7402_v2, 1  ;;  %v7433_v21 = vld [vmem:[%s9117_s1 + $0x110] sm:$0xff]  }
  0x42   : > { %6946 = vmatpush3.bf16.msra.mxu0 %v7379_v29  ;;  %v918_v15 = vsel %vm794_vm0, %v913_v9, %v917_v10  ;;  %v939_v29 = vshll.u32 %v7392_v18, 16  ;;  %v7432_v9 = vld [vmem:[%s9117_s1 + $0x168] sm:$0xff]   ;;  %v7406_v18 = vld [vmem:[%s7645_s16 + $0x40] sm:$0xff]  }
  0x43   : > { %6947 = vmatprep.subr.bf16.mxu0 %v7385_v43  ;;  %6998 = vmatpush3.bf16.msra.mxu1 %v7388_v51  ;;  %v1980_v51 = vrot.slane %v7400_v45, 1  ;;  %v1461_v45 = vrot.slane %v7410_v36, 1 }
  0x44   : > { %6860 = vmatmul.mubr.bf16.gmra.mxu0 %v7353_v16  ;;  %6999 = vmatprep.subr.bf16.mxu1 %v7394_v61  ;;  %v927_v16 = vshrl.u32 %v7384_v5, 16  ;;  %v941_v38 = vrot.slane %v939_v29, 1 }
  0x45   : > { %6863 = vmatprep.mubr.bf16.mxu0 %v7355_v19  ;;  %6912 = vmatmul.mubr.bf16.gmra.mxu1 %v862_v30  ;;  %v7375_v19 = vld [vmem:[%s7645_s16 + $0x78] sm:$0xff]   ;;  %v7399_v30 = vld [vmem:[%s7645_s16 + $0x10] sm:$0xff]  }
  0x46   : > { %6915 = vmatprep.mubr.bf16.mxu1 %v870_v31  ;;  %6948 = vmatpush3.bf16.msra.mxu0 %v7385_v43  ;;  %v929_v24 = vor.u32 %v927_v16, %v925_v20  ;;  %v1978_v41 = vrot.slane %v7399_v30, 1  ;;  %v7396_v43 = vld [vmem:[%s7645_s16 + $0x18] sm:$0xff]   ;;  %v1455_v16 = vrot.slane %v7405_v4, 1  ;;  %v1988_v20 = vrot.slane %v7408_v11, 1 }
  0x47   : > { %6949 = vmatprep.subr.bf16.mxu0 %v7387_v47  ;;  %7000 = vmatpush3.bf16.msra.mxu1 %v7394_v61  ;;  %v1449_v61 = vrot.slane %v7397_v50, 1  ;;  %v7431_v4 = vld [vmem:[%s7645_s16 + $0x78] sm:$0xff]  }
  0x48   : > { %7001 = vmatprep.subr.bf16.mxu1 %v7395_v63  ;;  %v934_v31 = vsel %vm794_vm0, %v929_v24, %v933_v25  ;;  %v1981_v59 = vsel %vm1441_vm1, %v1978_v41, %v1980_v51  ;;  %v7440_v24 = vld [vmem:[%s9117_s1 + $0x158] sm:$0xff]   ;;  %v2004_v11 = vrot.slane %v7431_v4, 1 }
  0x4a   : > { %6950 = vmatpush3.bf16.msra.mxu0 %v7387_v47  ;;  %v1979_v47 = vsel %vm1441_vm1, %v1977_v40, %v1978_v41  ;;  %v7417_v40 = vld [vmem:[%s7645_s16 + $0x58] sm:$0xff]   ;;  %v7441_v41 = vld [vmem:[%s9117_s1 + $0x100] sm:$0xff]  }
  0x4b   : > { %7002 = vmatpush3.bf16.msra.mxu1 %v7395_v63  ;;  %7039 = vmatprep.subr.bf16.mxu0 %v7415_v39  ;;  %v7426_v63 = vld [vmem:[%s9117_s1 + $0x170] sm:$0xff]  }
  0x4c   : > { %6864 = vmatmul.mubr.bf16.gmra.mxu0 %v7357_v34  ;;  %v1442_v34 = vrot.slane %v7390_v22, 1  ;;  %7091 = vmatprep.subr.bf16.mxu1 %v7424_v55 }
  0x4d   : > { %6867 = vmatprep.mubr.bf16.mxu0 %v7359_v37  ;;  %6916 = vmatmul.mubr.bf16.gmra.mxu1 %v878_v48  ;;  %v937_v37 = vor.u32 %v935_v27, %v933_v25  ;;  %v7403_v48 = vld [vmem:[%s7645_s16 + $0x20] sm:$0xff]   ;;  %v1456_v25 = vsel %vm1441_vm1, %v1453_v12, %v1455_v16 }
  0x4e   : > { %6919 = vmatprep.mubr.bf16.mxu1 %v886_v49  ;;  %v1444_v42 = vsel %vm1441_vm1, %v1442_v34, %v1443_v35  ;;  %v1447_v49 = vrot.slane %v7396_v43, 1  ;;  %v1992_v34 = vrot.slane %v7412_v26, 1 }
  0x4f   : > { %v942_v44 = vsel %vm794_vm0, %v937_v37, %v941_v38  ;;  %v7413_v37 = vld [vmem:[%s7645_s16 + $0x58] sm:$0xff]  }
  0x50   : > { %v1450_v5 = vsel %vm1441_vm1, %v1447_v49, %v1449_v61 }
  0x54   : > { %6868 = vmatmul.mubr.bf16.gmra.mxu0 %v7361_v54  ;;  %v1982_v54 = vrot.slane %v7403_v48, 1  ;;  %v1463_v48 = vrot.slane %v7413_v37, 1 }
  0x55   : > { %6871 = vmatprep.mubr.bf16.mxu0 %v7365_v56  ;;  %6920 = vmatmul.mubr.bf16.gmra.mxu1 %v894_v0  ;;  %v1448_v56 = vsel %vm1441_vm1, %v1445_v46, %v1447_v49  ;;  %v1451_v0 = vrot.slane %v7401_v52, 1  ;;  %v1996_v49 = vrot.slane %v7417_v40, 1  ;;  %v7450_v40 = vld [vmem:[%s7645_s16 + $0x20] sm:$0xff]  }
  0x56   : > { %6923 = vmatprep.mubr.bf16.mxu1 %v902_v1  ;;  %v1983_v62 = vsel %vm1441_vm1, %v1980_v51, %v1982_v54  ;;  %v7421_v1 = vld [vmem:[%s9117_s1 + $0x128] sm:$0xff]   ;;  %v1985_v10 = vsel %vm1441_vm1, %v1982_v54, %v1984_v3  ;;  %v7414_v51 = vld [vmem:[%s7645_s16 + $0x60] sm:$0xff]  }
  0x57   : > { %v1452_v8 = vsel %vm1441_vm1, %v1449_v61, %v1451_v0  ;;  %v1454_v22 = vsel %vm1441_vm1, %v1451_v0, %v1453_v12  ;;  %v7419_v54 = vld [vmem:[%s7645_s16 + $0x68] sm:$0xff]   ;;  %v1465_v58 = vrot.slane %v7414_v51, 1  ;;  %v7420_v61 = vld [vmem:[%s7645_s16 + $0x70] sm:$0xff]  }
  0x58   : > { %v7435_v12 = vld [vmem:[%s7645_s16 + $0x88] sm:$0xff]  }
  0x5c   : > { %6872 = vmatmul.mubr.bf16.gmra.mxu0 %v7367_v6  ;;  %v1986_v6 = vrot.slane %v7407_v60, 1  ;;  %v1467_v60 = vrot.slane %v7419_v54, 1 }
  0x5d   : > { %6875 = vmatprep.mubr.bf16.mxu0 %v7373_v7  ;;  %6924 = vmatmul.mubr.bf16.gmra.mxu1 %v910_v13  ;;  %v7425_v7 = vld [vmem:[%s9117_s1 + $0x120] sm:$0xff]  }
  0x5e   : > { %6927 = vmatprep.mubr.bf16.mxu1 %v918_v15  ;;  %v1987_v13 = vsel %vm1441_vm1, %v1984_v3, %v1986_v6  ;;  %v7434_v15 = vld [vmem:[%s9117_s1 + $0x160] sm:$0xff]   ;;  %v1989_v27 = vsel %vm1441_vm1, %v1986_v6, %v1988_v20  ;;  %v1468_v2 = vsel %vm1441_vm1, %v1465_v58, %v1467_v60 }
  0x64   : > { %6876 = vmatmul.mubr.bf16.gmra.mxu0 %v7375_v19  ;;  %v7409_v19 = vld [vmem:[%s7645_s16 + $0x48] sm:$0xff]  }
  0x65   : > { %6879 = vmatprep.mubr.bf16.mxu0 %v7381_v23  ;;  %6928 = vmatmul.mubr.bf16.gmra.mxu1 %v926_v28  ;;  %v1990_v23 = vrot.slane %v7411_v14, 1  ;;  %v1457_v28 = vrot.slane %v7406_v18, 1  ;;  %v1459_v29 = vrot.slane %v7409_v19, 1  ;;  %v7445_v19 = vld [vmem:[%s7645_s16 + $0x18] sm:$0xff]  }
  0x66   : > { %6931 = vmatprep.mubr.bf16.mxu1 %v934_v31  ;;  %v7416_v31 = vld [vmem:[%s7645_s16 + $0x50] sm:$0xff]  }
  0x67   : > { %v1991_v30 = vsel %vm1441_vm1, %v1988_v20, %v1990_v23  ;;  %v1458_v35 = vsel %vm1441_vm1, %v1455_v16, %v1457_v28  ;;  %v1994_v38 = vrot.slane %v7416_v31, 1  ;;  %v1993_v43 = vsel %vm1441_vm1, %v1990_v23, %v1992_v34 }
  0x68   : > { %v1462_v50 = vsel %vm1441_vm1, %v1459_v29, %v1461_v45  ;;  %v2531_v31 = vshrl.u32 %v7445_v19, 16 }
  0x69   : > { %v1995_v46 = vsel %vm1441_vm1, %v1992_v34, %v1994_v38 }
  0x6c   : > { %6880 = vmatmul.mubr.bf16.gmra.mxu0 %v7383_v33  ;;  %v7442_v33 = vld [vmem:[%s9117_s1 + $0x150] sm:$0xff]  }
  0x6d   : > { %6951 = vmatprep.mubr.bf16.mxu0 %v1444_v42  ;;  %6932 = vmatmul.mubr.bf16.gmra.mxu1 %v942_v44  ;;  %v7448_v42 = vld [vmem:[%s9117_s1 + $0x148] sm:$0xff]   ;;  %v7422_v44 = vld [vmem:[%s7645_s16 + $0x60] sm:$0xff]  }
  0x6e   : > { %7003 = vmatprep.mubr.bf16.mxu1 %v1979_v47  ;;  %v7449_v47 = vld [vmem:[%s9117_s1 + $0x140] sm:$0xff]   ;;  %v1998_v52 = vrot.slane %v7422_v44, 1  ;;  %v7452_v44 = vld [vmem:[%s7645_s16 + $0x8] sm:$0xfc]  }
  0x74   : > { %6952 = vmatmul.mubr.bf16.vlgmr.msra.gmra.mxu0 %v1446_v53  ;;  %v1464_v53 = vsel %vm1441_vm1, %v1461_v45, %v1463_v48 }
  0x75   : > { %6955 = vmatprep.mubr.bf16.mxu0 %v1448_v56  ;;  %7040 = vmatpush3.bf16.msra.mxu0 %v7415_v39  ;;  %v1460_v39 = vsel %vm1441_vm1, %v1457_v28, %v1459_v29  ;;  %v1997_v56 = vsel %vm1441_vm1, %v1994_v38, %v1996_v49 }
  0x76   : > { %7041 = vmatprep.subr.bf16.mxu0 %v7418_v57  ;;  %7004 = vmatmul.mubr.bf16.vlgmr.msra.gmra.mxu1 %v1981_v59  ;;  %v1999_v59 = vsel %vm1441_vm1, %v1996_v49, %v1998_v52  ;;  %v7453_v49 = vld [vmem:[%s7645_s16 + $0x10] sm:$0xff]  }
  0x77   : > { %7007 = vmatprep.mubr.bf16.mxu1 %v1983_v62  ;;  %7092 = vmatpush3.bf16.msra.mxu1 %v7424_v55  ;;  %v7423_v55 = vld [vmem:[%s7645_s16 + $0x68] sm:$0xff]  }
  0x78   : > { %7093 = vmatprep.subr.bf16.mxu1 %v7426_v63  ;;  %v2000_v62 = vrot.slane %v7423_v55, 1  ;;  %v7478_v55 = vld [vmem:[%s9117_s1 + $0x1f8] sm:$0xff]  }
  0x79   : > { %7042 = vmatpush3.bf16.msra.mxu0 %v7418_v57  ;;  %v7430_v57 = vld [vmem:[%s7645_s16 + $0x70] sm:$0xff]  }
  0x7a   : > { %7043 = vmatprep.subr.bf16.mxu0 %v7421_v1  ;;  %v2002_v0 = vrot.slane %v7430_v57, 1  ;;  %v2001_v3 = vsel %vm1441_vm1, %v1998_v52, %v2000_v62  ;;  %v2540_v52 = vshrl.u32 %v7450_v40, 16  ;;  %v3182_v57 = vrot.slane %v7452_v44, 2 }
  0x7b   : > { %7094 = vmatpush3.bf16.msra.mxu1 %v7426_v63  ;;  %v7427_v63 = vld [vmem:[%s7645_s16 + $0x78] sm:$0xff]  }
  0x7c   : > { %6956 = vmatmul.mubr.bf16.gmra.mxu0 %v1450_v5  ;;  %7095 = vmatprep.subr.bf16.mxu1 %v7432_v9  ;;  %v1469_v5 = vrot.slane %v7420_v61, 1  ;;  %v1471_v6 = vrot.slane %v7427_v63, 1  ;;  %v2005_v20 = vsel %vm1441_vm1, %v2002_v0, %v2004_v11 }
  0x7d   : > { %6959 = vmatprep.mubr.bf16.mxu0 %v1452_v8  ;;  %7044 = vmatpush3.bf16.msra.mxu0 %v7421_v1  ;;  %v1466_v1 = vsel %vm1441_vm1, %v1463_v48, %v1465_v58  ;;  %v7438_v8 = vld [vmem:[%s7645_s16 + $0x80] sm:$0xff]  }
  0x7e   : > { %7045 = vmatprep.subr.bf16.mxu0 %v7425_v7  ;;  %7008 = vmatmul.mubr.bf16.gmra.mxu1 %v1985_v10  ;;  %v7428_v10 = vld [vmem:[%s7645_s16 + $0x80] sm:$0xff]   ;;  %v2006_v14 = vrot.slane %v7438_v8, 1  ;;  %v1472_v16 = vsel %vm1441_vm1, %v1469_v5, %v1471_v6 }
  0x7f   : > { %7011 = vmatprep.mubr.bf16.mxu1 %v1987_v13  ;;  %7096 = vmatpush3.bf16.msra.mxu1 %v7432_v9  ;;  %v7443_v9 = vld [vmem:[%s7645_s16 + $0x8] sm:$0xfe]   ;;  %v1470_v13 = vsel %vm1441_vm1, %v1467_v60, %v1469_v5  ;;  %v1473_v23 = vrot.slane %v7428_v10, 1  ;;  %v7455_v60 = vld [vmem:[%s7645_s16 + $0x30] sm:$0xff]  }
  0x80   : > { %7097 = vmatprep.subr.bf16.mxu1 %v7434_v15  ;;  %v2514_v18 = vshrl.u32 %v7443_v9, 16  ;;  %v2558_v5 = vshrl.u32 %v7455_v60, 16 }
  0x81   : > { %7046 = vmatpush3.bf16.msra.mxu0 %v7425_v7  ;;  %v2003_v7 = vsel %vm1441_vm1, %v2000_v62, %v2002_v0  ;;  %v2542_v62 = vrot.slane %v2540_v52, 1  ;;  %v7950_v52 = vld [vmem:[%s7645_s16 + $0x40] sm:$0xff]  }
  0x82   : > { %7047 = vmatprep.subr.bf16.mxu0 %v7429_v17 }
  0x83   : > { %7098 = vmatpush3.bf16.msra.mxu1 %v7434_v15  ;;  %v7444_v15 = vld [vmem:[%s7645_s16 + $0x10] sm:$0xff]  }
  0x84   : > { %6960 = vmatmul.mubr.bf16.gmra.mxu0 %v1454_v22  ;;  %7099 = vmatprep.subr.bf16.mxu1 %v7440_v24  ;;  %v7889_v22 = vld [vmem:[%s9117_s1 + $0x1b8] sm:$0xff]   ;;  %v2522_v26 = vshrl.u32 %v7444_v15, 16  ;;  %v2525_v29 = vshll.u32 %v7444_v15, 16 }
  0x85   : > { %6963 = vmatprep.mubr.bf16.mxu0 %v1456_v25  ;;  %7048 = vmatpush3.bf16.msra.mxu0 %v7429_v17  ;;  %v7439_v17 = vld [vmem:[%s7645_s16 + $0x88] sm:$0xff]   ;;  %v2007_v25 = vsel %vm1441_vm1, %v2004_v11, %v2006_v14  ;;  %v7456_v11 = vld [vmem:[%s7645_s16 + $0x38] sm:$0xff]  }
  0x86   : > { %7049 = vmatprep.subr.bf16.mxu0 %v7433_v21  ;;  %7012 = vmatmul.mubr.bf16.gmra.mxu1 %v1989_v27  ;;  %v7446_v27 = vld [vmem:[%s7645_s16 + $0x90] sm:$0xff]   ;;  %v2008_v28 = vrot.slane %v7439_v17, 1  ;;  %v2524_v36 = vrot.slane %v2522_v26, 1  ;;  %v7460_v26 = vld [vmem:[%s7645_s16 + $0x48] sm:$0xff]  }
  0x87   : > { %7015 = vmatprep.mubr.bf16.mxu1 %v1991_v30  ;;  %7100 = vmatpush3.bf16.msra.mxu1 %v7440_v24  ;;  %v1475_v24 = vrot.slane %v7435_v12, 1  ;;  %v7436_v30 = vld [vmem:[%s7645_s16 + $0x90] ss:$0 sps:$4 sm:$0x11]   ;;  %v2010_v37 = vrot.slane %v7446_v27, 1 }
  0x88   : > { %7101 = vmatprep.subr.bf16.mxu1 %v7442_v33  ;;  %v1477_v45 = vrot.slane %v7436_v30, 1  ;;  %v7925_v27 = vld [vmem:[%s7645_s16 + $0x30] sm:$0xff]  }
  0x89   : > { %7050 = vmatpush3.bf16.msra.mxu0 %v7433_v21  ;;  %v2517_v21 = vshll.u32 %v7443_v9, 16  ;;  %v1476_v38 = vsel %vm1441_vm1, %v1473_v23, %v1475_v24  ;;  %v2011_v48 = vsel %vm1441_vm1, %v2008_v28, %v2010_v37  ;;  %v2561_v9 = vshll.u32 %v7455_v60, 16  ;;  %v7480_v30 = vld [vmem:[%s9117_s1 + $0x1f0] sm:$0xff]  }
  0x8a   : > { %7051 = vmatprep.subr.bf16.mxu0 %v7437_v32  ;;  %v1478_v58 = vsel %vm1441_vm1, %v1475_v24, %v1477_v45  ;;  %v2570_v24 = vshll.u32 %v7456_v11, 16  ;;  %v7462_v45 = vld [vmem:[%s7645_s16 + $0x38] sm:$0xff]  }
  0x8b   : > { %7102 = vmatpush3.bf16.msra.mxu1 %v7442_v33  ;;  %v2516_v33 = vrot.slane %v2514_v18, 1  ;;  %v2519_v34 = vrot.slane %v2517_v21, 2  ;;  %v2567_v21 = vshrl.u32 %v7456_v11, 16 }
  0x8c   : > { %6964 = vmatmul.mubr.bf16.gmra.mxu0 %v1458_v35  ;;  %7103 = vmatprep.subr.bf16.mxu1 %v7448_v42  ;;  %v1474_v35 = vsel %vm1441_vm1, %v1471_v6, %v1473_v23  ;;  %v7457_v6 = vld [vmem:[%s7645_s16 + $0x20] sm:$0xff]  }
  0x8d   : > { %6967 = vmatprep.mubr.bf16.mxu0 %v1460_v39  ;;  %7052 = vmatpush3.bf16.msra.mxu0 %v7437_v32  ;;  %v2534_v32 = vshll.u32 %v7445_v19, 16  ;;  %v2527_v39 = vrot.slane %v2525_v29, 2  ;;  %v3187_v17 = vrot.slane %v7457_v6, 2  ;;  %v2563_v19 = vrot.slane %v2561_v9, 2  ;;  %v7970_v6 = vld [vmem:[%s7645_s16 + $0x50] sm:$0xff]  }
  0x8e   : > { %7053 = vmatprep.subr.bf16.mxu0 %v7441_v41  ;;  %7016 = vmatmul.mubr.bf16.gmra.mxu1 %v1993_v43  ;;  %v2009_v43 = vsel %vm1441_vm1, %v2006_v14, %v2008_v28  ;;  %v7459_v14 = vld [vmem:[%s7645_s16 + $0x40] sm:$0xff]   ;;  %v7496_v9 = vld [vmem:[%s9117_s1 + $0x1d0] sm:$0xff]  }
  0x8f   : > { %7019 = vmatprep.mubr.bf16.mxu1 %v1995_v46  ;;  %7104 = vmatpush3.bf16.msra.mxu1 %v7448_v42  ;;  %v7451_v42 = vld [vmem:[%s7645_s16 + $0x28] sm:$0xff]   ;;  %v2533_v46 = vrot.slane %v2531_v31, 1  ;;  %v2528_v51 = vor.u32 %v2527_v39, %v2524_v36  ;;  %v7463_v36 = vld [vmem:[%s7645_s16 + $0x50] sm:$0xff]   ;;  %v2588_v39 = vshll.u32 %v7460_v26, 16 }
  0x90   : > { %7105 = vmatprep.subr.bf16.mxu1 %v7449_v47  ;;  %v2552_v0 = vshll.u32 %v7451_v42, 16 }
  0x91   : > { %7054 = vmatpush3.bf16.msra.mxu0 %v7441_v41  ;;  %v7447_v41 = vld [vmem:[%s7645_s16 + $0x98] ss:$0 sps:$4 sm:$0x11]  }
  0x92   : > { %7143 = vmatprep.subr.bf16.mxu0 %v7889_v22  ;;  %v2012_v54 = vrot.slane %v7447_v41, 1  ;;  %v2554_v10 = vrot.slane %v2552_v0, 2  ;;  %v3191_v41 = vrot.slane %v7925_v27, 2  ;;  %v3195_v0 = vrot.slane %v7950_v52, 2  ;;  %v7495_v27 = vld [vmem:[%s9117_s1 + $0x180] sm:$0xff]  }
  0x93   : > { %7106 = vmatpush3.bf16.msra.mxu1 %v7449_v47  ;;  %v2536_v47 = vrot.slane %v2534_v32, 2 }
  0x94   : > { %6968 = vmatmul.mubr.bf16.gmra.mxu0 %v1462_v50  ;;  %v2520_v50 = vor.u32 %v2519_v34, %v2516_v33  ;;  %7195 = vmatprep.subr.bf16.mxu1 %v7478_v55  ;;  %v2579_v33 = vshll.u32 %v7459_v14, 16  ;;  %v7475_v34 = vld [vmem:[%s9117_s1 + $0x1a8] sm:$0xff]  }
  0x95   : > { %6971 = vmatprep.mubr.bf16.mxu0 %v1464_v53  ;;  %v2543_v53 = vshll.u32 %v7450_v40, 16 }
  0x96   : > { %7020 = vmatmul.mubr.bf16.gmra.mxu1 %v1997_v56  ;;  %v2549_v56 = vshrl.u32 %v7451_v42, 16  ;;  %v2529_v61 = vsel %vm2512_vm2, %v2520_v50, %v2528_v51  ;;  %v7479_v42 = vld [vmem:[%s9117_s1 + $0x1a0] sm:$0xff]   ;;  %v2581_v44 = vrot.slane %v2579_v33, 2 }
  0x97   : > { %7023 = vmatprep.mubr.bf16.mxu1 %v1999_v59  ;;  %v3183_v59 = vrot.slane %v7453_v49, 2  ;;  %v2545_v63 = vrot.slane %v2543_v53, 2  ;;  %v7488_v53 = vld [vmem:[%s9117_s1 + $0x1e0] sm:$0xff]  }
  0x98   : > { %v2551_v8 = vrot.slane %v2549_v56, 1  ;;  %v7483_v56 = vld [vmem:[%s9117_s1 + $0x198] sm:$0xff]   ;;  %v7476_v33 = vld [vmem:[%s7645_s16 + $0x60] sm:$0xff]  }
  0x99   : > { %v3184_v4 = vsel %vm3181_vm3, %v3182_v57, %v3183_v59 }
  0x9a   : > { %v2555_v28 = vor.u32 %v2554_v10, %v2551_v8 }
  0x9c   : > { %6972 = vmatmul.mubr.bf16.gmra.mxu0 %v1466_v1  ;;  %v2013_v1 = vsel %vm1441_vm1, %v2010_v37, %v2012_v54  ;;  %v2572_v37 = vrot.slane %v2570_v24, 2 }
  0x9d   : > { %6975 = vmatprep.mubr.bf16.mxu0 %v1468_v2  ;;  %v7454_v2 = vld [vmem:[%s7645_s16 + $0x18] sm:$0xff]  }
  0x9e   : > { %7024 = vmatmul.mubr.bf16.gmra.mxu1 %v2001_v3  ;;  %v2537_v3 = vor.u32 %v2536_v47, %v2533_v46  ;;  %v3185_v12 = vrot.slane %v7454_v2, 2  ;;  %v7486_v46 = vld [vmem:[%s9117_s1 + $0x1e8] sm:$0xff]   ;;  %v2594_v47 = vshrl.u32 %v7463_v36, 16 }
  0x9f   : > { %7027 = vmatprep.mubr.bf16.mxu1 %v2003_v7  ;;  %v2546_v7 = vor.u32 %v2545_v63, %v2542_v62  ;;  %v7467_v62 = vld [vmem:[%s7645_s16 + $0x60] sm:$0xff]  }
  0xa0   : > { %v2538_v15 = vsel %vm2512_vm2, %v2528_v51, %v2537_v3  ;;  %v3186_v23 = vsel %vm3181_vm3, %v3183_v59, %v3185_v12  ;;  %v3188_v29 = vsel %vm3181_vm3, %v3185_v12, %v3187_v17  ;;  %v3193_v59 = vrot.slane %v7462_v45, 2  ;;  %v7481_v45 = vld [vmem:[%s7645_s16 + $0x80] sm:$0xff]  }
  0xa1   : > { %v2547_v18 = vsel %vm2512_vm2, %v2537_v3, %v2546_v7  ;;  %v2556_v40 = vsel %vm2512_vm2, %v2546_v7, %v2555_v28  ;;  %v2596_v60 = vrot.slane %v2594_v47, 1 }
  0xa2   : > { %v3194_v7 = vsel %vm3181_vm3, %v3191_v41, %v3193_v59  ;;  %v3196_v11 = vsel %vm3181_vm3, %v3193_v59, %v3195_v0 }
  0xa4   : > { %6976 = vmatmul.mubr.bf16.gmra.mxu0 %v1470_v13  ;;  %v7458_v13 = vld [vmem:[%s7645_s16 + $0x28] sm:$0xff]  }
  0xa5   : > { %6979 = vmatprep.mubr.bf16.mxu0 %v1472_v16  ;;  %v2560_v16 = vrot.slane %v2558_v5, 1  ;;  %v3189_v32 = vrot.slane %v7458_v13, 2  ;;  %v7494_v5 = vld [vmem:[%s9117_s1 + $0x1d8] sm:$0xff]   ;;  %v2612_v13 = vshrl.u32 %v7467_v62, 16 }
  0xa6   : > { %7028 = vmatmul.mubr.bf16.gmra.mxu1 %v2005_v20  ;;  %v7472_v20 = vld [vmem:[%s9117_s1 + $0x1b0] sm:$0xff]  }
  0xa7   : > { %7031 = vmatprep.mubr.bf16.mxu1 %v2007_v25  ;;  %v2576_v25 = vshrl.u32 %v7459_v14, 16  ;;  %v2564_v31 = vor.u32 %v2563_v19, %v2560_v16  ;;  %v3190_v49 = vsel %vm3181_vm3, %v3187_v17, %v3189_v32  ;;  %v3192_v51 = vsel %vm3181_vm3, %v3189_v32, %v3191_v41  ;;  %v7468_v16 = vld [vmem:[%s7645_s16 + $0x68] sm:$0xff]  }
  0xa8   : > { %v2615_v14 = vshll.u32 %v7467_v62, 16 }
  0xac   : > { %6980 = vmatmul.mubr.bf16.gmra.mxu0 %v1474_v35  ;;  %v2569_v35 = vrot.slane %v2567_v21, 1  ;;  %v3199_v21 = vrot.slane %v7970_v6, 2 }
  0xad   : > { %6983 = vmatprep.mubr.bf16.mxu0 %v1476_v38  ;;  %v2585_v38 = vshrl.u32 %v7460_v26, 16  ;;  %v2617_v26 = vrot.slane %v2615_v14, 2 }
  0xae   : > { %7032 = vmatmul.mubr.bf16.gmra.mxu1 %v2009_v43  ;;  %v2565_v43 = vsel %vm2512_vm2, %v2555_v28, %v2564_v31  ;;  %v2573_v50 = vor.u32 %v2572_v37, %v2569_v35  ;;  %v7502_v28 = vld [vmem:[%s9117_s1 + $0x1c8] sm:$0xff]  }
  0xaf   : > { %7035 = vmatprep.mubr.bf16.mxu1 %v2011_v48  ;;  %v7464_v48 = vld [vmem:[%s7645_s16 + $0x58] sm:$0xff]   ;;  %v2587_v57 = vrot.slane %v2585_v38, 1 }
  0xb0   : > { %v2574_v63 = vsel %vm2512_vm2, %v2564_v31, %v2573_v50  ;;  %v2606_v8 = vshll.u32 %v7464_v48, 16  ;;  %v7471_v31 = vld [vmem:[%s7645_s16 + $0x58] sm:$0xff]  }
  0xb1   : > { %v3201_v41 = vrot.slane %v7471_v31, 2 }
  0xb4   : > { %6984 = vmatmul.mubr.bf16.gmra.mxu0 %v1478_v58  ;;  %v2590_v58 = vrot.slane %v2588_v39, 2 }
  0xb5   : > { %7055 = vmatprep.mubr.bf16.mxu0 %v2529_v61  ;;  %v2603_v61 = vshrl.u32 %v7464_v48, 16 }
  0xb6   : > { %7036 = vmatmul.mubr.bf16.gmra.mxu1 %v2013_v1  ;;  %v7487_v1 = vld [vmem:[%s9117_s1 + $0x190] sm:$0xff]   ;;  %v2591_v10 = vor.u32 %v2590_v58, %v2587_v57  ;;  %v2651_v58 = vshll.u32 %v7481_v45, 16 }
  0xb7   : > { %7107 = vmatprep.mubr.bf16.mxu1 %v3184_v4  ;;  %v7466_v4 = vld [vmem:[%s7645_s16 + $0x48] sm:$0xff]   ;;  %v2605_v19 = vrot.slane %v2603_v61, 1 }
  0xb8   : > { %v3197_v17 = vrot.slane %v7466_v4, 2  ;;  %v7489_v4 = vld [vmem:[%s7645_s16 + $0x90] sm:$0xff]  }
  0xba   : > { %v3198_v32 = vsel %vm3181_vm3, %v3195_v0, %v3197_v17  ;;  %v3200_v35 = vsel %vm3181_vm3, %v3197_v17, %v3199_v21 }
  0xbc   : > { %7056 = vmatmul.mubr.bf16.vlgmr.msra.gmra.mxu0 %v2538_v15  ;;  %v7491_v15 = vld [vmem:[%s9117_s1 + $0x188] sm:$0xff]  }
  0xbd   : > { %7059 = vmatprep.mubr.bf16.mxu0 %v2547_v18  ;;  %7144 = vmatpush3.bf16.msra.mxu0 %v7889_v22  ;;  %v2578_v22 = vrot.slane %v2576_v25, 1  ;;  %v2614_v25 = vrot.slane %v2612_v13, 1 }
  0xbe   : > { %7145 = vmatprep.subr.bf16.mxu0 %v7472_v20  ;;  %7108 = vmatmul.mubr.bf16.vlgmr.msra.gmra.mxu1 %v3186_v23  ;;  %v7473_v23 = vld [vmem:[%s7645_s16 + $0x70] sm:$0xff]  }
  0xbf   : > { %7111 = vmatprep.mubr.bf16.mxu1 %v3188_v29  ;;  %7196 = vmatpush3.bf16.msra.mxu1 %v7478_v55  ;;  %v2582_v54 = vor.u32 %v2581_v44, %v2578_v22  ;;  %v2597_v55 = vshll.u32 %v7463_v36, 16  ;;  %v2621_v29 = vshrl.u32 %v7468_v16, 16  ;;  %v7503_v36 = vld [vmem:[%s9117_s1 + $0x1c0] sm:$0xff]   ;;  %v2618_v37 = vor.u32 %v2617_v26, %v2614_v25 }
  0xc0   : > { %7197 = vmatprep.subr.bf16.mxu1 %v7480_v30  ;;  %v2630_v22 = vshrl.u32 %v7473_v23, 16  ;;  %v2633_v38 = vshll.u32 %v7473_v23, 16  ;;  %v3203_v44 = vrot.slane %v7476_v33, 2 }
  0xc1   : > { %7146 = vmatpush3.bf16.msra.mxu0 %v7472_v20  ;;  %v2583_v2 = vsel %vm2512_vm2, %v2573_v50, %v2582_v54  ;;  %v2599_v3 = vrot.slane %v2597_v55, 2  ;;  %v2592_v18 = vsel %vm2512_vm2, %v2582_v54, %v2591_v10  ;;  %v2608_v20 = vrot.slane %v2606_v8, 2  ;;  %v8014_v8 = vld [vmem:[%s9117_s1 + $0x238] sm:$0xff]  }
  0xc2   : > { %7147 = vmatprep.subr.bf16.mxu0 %v7475_v34  ;;  %v2623_v39 = vrot.slane %v2621_v29, 1  ;;  %v2632_v47 = vrot.slane %v2630_v22, 1  ;;  %v2635_v48 = vrot.slane %v2633_v38, 2  ;;  %v3204_v54 = vsel %vm3181_vm3, %v3201_v41, %v3203_v44  ;;  %v8025_v29 = vld [vmem:[%s7645_s16 + $0x90] sm:$0xff]  }
  0xc3   : > { %7198 = vmatpush3.bf16.msra.mxu1 %v7480_v30  ;;  %v2600_v12 = vor.u32 %v2599_v3, %v2596_v60  ;;  %v2624_v30 = vshll.u32 %v7468_v16, 16  ;;  %v2648_v55 = vshrl.u32 %v7481_v45, 16  ;;  %v7482_v60 = vld [vmem:[%s7645_s16 + $0x88] sm:$0xff]   ;;  %v2653_v3 = vrot.slane %v2651_v58, 2 }
  0xc4   : > { %7060 = vmatmul.mubr.bf16.gmra.mxu0 %v2556_v40  ;;  %7199 = vmatprep.subr.bf16.mxu1 %v7486_v46  ;;  %v2636_v57 = vor.u32 %v2635_v48, %v2632_v47  ;;  %v2660_v6 = vshll.u32 %v7482_v60, 16  ;;  %v2669_v16 = vshll.u32 %v7489_v4, 16 }
  0xc5   : > { %7063 = vmatprep.mubr.bf16.mxu0 %v2565_v43  ;;  %7148 = vmatpush3.bf16.msra.mxu0 %v7475_v34  ;;  %v2601_v24 = vsel %vm2512_vm2, %v2591_v10, %v2600_v12  ;;  %v2609_v34 = vor.u32 %v2608_v20, %v2605_v19  ;;  %v2626_v40 = vrot.slane %v2624_v30, 2  ;;  %v2650_v0 = vrot.slane %v2648_v55, 1  ;;  %v7490_v10 = vld [vmem:[%s7645_s16 + $0x98] ss:$0 sps:$4 sm:$0x33]  }
  0xc6   : > { %7149 = vmatprep.subr.bf16.mxu0 %v7479_v42  ;;  %7112 = vmatmul.mubr.bf16.gmra.mxu1 %v3190_v49  ;;  %v7477_v49 = vld [vmem:[%s7645_s16 + $0x68] sm:$0xff]   ;;  %v2662_v20 = vrot.slane %v2660_v6, 2  ;;  %v2671_v25 = vrot.slane %v2669_v16, 2  ;;  %v2675_v26 = vshrl.u32 %v7490_v10, 16 }
  0xc7   : > { %7115 = vmatprep.mubr.bf16.mxu1 %v3192_v51  ;;  %7200 = vmatpush3.bf16.msra.mxu1 %v7486_v46  ;;  %v2610_v43 = vsel %vm2512_vm2, %v2600_v12, %v2609_v34  ;;  %v2619_v46 = vsel %vm2512_vm2, %v2609_v34, %v2618_v37  ;;  %v2627_v50 = vor.u32 %v2626_v40, %v2623_v39  ;;  %v3205_v59 = vrot.slane %v7477_v49, 2  ;;  %v7501_v55 = vld [vmem:[%s7645_s16 + $0x98] ss:$0 sps:$4 sm:$0x33]  }
  0xc8   : > { %7201 = vmatprep.subr.bf16.mxu1 %v7488_v53  ;;  %v3202_v51 = vsel %vm3181_vm3, %v3199_v21, %v3201_v41  ;;  %v2654_v14 = vor.u32 %v2653_v3, %v2650_v0  ;;  %v2677_v22 = vrot.slane %v2675_v26, 1  ;;  %v7511_v0 = vld [vmem:[%s7645_s16 + $0x28] sm:$0xff]   ;;  %v3217_v16 = vrot.slane %v7501_v55, 2 }
  0xc9   : > { %7150 = vmatpush3.bf16.msra.mxu0 %v7479_v42  ;;  %v7474_v42 = vld [vmem:[%s7645_s16 + $0x78] sm:$0xff]   ;;  %v2628_v61 = vsel %vm2512_vm2, %v2618_v37, %v2627_v50 }
  0xca   : > { %7151 = vmatprep.subr.bf16.mxu0 %v7483_v56  ;;  %v2639_v52 = vshrl.u32 %v7474_v42, 16 }
  0xcb   : > { %7202 = vmatpush3.bf16.msra.mxu1 %v7488_v53  ;;  %v2642_v53 = vshll.u32 %v7474_v42, 16 }
  0xcc   : > { %7064 = vmatmul.mubr.bf16.gmra.mxu0 %v2574_v63  ;;  %7203 = vmatprep.subr.bf16.mxu1 %v7494_v5  ;;  %v2641_v62 = vrot.slane %v2639_v52, 1 }
  0xcd   : > { %7067 = vmatprep.mubr.bf16.mxu0 %v2583_v2  ;;  %7152 = vmatpush3.bf16.msra.mxu0 %v7483_v56  ;;  %v7484_v56 = vld [vmem:[%s7645_s16 + $0x70] sm:$0xff]   ;;  %v2644_v63 = vrot.slane %v2642_v53, 2  ;;  %v2637_v2 = vsel %vm2512_vm2, %v2627_v50, %v2636_v57 }
  0xce   : > { %7153 = vmatprep.subr.bf16.mxu0 %v7487_v1  ;;  %7116 = vmatmul.mubr.bf16.gmra.mxu1 %v3194_v7  ;;  %v7485_v7 = vld [vmem:[%s7645_s16 + $0x78] sm:$0xff]  }
  0xcf   : > { %7119 = vmatprep.mubr.bf16.mxu1 %v3196_v11  ;;  %7204 = vmatpush3.bf16.msra.mxu1 %v7494_v5  ;;  %v2657_v5 = vshrl.u32 %v7482_v60, 16  ;;  %v7492_v11 = vld [vmem:[%s7645_s16 + $0x80] sm:$0xff]   ;;  %v2645_v12 = vor.u32 %v2644_v63, %v2641_v62 }
  0xd0   : > { %7205 = vmatprep.subr.bf16.mxu1 %v7496_v9  ;;  %v3211_v21 = vrot.slane %v7492_v11, 2  ;;  %v8048_v62 = vld [vmem:[%s7645_s16 + $0x20] sm:$0xff]  }
  0xd1   : > { %7154 = vmatpush3.bf16.msra.mxu0 %v7487_v1  ;;  %v3207_v1 = vrot.slane %v7484_v56, 2  ;;  %v2659_v17 = vrot.slane %v2657_v5, 1  ;;  %v2646_v19 = vsel %vm2512_vm2, %v2636_v57, %v2645_v12  ;;  %v2655_v23 = vsel %vm2512_vm2, %v2645_v12, %v2654_v14  ;;  %v7508_v57 = vld [vmem:[%s7645_s16 + $0x20] sm:$0xff]  }
  0xd2   : > { %7155 = vmatprep.subr.bf16.mxu0 %v7491_v15  ;;  %v4271_v12 = vshrl.u32 %v7508_v57, 16 }
  0xd3   : > { %7206 = vmatpush3.bf16.msra.mxu1 %v7496_v9  ;;  %v3206_v9 = vsel %vm3181_vm3, %v3203_v44, %v3205_v59  ;;  %v3208_v13 = vsel %vm3181_vm3, %v3205_v59, %v3207_v1  ;;  %v2663_v33 = vor.u32 %v2662_v20, %v2659_v17  ;;  %v3215_v44 = vrot.slane %v8025_v29, 2 }
  0xd4   : > { %7068 = vmatmul.mubr.bf16.gmra.mxu0 %v2592_v18  ;;  %7207 = vmatprep.subr.bf16.mxu1 %v7502_v28  ;;  %v3209_v18 = vrot.slane %v7485_v7, 2  ;;  %v4280_v17 = vshrl.u32 %v7511_v0, 16 }
  0xd5   : > { %7071 = vmatprep.mubr.bf16.mxu0 %v2601_v24  ;;  %7156 = vmatpush3.bf16.msra.mxu0 %v7491_v15  ;;  %v2666_v15 = vshrl.u32 %v7489_v4, 16  ;;  %v2664_v47 = vsel %vm2512_vm2, %v2654_v14, %v2663_v33 }
  0xd6   : > { %7157 = vmatprep.subr.bf16.mxu0 %v7495_v27  ;;  %7120 = vmatmul.mubr.bf16.gmra.mxu1 %v3198_v32  ;;  %v3210_v31 = vsel %vm3181_vm3, %v3207_v1, %v3209_v18  ;;  %v7506_v32 = vld [vmem:[%s7645_s16 + $0x10] sm:$0xfc]   ;;  %v3212_v34 = vsel %vm3181_vm3, %v3209_v18, %v3211_v21  ;;  %v4283_v18 = vshll.u32 %v7511_v0, 16 }
  0xd7   : > { %7123 = vmatprep.mubr.bf16.mxu1 %v3200_v35  ;;  %7208 = vmatpush3.bf16.msra.mxu1 %v7502_v28  ;;  %v2668_v24 = vrot.slane %v2666_v15, 1  ;;  %v2678_v28 = vshll.u32 %v7490_v10, 16  ;;  %v7507_v35 = vld [vmem:[%s7645_s16 + $0x18] sm:$0xff]   ;;  %v4254_v45 = vshrl.u32 %v7506_v32, 16 }
  0xd8   : > { %7209 = vmatprep.subr.bf16.mxu1 %v7503_v36  ;;  %v4262_v49 = vshrl.u32 %v7507_v35, 16  ;;  %v4265_v50 = vshll.u32 %v7507_v35, 16  ;;  %v4282_v35 = vrot.slane %v4280_v17, 2 }
  0xd9   : > { %7158 = vmatpush3.bf16.msra.mxu0 %v7495_v27  ;;  %v7493_v27 = vld [vmem:[%s7645_s16 + $0x88] sm:$0xff]   ;;  %v2672_v37 = vor.u32 %v2671_v25, %v2668_v24  ;;  %v2680_v39 = vrot.slane %v2678_v28, 2 }
  0xda   : > { %7247 = vmatprep.subr.bf16.mxu0 %v8014_v8  ;;  %v3213_v40 = vrot.slane %v7493_v27, 2  ;;  %v4264_v4 = vrot.slane %v4262_v49, 2  ;;  %v4267_v5 = vrot.slane %v4265_v50, 3  ;;  %v3720_v27 = vrot.slane %v8048_v62, 2  ;;  %v8063_v28 = vld [vmem:[%s7645_s16 + $0x28] sm:$0xff]   ;;  %v7526_v62 = vld [vmem:[%s9117_s1 + $0x230] sm:$0xff]  }
  0xdb   : > { %7210 = vmatpush3.bf16.msra.mxu1 %v7503_v36  ;;  %v2673_v53 = vsel %vm2512_vm2, %v2663_v33, %v2672_v37  ;;  %v2681_v60 = vor.u32 %v2680_v39, %v2677_v22  ;;  %v7515_v39 = vld [vmem:[%s7645_s16 + $0x38] sm:$0xff]  }
  0xdc   : > { %7072 = vmatmul.mubr.bf16.gmra.mxu0 %v2610_v43  ;;  %v7497_v43 = vld [vmem:[%s7645_s16 + $0x10] sm:$0xfc]   ;;  %v3216_v63 = vsel %vm3181_vm3, %v3213_v40, %v3215_v44  ;;  %v4298_v55 = vshrl.u32 %v7515_v39, 16 }
  0xdd   : > { %7075 = vmatprep.mubr.bf16.mxu0 %v2619_v46  ;;  %v4257_v46 = vshll.u32 %v7506_v32, 16 }
  0xde   : > { %7124 = vmatmul.mubr.bf16.gmra.mxu1 %v3202_v51 }
  0xdf   : > { %7127 = vmatprep.mubr.bf16.mxu1 %v3204_v54  ;;  %v8040_v54 = vld [vmem:[%s7645_s16 + $0x18] sm:$0xff]   ;;  %v4259_v3 = vrot.slane %v4257_v46, 3  ;;  %v7505_v46 = vld [vmem:[%s7645_s16 + $0x30] sm:$0xff]  }
  0xe0   : > { %v3718_v10 = vrot.slane %v8040_v54, 2  ;;  %v3724_v0 = vrot.slane %v7505_v46, 2 }
  0xe4   : > { %7076 = vmatmul.mubr.bf16.gmra.mxu0 %v2628_v61  ;;  %v3214_v61 = vsel %vm3181_vm3, %v3211_v21, %v3213_v40 }
  0xe5   : > { %7079 = vmatprep.mubr.bf16.mxu0 %v2637_v2  ;;  %v4256_v2 = vrot.slane %v4254_v45, 2 }
  0xe6   : > { %7128 = vmatmul.mubr.bf16.gmra.mxu1 %v3206_v9  ;;  %v3717_v9 = vrot.slane %v7497_v43, 2  ;;  %v3722_v43 = vrot.slane %v8063_v28, 2 }
  0xe7   : > { %7131 = vmatprep.mubr.bf16.mxu1 %v3208_v13  ;;  %v4274_v13 = vshll.u32 %v7508_v57, 16  ;;  %v4260_v21 = vor.u32 %v4259_v3, %v4256_v2 }
  0xe8   : > { %v3719_v26 = vsel %vm3181_vm3, %v3717_v9, %v3718_v10  ;;  %v3725_v28 = vsel %vm3181_vm3, %v3722_v43, %v3724_v0 }
  0xec   : > { %v6849_v30 = vpop.f32.mrf.mxu0  ;;  %7080 = vmatmul.mubr.bf16.gmra.mxu0 %v2646_v19  ;;  %v2682_v19 = vsel %vm2512_vm2, %v2672_v37, %v2681_v60  ;;  %v3723_v60 = vsel %vm3181_vm3, %v3720_v27, %v3722_v43 }
  0xed   : > { %7083 = vmatprep.mubr.bf16.mxu0 %v2655_v23  ;;  %v6901_v38 = vpop.f32.mrf.mxu1  ;;  %v4268_v23 = vor.u32 %v4267_v5, %v4264_v4  ;;  %v8092_v5 = vld [vmem:[%s7645_s16 + $0x40] sm:$0xff]  }
  0xee   : > { %v468_v36 = vpop.f32.mrf.mxu0  ;;  %7132 = vmatmul.mubr.bf16.gmra.mxu1 %v3210_v31  ;;  %v8031_v42 = vadd.f32 %v6901_v38, %v6849_v30  ;;  %v4273_v30 = vrot.slane %v4271_v12, 2  ;;  %v4276_v31 = vrot.slane %v4274_v13, 3  ;;  %v4285_v38 = vrot.slane %v4283_v18, 3 }
  0xef   : > { %7135 = vmatprep.mubr.bf16.mxu1 %v3212_v34  ;;  %v1043_v48 = vpop.f32.mrf.mxu1  ;;  %v3218_v34 = vsel %vm3181_vm3, %v3215_v44, %v3217_v16  ;;  %v4269_v22 = vsel %vm4252_vm4, %v4260_v21, %v4268_v23  ;;  %v4300_v13 = vrot.slane %v4298_v55, 2 }
  0xf0   : > { %v6850_v41 = vpop.f32.mrf.mxu0  ;;  %v8036_v52 = vadd.f32 %v1043_v48, %v468_v36  ;;  %v7512_v36 = vld [vmem:[%s7645_s16 + $0x30] sm:$0xff]   ;;  %v4277_v44 = vor.u32 %v4276_v31, %v4273_v30  ;;  %v4286_v54 = vor.u32 %v4285_v38, %v4282_v35  ;;  %v8103_v30 = vld [vmem:[%s7645_s16 + $0x48] sm:$0xff]  }
  0xf1   : > { %v6902_v56 = vpop.f32.mrf.mxu1  ;;  %v4289_v49 = vshrl.u32 %v7512_v36, 16  ;;  %v4292_v50 = vshll.u32 %v7512_v36, 16 }
  0xf2   : > { %v471_v51 = vpop.f32.mrf.mxu0  ;;  %v8044_v59 = vadd.f32 %v6902_v56, %v6850_v41  ;;  %v4301_v56 = vshll.u32 %v7515_v39, 16  ;;  %v4278_v4 = vsel %vm4252_vm4, %v4268_v23, %v4277_v44  ;;  %v4287_v12 = vsel %vm4252_vm4, %v4277_v44, %v4286_v54  ;;  %v7520_v44 = vld [vmem:[%s7645_s16 + $0x50] sm:$0xff]  }
  0xf3   : > { %v1046_v1 = vpop.f32.mrf.mxu1  ;;  %v4294_v9 = vrot.slane %v4292_v50, 3 }
  0xf4   : > { %v6853_v58 = vpop.f32.mrf.mxu0  ;;  %7084 = vmatmul.mubr.bf16.gmra.mxu0 %v2664_v47  ;;  %v8052_v7 = vadd.f32 %v1046_v1, %v471_v51  ;;  %v3721_v51 = vsel %vm3181_vm3, %v3718_v10, %v3720_v27  ;;  %v7516_v1 = vld [vmem:[%s7645_s16 + $0x40] sm:$0xff]   ;;  %v7519_v10 = vld [vmem:[%s7645_s16 + $0x48] sm:$0xff]  }
  0xf5   : > { %7087 = vmatprep.mubr.bf16.mxu0 %v2673_v53  ;;  %v6905_v11 = vpop.f32.mrf.mxu1  ;;  %v4307_v21 = vshrl.u32 %v7516_v1, 16  ;;  %v4310_v23 = vshll.u32 %v7516_v1, 16  ;;  %v4328_v1 = vshll.u32 %v7520_v44, 16 }
  0xf6   : > { %v484_v6 = vpop.f32.mrf.mxu0  ;;  %7136 = vmatmul.mubr.bf16.gmra.mxu1 %v3214_v61  ;;  %v8055_v15 = vadd.f32 %v6905_v11, %v6853_v58  ;;  %v8082_v61 = vld [vmem:[%s7645_s16 + $0x38] sm:$0xff]  }
  0xf7   : > { %7139 = vmatprep.mubr.bf16.mxu1 %v3216_v63  ;;  %v1059_v20 = vpop.f32.mrf.mxu1  ;;  %v3726_v18 = vrot.slane %v8082_v61, 2  ;;  %v4309_v39 = vrot.slane %v4307_v21, 2 }
  0xf8   : > { %v6854_v14 = vpop.f32.mrf.mxu0  ;;  %v8058_v25 = vadd.f32 %v1059_v20, %v484_v6  ;;  %v4291_v6 = vrot.slane %v4289_v49, 2 }
  0xf9   : > { %v6906_v29 = vpop.f32.mrf.mxu1  ;;  %v3727_v36 = vsel %vm3181_vm3, %v3724_v0, %v3726_v18  ;;  %v4325_v0 = vshrl.u32 %v7520_v44, 16  ;;  %v7518_v44 = vld [vmem:[%s7645_s16 + $0x60] sm:$0xff]  }
  0xfa   : > { %v487_v24 = vpop.f32.mrf.mxu0  ;;  %v8065_v33 = vadd.f32 %v6906_v29, %v6854_v14  ;;  %v4303_v14 = vrot.slane %v4301_v56, 3  ;;  %v4295_v27 = vor.u32 %v4294_v9, %v4291_v6  ;;  %v8125_v6 = vld [vmem:[%s7645_s16 + $0x58] sm:$0xff]  }
  0xfb   : > { %v1062_v37 = vpop.f32.mrf.mxu1  ;;  %v4327_v21 = vrot.slane %v4325_v0, 2 }
  0xfc   : > { %v6857_v32 = vpop.f32.mrf.mxu0  ;;  %7088 = vmatmul.mubr.bf16.gmra.mxu0 %v2682_v19  ;;  %v8071_v41 = vadd.f32 %v1062_v37, %v487_v24  ;;  %v7529_v19 = vld [vmem:[%s9117_s1 + $0x228] sm:$0xff]   ;;  %v4304_v31 = vor.u32 %v4303_v14, %v4300_v13  ;;  %v3728_v37 = vrot.slane %v8092_v5, 2  ;;  %v4296_v46 = vsel %vm4252_vm4, %v4286_v54, %v4295_v27  ;;  %v7535_v54 = vld [vmem:[%s9117_s1 + $0x218] sm:$0xff]   ;;  %v7514_v5 = vld [vmem:[%s7645_s16 + $0x50] sm:$0xff]  }
  0xfd   : > { %7159 = vmatprep.mubr.bf16.mxu0 %v3719_v26  ;;  %v6909_v45 = vpop.f32.mrf.mxu1 }
  0xfe   : > { %v500_v40 = vpop.f32.mrf.mxu0  ;;  %7140 = vmatmul.mubr.bf16.gmra.mxu1 %v3218_v34  ;;  %v8075_v48 = vadd.f32 %v6909_v45, %v6857_v32  ;;  %v4319_v32 = vshll.u32 %v7519_v10, 16  ;;  %v4305_v50 = vsel %vm4252_vm4, %v4295_v27, %v4304_v31  ;;  %v3732_v27 = vrot.slane %v7514_v5, 2 }
  0xff   : > { %7211 = vmatprep.mubr.bf16.mxu1 %v4269_v22  ;;  %v1075_v53 = vpop.f32.mrf.mxu1  ;;  %v7532_v22 = vld [vmem:[%s9117_s1 + $0x220] sm:$0xff]   ;;  %v3736_v5 = vrot.slane %v7518_v44, 2 }
 0x100   : > { %v6858_v47 = vpop.f32.mrf.mxu0  ;;  %v8078_v58 = vadd.f32 %v1075_v53, %v500_v40  ;;  %v4312_v40 = vrot.slane %v4310_v23, 3  ;;  %v7524_v53 = vld [vmem:[%s7645_s16 + $0x58] sm:$0xff]   ;;  %v4330_v23 = vrot.slane %v4328_v1, 3  ;;  %v7537_v44 = vld [vmem:[%s7645_s16 + $0x80] sm:$0xff]  }
 0x101   : > { %v6910_v63 = vpop.f32.mrf.mxu1 }
 0x102   : > { %v503_v57 = vpop.f32.mrf.mxu0  ;;  %v8088_v3 = vadd.f32 %v6910_v63, %v6858_v47  ;;  %v4313_v63 = vor.u32 %v4312_v40, %v4309_v39  ;;  %v4331_v39 = vor.u32 %v4330_v23, %v4327_v21 }
 0x103   : > { %v1078_v11 = vpop.f32.mrf.mxu1 }
 0x104   : > { %v6861_v2 = vpop.f32.mrf.mxu0  ;;  %7160 = vmatmul.mubr.bf16.vlgmr.msra.gmra.mxu0 %v3721_v51  ;;  %v1231_v17 = vadd.f32 %v1078_v11, %v503_v57  ;;  %v4321_v51 = vrot.slane %v4319_v32, 3  ;;  %v3730_v57 = vrot.slane %v8103_v30, 2  ;;  %v4337_v11 = vshll.u32 %v7524_v53, 16  ;;  %v7530_v30 = vld [vmem:[%s7645_s16 + $0x68] sm:$0xff]  }
 0x105   : > { %7163 = vmatprep.mubr.bf16.mxu0 %v3723_v60  ;;  %7248 = vmatpush3.bf16.msra.mxu0 %v8014_v8  ;;  %v6913_v20 = vpop.f32.mrf.mxu1  ;;  %v4316_v8 = vshrl.u32 %v7519_v10, 16  ;;  %v4334_v10 = vshrl.u32 %v7524_v53, 16 }
 0x106   : > { %v516_v16 = vpop.f32.mrf.mxu0  ;;  %7249 = vmatprep.subr.bf16.mxu0 %v7526_v62  ;;  %7212 = vmatmul.mubr.bf16.vlgmr.msra.gmra.mxu1 %v4278_v4  ;;  %1267 = vst [vmem:[#allocation2 + $0x48] sm:$0xff] %v1231_v17  ;;  %v1236_v26 = vadd.f32 %v6913_v20, %v6861_v2  ;;  %v3729_v2 = vsel %vm3181_vm3, %v3726_v18, %v3728_v37 }
 0x107   : > { %7215 = vmatprep.mubr.bf16.mxu1 %v4287_v12  ;;  %v1091_v29 = vpop.f32.mrf.mxu1  ;;  %v4318_v47 = vrot.slane %v4316_v8, 2  ;;  %v3731_v14 = vsel %vm3181_vm3, %v3728_v37, %v3730_v57  ;;  %v4314_v20 = vsel %vm4252_vm4, %v4304_v31, %v4313_v63  ;;  %v7541_v31 = vld [vmem:[%s9117_s1 + $0x208] sm:$0xff]  }
 0x108   : > { %v6862_v24 = vpop.f32.mrf.mxu0  ;;  %1272 = vst [vmem:[#allocation2 + $0x70] sm:$0xff] %v1236_v26  ;;  %v8105_v35 = vadd.f32 %v1091_v29, %v516_v16  ;;  %v7538_v16 = vld [vmem:[%s9117_s1 + $0x210] sm:$0xff]   ;;  %v4339_v29 = vrot.slane %v4337_v11, 3 }
 0x109   : > { %7250 = vmatpush3.bf16.msra.mxu0 %v7526_v62  ;;  %v6914_v38 = vpop.f32.mrf.mxu1  ;;  %v4322_v9 = vor.u32 %v4321_v51, %v4318_v47  ;;  %v4355_v51 = vshll.u32 %v7530_v30, 16 }
 0x10a   : > { %v519_v34 = vpop.f32.mrf.mxu0  ;;  %7251 = vmatprep.subr.bf16.mxu0 %v7529_v19  ;;  %v8112_v45 = vadd.f32 %v6914_v38, %v6862_v24  ;;  %v7525_v24 = vld [vmem:[%s7645_s16 + $0x60] sm:$0xff]  }
 0x10b   : > { %v1094_v49 = vpop.f32.mrf.mxu1  ;;  %v4323_v8 = vsel %vm4252_vm4, %v4313_v63, %v4322_v9  ;;  %v4343_v40 = vshrl.u32 %v7525_v24, 16  ;;  %v4332_v63 = vsel %vm4252_vm4, %v4322_v9, %v4331_v39  ;;  %v4357_v11 = vrot.slane %v4355_v51, 3 }
 0x10c   : > { %v6865_v43 = vpop.f32.mrf.mxu0  ;;  %7164 = vmatmul.mubr.bf16.gmra.mxu0 %v3725_v28  ;;  %v1235_v56 = vadd.f32 %v1094_v49, %v519_v34  ;;  %v4336_v28 = vrot.slane %v4334_v10, 2 }
 0x10d   : > { %7167 = vmatprep.mubr.bf16.mxu0 %v3727_v36  ;;  %7252 = vmatpush3.bf16.msra.mxu0 %v7529_v19  ;;  %v6917_v60 = vpop.f32.mrf.mxu1  ;;  %v3734_v36 = vrot.slane %v8125_v6, 2  ;;  %v4345_v0 = vrot.slane %v4343_v40, 2 }
 0x10e   : > { %v532_v55 = vpop.f32.mrf.mxu0  ;;  %7253 = vmatprep.subr.bf16.mxu0 %v7532_v22  ;;  %7216 = vmatmul.mubr.bf16.gmra.mxu1 %v4296_v46  ;;  %1271 = vst [vmem:[#allocation2 + $0x68] sm:$0xff] %v1235_v56  ;;  %v1240_v62 = vadd.f32 %v6917_v60, %v6865_v43  ;;  %v4346_v43 = vshll.u32 %v7525_v24, 16  ;;  %v3733_v46 = vsel %vm3181_vm3, %v3730_v57, %v3732_v27  ;;  %v7544_v57 = vld [vmem:[%s9117_s1 + $0x200] sm:$0xff]  }
 0x10f   : > { %7219 = vmatprep.mubr.bf16.mxu1 %v4305_v50  ;;  %v1107_v4 = vpop.f32.mrf.mxu1  ;;  %v4340_v49 = vor.u32 %v4339_v29, %v4336_v28  ;;  %v4352_v50 = vshrl.u32 %v7530_v30, 16  ;;  %v3735_v56 = vsel %vm3181_vm3, %v3732_v27, %v3734_v36 }
 0x110   : > { %v6866_v61 = vpop.f32.mrf.mxu0  ;;  %1276 = vst [vmem:[#allocation2 + $0x90] sm:$0xff] %v1240_v62  ;;  %v8127_v13 = vadd.f32 %v1107_v4, %v532_v55  ;;  %v4348_v1 = vrot.slane %v4346_v43, 3 }
 0x111   : > { %7254 = vmatpush3.bf16.msra.mxu0 %v7532_v22  ;;  %v6918_v17 = vpop.f32.mrf.mxu1  ;;  %v4341_v6 = vsel %vm4252_vm4, %v4331_v39, %v4340_v49  ;;  %v4354_v10 = vrot.slane %v4352_v50, 2 }
 0x112   : > { %v535_v12 = vpop.f32.mrf.mxu0  ;;  %7255 = vmatprep.subr.bf16.mxu0 %v7535_v54  ;;  %v8133_v19 = vadd.f32 %v6918_v17, %v6866_v61  ;;  %v4349_v21 = vor.u32 %v4348_v1, %v4345_v0 }
 0x113   : > { %v1110_v26 = vpop.f32.mrf.mxu1  ;;  %v4358_v28 = vor.u32 %v4357_v11, %v4354_v10  ;;  %v7528_v11 = vld [vmem:[%s7645_s16 + $0x80] sm:$0xff]  }
 0x114   : > { %v6869_v18 = vpop.f32.mrf.mxu0  ;;  %7168 = vmatmul.mubr.bf16.gmra.mxu0 %v3729_v2  ;;  %v8139_v34 = vadd.f32 %v1110_v26, %v535_v12  ;;  %v7531_v2 = vld [vmem:[%s7645_s16 + $0x70] sm:$0xff]   ;;  %v7536_v12 = vld [vmem:[%s7645_s16 + $0x78] sm:$0xff]   ;;  %v3737_v26 = vsel %vm3181_vm3, %v3734_v36, %v3736_v5  ;;  %v4350_v36 = vsel %vm4252_vm4, %v4340_v49, %v4349_v21 }
 0x115   : > { %7171 = vmatprep.mubr.bf16.mxu0 %v3731_v14  ;;  %7256 = vmatpush3.bf16.msra.mxu0 %v7535_v54  ;;  %v6921_v37 = vpop.f32.mrf.mxu1  ;;  %v8153_v54 = vld [vmem:[%s7645_s16 + $0x68] sm:$0xff]   ;;  %v4361_v23 = vshrl.u32 %v7531_v2, 16  ;;  %v4364_v24 = vshll.u32 %v7531_v2, 16  ;;  %v4370_v29 = vshrl.u32 %v7536_v12, 16  ;;  %v4373_v30 = vshll.u32 %v7536_v12, 16 }
 0x116   : > { %v548_v32 = vpop.f32.mrf.mxu0  ;;  %7257 = vmatprep.subr.bf16.mxu0 %v7538_v16  ;;  %7220 = vmatmul.mubr.bf16.gmra.mxu1 %v4314_v20  ;;  %v8145_v38 = vadd.f32 %v6921_v37, %v6869_v18  ;;  %v3738_v17 = vrot.slane %v8153_v54, 2 }
 0x117   : > { %7223 = vmatprep.mubr.bf16.mxu1 %v4323_v8  ;;  %v1123_v47 = vpop.f32.mrf.mxu1  ;;  %v7522_v8 = vld [vmem:[%s7645_s16 + $0x70] sm:$0xff]   ;;  %v4375_v54 = vrot.slane %v4373_v30, 3 }
 0x118   : > { %v6870_v22 = vpop.f32.mrf.mxu0  ;;  %v8149_v55 = vadd.f32 %v1123_v47, %v548_v32  ;;  %v3739_v37 = vsel %vm3181_vm3, %v3736_v5, %v3738_v17  ;;  %v4366_v47 = vrot.slane %v4364_v24, 3  ;;  %v3740_v51 = vrot.slane %v7522_v8, 2  ;;  %v8194_v24 = vld [vmem:[%s7645_s16 + $0x88] sm:$0xff]  }
 0x119   : > { %7258 = vmatpush3.bf16.msra.mxu0 %v7538_v16  ;;  %v6922_v60 = vpop.f32.mrf.mxu1  ;;  %v4382_v5 = vshll.u32 %v7537_v44, 16 }
 0x11a   : > { %v551_v53 = vpop.f32.mrf.mxu0  ;;  %7259 = vmatprep.subr.bf16.mxu0 %v7541_v31  ;;  %v8158_v62 = vadd.f32 %v6922_v60, %v6870_v22  ;;  %v8175_v22 = vld [vmem:[%s7645_s16 + $0x78] sm:$0xff]  }
 0x11b   : > { %v1126_v4 = vpop.f32.mrf.mxu1  ;;  %v4384_v30 = vrot.slane %v4382_v5, 3 }
 0x11c   : > { %v6873_v61 = vpop.f32.mrf.mxu0  ;;  %7172 = vmatmul.mubr.bf16.gmra.mxu0 %v3733_v46  ;;  %v8164_v16 = vadd.f32 %v1126_v4, %v551_v53  ;;  %v4363_v46 = vrot.slane %v4361_v23, 2  ;;  %v4359_v53 = vsel %vm4252_vm4, %v4349_v21, %v4358_v28  ;;  %v4379_v4 = vshrl.u32 %v7537_v44, 16 }
 0x11d   : > { %7175 = vmatprep.mubr.bf16.mxu0 %v3735_v56  ;;  %7260 = vmatpush3.bf16.msra.mxu0 %v7541_v31  ;;  %v6925_v9 = vpop.f32.mrf.mxu1  ;;  %v4372_v56 = vrot.slane %v4370_v29, 2 }
 0x11e   : > { %v564_v14 = vpop.f32.mrf.mxu0  ;;  %7261 = vmatprep.subr.bf16.mxu0 %v7544_v57  ;;  %7224 = vmatmul.mubr.bf16.gmra.mxu1 %v4332_v63  ;;  %v8167_v20 = vadd.f32 %v6925_v9, %v6873_v61  ;;  %v3742_v63 = vrot.slane %v8175_v22, 2  ;;  %v4367_v2 = vor.u32 %v4366_v47, %v4363_v46  ;;  %v4381_v29 = vrot.slane %v4379_v4, 2  ;;  %v7548_v46 = vld [vmem:[%s7645_s16 + $0x98] sm:$0xff]  }
 0x11f   : > { %7227 = vmatprep.mubr.bf16.mxu1 %v4341_v6  ;;  %v1139_v27 = vpop.f32.mrf.mxu1  ;;  %v3741_v6 = vsel %vm3181_vm3, %v3738_v17, %v3740_v51  ;;  %v4376_v12 = vor.u32 %v4375_v54, %v4372_v56  ;;  %v3744_v22 = vrot.slane %v7528_v11, 2  ;;  %v4406_v4 = vshrl.u32 %v7548_v46, 16  ;;  %v8217_v11 = vld [vmem:[%s7645_s16 + $0x98] sm:$0xff]  }
 0x120   : > { %v6874_v18 = vpop.f32.mrf.mxu0  ;;  %v8171_v31 = vadd.f32 %v1139_v27, %v564_v14  ;;  %v3743_v23 = vsel %vm3181_vm3, %v3740_v51, %v3742_v63  ;;  %v4368_v17 = vsel %vm4252_vm4, %v4358_v28, %v4367_v2  ;;  %v7534_v28 = vld [vmem:[%s7645_s16 + $0x90] sm:$0xff]   ;;  %v4385_v54 = vor.u32 %v4384_v30, %v4381_v29 }
 0x121   : > { %7262 = vmatpush3.bf16.msra.mxu0 %v7544_v57  ;;  %v6926_v39 = vpop.f32.mrf.mxu1  ;;  %v7542_v57 = vld [vmem:[%s7645_s16 + $0x88] sm:$0xff]   ;;  %v4409_v5 = vshll.u32 %v7548_v46, 16 }
 0x122   : > { %v567_v32 = vpop.f32.mrf.mxu0  ;;  %v8177_v43 = vadd.f32 %v6926_v39, %v6874_v18  ;;  %v4388_v14 = vshrl.u32 %v7542_v57, 16  ;;  %v4391_v9 = vshll.u32 %v7542_v57, 16  ;;  %v4377_v39 = vsel %vm4252_vm4, %v4367_v2, %v4376_v12 }
 0x123   : > { %v1142_v50 = vpop.f32.mrf.mxu1 }
 0x124   : > { %v6877_v40 = vpop.f32.mrf.mxu0  ;;  %7176 = vmatmul.mubr.bf16.gmra.mxu0 %v3737_v26  ;;  %v8183_v61 = vadd.f32 %v1142_v50, %v567_v32  ;;  %v7543_v32 = vld [vmem:[%s7645_s16 + $0x90] sm:$0xff]   ;;  %v3746_v50 = vrot.slane %v8194_v24, 2 }
 0x125   : > { %7179 = vmatprep.mubr.bf16.mxu0 %v3739_v37  ;;  %v6929_v0 = vpop.f32.mrf.mxu1  ;;  %v4397_v57 = vshrl.u32 %v7543_v32, 16 }
 0x126   : > { %v580_v60 = vpop.f32.mrf.mxu0  ;;  %7228 = vmatmul.mubr.bf16.gmra.mxu1 %v4350_v36  ;;  %v8186_v1 = vadd.f32 %v6929_v0, %v6877_v40  ;;  %v4390_v40 = vrot.slane %v4388_v14, 2  ;;  %v4393_v36 = vrot.slane %v4391_v9, 3  ;;  %v3745_v0 = vsel %vm3181_vm3, %v3742_v63, %v3744_v22 }
 0x127   : > { %7231 = vmatprep.mubr.bf16.mxu1 %v4359_v53  ;;  %v1155_v10 = vpop.f32.mrf.mxu1  ;;  %v3748_v9 = vrot.slane %v7534_v28, 2  ;;  %v4386_v63 = vsel %vm4252_vm4, %v4376_v12, %v4385_v54  ;;  %v4399_v24 = vrot.slane %v4397_v57, 2 }
 0x128   : > { %v6878_v49 = vpop.f32.mrf.mxu0  ;;  %v8190_v21 = vadd.f32 %v1155_v10, %v580_v60  ;;  %v4400_v60 = vshll.u32 %v7543_v32, 16  ;;  %v4394_v2 = vor.u32 %v4393_v36, %v4390_v40  ;;  %v3747_v10 = vsel %vm3181_vm3, %v3744_v22, %v3746_v50 }
 0x129   : > { %v6930_v26 = vpop.f32.mrf.mxu1  ;;  %v4408_v32 = vrot.slane %v4406_v4, 2 }
 0x12a   : > { %v583_v18 = vpop.f32.mrf.mxu0  ;;  %v8196_v8 = vadd.f32 %v6930_v26, %v6878_v49  ;;  %v4402_v26 = vrot.slane %v4400_v60, 3  ;;  %v4395_v30 = vsel %vm4252_vm4, %v4385_v54, %v4394_v2  ;;  %v3749_v54 = vsel %vm3181_vm3, %v3746_v50, %v3748_v9  ;;  %v7540_v60 = vld [vmem:[%s7645_s16 + $0xa0] ss:$0 sps:$4 sm:$0x33]  }
 0x12b   : > { %v1158_v37 = vpop.f32.mrf.mxu1 }
 0x12c   : > { %v6881_v27 = vpop.f32.mrf.mxu0  ;;  %7180 = vmatmul.mubr.bf16.gmra.mxu0 %v3741_v6  ;;  %v8204_v44 = vadd.f32 %v1158_v37, %v583_v18  ;;  %v4411_v37 = vrot.slane %v4409_v5, 3  ;;  %v4403_v46 = vor.u32 %v4402_v26, %v4399_v24  ;;  %v7545_v5 = vld [vmem:[%s7645_s16 + $0x10] sm:$0xf8]  }
 0x12d   : > { %7183 = vmatprep.mubr.bf16.mxu0 %v3743_v23  ;;  %v6933_v51 = vpop.f32.mrf.mxu1 }
 0x12e   : > { %v8202_v47 = vpop.f32.mrf.mxu0  ;;  %7232 = vmatmul.mubr.bf16.gmra.mxu1 %v4368_v17  ;;  %v8208_v56 = vadd.f32 %v6933_v51, %v6881_v27  ;;  %v7549_v27 = vld [vmem:[%s7645_s16 + $0xa0] ss:$0 sps:$4 sm:$0x77]  }
 0x12f   : > { %7235 = vmatprep.mubr.bf16.mxu1 %v4377_v39  ;;  %v8211_v49 = vpop.f32.mrf.mxu1  ;;  %v3750_v39 = vrot.slane %v8217_v11, 2  ;;  %v4415_v51 = vshrl.u32 %v7549_v27, 16  ;;  %v4418_v28 = vshll.u32 %v7549_v27, 16 }
 0x130   : > { %v6882_v53 = vpop.f32.mrf.mxu0 }
 0x131   : > { %v6934_v14 = vpop.f32.mrf.mxu1  ;;  %v3751_v4 = vsel %vm3181_vm3, %v3748_v9, %v3750_v39  ;;  %v4417_v50 = vrot.slane %v4415_v51, 2  ;;  %v4420_v24 = vrot.slane %v4418_v28, 3  ;;  %v3752_v9 = vrot.slane %v7540_v60, 2  ;;  %v7547_v28 = vld [vmem:[%s7645_s16 + $0x20] sm:$0xff]  }
 0x132   : > { %v8213_v6 = vpop.f32.mrf.mxu0  ;;  %v8219_v23 = vadd.f32 %v6934_v14, %v6882_v53 }
 0x133   : > { %v8224_v29 = vpop.f32.mrf.mxu1  ;;  %v3753_v51 = vsel %vm3181_vm3, %v3750_v39, %v3752_v9 }
 0x134   : > { %v6953_v18 = vpop.f32.mrf.mxu0  ;;  %7184 = vmatmul.mubr.bf16.gmra.mxu0 %v3745_v0 }
 0x135   : > { %v1760_v17 = vadd.f32 %v6953_v18, %v8031_v42  ;;  %7187 = vmatprep.mubr.bf16.mxu0 %v3747_v10  ;;  %v7546_v10 = vld [vmem:[%s7645_s16 + $0x18] sm:$0xff]  }
 0x136   : > { %v1579_v22 = vpop.f32.mrf.mxu0  ;;  %v7005_v12 = vpop.f32.mrf.mxu1  ;;  %7236 = vmatmul.mubr.bf16.gmra.mxu1 %v4386_v63 }
 0x137   : > { %v8229_v40 = vadd.f32 %v1579_v22, %v8036_v52  ;;  %v8231_v42 = vadd.f32 %v7005_v12, %v1760_v17  ;;  %7239 = vmatprep.mubr.bf16.mxu1 %v4395_v30  ;;  %v4412_v52 = vor.u32 %v4411_v37, %v4408_v32  ;;  %v4922_v30 = vrot.slane %v7545_v5, 3 }
 0x138   : > { %v6954_v36 = vpop.f32.mrf.mxu0  ;;  %v8235_v57 = vpop.f32.mrf.mxu1  ;;  %v4923_v32 = vrot.slane %v7546_v10, 3 }
 0x139   : > { %v1761_v53 = vadd.f32 %v6954_v36, %v8044_v59  ;;  %v4404_v59 = vsel %vm4252_vm4, %v4394_v2, %v4403_v46  ;;  %v4413_v17 = vsel %vm4252_vm4, %v4403_v46, %v4412_v52 }
 0x13a   : > { %v1582_v0 = vpop.f32.mrf.mxu0  ;;  %v7006_v14 = vpop.f32.mrf.mxu1 }
 0x13b   : > { %v8242_v11 = vadd.f32 %v1582_v0, %v8052_v7  ;;  %v8244_v63 = vadd.f32 %v7006_v14, %v1761_v53  ;;  %v4925_v14 = vrot.slane %v7547_v28, 3 }
 0x13c   : > { %v6957_v18 = vpop.f32.mrf.mxu0  ;;  %7188 = vmatmul.mubr.bf16.gmra.mxu0 %v3749_v54  ;;  %v8248_v27 = vpop.f32.mrf.mxu1  ;;  %v4924_v54 = vsel %vm4921_vm5, %v4922_v30, %v4923_v32 }
 0x13d   : > { %v1764_v26 = vadd.f32 %v6957_v18, %v8055_v15  ;;  %7191 = vmatprep.mubr.bf16.mxu0 %v3751_v4  ;;  %v4421_v15 = vor.u32 %v4420_v24, %v4417_v50 }
 0x13e   : > { %v1595_v7 = vpop.f32.mrf.mxu0  ;;  %v7009_v22 = vpop.f32.mrf.mxu1  ;;  %7240 = vmatmul.mubr.bf16.gmra.mxu1 %v4404_v59 }
 0x13f   : > { %v8252_v37 = vadd.f32 %v1595_v7, %v8058_v25  ;;  %v8254_v12 = vadd.f32 %v7009_v22, %v1764_v26  ;;  %7243 = vmatprep.mubr.bf16.mxu1 %v4413_v17  ;;  %v7550_v25 = vld [vmem:[%s7645_s16 + $0x28] sm:$0xff]   ;;  %v7551_v17 = vld [vmem:[%s7645_s16 + $0x30] sm:$0xff]   ;;  %v7552_v22 = vld [vmem:[%s7645_s16 + $0x38] sm:$0xff]  }
 0x140   : > { %v6958_v2 = vpop.f32.mrf.mxu0  ;;  %v8258_v46 = vpop.f32.mrf.mxu1  ;;  %v4927_v59 = vrot.slane %v7550_v25, 3 }
 0x141   : > { %v1765_v36 = vadd.f32 %v6958_v2, %v8065_v33  ;;  %v4422_v33 = vsel %vm4252_vm4, %v4412_v52, %v4421_v15  ;;  %v4926_v52 = vsel %vm4921_vm5, %v4923_v32, %v4925_v14  ;;  %v1736_v15 = vld [vmem:[#allocation2 + $0x70] sm:$0xff]  ;;  %v4929_v32 = vrot.slane %v7551_v17, 3 }
 0x142   : > { %v1598_v53 = vpop.f32.mrf.mxu0  ;;  %v7010_v0 = vpop.f32.mrf.mxu1  ;;  %v4928_v30 = vsel %vm4921_vm5, %v4925_v14, %v4927_v59 }
 0x143   : > { %v8264_v60 = vadd.f32 %v1598_v53, %v8071_v41  ;;  %v8266_v5 = vadd.f32 %v7010_v0, %v1765_v36  ;;  %v4931_v53 = vrot.slane %v7552_v22, 3 }
 0x144   : > { %v6961_v4 = vpop.f32.mrf.mxu0  ;;  %7192 = vmatmul.mubr.bf16.gmra.mxu0 %v3753_v51  ;;  %v8270_v10 = vpop.f32.mrf.mxu1 }
 0x145   : > { %v1768_v39 = vadd.f32 %v6961_v4, %v8075_v48  ;;  %7263 = vmatprep.mubr.bf16.mxu0 %v4924_v54 }
 0x146   : > { %v1611_v18 = vpop.f32.mrf.mxu0  ;;  %v7013_v50 = vpop.f32.mrf.mxu1  ;;  %7244 = vmatmul.mubr.bf16.gmra.mxu1 %v4422_v33 }
 0x147   : > { %v8273_v41 = vadd.f32 %v1611_v18, %v8078_v58  ;;  %v8275_v26 = vadd.f32 %v7013_v50, %v1768_v39  ;;  %v4930_v39 = vsel %vm4921_vm5, %v4927_v59, %v4929_v32  ;;  %v7553_v18 = vld [vmem:[%s7645_s16 + $0x40] sm:$0xff]  }
 0x148   : > { %v6962_v24 = vpop.f32.mrf.mxu0  ;;  %v8279_v48 = vpop.f32.mrf.mxu1  ;;  %v4933_v59 = vrot.slane %v7553_v18, 3  ;;  %v7556_v18 = vld [vmem:[%s7645_s16 + $0x58] sm:$0xff]  }
 0x149   : > { %v1769_v9 = vadd.f32 %v6962_v24, %v8088_v3  ;;  %v4932_v24 = vsel %vm4921_vm5, %v4929_v32, %v4931_v53 }
 0x14a   : > { %v8282_v7 = vpop.f32.mrf.mxu0  ;;  %v7014_v2 = vpop.f32.mrf.mxu1 }
 0x14b   : > { %v8286_v36 = vadd.f32 %v7014_v2, %v1769_v9  ;;  %v7554_v9 = vld [vmem:[%s7645_s16 + $0x48] sm:$0xff]  }
 0x14c   : > { %v6965_v58 = vpop.f32.mrf.mxu0  ;;  %7264 = vmatmul.mubr.bf16.vlgmr.msra.gmra.mxu0 %v4926_v52  ;;  %v8288_v3 = vpop.f32.mrf.mxu1 }
 0x14d   : > { %v1772_v51 = vadd.f32 %v6965_v58, %v1736_v15  ;;  %7267 = vmatprep.mubr.bf16.mxu0 %v4928_v30  ;;  %v4935_v58 = vrot.slane %v7554_v9, 3 }
 0x14e   : > { %v1627_v28 = vpop.f32.mrf.mxu0  ;;  %v7017_v25 = vpop.f32.mrf.mxu1 }
 0x14f   : > { %v8291_v54 = vadd.f32 %v1627_v28, %v8105_v35  ;;  %v8293_v4 = vadd.f32 %v7017_v25, %v1772_v51  ;;  %v1740_v35 = vld [vmem:[#allocation2 + $0x90] sm:$0xff] }
 0x150   : > { %v6966_v0 = vpop.f32.mrf.mxu0  ;;  %v8297_v14 = vpop.f32.mrf.mxu1 }
 0x151   : > { %v1773_v33 = vadd.f32 %v6966_v0, %v8112_v45  ;;  %v4934_v0 = vsel %vm4921_vm5, %v4931_v53, %v4933_v59 }
 0x152   : > { %v8300_v50 = vpop.f32.mrf.mxu0  ;;  %v7018_v52 = vpop.f32.mrf.mxu1 }
 0x153   : > { %v8304_v30 = vadd.f32 %v7018_v52, %v1773_v33  ;;  %v4936_v52 = vsel %vm4921_vm5, %v4933_v59, %v4935_v58 }
 0x154   : > { %v6969_v17 = vpop.f32.mrf.mxu0  ;;  %7268 = vmatmul.mubr.bf16.gmra.mxu0 %v4930_v39  ;;  %v8306_v45 = vpop.f32.mrf.mxu1  ;;  %v7555_v39 = vld [vmem:[%s7645_s16 + $0x50] sm:$0xff]  }
 0x155   : > { %v1776_v22 = vadd.f32 %v6969_v17, %v1740_v35  ;;  %7271 = vmatprep.mubr.bf16.mxu0 %v4932_v24 }
 0x156   : > { %v1643_v2 = vpop.f32.mrf.mxu0  ;;  %v7021_v51 = vpop.f32.mrf.mxu1 }
 0x157   : > { %v8309_v15 = vadd.f32 %v1643_v2, %v8127_v13  ;;  %v8311_v28 = vadd.f32 %v7021_v51, %v1776_v22  ;;  %v4937_v22 = vrot.slane %v7555_v39, 3  ;;  %v4939_v51 = vrot.slane %v7556_v18, 3  ;;  %v7558_v39 = vld [vmem:[%s7645_s16 + $0x68] sm:$0xff]  }
 0x158   : > { %v6970_v32 = vpop.f32.mrf.mxu0  ;;  %v8315_v33 = vpop.f32.mrf.mxu1 }
 0x159   : > { %v1777_v25 = vadd.f32 %v6970_v32, %v8133_v19 }
 0x15a   : > { %v1646_v24 = vpop.f32.mrf.mxu0  ;;  %v7022_v13 = vpop.f32.mrf.mxu1 }
 0x15b   : > { %v8321_v9 = vadd.f32 %v1646_v24, %v8139_v34  ;;  %v8323_v35 = vadd.f32 %v7022_v13, %v1777_v25  ;;  %v4938_v25 = vsel %vm4921_vm5, %v4935_v58, %v4937_v22  ;;  %v7557_v13 = vld [vmem:[%s7645_s16 + $0x60] sm:$0xff]  }
 0x15c   : > { %v6973_v17 = vpop.f32.mrf.mxu0  ;;  %7272 = vmatmul.mubr.bf16.gmra.mxu0 %v4934_v0  ;;  %v8326_v53 = vpop.f32.mrf.mxu1 }
 0x15d   : > { %9144 = vst [vmem:[#allocation3_spill] sm:$0xff] %v8321_v9  ;;  %9145 = vst [vmem:[#allocation4_spill] sm:$0xff] %v8323_v35  ;;  %v1780_v19 = vadd.f32 %v6973_v17, %v8145_v38  ;;  %7275 = vmatprep.mubr.bf16.mxu0 %v4936_v52  ;;  %v4940_v17 = vsel %vm4921_vm5, %v4937_v22, %v4939_v51 }
 0x15e   : > { %v1659_v2 = vpop.f32.mrf.mxu0  ;;  %v7025_v32 = vpop.f32.mrf.mxu1 }
 0x15f   : > { %v1778_v59 = vadd.f32 %v1659_v2, %v8149_v55  ;;  %v8329_v24 = vadd.f32 %v7025_v32, %v1780_v19  ;;  %v4941_v2 = vrot.slane %v7557_v13, 3 }
 0x160   : > { %v6974_v34 = vpop.f32.mrf.mxu0  ;;  %v2194_v0 = vpop.f32.mrf.mxu1 }
 0x161   : > { %v1781_v9 = vadd.f32 %v6974_v34, %v8158_v62  ;;  %v8334_v52 = vadd.f32 %v2194_v0, %v1778_v59  ;;  %v4943_v34 = vrot.slane %v7558_v39, 3 }
 0x162   : > { %v1662_v38 = vpop.f32.mrf.mxu0  ;;  %v7026_v35 = vpop.f32.mrf.mxu1 }
 0x163   : > { %v1779_v18 = vadd.f32 %v1662_v38, %v8164_v16  ;;  %v8339_v19 = vadd.f32 %v7026_v35, %v1781_v9  ;;  %v4942_v9 = vsel %vm4921_vm5, %v4939_v51, %v4941_v2  ;;  %v4944_v13 = vsel %vm4921_vm5, %v4941_v2, %v4943_v34 }
 0x164   : > { %v6977_v55 = vpop.f32.mrf.mxu0  ;;  %7276 = vmatmul.mubr.bf16.gmra.mxu0 %v4938_v25  ;;  %v2197_v58 = vpop.f32.mrf.mxu1 }
 0x165   : > { %v1784_v62 = vadd.f32 %v6977_v55, %v8167_v20  ;;  %7279 = vmatprep.mubr.bf16.mxu0 %v4940_v17  ;;  %v8342_v59 = vadd.f32 %v2197_v58, %v1779_v18  ;;  %v7559_v20 = vld [vmem:[%s7645_s16 + $0x70] sm:$0xff]   ;;  %v7560_v18 = vld [vmem:[%s7645_s16 + $0x78] sm:$0xff]  }
 0x166   : > { %v1675_v32 = vpop.f32.mrf.mxu0  ;;  %v7029_v0 = vpop.f32.mrf.mxu1 }
 0x167   : > { %v1782_v22 = vadd.f32 %v1675_v32, %v8171_v31  ;;  %v8345_v38 = vadd.f32 %v7029_v0, %v1784_v62  ;;  %v4945_v32 = vrot.slane %v7559_v20, 3 }
 0x168   : > { %v6978_v16 = vpop.f32.mrf.mxu0  ;;  %v2210_v35 = vpop.f32.mrf.mxu1 }
 0x169   : > { %v1785_v25 = vadd.f32 %v6978_v16, %v8177_v43  ;;  %v8350_v55 = vadd.f32 %v2210_v35, %v1782_v22  ;;  %v4947_v16 = vrot.slane %v7560_v18, 3 }
 0x16a   : > { %v1678_v17 = vpop.f32.mrf.mxu0  ;;  %v7030_v58 = vpop.f32.mrf.mxu1 }
 0x16b   : > { %v1783_v39 = vadd.f32 %v1678_v17, %v8183_v61  ;;  %v8355_v62 = vadd.f32 %v7030_v58, %v1785_v25  ;;  %v4946_v25 = vsel %vm4921_vm5, %v4943_v34, %v4945_v32  ;;  %v4948_v20 = vsel %vm4921_vm5, %v4945_v32, %v4947_v16 }
 0x16c   : > { %v6981_v31 = vpop.f32.mrf.mxu0  ;;  %7280 = vmatmul.mubr.bf16.gmra.mxu0 %v4942_v9  ;;  %v2213_v51 = vpop.f32.mrf.mxu1 }
 0x16d   : > { %v1788_v43 = vadd.f32 %v6981_v31, %v8186_v1  ;;  %7283 = vmatprep.mubr.bf16.mxu0 %v4944_v13  ;;  %v8358_v22 = vadd.f32 %v2213_v51, %v1783_v39  ;;  %v7561_v1 = vld [vmem:[%s7645_s16 + $0x80] sm:$0xff]   ;;  %v7562_v39 = vld [vmem:[%s7645_s16 + $0x88] sm:$0xff]  }
 0x16e   : > { %v1691_v0 = vpop.f32.mrf.mxu0  ;;  %v7033_v35 = vpop.f32.mrf.mxu1 }
 0x16f   : > { %v1786_v2 = vadd.f32 %v1691_v0, %v8190_v21  ;;  %v8361_v17 = vadd.f32 %v7033_v35, %v1788_v43 }
 0x170   : > { %v6982_v61 = vpop.f32.mrf.mxu0  ;;  %v2226_v58 = vpop.f32.mrf.mxu1 }
 0x171   : > { %v1789_v9 = vadd.f32 %v6982_v61, %v8196_v8  ;;  %v8366_v31 = vadd.f32 %v2226_v58, %v1786_v2  ;;  %v1254_v8 = vadd.f32 %v8211_v49, %v8202_v47  ;;  %v4949_v2 = vrot.slane %v7561_v1, 3 }
 0x172   : > { %v1694_v13 = vpop.f32.mrf.mxu0  ;;  %v7034_v51 = vpop.f32.mrf.mxu1  ;;  %v4951_v61 = vrot.slane %v7562_v39, 3  ;;  %v7564_v39 = vld [vmem:[%s7645_s16 + $0x98] sm:$0xff]  }
 0x173   : > { %v1787_v18 = vadd.f32 %v1694_v13, %v8204_v44  ;;  %v8371_v0 = vadd.f32 %v7034_v51, %v1789_v9  ;;  %v1255_v9 = vadd.f32 %v8224_v29, %v8213_v6  ;;  %v2293_v6 = vadd.f32 %v8235_v57, %v8229_v40 }
 0x174   : > { %v6985_v21 = vpop.f32.mrf.mxu0  ;;  %7284 = vmatmul.mubr.bf16.gmra.mxu0 %v4946_v25  ;;  %v2229_v43 = vpop.f32.mrf.mxu1 }
 0x175   : > { %v1792_v34 = vadd.f32 %v6985_v21, %v8208_v56  ;;  %7287 = vmatprep.mubr.bf16.mxu0 %v4948_v20  ;;  %v8376_v32 = vadd.f32 %v2229_v43, %v1787_v18  ;;  %v4950_v56 = vsel %vm4921_vm5, %v4947_v16, %v4949_v2  ;;  %v7563_v20 = vld [vmem:[%s7645_s16 + $0x90] sm:$0xff]   ;;  %v4952_v18 = vsel %vm4921_vm5, %v4949_v2, %v4951_v61 }
 0x176   : > { %v1707_v35 = vpop.f32.mrf.mxu0  ;;  %v7037_v58 = vpop.f32.mrf.mxu1  ;;  %v4953_v16 = vrot.slane %v7563_v20, 3  ;;  %v4955_v2 = vrot.slane %v7564_v39, 3 }
 0x177   : > { %v1790_v44 = vadd.f32 %v1707_v35, %v1254_v8  ;;  %v8378_v25 = vadd.f32 %v7037_v58, %v1792_v34 }
 0x178   : > { %v6986_v13 = vpop.f32.mrf.mxu0  ;;  %v2242_v49 = vpop.f32.mrf.mxu1  ;;  %v4954_v57 = vsel %vm4921_vm5, %v4951_v61, %v4953_v16 }
 0x179   : > { %v1793_v47 = vadd.f32 %v6986_v13, %v8219_v23  ;;  %v8385_v51 = vadd.f32 %v2242_v49, %v1790_v44 }
 0x17a   : > { %v1710_v1 = vpop.f32.mrf.mxu0  ;;  %v7038_v8 = vpop.f32.mrf.mxu1 }
 0x17b   : > { %v1791_v21 = vadd.f32 %v1710_v1, %v1255_v9  ;;  %v8389_v34 = vadd.f32 %v7038_v8, %v1793_v47  ;;  %v2294_v47 = vadd.f32 %v8248_v27, %v8242_v11  ;;  %v2297_v11 = vadd.f32 %v8258_v46, %v8252_v37 }
 0x17c   : > { %v7057_v43 = vpop.f32.mrf.mxu0  ;;  %7288 = vmatmul.mubr.bf16.gmra.mxu0 %v4950_v56  ;;  %v2245_v29 = vpop.f32.mrf.mxu1  ;;  %v7565_v56 = vld [vmem:[%s7645_s16 + $0xa0] ss:$0 sps:$4 sm:$0x77]  }
 0x17d   : > { %v2964_v23 = vadd.f32 %v7057_v43, %v8231_v42  ;;  %7291 = vmatprep.mubr.bf16.mxu0 %v4952_v18  ;;  %v8394_v44 = vadd.f32 %v2245_v29, %v1791_v21  ;;  %v4956_v18 = vsel %vm4921_vm5, %v4953_v16, %v4955_v2  ;;  %v4957_v61 = vrot.slane %v7565_v56, 3 }
 0x17e   : > { %v2783_v35 = vpop.f32.mrf.mxu0  ;;  %v7109_v13 = vpop.f32.mrf.mxu1 }
 0x17f   : > { %v2962_v58 = vadd.f32 %v2783_v35, %v2293_v6  ;;  %v8396_v49 = vadd.f32 %v7109_v13, %v2964_v23  ;;  %v2298_v13 = vadd.f32 %v8270_v10, %v8264_v60  ;;  %v4958_v37 = vsel %vm4921_vm5, %v4955_v2, %v4957_v61 }
 0x180   : > { %v7058_v9 = vpop.f32.mrf.mxu0  ;;  %v3319_v42 = vpop.f32.mrf.mxu1  ;;  %v2301_v60 = vadd.f32 %v8279_v48, %v8273_v41 }
 0x181   : > { %v2965_v40 = vadd.f32 %v7058_v9, %v8244_v63  ;;  %v8403_v20 = vadd.f32 %v3319_v42, %v2962_v58  ;;  %v1731_v42 = vld [vmem:[#allocation2 + $0x48] sm:$0xff] }
 0x182   : > { %v2786_v1 = vpop.f32.mrf.mxu0  ;;  %v7110_v21 = vpop.f32.mrf.mxu1 }
 0x183   : > { %v2963_v39 = vadd.f32 %v2786_v1, %v2294_v47  ;;  %v8406_v43 = vadd.f32 %v7110_v21, %v2965_v40 }
 0x184   : > { %v7061_v8 = vpop.f32.mrf.mxu0  ;;  %7292 = vmatmul.mubr.bf16.gmra.mxu0 %v4954_v57  ;;  %v3322_v27 = vpop.f32.mrf.mxu1 }
 0x185   : > { %v2968_v63 = vadd.f32 %v7061_v8, %v8254_v12  ;;  %7295 = vmatprep.mubr.bf16.mxu0 %v4956_v18  ;;  %v8411_v23 = vadd.f32 %v3322_v27, %v2963_v39  ;;  %v1767_v18 = vadd.f32 %v1731_v42, %v8282_v7 }
 0x186   : > { %v2799_v6 = vpop.f32.mrf.mxu0  ;;  %v7113_v35 = vpop.f32.mrf.mxu1 }
 0x187   : > { %v2966_v29 = vadd.f32 %v2799_v6, %v2297_v11  ;;  %v8413_v58 = vadd.f32 %v7113_v35, %v2968_v63  ;;  %v2302_v27 = vadd.f32 %v8288_v3, %v1767_v18 }
 0x188   : > { %v7062_v16 = vpop.f32.mrf.mxu0  ;;  %v3335_v46 = vpop.f32.mrf.mxu1 }
 0x189   : > { %v2969_v9 = vadd.f32 %v7062_v16, %v8266_v5  ;;  %v8419_v47 = vadd.f32 %v3335_v46, %v2966_v29 }
 0x18a   : > { %v2802_v12 = vpop.f32.mrf.mxu0  ;;  %v7114_v57 = vpop.f32.mrf.mxu1 }
 0x18b   : > { %v2967_v40 = vadd.f32 %v2802_v12, %v2298_v13  ;;  %v8421_v1 = vadd.f32 %v7114_v57, %v2969_v9  ;;  %v2305_v9 = vadd.f32 %v8297_v14, %v8291_v54 }
 0x18c   : > { %v7065_v56 = vpop.f32.mrf.mxu0  ;;  %7296 = vmatmul.mubr.bf16.gmra.mxu0 %v4958_v37  ;;  %v3338_v10 = vpop.f32.mrf.mxu1 }
 0x18d   : > { %v2972_v5 = vadd.f32 %v7065_v56, %v8275_v26  ;;  %v8427_v39 = vadd.f32 %v3338_v10, %v2967_v40  ;;  %v1735_v26 = vld [vmem:[#allocation2 + $0x68] sm:$0xff] }
 0x18e   : > { %v2815_v2 = vpop.f32.mrf.mxu0  ;;  %v7117_v8 = vpop.f32.mrf.mxu1  ;;  %v1771_v13 = vadd.f32 %v1735_v26, %v8300_v50 }
 0x18f   : > { %v2970_v21 = vadd.f32 %v2815_v2, %v2301_v60  ;;  %v8429_v63 = vadd.f32 %v7117_v8, %v2972_v5  ;;  %v2309_v2 = vadd.f32 %v8315_v33, %v8309_v15 }
 0x190   : > { %v7066_v11 = vpop.f32.mrf.mxu0  ;;  %v3351_v6 = vpop.f32.mrf.mxu1  ;;  %v2306_v56 = vadd.f32 %v8306_v45, %v1771_v13 }
 0x191   : > { %v2973_v61 = vadd.f32 %v7066_v11, %v8286_v36  ;;  %v8433_v29 = vadd.f32 %v3351_v6, %v2970_v21 }
 0x192   : > { %v2818_v7 = vpop.f32.mrf.mxu0  ;;  %v7118_v48 = vpop.f32.mrf.mxu1 }
 0x193   : > { %v2971_v41 = vadd.f32 %v2818_v7, %v2302_v27  ;;  %v8435_v16 = vadd.f32 %v7118_v48, %v2973_v61  ;;  %v9146_v7 = vld [vmem:[#allocation3_spill] sm:$0xff]  ;;  %v9147_v48 = vld [vmem:[#allocation4_spill] sm:$0xff] }
 0x194   : > { %v7069_v35 = vpop.f32.mrf.mxu0  ;;  %v3354_v3 = vpop.f32.mrf.mxu1 }
 0x195   : > { %v2976_v37 = vadd.f32 %v7069_v35, %v8293_v4  ;;  %v8441_v36 = vadd.f32 %v3354_v3, %v2971_v41  ;;  %v2310_v41 = vadd.f32 %v8326_v53, %v9146_v7 }
 0x196   : > { %v2831_v46 = vpop.f32.mrf.mxu0  ;;  %v7121_v40 = vpop.f32.mrf.mxu1 }
 0x197   : > { %v2974_v12 = vadd.f32 %v2831_v46, %v2305_v9  ;;  %v8443_v42 = vadd.f32 %v7121_v40, %v2976_v37 }
 0x198   : > { %v7070_v57 = vpop.f32.mrf.mxu0  ;;  %v3367_v60 = vpop.f32.mrf.mxu1 }
 0x199   : > { %v2977_v18 = vadd.f32 %v7070_v57, %v8304_v30  ;;  %v8447_v5 = vadd.f32 %v3367_v60, %v2974_v12 }
 0x19a   : > { %v2834_v50 = vpop.f32.mrf.mxu0  ;;  %v7122_v14 = vpop.f32.mrf.mxu1 }
 0x19b   : > { %v2975_v54 = vadd.f32 %v2834_v50, %v2306_v56  ;;  %v8449_v10 = vadd.f32 %v7122_v14, %v2977_v18 }
 0x19c   : > { %v7073_v4 = vpop.f32.mrf.mxu0  ;;  %v3370_v8 = vpop.f32.mrf.mxu1 }
 0x19d   : > { %v2980_v21 = vadd.f32 %v7073_v4, %v8311_v28  ;;  %v8454_v27 = vadd.f32 %v3370_v8, %v2975_v54 }
 0x19e   : > { %v2847_v11 = vpop.f32.mrf.mxu0  ;;  %v7125_v30 = vpop.f32.mrf.mxu1 }
 0x19f   : > { %v2978_v45 = vadd.f32 %v2847_v11, %v2309_v2  ;;  %v8456_v6 = vadd.f32 %v7125_v30, %v2980_v21 }
 0x1a0   : > { %v7074_v61 = vpop.f32.mrf.mxu0  ;;  %v3383_v35 = vpop.f32.mrf.mxu1 }
 0x1a1   : > { %v2981_v26 = vadd.f32 %v7074_v61, %v9147_v48  ;;  %v8461_v9 = vadd.f32 %v3383_v35, %v2978_v45 }
 0x1a2   : > { %v2850_v13 = vpop.f32.mrf.mxu0  ;;  %v7126_v28 = vpop.f32.mrf.mxu1 }
 0x1a3   : > { %v2979_v15 = vadd.f32 %v2850_v13, %v2310_v41  ;;  %v8463_v37 = vadd.f32 %v7126_v28, %v2981_v26 }
 0x1a4   : > { %v7077_v33 = vpop.f32.mrf.mxu0  ;;  %v3386_v46 = vpop.f32.mrf.mxu1 }
 0x1a5   : > { %v2984_v3 = vadd.f32 %v7077_v33, %v8329_v24  ;;  %v8466_v40 = vadd.f32 %v3386_v46, %v2979_v15 }
 0x1a6   : > { %v2863_v12 = vpop.f32.mrf.mxu0  ;;  %v7129_v53 = vpop.f32.mrf.mxu1 }
 0x1a7   : > { %v2982_v57 = vadd.f32 %v2863_v12, %v8334_v52  ;;  %v8469_v18 = vadd.f32 %v7129_v53, %v2984_v3 }
 0x1a8   : > { %v7078_v56 = vpop.f32.mrf.mxu0  ;;  %v3399_v50 = vpop.f32.mrf.mxu1 }
 0x1a9   : > { %v2985_v60 = vadd.f32 %v7078_v56, %v8339_v19  ;;  %v8472_v14 = vadd.f32 %v3399_v50, %v2982_v57 }
 0x1aa   : > { %v2866_v54 = vpop.f32.mrf.mxu0  ;;  %v7130_v2 = vpop.f32.mrf.mxu1 }
 0x1ab   : > { %v2983_v4 = vadd.f32 %v2866_v54, %v8342_v59  ;;  %v8475_v21 = vadd.f32 %v7130_v2, %v2985_v60 }
 0x1ac   : > { %v7081_v24 = vpop.f32.mrf.mxu0  ;;  %v3402_v11 = vpop.f32.mrf.mxu1 }
 0x1ad   : > { %v2988_v8 = vadd.f32 %v7081_v24, %v8345_v38  ;;  %v8478_v45 = vadd.f32 %v3402_v11, %v2983_v4 }
 0x1ae   : > { %v2879_v52 = vpop.f32.mrf.mxu0  ;;  %v7133_v61 = vpop.f32.mrf.mxu1 }
 0x1af   : > { %v2986_v30 = vadd.f32 %v2879_v52, %v8350_v55  ;;  %v8481_v7 = vadd.f32 %v7133_v61, %v2988_v8 }
 0x1b0   : > { %v7082_v19 = vpop.f32.mrf.mxu0  ;;  %v3415_v48 = vpop.f32.mrf.mxu1 }
 0x1b1   : > { %v2989_v41 = vadd.f32 %v7082_v19, %v8355_v62  ;;  %v8484_v26 = vadd.f32 %v3415_v48, %v2986_v30 }
 0x1b2   : > { %v2882_v59 = vpop.f32.mrf.mxu0  ;;  %v7134_v13 = vpop.f32.mrf.mxu1 }
 0x1b3   : > { %v2987_v35 = vadd.f32 %v2882_v59, %v8358_v22  ;;  %v8487_v15 = vadd.f32 %v7134_v13, %v2989_v41 }
 0x1b4   : > { %v7085_v38 = vpop.f32.mrf.mxu0  ;;  %v3418_v33 = vpop.f32.mrf.mxu1 }
 0x1b5   : > { %v2992_v28 = vadd.f32 %v7085_v38, %v8361_v17  ;;  %v8490_v3 = vadd.f32 %v3418_v33, %v2987_v35 }
 0x1b6   : > { %v2895_v55 = vpop.f32.mrf.mxu0  ;;  %v7137_v12 = vpop.f32.mrf.mxu1 }
 0x1b7   : > { %v2990_v46 = vadd.f32 %v2895_v55, %v8366_v31  ;;  %v8493_v57 = vadd.f32 %v7137_v12, %v2992_v28 }
 0x1b8   : > { %v7086_v62 = vpop.f32.mrf.mxu0  ;;  %v3431_v56 = vpop.f32.mrf.mxu1 }
 0x1b9   : > { %v2993_v53 = vadd.f32 %v7086_v62, %v8371_v0  ;;  %v8496_v60 = vadd.f32 %v3431_v56, %v2990_v46 }
 0x1ba   : > { %v2898_v22 = vpop.f32.mrf.mxu0  ;;  %v7138_v54 = vpop.f32.mrf.mxu1 }
 0x1bb   : > { %v2991_v50 = vadd.f32 %v2898_v22, %v8376_v32  ;;  %v8499_v4 = vadd.f32 %v7138_v54, %v2993_v53 }
 0x1bc   : > { %v7089_v17 = vpop.f32.mrf.mxu0  ;;  %v3434_v24 = vpop.f32.mrf.mxu1 }
 0x1bd   : > { %v2996_v2 = vadd.f32 %v7089_v17, %v8378_v25  ;;  %v8502_v8 = vadd.f32 %v3434_v24, %v2991_v50 }
 0x1be   : > { %v2911_v31 = vpop.f32.mrf.mxu0  ;;  %v7141_v52 = vpop.f32.mrf.mxu1 }
 0x1bf   : > { %v2994_v11 = vadd.f32 %v2911_v31, %v8385_v51  ;;  %v8505_v30 = vadd.f32 %v7141_v52, %v2996_v2 }
 0x1c0   : > { %v7090_v0 = vpop.f32.mrf.mxu0  ;;  %v3447_v19 = vpop.f32.mrf.mxu1 }
 0x1c1   : > { %v2997_v61 = vadd.f32 %v7090_v0, %v8389_v34  ;;  %v8508_v41 = vadd.f32 %v3447_v19, %v2994_v11 }
 0x1c2   : > { %v2914_v32 = vpop.f32.mrf.mxu0  ;;  %v7142_v59 = vpop.f32.mrf.mxu1 }
 0x1c3   : > { %v2995_v48 = vadd.f32 %v2914_v32, %v8394_v44  ;;  %v8511_v35 = vadd.f32 %v7142_v59, %v2997_v61 }
 0x1c4   : > { %v7161_v25 = vpop.f32.mrf.mxu0  ;;  %v3450_v51 = vpop.f32.mrf.mxu1 }
 0x1c5   : > { %v8514_v13 = vadd.f32 %v7161_v25, %v8396_v49  ;;  %v8516_v28 = vadd.f32 %v3450_v51, %v2995_v48 }
 0x1c6   : > { %v3854_v38 = vpop.f32.mrf.mxu0  ;;  %v8521_v34 = vpop.f32.mrf.mxu1 }
 0x1c7   : > { %v8519_v33 = vadd.f32 %v3854_v38, %v8403_v20 }
 0x1c8   : > { %v7162_v55 = vpop.f32.mrf.mxu0  ;;  %v8526_v44 = vpop.f32.mrf.mxu1 }
 0x1c9   : > { %v8524_v46 = vadd.f32 %v7162_v55, %v8406_v43 }
 0x1ca   : > { %v3857_v12 = vpop.f32.mrf.mxu0  ;;  %v8531_v49 = vpop.f32.mrf.mxu1 }
 0x1cb   : > { %v8529_v62 = vadd.f32 %v3857_v12, %v8411_v23 }
 0x1cc   : > { %v7165_v53 = vpop.f32.mrf.mxu0  ;;  %v8536_v20 = vpop.f32.mrf.mxu1 }
 0x1cd   : > { %v8534_v56 = vadd.f32 %v7165_v53, %v8413_v58 }
 0x1ce   : > { %v3870_v22 = vpop.f32.mrf.mxu0  ;;  %v8544_v17 = vpop.f32.mrf.mxu1 }
 0x1cf   : > { %v8539_v50 = vadd.f32 %v3870_v22, %v8419_v47 }
 0x1d0   : > { %v7166_v43 = vpop.f32.mrf.mxu0  ;;  %v8552_v31 = vpop.f32.mrf.mxu1 }
 0x1d1   : > { %v8542_v54 = vadd.f32 %v7166_v43, %v8421_v1 }
 0x1d2   : > { %v3873_v23 = vpop.f32.mrf.mxu0  ;;  %v8560_v0 = vpop.f32.mrf.mxu1 }
 0x1d3   : > { %v8547_v2 = vadd.f32 %v3873_v23, %v8427_v39 }
 0x1d4   : > { %v7169_v24 = vpop.f32.mrf.mxu0  ;;  %v8568_v32 = vpop.f32.mrf.mxu1 }
 0x1d5   : > { %v8550_v58 = vadd.f32 %v7169_v24, %v8429_v63 }
 0x1d6   : > { %v3886_v11 = vpop.f32.mrf.mxu0  ;;  %v8573_v25 = vpop.f32.mrf.mxu1 }
 0x1d7   : > { %v8555_v47 = vadd.f32 %v3886_v11, %v8433_v29 }
 0x1d8   : > { %v7170_v52 = vpop.f32.mrf.mxu0  ;;  %v8581_v55 = vpop.f32.mrf.mxu1 }
 0x1d9   : > { %v8558_v1 = vadd.f32 %v7170_v52, %v8435_v16 }
 0x1da   : > { %v3889_v61 = vpop.f32.mrf.mxu0  ;;  %v8589_v22 = vpop.f32.mrf.mxu1 }
 0x1db   : > { %v8563_v39 = vadd.f32 %v3889_v61, %v8441_v36 }
 0x1dc   : > { %v7173_v19 = vpop.f32.mrf.mxu0  ;;  %v8597_v24 = vpop.f32.mrf.mxu1 }
 0x1dd   : > { %v8566_v63 = vadd.f32 %v7173_v19, %v8443_v42 }
 0x1de   : > { %v3902_v48 = vpop.f32.mrf.mxu0  ;;  %v8605_v61 = vpop.f32.mrf.mxu1 }
 0x1df   : > { %v8571_v29 = vadd.f32 %v3902_v48, %v8447_v5 }
 0x1e0   : > { %v7174_v59 = vpop.f32.mrf.mxu0 }
 0x1e1   : > { %v8576_v16 = vadd.f32 %v7174_v59, %v8449_v10  ;;  %v8613_v59 = vpop.f32.mrf.mxu1 }
 0x1e2   : > { %v3905_v51 = vpop.f32.mrf.mxu0 }
 0x1e3   : > { %v8579_v36 = vadd.f32 %v3905_v51, %v8454_v27 }
 0x1e4   : > { %v7177_v38 = vpop.f32.mrf.mxu0 }
 0x1e5   : > { %v8584_v42 = vadd.f32 %v7177_v38, %v8456_v6 }
 0x1e6   : > { %v3918_v12 = vpop.f32.mrf.mxu0 }
 0x1e7   : > { %v8587_v5 = vadd.f32 %v3918_v12, %v8461_v9  ;;  %v8621_v12 = vpop.f32.mrf.mxu1 }
 0x1e8   : > { %v7178_v53 = vpop.f32.mrf.mxu0 }
 0x1e9   : > { %v8592_v10 = vadd.f32 %v7178_v53, %v8463_v37 }
 0x1ea   : > { %v3921_v43 = vpop.f32.mrf.mxu0 }
 0x1eb   : > { %v8595_v27 = vadd.f32 %v3921_v43, %v8466_v40 }
 0x1ec   : > { %v7181_v23 = vpop.f32.mrf.mxu0 }
 0x1ed   : > { %v8600_v6 = vadd.f32 %v7181_v23, %v8469_v18  ;;  %v8629_v23 = vpop.f32.mrf.mxu1 }
 0x1ee   : > { %v3934_v11 = vpop.f32.mrf.mxu0 }
 0x1ef   : > { %v8603_v9 = vadd.f32 %v3934_v11, %v8472_v14 }
 0x1f0   : > { %v7182_v52 = vpop.f32.mrf.mxu0 }
 0x1f1   : > { %v8608_v37 = vadd.f32 %v7182_v52, %v8475_v21 }
 0x1f2   : > { %v3937_v19 = vpop.f32.mrf.mxu0 }
 0x1f3   : > { %v8611_v40 = vadd.f32 %v3937_v19, %v8478_v45  ;;  %v8637_v19 = vpop.f32.mrf.mxu1 }
 0x1f4   : > { %v7185_v48 = vpop.f32.mrf.mxu0 }
 0x1f5   : > { %v8616_v18 = vadd.f32 %v7185_v48, %v8481_v7 }
 0x1f6   : > { %v3950_v51 = vpop.f32.mrf.mxu0 }
 0x1f7   : > { %v8619_v14 = vadd.f32 %v3950_v51, %v8484_v26 }
 0x1f8   : > { %v7186_v38 = vpop.f32.mrf.mxu0 }
 0x1f9   : > { %v8624_v21 = vadd.f32 %v7186_v38, %v8487_v15  ;;  %v8645_v38 = vpop.f32.mrf.mxu1 }
 0x1fa   : > { %v3953_v53 = vpop.f32.mrf.mxu0 }
 0x1fb   : > { %v8627_v45 = vadd.f32 %v3953_v53, %v8490_v3 }
 0x1fc   : > { %v7189_v43 = vpop.f32.mrf.mxu0 }
 0x1fd   : > { %v8632_v7 = vadd.f32 %v7189_v43, %v8493_v57 }
 0x1fe   : > { %v3966_v11 = vpop.f32.mrf.mxu0 }
 0x1ff   : > { %v8635_v26 = vadd.f32 %v3966_v11, %v8496_v60  ;;  %v5743_v60 = vld [vmem:[%s9120_s4 + $0x8] sm:$0xff]  ;;  %v8656_v11 = vpop.f32.mrf.mxu1 }
 0x200   : > { %v7190_v52 = vpop.f32.mrf.mxu0  ;;  %5859 = vmatprep.mubr.f32.mxu1 %v5743_v60 }
 0x201   : > { %v8640_v15 = vadd.f32 %v7190_v52, %v8499_v4  ;;  %v8673_v60 = vpop.f32.mrf.mxu1 }
 0x202   : > { %v3969_v48 = vpop.f32.mrf.mxu0 }
 0x203   : > { %v8643_v3 = vadd.f32 %v3969_v48, %v8502_v8 }
 0x204   : > { %v7193_v51 = vpop.f32.mrf.mxu0 }
 0x205   : > { %9148 = vst [vmem:[#allocation3_spill] sm:$0xff] %v8643_v3  ;;  %v8648_v57 = vadd.f32 %v7193_v51, %v8505_v30  ;;  %v4704_v30 = vadd.f32 %v8521_v34, %v8514_v13 }
 0x206   : > { %v3982_v53 = vpop.f32.mrf.mxu0 }
 0x207   : > { %9149 = vst [vmem:[#allocation4_spill] sm:$0xff] %v8648_v57  ;;  %v8654_v43 = vadd.f32 %v3982_v53, %v8508_v41  ;;  %v8669_v41 = vld [vmem:[%s9118_s2] ss:$0 sm:$0xff]  ;;  %v4702_v53 = vadd.f32 %v8526_v44, %v8519_v33  ;;  %v8685_v33 = vpop.f32.mrf.mxu1 }
 0x208   : > { %v7194_v4 = vpop.f32.mrf.mxu0 }
 0x209   : > { %9150 = vst [vmem:[#allocation5_spill] sm:$0xff] %v8654_v43  ;;  %v8659_v8 = vadd.f32 %v7194_v4, %v8511_v35  ;;  %v8678_v4 = vld [vmem:[%s9119_s3] ss:$0 sm:$0xff]  ;;  %v4708_v43 = vadd.f32 %v8544_v17, %v8534_v56 }
 0x20a   : > { %v3985_v52 = vpop.f32.mrf.mxu0 }
 0x20b   : > { %9151 = vst [vmem:[#allocation6_spill] sm:$0xff] %v8659_v8  ;;  %v8664_v48 = vadd.f32 %v3985_v52, %v8516_v28  ;;  %v4705_v28 = vadd.f32 %v8531_v49, %v8524_v46  ;;  %v4703_v8 = vadd.f32 %v8536_v20, %v8529_v62  ;;  %v4706_v62 = vadd.f32 %v8552_v31, %v8539_v50 }
 0x20c   : > { %v7265_v51 = vpop.f32.mrf.mxu0 }
 0x20d   : > { %9152 = vst [vmem:[#allocation7_spill] sm:$0xff] %v8664_v48  ;;  %v5240_v35 = vadd.f32 %v7265_v51, %v4704_v30 }
 0x20e   : > { %v5059_v13 = vpop.f32.mrf.mxu0 }
 0x20f   : > { %v5355_v34 = vmul.f32 %v8669_v41, %v5240_v35  ;;  %v5238_v52 = vadd.f32 %v5059_v13, %v4702_v53  ;;  %v8695_v35 = vpop.f32.mrf.mxu1 }
 0x210   : > { %v7266_v48 = vpop.f32.mrf.mxu0 }
 0x211   : > { %v5398_v44 = vadd.f32 %v8678_v4, %v5355_v34  ;;  %v5353_v30 = vmul.f32 %v8669_v41, %v5238_v52  ;;  %v5241_v51 = vadd.f32 %v7266_v48, %v4705_v28  ;;  %v4709_v28 = vadd.f32 %v8560_v0, %v8542_v54 }
 0x212   : > { %v5062_v57 = vpop.f32.mrf.mxu0 }
 0x213   : > { %v5434_v3 = vmax.f32 %v5398_v44, 0.0  ;;  %v5396_v46 = vadd.f32 %v8678_v4, %v5353_v30  ;;  %v5356_v49 = vmul.f32 %v8669_v41, %v5241_v51  ;;  %v5239_v53 = vadd.f32 %v5062_v57, %v4703_v8  ;;  %v8708_v44 = vpop.f32.mrf.mxu1 }
 0x214   : > { %v7269_v20 = vpop.f32.mrf.mxu0  ;;  %v4712_v51 = vadd.f32 %v8573_v25, %v8550_v58 }
 0x215   : > { %5470 = vst [vmem:[#allocation2 + $0x10] sm:$0xff] %v5434_v3  ;;  %v5432_v13 = vmax.f32 %v5396_v46, 0.0  ;;  %v8698_v48 = vadd.f32 %v8678_v4, %v5356_v49  ;;  %v5354_v56 = vmul.f32 %v8669_v41, %v5239_v53  ;;  %v5244_v17 = vadd.f32 %v7269_v20, %v4708_v43 }
 0x216   : > { %v5075_v34 = vpop.f32.mrf.mxu0  ;;  %v4707_v3 = vadd.f32 %v8568_v32, %v8547_v2 }
 0x217   : > { %5468 = vst [vmem:[#allocation2] sm:$0xff] %v5432_v13  ;;  %v9125_v57 = vmax.f32 %v8698_v48, 0.0  ;;  %v5397_v50 = vadd.f32 %v8678_v4, %v5354_v56  ;;  %v5359_v31 = vmul.f32 %v8669_v41, %v5244_v17  ;;  %v5242_v8 = vadd.f32 %v5075_v34, %v4706_v62  ;;  %v8725_v13 = vpop.f32.mrf.mxu1 }
 0x218   : > { %v7270_v52 = vpop.f32.mrf.mxu0  ;;  %v4710_v62 = vadd.f32 %v8581_v55, %v8555_v47 }
 0x219   : > { %5471 = vst [vmem:[#allocation2 + $0x18] sm:$0xff] %v9125_v57  ;;  %v5433_v43 = vmax.f32 %v5397_v50, 0.0  ;;  %v8713_v54 = vadd.f32 %v8678_v4, %v5359_v31  ;;  %v5357_v0 = vmul.f32 %v8669_v41, %v5242_v8  ;;  %v5245_v30 = vadd.f32 %v7270_v52, %v4709_v28  ;;  %v8745_v52 = vpop.f32.mrf.mxu1 }
 0x21a   : > { %v5078_v46 = vpop.f32.mrf.mxu0  ;;  %v4713_v28 = vadd.f32 %v8589_v22, %v8558_v1  ;;  %v4711_v8 = vadd.f32 %v8597_v24, %v8563_v39 }
 0x21b   : > { %5469 = vst [vmem:[#allocation2 + $0x8] sm:$0xff] %v5433_v43  ;;  %v9131_v2 = vmax.f32 %v8713_v54, 0.0  ;;  %v8720_v32 = vadd.f32 %v8678_v4, %v5357_v0  ;;  %v5360_v49 = vmul.f32 %v8669_v41, %v5245_v30  ;;  %v5243_v53 = vadd.f32 %v5078_v46, %v4707_v3 }
 0x21c   : > { %v7273_v20 = vpop.f32.mrf.mxu0  ;;  %v4716_v30 = vadd.f32 %v8605_v61, %v8566_v63 }
 0x21d   : > { %5474 = vst [vmem:[#allocation2 + $0x30] sm:$0xff] %v9131_v2  ;;  %v9127_v58 = vmax.f32 %v8720_v32, 0.0  ;;  %v8731_v25 = vadd.f32 %v8678_v4, %v5360_v49  ;;  %v5358_v56 = vmul.f32 %v8669_v41, %v5243_v53  ;;  %v5248_v17 = vadd.f32 %v7273_v20, %v4712_v51  ;;  %v8765_v20 = vpop.f32.mrf.mxu1 }
 0x21e   : > { %v5091_v34 = vpop.f32.mrf.mxu0  ;;  %v4714_v53 = vadd.f32 %v8613_v59, %v8571_v29 }
 0x21f   : > { %5472 = vst [vmem:[#allocation2 + $0x20] sm:$0xff] %v9127_v58  ;;  %v9133_v47 = vmax.f32 %v8731_v25, 0.0  ;;  %v8740_v55 = vadd.f32 %v8678_v4, %v5358_v56  ;;  %v5363_v50 = vmul.f32 %v8669_v41, %v5248_v17  ;;  %v5246_v31 = vadd.f32 %v5091_v34, %v4710_v62 }
 0x220   : > { %v7274_v3 = vpop.f32.mrf.mxu0 }
 0x221   : > { %5475 = vst [vmem:[#allocation2 + $0x38] sm:$0xff] %v9133_v47  ;;  %v9128_v1 = vmax.f32 %v8740_v55, 0.0  ;;  %v8751_v22 = vadd.f32 %v8678_v4, %v5363_v50  ;;  %v5361_v43 = vmul.f32 %v8669_v41, %v5246_v31  ;;  %v5249_v0 = vadd.f32 %v7274_v3, %v4713_v28 }
 0x222   : > { %v5094_v51 = vpop.f32.mrf.mxu0  ;;  %v4717_v28 = vadd.f32 %v8621_v12, %v8576_v16 }
 0x223   : > { %5473 = vst [vmem:[#allocation2 + $0x28] sm:$0xff] %v9128_v1  ;;  %v9140_v39 = vmax.f32 %v8751_v22, 0.0  ;;  %v8760_v24 = vadd.f32 %v8678_v4, %v5361_v43  ;;  %v5364_v46 = vmul.f32 %v8669_v41, %v5249_v0  ;;  %v5247_v49 = vadd.f32 %v5094_v51, %v4711_v8  ;;  %v8785_v43 = vpop.f32.mrf.mxu1 }
 0x224   : > { %v7277_v62 = vpop.f32.mrf.mxu0  ;;  %v4715_v8 = vadd.f32 %v8629_v23, %v8579_v36  ;;  %v4720_v51 = vadd.f32 %v8637_v19, %v8584_v42 }
 0x225   : > { %5478 = vst [vmem:[#allocation2 + $0x50] sm:$0xff] %v9140_v39  ;;  %v9136_v63 = vmax.f32 %v8760_v24, 0.0  ;;  %v8771_v61 = vadd.f32 %v8678_v4, %v5364_v46  ;;  %v5362_v56 = vmul.f32 %v8669_v41, %v5247_v49  ;;  %v5252_v17 = vadd.f32 %v7277_v62, %v4716_v30 }
 0x226   : > { %v5107_v34 = vpop.f32.mrf.mxu0  ;;  %v4718_v62 = vadd.f32 %v8645_v38, %v8587_v5 }
 0x227   : > { %5476 = vst [vmem:[#allocation2 + $0x40] sm:$0xff] %v9136_v63  ;;  %v9142_v29 = vmax.f32 %v8771_v61, 0.0  ;;  %v8780_v59 = vadd.f32 %v8678_v4, %v5362_v56  ;;  %v5367_v50 = vmul.f32 %v8669_v41, %v5252_v17  ;;  %v5250_v31 = vadd.f32 %v5107_v34, %v4714_v53  ;;  %v8805_v17 = vpop.f32.mrf.mxu1 }
 0x228   : > { %v7278_v3 = vpop.f32.mrf.mxu0 }
 0x229   : > { %5479 = vst [vmem:[#allocation2 + $0x58] sm:$0xff] %v9142_v29  ;;  %v9137_v16 = vmax.f32 %v8780_v59, 0.0  ;;  %v8791_v12 = vadd.f32 %v8678_v4, %v5367_v50  ;;  %v5365_v0 = vmul.f32 %v8669_v41, %v5250_v31  ;;  %v5253_v30 = vadd.f32 %v7278_v3, %v4717_v28 }
 0x22a   : > { %v5110_v46 = vpop.f32.mrf.mxu0  ;;  %v4721_v50 = vadd.f32 %v8656_v11, %v8592_v10 }
 0x22b   : > { %5477 = vst [vmem:[#allocation2 + $0x48] sm:$0xff] %v9137_v16  ;;  %v5446_v36 = vmax.f32 %v8791_v12, 0.0  ;;  %v8800_v23 = vadd.f32 %v8678_v4, %v5365_v0  ;;  %v5368_v49 = vmul.f32 %v8669_v41, %v5253_v30  ;;  %v5251_v53 = vadd.f32 %v5110_v46, %v4715_v8 }
 0x22c   : > { %v7281_v56 = vpop.f32.mrf.mxu0  ;;  %v4719_v0 = vadd.f32 %v8673_v60, %v8595_v27 }
 0x22d   : > { %5482 = vst [vmem:[#allocation2 + $0x70] sm:$0xff] %v5446_v36  ;;  %v5444_v42 = vmax.f32 %v8800_v23, 0.0  ;;  %v8811_v19 = vadd.f32 %v8678_v4, %v5368_v49  ;;  %v5366_v28 = vmul.f32 %v8669_v41, %v5251_v53  ;;  %v5256_v34 = vadd.f32 %v7281_v56, %v4720_v51  ;;  %v8825_v51 = vpop.f32.mrf.mxu1 }
 0x22e   : > { %v5123_v31 = vpop.f32.mrf.mxu0  ;;  %v4724_v53 = vadd.f32 %v8685_v33, %v8600_v6 }
 0x22f   : > { %5480 = vst [vmem:[#allocation2 + $0x60] sm:$0xff] %v5444_v42  ;;  %v5447_v5 = vmax.f32 %v8811_v19, 0.0  ;;  %v8820_v38 = vadd.f32 %v8678_v4, %v5366_v28  ;;  %v5371_v8 = vmul.f32 %v8669_v41, %v5256_v34  ;;  %v5254_v3 = vadd.f32 %v5123_v31, %v4718_v62 }
 0x230   : > { %v7282_v30 = vpop.f32.mrf.mxu0  ;;  %v4722_v34 = vadd.f32 %v8695_v35, %v8603_v9 }
 0x231   : > { %5483 = vst [vmem:[#allocation2 + $0x78] sm:$0xff] %v5447_v5  ;;  %v5445_v10 = vmax.f32 %v8820_v38, 0.0  ;;  %v8831_v11 = vadd.f32 %v8678_v4, %v5371_v8  ;;  %v5369_v46 = vmul.f32 %v8669_v41, %v5254_v3  ;;  %v5257_v49 = vadd.f32 %v7282_v30, %v4721_v50  ;;  %v4635_v50 = vpop.f32.mrf.mxu1 }
 0x232   : > { %v5126_v62 = vpop.f32.mrf.mxu0  ;;  %v4725_v30 = vadd.f32 %v8708_v44, %v8608_v37 }
 0x233   : > { %5481 = vst [vmem:[#allocation2 + $0x68] sm:$0xff] %v5445_v10  ;;  %v9124_v27 = vmax.f32 %v8831_v11, 0.0  ;;  %v8840_v60 = vadd.f32 %v8678_v4, %v5369_v46  ;;  %v5372_v56 = vmul.f32 %v8669_v41, %v5257_v49  ;;  %v5255_v28 = vadd.f32 %v5126_v62, %v4719_v0 }
 0x234   : > { %v7285_v31 = vpop.f32.mrf.mxu0  ;;  %v4723_v62 = vadd.f32 %v8725_v13, %v8611_v40 }
 0x235   : > { %5486 = vst [vmem:[#allocation2 + $0x90] sm:$0xff] %v9124_v27  ;;  %v9122_v6 = vmax.f32 %v8840_v60, 0.0  ;;  %v8849_v33 = vadd.f32 %v8678_v4, %v5372_v56  ;;  %v5370_v8 = vmul.f32 %v8669_v41, %v5255_v28  ;;  %v5260_v3 = vadd.f32 %v7285_v31, %v4724_v53  ;;  %v7242_v53 = vpop.f32.mrf.mxu1 }
 0x236   : > { %v5139_v0 = vpop.f32.mrf.mxu0 }
 0x237   : > { %5484 = vst [vmem:[#allocation2 + $0x80] sm:$0xff] %v9122_v6  ;;  %v9126_v9 = vmax.f32 %v8849_v33, 0.0  ;;  %v8858_v35 = vadd.f32 %v8678_v4, %v5370_v8  ;;  %v5375_v46 = vmul.f32 %v8669_v41, %v5260_v3  ;;  %v5258_v49 = vadd.f32 %v5139_v0, %v4722_v34 }
 0x238   : > { %v7286_v56 = vpop.f32.mrf.mxu0  ;;  %v4728_v8 = vadd.f32 %v8745_v52, %v8616_v18 }
 0x239   : > { %5487 = vst [vmem:[#allocation2 + $0x98] sm:$0xff] %v9126_v9  ;;  %v9123_v37 = vmax.f32 %v8858_v35, 0.0  ;;  %v8867_v44 = vadd.f32 %v8678_v4, %v5375_v46  ;;  %v5373_v28 = vmul.f32 %v8669_v41, %v5258_v49  ;;  %v5261_v31 = vadd.f32 %v7286_v56, %v4725_v30  ;;  %v4638_v30 = vpop.f32.mrf.mxu1 }
 0x23a   : > { %v5142_v34 = vpop.f32.mrf.mxu0  ;;  %v4726_v46 = vadd.f32 %v8765_v20, %v8619_v14 }
 0x23b   : > { %5485 = vst [vmem:[#allocation2 + $0x88] sm:$0xff] %v9123_v37  ;;  %v9132_v40 = vmax.f32 %v8867_v44, 0.0  ;;  %v8876_v13 = vadd.f32 %v8678_v4, %v5373_v28  ;;  %v5376_v3 = vmul.f32 %v8669_v41, %v5261_v31  ;;  %v5259_v0 = vadd.f32 %v5142_v34, %v4723_v62 }
 0x23c   : > { %v7289_v49 = vpop.f32.mrf.mxu0  ;;  %v4729_v31 = vadd.f32 %v8785_v43, %v8624_v21 }
 0x23d   : > { %5490 = vst [vmem:[#allocation2 + $0xb0] sm:$0xff] %v9132_v40  ;;  %v9129_v18 = vmax.f32 %v8876_v13, 0.0  ;;  %v8885_v52 = vadd.f32 %v8678_v4, %v5376_v3  ;;  %v5374_v56 = vmul.f32 %v8669_v41, %v5259_v0  ;;  %v5264_v28 = vadd.f32 %v7289_v49, %v4728_v8  ;;  %v7245_v8 = vpop.f32.mrf.mxu1 }
 0x23e   : > { %v5155_v62 = vpop.f32.mrf.mxu0  ;;  %v4727_v3 = vadd.f32 %v8805_v17, %v8627_v45 }
 0x23f   : > { %5488 = vst [vmem:[#allocation2 + $0xa0] sm:$0xff] %v9129_v18  ;;  %v9134_v14 = vmax.f32 %v8885_v52, 0.0  ;;  %v8894_v20 = vadd.f32 %v8678_v4, %v5374_v56  ;;  %v5379_v34 = vmul.f32 %v8669_v41, %v5264_v28  ;;  %v5262_v6 = vadd.f32 %v5155_v62, %v4726_v46 }
 0x240   : > { %v7290_v0 = vpop.f32.mrf.mxu0  ;;  %v4732_v28 = vadd.f32 %v8825_v51, %v8632_v7 }
 0x241   : > { %5491 = vst [vmem:[#allocation2 + $0xb8] sm:$0xff] %v9134_v14  ;;  %v9130_v21 = vmax.f32 %v8894_v20, 0.0  ;;  %v8903_v43 = vadd.f32 %v8678_v4, %v5379_v34  ;;  %v5377_v49 = vmul.f32 %v8669_v41, %v5262_v6  ;;  %v5265_v56 = vadd.f32 %v7290_v0, %v4729_v31  ;;  %v4651_v6 = vpop.f32.mrf.mxu1 }
 0x242   : > { %v5158_v46 = vpop.f32.mrf.mxu0  ;;  %v4730_v34 = vadd.f32 %v4635_v50, %v8635_v26 }
 0x243   : > { %5489 = vst [vmem:[#allocation2 + $0xa8] sm:$0xff] %v9130_v21  ;;  %v9141_v45 = vmax.f32 %v8903_v43, 0.0  ;;  %v8912_v17 = vadd.f32 %v8678_v4, %v5377_v49  ;;  %v5380_v62 = vmul.f32 %v8669_v41, %v5265_v56  ;;  %v5263_v37 = vadd.f32 %v5158_v46, %v4727_v3  ;;  %v9153_v46 = vld [vmem:[#allocation3_spill] sm:$0xff]  ;;  %v7246_v58 = vpop.f32.mrf.mxu1 }
 0x244   : > { %v7293_v27 = vpop.f32.mrf.mxu0  ;;  %v4733_v49 = vadd.f32 %v7242_v53, %v8640_v15 }
 0x245   : > { %5494 = vst [vmem:[#allocation2 + $0xd0] sm:$0xff] %v9141_v45  ;;  %v9138_v7 = vmax.f32 %v8912_v17, 0.0  ;;  %v8920_v51 = vadd.f32 %v8678_v4, %v5380_v62  ;;  %v5378_v31 = vmul.f32 %v8669_v41, %v5263_v37  ;;  %v5268_v0 = vadd.f32 %v7293_v27, %v4732_v28  ;;  %v9154_v28 = vld [vmem:[#allocation4_spill] sm:$0xff]  ;;  %v4654_v21 = vpop.f32.mrf.mxu1 }
 0x246   : > { %v5171_v57 = vpop.f32.mrf.mxu0  ;;  %v4731_v62 = vadd.f32 %v4638_v30, %v9153_v46  ;;  %v9155_v46 = vld [vmem:[#allocation5_spill] sm:$0xff] }
 0x247   : > { %5492 = vst [vmem:[#allocation2 + $0xc0] sm:$0xff] %v9138_v7  ;;  %v9143_v26 = vmax.f32 %v8920_v51, 0.0  ;;  %v8928_v50 = vadd.f32 %v8678_v4, %v5378_v31  ;;  %v5383_v3 = vmul.f32 %v8669_v41, %v5268_v0  ;;  %v5266_v56 = vadd.f32 %v5171_v57, %v4730_v34 }
 0x248   : > { %v7294_v9 = vpop.f32.mrf.mxu0  ;;  %v4736_v31 = vadd.f32 %v7245_v8, %v9154_v28  ;;  %v9156_v28 = vld [vmem:[#allocation6_spill] sm:$0xff] }
 0x249   : > { %5495 = vst [vmem:[#allocation2 + $0xd8] sm:$0xff] %v9143_v26  ;;  %v9139_v15 = vmax.f32 %v8928_v50, 0.0  ;;  %v8936_v27 = vadd.f32 %v8678_v4, %v5383_v3  ;;  %v5381_v53 = vmul.f32 %v8669_v41, %v5266_v56  ;;  %v5269_v37 = vadd.f32 %v7294_v9, %v4733_v49  ;;  %v5551_v26 = vld [vmem:[#allocation2 + $0x69] sm:$0xff] }
 0x24a   : > { %v5174_v1 = vpop.f32.mrf.mxu0  ;;  %v4734_v3 = vadd.f32 %v4651_v6, %v9155_v46  ;;  %v9157_v46 = vld [vmem:[#allocation7_spill] sm:$0xff] }
 0x24b   : > { %5493 = vst [vmem:[#allocation2 + $0xc8] sm:$0xff] %v9139_v15  ;;  %v5462_v57 = vmax.f32 %v8936_v27, 0.0  ;;  %v8944_v30 = vadd.f32 %v8678_v4, %v5381_v53  ;;  %v5384_v34 = vmul.f32 %v8669_v41, %v5269_v37  ;;  %v5267_v0 = vadd.f32 %v5174_v1, %v4731_v62  ;;  %v5652_v27 = vld [vmem:[#allocation2 + $0x73] sm:$0xff] }
 0x24c   : > { %v7297_v18 = vpop.f32.mrf.mxu0  ;;  %v4737_v53 = vadd.f32 %v7246_v58, %v9156_v28  ;;  %v4735_v40 = vadd.f32 %v4654_v21, %v9157_v46  ;;  %v5655_v46 = vld [vmem:[#allocation2 + $0x8b] sm:$0xff] }
 0x24d   : > { %5498 = vst [vmem:[#allocation2 + $0xf0] sm:$0xff] %v5462_v57  ;;  %v5460_v9 = vmax.f32 %v8944_v30, 0.0  ;;  %v5427_v8 = vadd.f32 %v8678_v4, %v5384_v34  ;;  %v5382_v49 = vmul.f32 %v8669_v41, %v5267_v0  ;;  %v5272_v56 = vadd.f32 %v7297_v18, %v4736_v31  ;;  %v5549_v30 = vld [vmem:[#allocation2 + $0x59] sm:$0xff] }
 0x24e   : > { %v5187_v2 = vpop.f32.mrf.mxu0 }
 0x24f   : > { %5496 = vst [vmem:[#allocation2 + $0xe0] sm:$0xff] %v5460_v9  ;;  %v5463_v1 = vmax.f32 %v5427_v8, 0.0  ;;  %v8957_v6 = vadd.f32 %v8678_v4, %v5382_v49  ;;  %v5387_v62 = vmul.f32 %v8669_v41, %v5272_v56  ;;  %v5270_v37 = vadd.f32 %v5187_v2, %v4734_v3 }
 0x250   : > { %v7298_v47 = vpop.f32.mrf.mxu0 }
 0x251   : > { %5499 = vst [vmem:[#allocation2 + $0xf8] sm:$0xff] %v5463_v1  ;;  %v5461_v34 = vmax.f32 %v8957_v6, 0.0  ;;  %v5430_v18 = vadd.f32 %v8678_v4, %v5387_v62  ;;  %v5385_v58 = vmul.f32 %v8669_v41, %v5270_v37  ;;  %v5273_v31 = vadd.f32 %v7298_v47, %v4737_v53  ;;  %v5553_v62 = vld [vmem:[#allocation2 + $0x79] sm:$0xff]  ;;  %v5621_v37 = vld [vmem:[#allocation2 + $0x8a] sm:$0xff] }
 0x252   : > { %v5190_v0 = vpop.f32.mrf.mxu0  ;;  %v5689_v14 = vmax.f32 %v5621_v37, %v5655_v46  ;;  %v5550_v46 = vld [vmem:[#allocation2 + $0x61] sm:$0xff] }
 0x253   : > { %5497 = vst [vmem:[#allocation2 + $0xe8] sm:$0xff] %v5461_v34  ;;  %v5466_v8 = vmax.f32 %v5430_v18, 0.0  ;;  %v8965_v49 = vadd.f32 %v8678_v4, %v5385_v58  ;;  %v5388_v56 = vmul.f32 %v8669_v41, %v5273_v31  ;;  %v5271_v2 = vadd.f32 %v5190_v0, %v4735_v40  ;;  %v5620_v18 = vld [vmem:[#allocation2 + $0x82] sm:$0xff]  ;;  %v5552_v0 = vld [vmem:[#allocation2 + $0x71] sm:$0xff] }
 0x254   : > { %v5654_v58 = vld [vmem:[#allocation2 + $0x83] sm:$0xff]  ;;  %v5584_v12 = vmax.f32 %v5444_v42, %v5550_v46  ;;  %v9158_v42 = vmax.f32 %v8920_v51, 0.0 }
 0x255   : > { %5502 = vst [vmem:[#allocation2 + $0x110] sm:$0xff] %v5466_v8  ;;  %v9135_v21 = vmax.f32 %v8965_v49, 0.0  ;;  %v5431_v3 = vadd.f32 %v8678_v4, %v5388_v56  ;;  %v5386_v28 = vmul.f32 %v8669_v41, %v5271_v2  ;;  %v5688_v16 = vmax.f32 %v5620_v18, %v5654_v58  ;;  %v5651_v58 = vld [vmem:[#allocation2 + $0x6b] sm:$0xff] }
 0x256   : > { %v5631_v38 = vld [vmem:[#allocation2 + $0xda] sm:$0xff]  ;;  %v5547_v51 = vld [vmem:[#allocation2 + $0x49] sm:$0xff] }
 0x257   : > { %5500 = vst [vmem:[#allocation2 + $0x100] sm:$0xff] %v9135_v21  ;;  %v5467_v47 = vmax.f32 %v5431_v3, 0.0  ;;  %v5429_v53 = vadd.f32 %v8678_v4, %v5386_v28  ;;  %v5619_v28 = vld [vmem:[#allocation2 + $0x7a] sm:$0xff] }
 0x258   : > { %v5568_v31 = vld [vmem:[#allocation2 + $0xf1] sm:$0xff] }
 0x259   : > { %5503 = vst [vmem:[#allocation2 + $0x118] sm:$0xff] %v5467_v47  ;;  %v5465_v6 = vmax.f32 %v5429_v53, 0.0  ;;  %v5653_v47 = vld [vmem:[#allocation2 + $0x7b] sm:$0xff]  ;;  %v5587_v53 = vmax.f32 %v5447_v5, %v5553_v62  ;;  %v5602_v45 = vmax.f32 %v5462_v57, %v5568_v31  ;;  %v5634_v37 = vld [vmem:[#allocation2 + $0xf2] sm:$0xff]  ;;  %v5617_v57 = vld [vmem:[#allocation2 + $0x6a] sm:$0xff] }
 0x25a   : > { %v5567_v7 = vld [vmem:[#allocation2 + $0xe9] sm:$0xff]  ;;  %v5566_v15 = vld [vmem:[#allocation2 + $0xe1] sm:$0xff]  ;;  %v5668_v19 = vld [vmem:[#allocation2 + $0xf3] sm:$0xff] }
 0x25b   : > { %5501 = vst [vmem:[#allocation2 + $0x108] sm:$0xff] %v5465_v6  ;;  %v5633_v5 = vld [vmem:[#allocation2 + $0xea] sm:$0xff]  ;;  %v5601_v18 = vmax.f32 %v5461_v34, %v5567_v7 }
 0x25e   : > { %v5569_v40 = vld [vmem:[#allocation2 + $0xf9] sm:$0xff] }
 0x25f   : > { %v5635_v8 = vld [vmem:[#allocation2 + $0xfa] sm:$0xff]  ;;  %v5603_v3 = vmax.f32 %v5463_v1, %v5569_v40  ;;  %v5618_v1 = vld [vmem:[#allocation2 + $0x72] sm:$0xff]  ;;  %v5723_v40 = vmax.f32 %v5587_v53, %v5689_v14  ;;  %v5585_v14 = vmax.f32 %v5445_v10, %v5551_v26 }
 0x260   : > { %v5669_v56 = vld [vmem:[#allocation2 + $0xfb] sm:$0xff] }
 0x261   : > { %v5703_v29 = vmax.f32 %v5635_v8, %v5669_v56  ;;  %v5666_v8 = vld [vmem:[#allocation2 + $0xe3] sm:$0xff]  ;;  %v5686_v56 = vmax.f32 %v5618_v1, %v5652_v27  ;;  %v5665_v10 = vld [vmem:[#allocation2 + $0xdb] sm:$0xff]  ;;  %v9161_v27 = vmax.f32 %v8751_v22, 0.0  ;;  %v9164_v22 = vmax.f32 %v8780_v59, 0.0 }
 0x262   : > { %v5637_v41 = vld [vmem:[#allocation2 + $0x10a] sm:$0xff]  ;;  %v5636_v21 = vld [vmem:[#allocation2 + $0x102] sm:$0xff]  ;;  %v5627_v59 = vld [vmem:[#allocation2 + $0xba] sm:$0xff] }
 0x263   : > { %v5671_v2 = vld [vmem:[#allocation2 + $0x10b] sm:$0xff]  ;;  %v5670_v4 = vld [vmem:[#allocation2 + $0x103] sm:$0xff]  ;;  %v5720_v53 = vmax.f32 %v5584_v12, %v5686_v56  ;;  %v5561_v56 = vld [vmem:[#allocation2 + $0xb9] sm:$0xff] }
 0x264   : > { %v5705_v63 = vmax.f32 %v5637_v41, %v5671_v2  ;;  %v5704_v6 = vmax.f32 %v5636_v21, %v5670_v4  ;;  %v5586_v41 = vmax.f32 %v5446_v36, %v5552_v0  ;;  %v5687_v2 = vmax.f32 %v5619_v28, %v5653_v47  ;;  %v5667_v21 = vld [vmem:[#allocation2 + $0xeb] sm:$0xff]  ;;  %v5565_v36 = vld [vmem:[#allocation2 + $0xd9] sm:$0xff]  ;;  %v5632_v0 = vld [vmem:[#allocation2 + $0xe2] sm:$0xff] }
 0x265   : > { %v5701_v7 = vmax.f32 %v5633_v5, %v5667_v21  ;;  %v5599_v26 = vmax.f32 %v9158_v42, %v5565_v36  ;;  %v5700_v4 = vmax.f32 %v5632_v0, %v5666_v8  ;;  %v5548_v28 = vld [vmem:[#allocation2 + $0x51] sm:$0xff]  ;;  %v5649_v47 = vld [vmem:[#allocation2 + $0x5b] sm:$0xff]  ;;  %v5563_v1 = vld [vmem:[#allocation2 + $0xc9] sm:$0xff]  ;;  %v5699_v5 = vmax.f32 %v5631_v38, %v5665_v10 }
 0x266   : > { %v5739_v39 = vmax.f32 %v5603_v3, %v5705_v63  ;;  %v5738_v62 = vmax.f32 %v5602_v45, %v5704_v6  ;;  %v5600_v63 = vmax.f32 %v5460_v9, %v5566_v15  ;;  %v5722_v31 = vmax.f32 %v5586_v41, %v5688_v16  ;;  %v5616_v15 = vld [vmem:[#allocation2 + $0x62] sm:$0xff]  ;;  %v5564_v3 = vld [vmem:[#allocation2 + $0xd1] sm:$0xff] }
 0x267   : > { %v5702_v45 = vmax.f32 %v5634_v37, %v5668_v19  ;;  %v5650_v9 = vld [vmem:[#allocation2 + $0x63] sm:$0xff]  ;;  %v5721_v34 = vmax.f32 %v5585_v14, %v5687_v2  ;;  %v5685_v16 = vmax.f32 %v5617_v57, %v5651_v58  ;;  %v9159_v6 = vmax.f32 %v8771_v61, 0.0  ;;  %v5630_v21 = vld [vmem:[#allocation2 + $0xd2] sm:$0xff] }
 0x268   : > { %6765 = vmatprep.subr.mxu1 %v5739_v39  ;;  %v5737_v39 = vmax.f32 %v5601_v18, %v5703_v29  ;;  %v5615_v29 = vld [vmem:[#allocation2 + $0x5a] sm:$0xff]  ;;  %v5684_v46 = vmax.f32 %v5616_v15, %v5650_v9  ;;  %v5735_v41 = vmax.f32 %v5599_v26, %v5701_v7  ;;  %v9160_v2 = vmax.f32 %v8903_v43, 0.0  ;;  %v5614_v18 = vld [vmem:[#allocation2 + $0x52] sm:$0xff]  ;;  %v5646_v42 = vld [vmem:[#allocation2 + $0x43] sm:$0xff] }
 0x269   : > { %6766 = vmatpush3.msra.mxu1 %v5723_v40  ;;  %v5736_v23 = vmax.f32 %v5600_v63, %v5702_v45  ;;  %v5583_v37 = vmax.f32 %v9159_v6, %v5549_v30  ;;  %v5562_v40 = vld [vmem:[#allocation2 + $0xc1] sm:$0xff]  ;;  %v5582_v57 = vmax.f32 %v9161_v27, %v5548_v28  ;;  %v5683_v61 = vmax.f32 %v5615_v29, %v5649_v47  ;;  %v5664_v58 = vld [vmem:[#allocation2 + $0xd3] sm:$0xff]  ;;  %v5663_v14 = vld [vmem:[#allocation2 + $0xcb] sm:$0xff] }
 0x26a   : > { %6767 = vmatprep.subr.mxu1 %v5738_v62  ;;  %v5598_v19 = vmax.f32 %v9160_v2, %v5564_v3  ;;  %v5546_v62 = vld [vmem:[#allocation2 + $0x41] sm:$0xff]  ;;  %v9162_v36 = vmax.f32 %v8928_v50, 0.0  ;;  %v9163_v0 = vmax.f32 %v8912_v17, 0.0  ;;  %v5613_v45 = vld [vmem:[#allocation2 + $0x4a] sm:$0xff]  ;;  %v5581_v15 = vmax.f32 %v9164_v22, %v5547_v51  ;;  %v5545_v17 = vld [vmem:[#allocation2 + $0x39] sm:$0xff] }
 0x26b   : > { %6768 = vmatpush3.msra.mxu1 %v5722_v31  ;;  %v5719_v63 = vmax.f32 %v5583_v37, %v5685_v16  ;;  %v5629_v31 = vld [vmem:[#allocation2 + $0xca] sm:$0xff]  ;;  %v5718_v30 = vmax.f32 %v5582_v57, %v5684_v46  ;;  %v9165_v9 = vmax.f32 %v8760_v24, 0.0  ;;  %v5628_v16 = vld [vmem:[#allocation2 + $0xc2] sm:$0xff]  ;;  %v5698_v38 = vmax.f32 %v5630_v21, %v5664_v58  ;;  %v5626_v57 = vld [vmem:[#allocation2 + $0xb2] sm:$0xff] }
 0x26c   : > { %6769 = vmatprep.subr.mxu1 %v5737_v39  ;;  %v5734_v12 = vmax.f32 %v5598_v19, %v5700_v4  ;;  %v5597_v43 = vmax.f32 %v9162_v36, %v5563_v1  ;;  %v5596_v8 = vmax.f32 %v9163_v0, %v5562_v40  ;;  %v5648_v39 = vld [vmem:[#allocation2 + $0x53] sm:$0xff]  ;;  %v5647_v7 = vld [vmem:[#allocation2 + $0x4b] sm:$0xff]  ;;  %v5662_v3 = vld [vmem:[#allocation2 + $0xc3] sm:$0xff]  ;;  %v5697_v10 = vmax.f32 %v5629_v31, %v5663_v14 }
 0x26d   : > { %6770 = vmatpush3.msra.mxu1 %v5721_v34  ;;  %v5580_v34 = vmax.f32 %v9165_v9, %v5546_v62  ;;  %v5717_v26 = vmax.f32 %v5581_v15, %v5683_v61  ;;  %v5682_v4 = vmax.f32 %v5614_v18, %v5648_v39  ;;  %v5681_v28 = vmax.f32 %v5613_v45, %v5647_v7  ;;  %v5560_v29 = vld [vmem:[#allocation2 + $0xb1] sm:$0xff]  ;;  %v5661_v47 = vld [vmem:[#allocation2 + $0xbb] sm:$0xff]  ;;  %v5559_v51 = vld [vmem:[#allocation2 + $0xa9] sm:$0xff] }
 0x26e   : > { %6771 = vmatprep.subr.mxu1 %v5736_v23  ;;  %v5733_v50 = vmax.f32 %v5597_v43, %v5699_v5  ;;  %v5612_v23 = vld [vmem:[#allocation2 + $0x42] sm:$0xff]  ;;  %v5732_v24 = vmax.f32 %v5596_v8, %v5698_v38  ;;  %v5696_v37 = vmax.f32 %v5628_v16, %v5662_v3  ;;  %v5544_v46 = vld [vmem:[#allocation2 + $0x31] sm:$0xff]  ;;  %v5611_v1 = vld [vmem:[#allocation2 + $0x3a] sm:$0xff]  ;;  %v9167_v2 = vmax.f32 %v8731_v25, 0.0 }
 0x26f   : > { %6772 = vmatpush3.msra.mxu1 %v5720_v53  ;;  %v9166_v53 = vmax.f32 %v8885_v52, 0.0  ;;  %v5645_v40 = vld [vmem:[#allocation2 + $0x3b] sm:$0xff]  ;;  %v5680_v5 = vmax.f32 %v5612_v23, %v5646_v42  ;;  %v9168_v18 = vmax.f32 %v8867_v44, 0.0  ;;  %v5695_v27 = vmax.f32 %v5627_v59, %v5661_v47  ;;  %v5543_v52 = vld [vmem:[#allocation2 + $0x29] sm:$0xff]  ;;  %v5610_v58 = vld [vmem:[#allocation2 + $0x32] sm:$0xff] }
 0x270   : > { %6773 = vmatprep.subr.mxu1 %v5735_v41  ;;  %v5716_v41 = vmax.f32 %v5580_v34, %v5682_v4  ;;  %v5579_v19 = vmax.f32 %v9167_v2, %v5545_v17  ;;  %v5558_v21 = vld [vmem:[#allocation2 + $0xa1] sm:$0xff]  ;;  %v9169_v14 = vmax.f32 %v8713_v54, 0.0  ;;  %v5679_v25 = vmax.f32 %v5611_v1, %v5645_v40  ;;  %v5660_v36 = vld [vmem:[#allocation2 + $0xb3] sm:$0xff]  ;;  %v5625_v43 = vld [vmem:[#allocation2 + $0xaa] sm:$0xff] }
 0x271   : > { %6774 = vmatpush3.msra.mxu1 %v5719_v63  ;;  %v5595_v6 = vmax.f32 %v9166_v53, %v5561_v56  ;;  %v5594_v63 = vmax.f32 %v9168_v18, %v5560_v29  ;;  %v5542_v61 = vld [vmem:[#allocation2 + $0x21] sm:$0xff]  ;;  %v5659_v0 = vld [vmem:[#allocation2 + $0xab] sm:$0xff]  ;;  %v9170_v39 = vmax.f32 %v8894_v20, 0.0  ;;  %v9171_v45 = vmax.f32 %v8876_v13, 0.0  ;;  %v5557_v3 = vld [vmem:[#allocation2 + $0x99] sm:$0xff] }
 0x272   : > { %6775 = vmatprep.subr.mxu1 %v5734_v12  ;;  %v5715_v31 = vmax.f32 %v5579_v19, %v5681_v28  ;;  %v5578_v12 = vmax.f32 %v9169_v14, %v5544_v46  ;;  %v5609_v22 = vld [vmem:[#allocation2 + $0x2a] sm:$0xff]  ;;  %v9172_v54 = vmax.f32 %v8740_v55, 0.0  ;;  %v9173_v56 = vmax.f32 %v8720_v32, 0.0  ;;  %v5541_v13 = vld [vmem:[#allocation2 + $0x19] sm:$0xff]  ;;  %v5608_v23 = vld [vmem:[#allocation2 + $0x22] sm:$0xff] }
 0x273   : > { %6776 = vmatpush3.msra.mxu1 %v5718_v30  ;;  %v5731_v62 = vmax.f32 %v5595_v6, %v5697_v10  ;;  %v5730_v8 = vmax.f32 %v5594_v63, %v5696_v37  ;;  %v5593_v44 = vmax.f32 %v9170_v39, %v5559_v51  ;;  %v5592_v7 = vmax.f32 %v9171_v45, %v5558_v21  ;;  %v5644_v30 = vld [vmem:[#allocation2 + $0x33] sm:$0xff]  ;;  %v5643_v15 = vld [vmem:[#allocation2 + $0x2b] sm:$0xff]  ;;  %v5658_v38 = vld [vmem:[#allocation2 + $0xa3] sm:$0xff] }
 0x274   : > { %6777 = vmatprep.subr.mxu1 %v5733_v50  ;;  %v5714_v9 = vmax.f32 %v5578_v12, %v5680_v5  ;;  %v5577_v34 = vmax.f32 %v9172_v54, %v5543_v52  ;;  %v5576_v16 = vmax.f32 %v9173_v56, %v5542_v61  ;;  %v5624_v50 = vld [vmem:[#allocation2 + $0xa2] sm:$0xff]  ;;  %v5694_v10 = vmax.f32 %v5626_v57, %v5660_v36  ;;  %v5556_v29 = vld [vmem:[#allocation2 + $0x91] sm:$0xff]  ;;  %v5623_v55 = vld [vmem:[#allocation2 + $0x9a] sm:$0xff] }
 0x275   : > { %6778 = vmatpush3.msra.mxu1 %v5717_v26  ;;  %v5729_v20 = vmax.f32 %v5593_v44, %v5695_v27  ;;  %v5693_v17 = vmax.f32 %v5625_v43, %v5659_v0  ;;  %v5642_v42 = vld [vmem:[#allocation2 + $0x23] sm:$0xff]  ;;  %v5678_v4 = vmax.f32 %v5610_v58, %v5644_v30  ;;  %v5677_v28 = vmax.f32 %v5609_v22, %v5643_v15  ;;  %v5657_v59 = vld [vmem:[#allocation2 + $0x9b] sm:$0xff]  ;;  %v5506_v6 = vld [vmem:[#allocation2 + $0x10] sm:$0xff] }
 0x276   : > { %6779 = vmatprep.subr.mxu1 %v5732_v24  ;;  %v5713_v26 = vmax.f32 %v5577_v34, %v5679_v25  ;;  %v5728_v32 = vmax.f32 %v5592_v7, %v5694_v10  ;;  %v9174_v47 = vmax.f32 %v8849_v33, 0.0  ;;  %v5692_v53 = vmax.f32 %v5624_v50, %v5658_v38  ;;  %v5540_v37 = vld [vmem:[#allocation2 + $0x11] sm:$0xff]  ;;  %v5607_v46 = vld [vmem:[#allocation2 + $0x1a] sm:$0xff]  ;;  %v5555_v5 = vld [vmem:[#allocation2 + $0x89] sm:$0xff] }
 0x277   : > { %6780 = vmatpush3.msra.mxu1 %v5716_v41  ;;  %v5641_v1 = vld [vmem:[#allocation2 + $0x1b] sm:$0xff]  ;;  %v5712_v40 = vmax.f32 %v5576_v16, %v5678_v4  ;;  %v9175_v41 = vmax.f32 %v8698_v48, 0.0  ;;  %v5676_v19 = vmax.f32 %v5608_v23, %v5642_v42  ;;  %v5505_v51 = vld [vmem:[#allocation2 + $0x8] sm:$0xff]  ;;  %v9176_v18 = vmax.f32 %v8831_v11, 0.0  ;;  %v5622_v52 = vld [vmem:[#allocation2 + $0x92] sm:$0xff] }
 0x278   : > { %6781 = vmatprep.subr.mxu1 %v5731_v62  ;;  %v5591_v24 = vmax.f32 %v9174_v47, %v5557_v3  ;;  %v5554_v21 = vld [vmem:[#allocation2 + $0x81] sm:$0xff]  ;;  %v5691_v63 = vmax.f32 %v5623_v55, %v5657_v59  ;;  %v5539_v27 = vld [vmem:[#allocation2 + $0x9] sm:$0xff]  ;;  %v5574_v58 = vmax.f32 %v5506_v6, %v5540_v37  ;;  %v5656_v14 = vld [vmem:[#allocation2 + $0x93] sm:$0xff]  ;;  %v9177_v36 = vmax.f32 %v8858_v35, 0.0 }
 0x279   : > { %6782 = vmatpush3.msra.mxu1 %v5715_v31  ;;  %v5575_v2 = vmax.f32 %v9175_v41, %v5541_v13  ;;  %v5590_v33 = vmax.f32 %v9176_v18, %v5556_v29  ;;  %v5538_v57 = vld [vmem:[#allocation2 + $0x1] sm:$0xff]  ;;  %v5675_v31 = vmax.f32 %v5607_v46, %v5641_v1  ;;  %v5571_v12 = vld [vmem:[#allocation2 + $0x109] sm:$0x1f]  ;;  %v9178_v0 = vmax.f32 %v8840_v60, 0.0  ;;  %v5606_v39 = vld [vmem:[#allocation2 + $0x12] sm:$0xff] }
 0x27a   : > { %6783 = vmatprep.subr.mxu1 %v5730_v8  ;;  %v5727_v62 = vmax.f32 %v5591_v24, %v5693_v17  ;;  %v5537_v48 = vld [vmem:[#allocation2 + $0x108] sm:$0x1f]  ;;  %v5589_v43 = vmax.f32 %v9177_v36, %v5555_v5  ;;  %v5504_v8 = vld [vmem:[#allocation2] sm:$0xff]  ;;  %v5640_v44 = vld [vmem:[#allocation2 + $0x13] sm:$0xff]  ;;  %v5710_v45 = vmax.f32 %v5574_v58, %v5676_v19  ;;  %v5573_v7 = vmax.f32 %v5505_v51, %v5539_v27 }
 0x27b   : > { %6784 = vmatpush3.msra.mxu1 %v5714_v9  ;;  %v5711_v61 = vmax.f32 %v5575_v2, %v5677_v28  ;;  %v5726_v25 = vmax.f32 %v5590_v33, %v5692_v53  ;;  %v5588_v11 = vmax.f32 %v9178_v0, %v5554_v21  ;;  %v5572_v30 = vmax.f32 %v5504_v8, %v5538_v57  ;;  %v5639_v22 = vld [vmem:[#allocation2 + $0x11a] sm:$0x1f]  ;;  %v5570_v9 = vld [vmem:[#allocation2 + $0x101] sm:$0xff]  ;;  %v5638_v3 = vld [vmem:[#allocation2 + $0x112] sm:$0xff] }
 0x27c   : > { %6785 = vmatprep.subr.mxu1 %v5729_v20  ;;  %v5673_v15 = vld [vmem:[#allocation2 + $0x11b] sm:$0x1f]  ;;  %v5725_v54 = vmax.f32 %v5589_v43, %v5691_v63  ;;  %v5690_v34 = vmax.f32 %v5622_v52, %v5656_v14  ;;  %v5605_v56 = vmax.f32 %v5537_v48, %v5571_v12  ;;  %v5709_v35 = vmax.f32 %v5573_v7, %v5675_v31  ;;  %v5672_v60 = vld [vmem:[#allocation2 + $0x113] sm:$0xff]  ;;  %v5742_v13 = vld [vmem:[%s9120_s4] sm:$0xff] }
 0x27d   : > { %6786 = vmatpush3.msra.mxu1 %v5713_v26  ;;  %v5674_v16 = vmax.f32 %v5606_v39, %v5640_v44  ;;  %v5707_v38 = vmax.f32 %v5639_v22, %v5673_v15  ;;  %v9179_v20 = vmax.f32 %v8965_v49, 0.0  ;;  %v5706_v42 = vmax.f32 %v5638_v3, %v5672_v60  ;;  %v5746_v26 = vld [vmem:[%s9120_s4 + $0x20] sm:$0xff]  ;;  %v5745_v49 = vld [vmem:[%s9120_s4 + $0x18] sm:$0xff]  ;;  %v5748_v29 = vld [vmem:[%s9120_s4 + $0x30] sm:$0xff] }
 0x27e   : > { %6787 = vmatprep.subr.mxu1 %v5728_v32  ;;  %v5724_v50 = vmax.f32 %v5588_v11, %v5690_v34  ;;  %v5749_v28 = vld [vmem:[%s9120_s4 + $0x38] sm:$0xff]  ;;  %v5752_v55 = vld [vmem:[%s9120_s4 + $0x50] sm:$0xff]  ;;  %v5751_v59 = vld [vmem:[%s9120_s4 + $0x48] sm:$0xff] }
 0x27f   : > { %6788 = vmatpush3.msra.mxu1 %v5712_v40  ;;  %v5604_v10 = vmax.f32 %v9179_v20, %v5570_v9  ;;  %v5708_v17 = vmax.f32 %v5572_v30, %v5674_v16  ;;  %v5741_v23 = vmax.f32 %v5605_v56, %v5707_v38  ;;  %v5755_v32 = vld [vmem:[%s9120_s4 + $0x68] sm:$0xff]  ;;  %v5754_v47 = vld [vmem:[%s9120_s4 + $0x60] sm:$0xff]  ;;  %v5757_v53 = vld [vmem:[%s9120_s4 + $0x78] sm:$0xff] }
 0x280   : > { %6789 = vmatprep.subr.mxu1 %v5727_v62  ;;  %v5758_v24 = vld [vmem:[%s9120_s4 + $0x80] sm:$0xff]  ;;  %v5761_v6 = vld [vmem:[%s9120_s4 + $0x98] sm:$0xff]  ;;  %v5760_v37 = vld [vmem:[%s9120_s4 + $0x90] sm:$0xff] }
 0x281   : > { %6790 = vmatpush3.msra.mxu1 %v5711_v61  ;;  %v5740_v4 = vmax.f32 %v5604_v10, %v5706_v42  ;;  %v5764_v46 = vld [vmem:[%s9120_s4 + $0xb0] sm:$0xff]  ;;  %v5763_v1 = vld [vmem:[%s9120_s4 + $0xa8] sm:$0xff]  ;;  %v5750_v2 = vld [vmem:[%s9120_s4 + $0x40] sm:$0xff] }
 0x282   : > { %6791 = vmatprep.subr.mxu1 %v5726_v25  ;;  %v5744_v40 = vld [vmem:[%s9120_s4 + $0x10] sm:$0xff]  ;;  %v5747_v41 = vld [vmem:[%s9120_s4 + $0x28] sm:$0xff]  ;;  %v5753_v19 = vld [vmem:[%s9120_s4 + $0x58] sm:$0xff] }
 0x283   : > { %6792 = vmatpush3.msra.mxu1 %v5710_v45  ;;  %v5756_v5 = vld [vmem:[%s9120_s4 + $0x70] sm:$0xff]  ;;  %v5759_v51 = vld [vmem:[%s9120_s4 + $0x88] sm:$0xff]  ;;  %v5762_v21 = vld [vmem:[%s9120_s4 + $0xa0] sm:$0xff] }
 0x284   : > { %6793 = vmatprep.subr.mxu1 %v5725_v54  ;;  %v5765_v62 = vld [vmem:[%s9120_s4 + $0xb8] sm:$0xff] }
 0x285   : > { %6794 = vmatpush3.msra.mxu1 %v5709_v35 }
 0x286   : > { %6795 = vmatprep.subr.mxu1 %v5724_v50 }
 0x287   : > { %6796 = vmatpush3.msra.mxu1 %v5708_v17 }
 0x288   : > { %7299 = vmatprep.subr.msk.mxu1 %vm4921_vm5, %v5741_v23  ;;  %5860 = vmatmul.mubr.f32.vlgmr.msra.gmra.mxu1 %v5742_v13 }
 0x289   : > { %7300 = vmatpush3.msk.msra.mxu1 %vm4921_vm5, %v5741_v23  ;;  %5864 = vmatprep.mubr.f32.mxu1 %v5746_v26 }
 0x28a   : > { %7301 = vmatprep.subr.mxu1 %v5740_v4 }
 0x28b   : > { %7302 = vmatpush3.msra.mxu1 %v5740_v4 }
 0x28c   : > { %5865 = vmatmul.mubr.f32.gmra.mxu1 %v5745_v49 }
 0x28d   : > { %5869 = vmatprep.mubr.f32.mxu1 %v5749_v28 }
 0x290   : > { %5870 = vmatmul.mubr.f32.gmra.mxu1 %v5748_v29 }
 0x291   : > { %5874 = vmatprep.mubr.f32.mxu1 %v5752_v55 }
 0x294   : > { %5875 = vmatmul.mubr.f32.gmra.mxu1 %v5751_v59 }
 0x295   : > { %5879 = vmatprep.mubr.f32.mxu1 %v5755_v32 }
 0x298   : > { %5880 = vmatmul.mubr.f32.gmra.mxu1 %v5754_v47 }
 0x299   : > { %5884 = vmatprep.mubr.f32.mxu1 %v5758_v24 }
 0x29c   : > { %5885 = vmatmul.mubr.f32.gmra.mxu1 %v5757_v53 }
 0x29d   : > { %5889 = vmatprep.mubr.f32.mxu1 %v5761_v6 }
 0x2a0   : > { %5890 = vmatmul.mubr.f32.gmra.mxu1 %v5760_v37 }
 0x2a1   : > { %5894 = vmatprep.mubr.f32.mxu1 %v5764_v46 }
 0x2a4   : > { %5895 = vmatmul.mubr.f32.gmra.mxu1 %v5763_v1 }
 0x2a5   : > { %7303 = vmatprep.mubr.msk.f32.mxu1 %vm5766_vm6, %v5744_v40 }
 0x2a8   : > { %7304 = vmatmul.mubr.msk.f32.vlgmr.msra.gmra.mxu1 %vm5766_vm6, %v5747_v41 }
 0x2a9   : > { %7306 = vmatprep.mubr.msk.f32.mxu1 %vm5766_vm6, %v5750_v2 }
 0x2ac   : > { %7307 = vmatmul.mubr.msk.f32.gmra.mxu1 %vm5766_vm6, %v5753_v19 }
 0x2ad   : > { %7309 = vmatprep.mubr.msk.f32.mxu1 %vm5766_vm6, %v5756_v5 }
 0x2b0   : > { %7310 = vmatmul.mubr.msk.f32.gmra.mxu1 %vm5766_vm6, %v5759_v51 }
 0x2b1   : > { %7312 = vmatprep.mubr.msk.f32.mxu1 %vm5766_vm6, %v5762_v21 }
 0x2b4   : > { %7313 = vmatmul.mubr.msk.f32.gmra.mxu1 %vm5766_vm6, %v5765_v62 }
 0x348   : > { %v6797_v18 = vpop.f32.mrf.mxu1 }
 0x34a   : > { %v6798_v33 = vpop.f32.mrf.mxu1 }
 0x34b   : > { %v6799_v8 = vadd.f32 %v6798_v33, %v6797_v18 }
 0x34c   : > { %v6800_v63 = vpop.f32.mrf.mxu1 }
 0x34e   : > { %v6801_v27 = vpop.f32.mrf.mxu1 }
 0x34f   : > { %v6802_v39 = vadd.f32 %v6801_v27, %v6800_v63 }
 0x350   : > { %v6803_v52 = vpop.f32.mrf.mxu1 }
 0x352   : > { %v6804_v57 = vpop.f32.mrf.mxu1 }
 0x353   : > { %v6805_v22 = vadd.f32 %v6804_v57, %v6803_v52 }
 0x354   : > { %v6806_v61 = vpop.f32.mrf.mxu1 }
 0x356   : > { %v6807_v58 = vpop.f32.mrf.mxu1 }
 0x357   : > { %v6808_v15 = vadd.f32 %v6807_v58, %v6806_v61 }
 0x358   : > { %v6809_v31 = vpop.f32.mrf.mxu1 }
 0x35a   : > { %v6810_v14 = vpop.f32.mrf.mxu1 }
 0x35b   : > { %v6811_v16 = vadd.f32 %v6810_v14, %v6809_v31 }
 0x35c   : > { %v6812_v48 = vpop.f32.mrf.mxu1 }
 0x35e   : > { %v6813_v12 = vpop.f32.mrf.mxu1 }
 0x35f   : > { %v6814_v3 = vadd.f32 %v6813_v12, %v6812_v48 }
 0x360   : > { %v6815_v25 = vpop.f32.mrf.mxu1 }
 0x362   : > { %v6816_v36 = vpop.f32.mrf.mxu1 }
 0x363   : > { %v6817_v17 = vadd.f32 %v6816_v36, %v6815_v25 }
 0x364   : > { %v6818_v43 = vpop.f32.mrf.mxu1 }
 0x366   : > { %v6819_v0 = vpop.f32.mrf.mxu1 }
 0x367   : > { %v6820_v13 = vadd.f32 %v6819_v0, %v6818_v43 }
 0x368   : > { %v7305_v11 = vpop.f32.mrf.mxu1 }
 0x369   : > { %v5972_v45 = vadd.f32 %v7305_v11, %v6802_v39 }
 0x36a   : > { %v5966_v44 = vpop.f32.mrf.mxu1 }
 0x36b   : > { %v5967_v7 = vadd.f32 %v6799_v8, %v5966_v44 }
 0x36c   : > { %v7308_v30 = vpop.f32.mrf.mxu1 }
 0x36d   : > { %v6511_v9 = vpack.c.bf16 %v5972_v45, %v5967_v7  ;;  %v5982_v34 = vadd.f32 %v7308_v30, %v6808_v15 }
 0x36e   : > { %v5976_v54 = vpop.f32.mrf.mxu1 }
 0x36f   : > { %6512 = vst [vmem:[%s224_s21] sm:$0xff] %v6511_v9   ;;  %v5977_v56 = vadd.f32 %v6805_v22, %v5976_v54 }
 0x370   : > { %v7311_v35 = vpop.f32.mrf.mxu1 }
 0x371   : > { %v6516_v60 = vpack.c.bf16 %v5982_v34, %v5977_v56  ;;  %v5992_v38 = vadd.f32 %v7311_v35, %v6814_v3 }
 0x372   : > { %v5986_v50 = vpop.f32.mrf.mxu1 }
 0x373   : > { %6528 = vst [vmem:[%s224_s21 + $0x8] sm:$0xff] %v6516_v60   ;;  %v5987_v20 = vadd.f32 %v6811_v16, %v5986_v50 }
 0x374   : > { %v7314_v10 = vpop.f32.mrf.mxu1 }
 0x375   : > { %v6521_v23 = vpack.c.bf16 %v5992_v38, %v5987_v20  ;;  %v6002_v26 = vadd.f32 %v7314_v10, %v6820_v13 }
 0x376   : > { %v5996_v42 = vpop.f32.mrf.mxu1 }
 0x377   : > { %6529 = vst [vmem:[%s224_s21 + $0x10] sm:$0xff] %v6521_v23   ;;  %v5997_v4 = vadd.f32 %v6817_v17, %v5996_v42 }
 0x379   : > { %v6526_v49 = vpack.c.bf16 %v6002_v26, %v5997_v4 }
 0x37b   : > { %6530 = vst [vmem:[%s224_s21 + $0x18] sm:$0xff] %v6526_v49  }
 0x37c PF: > { %s15_s18 = sadd.s32 1, %s7572_s18  }
 0x37d   : > { %p12_p4 = scmp.ge.s32.totalorder %s15_s18, 4  }
 0x37f   :  { %14 = sbr.rel (!%p12_p4) target bundleno = 1 (0x1), region = 78 }

</bundles_post_ra>
